<compile_context>
chip_gen: v5e
topology: v5e:2x2
jax: 0.10.0
libtpu: 0.0.40
codegen_flags: <defaults>
</compile_context>

<pallas_src>
import jax
import jax.numpy as jnp
import numpy as np
from jax.experimental import pallas as pl
from jax.experimental.pallas import tpu as pltpu

BN_EPS = 1e-5
LANE = 128

_VMEM_LIMIT_CACHE = None


def _vmem_limit():
    """Generation-aware VMEM budget: ~60% of physical (v7x ~38 MiB, v5e/v6e ~76 MiB)."""
    global _VMEM_LIMIT_CACHE
    if _VMEM_LIMIT_CACHE is None:
        try:
            cap = int(pltpu.get_tpu_info().vmem_capacity_bytes)
        except Exception:
            cap = 64 * 1024 * 1024
        _VMEM_LIMIT_CACHE = min(int(cap * 0.6), 100 * 1024 * 1024)
    return _VMEM_LIMIT_CACHE


def _round_up(x, m):
    return ((x + m - 1) // m) * m


def _compiler_params(semantics):
    return pltpu.CompilerParams(dimension_semantics=semantics,
                                vmem_limit_bytes=_vmem_limit())


# ---------------- Pallas kernel 1: fused ConvTranspose2d(4,2,1) + BN1 statistics ----------------

def pallas_convT_bnstats(x_pad, w1, H, W, Cp):
    """All 4 sub-pixel phases of the transpose conv in one kernel, interleaved output.

    x_pad: (N, H+2, W+2, Cin) bf16 -- input spatially zero-padded by 1.
    w1:    (2, 2, 4*Cin, Cp) bf16  -- per-phase weights, the 4 taps of a phase concatenated
                                      along the contraction dim (K = 4*Cin).
    Returns:
      y  (N, H, 2, W, 2*Cp) bf16 -- y[n,h,ph,w,pw*Cp+c] == up(x)[n,2h+ph,2w+pw,c]; reshaping
                                    to (N, 2H, 2W, Cp) is a free row-major reinterpretation.
      st (N, 8, Cp) f32          -- row 0: per-image sum, row 1: per-image sum-of-squares.
    """
    N, Hp, Wp, Cin = x_pad.shape
    K4 = w1.shape[2]

    def kernel(x_ref, w_ref, y_ref, st_ref):
        sum_acc = jnp.zeros((1, Cp), jnp.float32)
        sq_acc = jnp.zeros((1, Cp), jnp.float32)
        for ph in range(2):
            cols = []
            for pw in range(2):
                # 4 shifted windows of the resident x_pad block, concatenated along K
                a = jnp.concatenate(
                    [x_ref[0, ph + rl:ph + rl + H, pw + cl:pw + cl + W, :].reshape(H * W, Cin)
                     for rl in range(2) for cl in range(2)], axis=-1)          # (H*W, 4*Cin)
                r = jnp.dot(a, w_ref[ph, pw], preferred_element_type=jnp.float32)
                sum_acc = sum_acc + jnp.sum(r, axis=0, keepdims=True)
                sq_acc = sq_acc + jnp.sum(r * r, axis=0, keepdims=True)
                cols.append(r)
            # pw folded into the lane dim -> dense 256-wide store, already interleaved
            y_ref[0, :, ph, :, :] = jnp.concatenate(cols, axis=-1).reshape(
                H, W, 2 * Cp).astype(y_ref.dtype)
        st_ref[...] = jnp.concatenate(
            [sum_acc, sq_acc, jnp.zeros((6, Cp), jnp.float32)], axis=0)[None]

    # TODO(synk): whole-image blocks per grid step; very large decoder feature maps would need
    # a spatial row-tile grid axis with halo handling (manual make_async_copy double-buffering).
    return pl.pallas_call(
        kernel,
        out_shape=(jax.ShapeDtypeStruct((N, H, 2, W, 2 * Cp), jnp.bfloat16),
                   jax.ShapeDtypeStruct((N, 8, Cp), jnp.float32)),
        grid=(N,),
        in_specs=[pl.BlockSpec((1, Hp, Wp, Cin), lambda n: (n, 0, 0, 0)),
                  pl.BlockSpec((2, 2, K4, Cp), lambda n: (0, 0, 0, 0))],
        out_specs=(pl.BlockSpec((1, H, 2, W, 2 * Cp), lambda n: (n, 0, 0, 0, 0)),
                   pl.BlockSpec((1, 8, Cp), lambda n: (n, 0, 0))),
        compiler_params=_compiler_params(("parallel",)),
    )(x_pad, w1)


# ------- Pallas kernel 2: Conv2d(3,1,1) with fused BN1+ReLU input path + BN2 statistics ---------

def pallas_conv2_bn1_bnstats(y1, skip, scale1, shift1, wz, ws, Cp):
    """Conv2d 3x3/p1 over [BN1+ReLU(y1), skip] without materializing z1 or the concat.

    y1:   (N, Ho, Wo, Cp) bf16 -- raw conv-transpose output (pre-BN1).
    skip: (N, Ho, Wo, Cs) bf16 or None -- skip-connection channel stream.
    scale1/shift1: (Cp,) f32 -- BN1 affine from batch stats, applied in-kernel.
    wz:   (3, 3*Cp, Cp) bf16 -- z1-stream weights, 3 column taps of kernel row dh along K.
    ws:   (3, 3*Cs, Cp) bf16 or None -- skip-stream weights, same layout.
    """
    N, Ho, Wo, _ = y1.shape
    has_skip = skip is not None
    Cs = skip.shape[-1] if has_skip else 0
    Hp, Wp = Ho + 2, Wo + 2

    def kernel(*refs):
        if has_skip:
            (y1_ref, skip_ref, s1_ref, b1_ref, wz_ref, ws_ref,
             y2_ref, st_ref, zp_ref, sp_ref, acc_ref) = refs
        else:
            (y1_ref, s1_ref, b1_ref, wz_ref,
             y2_ref, st_ref, zp_ref, acc_ref) = refs
            skip_ref = ws_ref = sp_ref = None

        # BN1 + ReLU fused into conv2's input path.  Spatial zero-pad is applied AFTER
        # BN+ReLU (PyTorch semantics) by writing into a zeroed padded VMEM scratch.
        # Re-zeroed every grid step so results stay correct when the batch axis is split
        # across TensorCores (cheap: VMEM-local stores only).
        zp_ref[...] = jnp.zeros(zp_ref.shape, zp_ref.dtype)
        z1 = jnp.maximum(
            y1_ref[0].astype(jnp.float32) * s1_ref[0, :] + b1_ref[0, :], 0.0)
        zp_ref[1:Ho + 1, 1:Wo + 1, :] = z1.astype(zp_ref.dtype)
        if has_skip:
            sp_ref[...] = jnp.zeros(sp_ref.shape, sp_ref.dtype)
            sp_ref[1:Ho + 1, 1:Wo + 1, :] = skip_ref[0]

        acc_ref[...] = jnp.zeros(acc_ref.shape, acc_ref.dtype)
        for dh in range(3):
            az = jnp.concatenate(
                [zp_ref[dh:dh + Ho, dw:dw + Wo, :].reshape(Ho * Wo, Cp)
                 for dw in range(3)], axis=-1)                              # (Ho*Wo, 3*Cp)
            contrib = jnp.dot(az, wz_ref[dh], preferred_element_type=jnp.float32)
            if has_skip:
                asf = jnp.concatenate(
                    [sp_ref[dh:dh + Ho, dw:dw + Wo, :].reshape(Ho * Wo, Cs)
                     for dw in range(3)], axis=-1)                          # (Ho*Wo, 3*Cs)
                contrib = contrib + jnp.dot(asf, ws_ref[dh],
                                            preferred_element_type=jnp.float32)
            acc_ref[...] += contrib

        acc = acc_ref[...]
        y2_ref[...] = acc.reshape(1, Ho, Wo, Cp).astype(y2_ref.dtype)
        srow = jnp.sum(acc, axis=0, keepdims=True)
        qrow = jnp.sum(acc * acc, axis=0, keepdims=True)
        st_ref[...] = jnp.concatenate(
            [srow, qrow, jnp.zeros((6, Cp), jnp.float32)], axis=0)[None]

    ins = [y1]
    in_specs = [pl.BlockSpec((1, Ho, Wo, Cp), lambda n: (n, 0, 0, 0))]
    if has_skip:
        ins.append(skip)
        in_specs.append(pl.BlockSpec((1, Ho, Wo, Cs), lambda n: (n, 0, 0, 0)))
    ins += [scale1.reshape(1, Cp), shift1.reshape(1, Cp), wz]
    in_specs += [pl.BlockSpec((1, Cp), lambda n: (0, 0)),
                 pl.BlockSpec((1, Cp), lambda n: (0, 0)),
                 pl.BlockSpec(wz.shape, lambda n: (0, 0, 0))]
    if has_skip:
        ins.append(ws)
        in_specs.append(pl.BlockSpec(ws.shape, lambda n: (0, 0, 0)))

    scratch = [pltpu.VMEM((Hp, Wp, Cp), jnp.bfloat16)]
    if has_skip:
        scratch.append(pltpu.VMEM((Hp, Wp, Cs), jnp.bfloat16))
    scratch.append(pltpu.VMEM((Ho * Wo, Cp), jnp.float32))

    return pl.pallas_call(
        kernel,
        out_shape=(jax.ShapeDtypeStruct((N, Ho, Wo, Cp), jnp.bfloat16),  # bf16 y2 (half HBM)
                   jax.ShapeDtypeStruct((N, 8, Cp), jnp.float32)),
        grid=(N,),
        in_specs=in_specs,
        out_specs=(pl.BlockSpec((1, Ho, Wo, Cp), lambda n: (n, 0, 0, 0)),
                   pl.BlockSpec((1, 8, Cp), lambda n: (n, 0, 0))),
        scratch_shapes=scratch,
        compiler_params=_compiler_params(("parallel",)),
    )(*ins)


# ----------------------------- Pallas kernel 3: fused BN + ReLU ---------------------------------

def _bn_relu_kernel(x_ref, scale_ref, shift_ref, o_ref):
    o_ref[...] = jnp.maximum(
        x_ref[...].astype(jnp.float32) * scale_ref[...] + shift_ref[...], 0.0
    ).astype(o_ref.dtype)


def pallas_bn_relu(x, scale, shift, out_dtype, tm_target=1024):
    """x: (M, C) with C a multiple of 128; scale/shift: (C,). cdiv grid with masked tail."""
    m, c = x.shape
    tm = m if m <= tm_target else tm_target
    return pl.pallas_call(
        _bn_relu_kernel,
        out_shape=jax.ShapeDtypeStruct((m, c), out_dtype),
        grid=(pl.cdiv(m, tm),),
        in_specs=[pl.BlockSpec((tm, c), lambda i: (i, 0)),
                  pl.BlockSpec((1, c), lambda i: (0, 0)),
                  pl.BlockSpec((1, c), lambda i: (0, 0))],
        out_specs=pl.BlockSpec((tm, c), lambda i: (i, 0)),
        compiler_params=_compiler_params(("parallel",)),
    )(x, scale.reshape(1, c), shift.reshape(1, c))


def _bn_scale_shift(sum_c, sumsq_c, count, gamma, beta):
    """Training-mode BN affine from fused per-image sums (biased variance, like PyTorch)."""
    mean = sum_c / count
    var = jnp.maximum(sumsq_c / count - mean * mean, 0.0)
    scale = gamma * jax.lax.rsqrt(var + BN_EPS)
    shift = beta - mean * scale
    return scale, shift


# --------------------------------------- weight prep --------------------------------------------

def _conv1_weight(w_up, Cout, Cp):
    """(Cin, Cout, 4, 4) PyTorch ConvTranspose2d weight -> (2, 2, 4*Cin, Cp) per-phase big-K."""
    phs = []
    for ph in range(2):
        pws = []
        for pw in range(2):
            wt = jnp.concatenate(
                [w_up[:, :, 3 - ph - 2 * rl, 3 - pw - 2 * cl]
                 for rl in range(2) for cl in range(2)], axis=0)             # (4*Cin, Cout)
            pws.append(jnp.pad(wt, ((0, 0), (0, Cp - Cout))))
        phs.append(jnp.stack(pws, axis=0))
    return jnp.stack(phs, axis=0).astype(jnp.bfloat16)                        # (2, 2, 4*Cin, Cp)


def _conv2_weights(w2, Cout, Cp, Cs, has_skip):
    """(Cout, Cout+Cs, 3, 3) PyTorch Conv2d weight -> row-grouped big-K streams."""
    wz_rows, ws_rows = [], []
    for dh in range(3):
        wz_rows.append(jnp.concatenate(
            [jnp.pad(w2[:, :Cout, dh, dw].T, ((0, Cp - Cout), (0, Cp - Cout)))
             for dw in range(3)], axis=0))                                    # (3*Cp, Cp)
        if has_skip:
            ws_rows.append(jnp.concatenate(
                [jnp.pad(w2[:, Cout:Cout + Cs, dh, dw].T, ((0, 0), (0, Cp - Cout)))
                 for dw in range(3)], axis=0))                                # (3*Cs, Cp)
    wz = jnp.stack(wz_rows, axis=0).astype(jnp.bfloat16)
    ws = jnp.stack(ws_rows, axis=0).astype(jnp.bfloat16) if has_skip else None
    return wz, ws


# --------------------------------------- parameters ---------------------------------------------

def make_params(key, ch_in, ch_out, skip_in):
    k1, k2, k3, k4, k5, k6 = jax.random.split(key, 6)
    conv2_in = ch_out + skip_in
    return dict(
        # PyTorch ConvTranspose2d weight layout: (ch_in, ch_out, 4, 4); use_bn=True -> no bias
        up_w=0.1 * jax.random.normal(k1, (ch_in, ch_out, 4, 4), jnp.float32),
        # PyTorch Conv2d weight layout: (ch_out, conv2_in, 3, 3); no bias
        conv2_w=0.1 * jax.random.normal(k2, (ch_out, conv2_in, 3, 3), jnp.float32),
        bn1_gamma=1.0 + 0.1 * jax.random.normal(k3, (ch_out,), jnp.float32),
        bn1_beta=0.1 * jax.random.normal(k4, (ch_out,), jnp.float32),
        bn2_gamma=1.0 + 0.1 * jax.random.normal(k5, (ch_out,), jnp.float32),
        bn2_beta=0.1 * jax.random.normal(k6, (ch_out,), jnp.float32),
    )


# --------------------------------------- forward pass -------------------------------------------

def upsample_block_forward(params, x_nchw, skip_nchw=None):
    """Forward pass of UpsampleBlock. Inputs/outputs are NCHW like PyTorch."""
    x = jnp.transpose(x_nchw, (0, 2, 3, 1))                       # -> NHWC f32
    N, H, W, Cin = x.shape
    w_up = params["up_w"]                                         # (Cin, Cout, 4, 4)
    Cout = w_up.shape[1]
    # TODO(synk): for tiny Cout (like the test's 4) a width/channel fold would avoid the
    # 128-lane padding bandwidth; production decoder channels are >=64 so we keep lane padding.
    Cp = _round_up(Cout, LANE)
    Ho, Wo = 2 * H, 2 * W
    M = N * Ho * Wo

    # ---- ConvTranspose2d(4,2,1): one fused kernel, interleaved output + BN1 stats ----------
    x_pad = jnp.pad(x, ((0, 0), (1, 1), (1, 1), (0, 0))).astype(jnp.bfloat16)
    w1 = _conv1_weight(w_up, Cout, Cp)
    y1i, st1 = pallas_convT_bnstats(x_pad, w1, H, W, Cp)
    y1 = y1i.reshape(N, Ho, Wo, Cp)             # free reshape (N,H,2,W,2*Cp) -> (N,2H,2W,Cp)

    g1 = jnp.pad(params["bn1_gamma"], (0, Cp - Cout))
    b1 = jnp.pad(params["bn1_beta"], (0, Cp - Cout))
    scale1, shift1 = _bn_scale_shift(jnp.sum(st1[:, 0, :], axis=0),
                                     jnp.sum(st1[:, 1, :], axis=0), M, g1, b1)

    # ---- Conv2d(3,1,1) with BN1+ReLU fused into its input path; skip as a second stream ----
    has_skip = skip_nchw is not None
    skip = (jnp.transpose(skip_nchw, (0, 2, 3, 1)).astype(jnp.bfloat16) if has_skip else None)
    Cs = skip.shape[-1] if has_skip else 0
    wz, ws = _conv2_weights(params["conv2_w"], Cout, Cp, Cs, has_skip)
    y2, st2 = pallas_conv2_bn1_bnstats(y1, skip, scale1, shift1, wz, ws, Cp)

    # ---- BN2 + ReLU (memory-bound fused pass) -----------------------------------------------
    g2 = jnp.pad(params["bn2_gamma"], (0, Cp - Cout))
    b2 = jnp.pad(params["bn2_beta"], (0, Cp - Cout))
    scale2, shift2 = _bn_scale_shift(jnp.sum(st2[:, 0, :], axis=0),
                                     jnp.sum(st2[:, 1, :], axis=0), M, g2, b2)
    z2 = pallas_bn_relu(y2.reshape(M, Cp), scale2, shift2,
                        out_dtype=jnp.float32).reshape(N, Ho, Wo, Cp)

    # drop lane padding, back to NCHW
    return jnp.transpose(z2[..., :Cout], (0, 3, 1, 2))


# ------------------------- numpy reference (PyTorch semantics) ----------------------------------

def numpy_reference(params, x_nchw, skip_nchw):
    x = np.asarray(x_nchw, np.float64)
    w_up = np.asarray(params["up_w"], np.float64)
    g1 = np.asarray(params["bn1_gamma"], np.float64)
    b1 = np.asarray(params["bn1_beta"], np.float64)
    w2 = np.asarray(params["conv2_w"], np.float64)
    g2 = np.asarray(params["bn2_gamma"], np.float64)
    b2 = np.asarray(params["bn2_beta"], np.float64)

    N, Cin, H, W = x.shape
    Cout = w_up.shape[1]
    s, p, k = 2, 1, 4
    Ho, Wo = (H - 1) * s - 2 * p + k, (W - 1) * s - 2 * p + k

    y = np.zeros((N, Cout, Ho, Wo))
    for ih in range(H):
        for iw in range(W):
            for kh in range(k):
                for kw in range(k):
                    oh, ow = ih * s - p + kh, iw * s - p + kw
                    if 0 <= oh < Ho and 0 <= ow < Wo:
                        y[:, :, oh, ow] += x[:, :, ih, iw] @ w_up[:, :, kh, kw]

    def bn_relu(t, g, b):
        m = t.mean(axis=(0, 2, 3), keepdims=True)
        v = t.var(axis=(0, 2, 3), keepdims=True)   # biased, as in PyTorch BN forward
        tn = g[None, :, None, None] * (t - m) / np.sqrt(v + BN_EPS) + b[None, :, None, None]
        return np.maximum(tn, 0.0)

    z = bn_relu(y, g1, b1)
    if skip_nchw is not None:
        z = np.concatenate([z, np.asarray(skip_nchw, np.float64)], axis=1)
    zp = np.pad(z, ((0, 0), (0, 0), (1, 1), (1, 1)))
    y2 = np.zeros((N, Cout, Ho, Wo))
    for kh in range(3):
        for kw in range(3):
            y2 += np.einsum("nchw,oc->nohw", zp[:, :, kh:kh + Ho, kw:kw + Wo], w2[:, :, kh, kw])
    return bn_relu(y2, g2, b2)


# -------------------------------------------- main ----------------------------------------------

if __name__ == "__main__":
    key = jax.random.PRNGKey(0)
    kx, ks, kp = jax.random.split(key, 3)

    # small shapes: batch=2, ch_in=8, ch_out=4, skip_in=4, spatial 8x8 -> 16x16 after upsample
    N, ch_in, H, W = 2, 8, 8, 8
    ch_out, skip_in = 4, 4

    x = jax.random.normal(kx, (N, ch_in, H, W), jnp.float32)                 # NCHW
    skip = jax.random.normal(ks, (N, skip_in, 2 * H, 2 * W), jnp.float32)    # NCHW
    params = make_params(kp, ch_in, ch_out, skip_in)

    fwd = jax.jit(upsample_block_forward)
    out = jax.block_until_ready(fwd(params, x, skip))

    ref = numpy_reference(params, x, skip)
    assert out.shape == ref.shape == (N, ch_out, 2 * H, 2 * W)
    # tolerance reflects bf16 MXU operands (f32 accumulation) and bf16 intermediates
    np.testing.assert_allclose(np.asarray(out, np.float64), ref, atol=4e-2, rtol=4e-2)

    print("KERNEL_OK")
</pallas_src>

<mosaic_0001>
module attributes {stable_mosaic.version = 11 : i64} {
  func.func @kernel(%arg0: i32, %arg1: memref<1x10x10x8xbf16, #tpu.memory_space<vmem>>, %arg2: memref<2x2x32x128xbf16, #tpu.memory_space<vmem>>, %arg3: memref<1x8x2x8x256xbf16, #tpu.memory_space<vmem>>, %arg4: memref<1x8x128xf32, #tpu.memory_space<vmem>>) attributes {dimension_semantics = [#tpu.dimension_semantics<parallel>], iteration_bounds = array<i64: 2>, scalar_prefetch = 0 : i64, scratch_operands = 0 : i64, tpu.core_type = #tpu.core_type<tc>, window_params = [{transform_indices = @transform_0, window_bounds = array<i64: 1, 10, 10, 8>}, {pipeline_mode = #tpu.pipeline_mode<synchronous>, transform_indices = @transform_1, window_bounds = array<i64: 2, 2, 32, 128>}, {transform_indices = @transform_2, window_bounds = array<i64: 1, 8, 2, 8, 256>}, {transform_indices = @transform_3, window_bounds = array<i64: 1, 8, 128>}]} {
    %cst = arith.constant 0.000000e+00 : f32
    %0 = vector.broadcast %cst : f32 to vector<1x128xf32>
    %cst_0 = arith.constant 0.000000e+00 : f32
    %1 = vector.broadcast %cst_0 : f32 to vector<1x128xf32>
    %c0 = arith.constant 0 : index
    %c0_1 = arith.constant 0 : index
    %c0_2 = arith.constant 0 : index
    %c0_3 = arith.constant 0 : index
    %2 = vector.load %arg1[%c0, %c0_1, %c0_2, %c0_3] : memref<1x10x10x8xbf16, #tpu.memory_space<vmem>>, vector<1x8x8x8xbf16>
    %3 = vector.shape_cast %2 : vector<1x8x8x8xbf16> to vector<8x8x8xbf16>
    %4 = vector.shape_cast %3 : vector<8x8x8xbf16> to vector<64x8xbf16>
    %c0_4 = arith.constant 0 : index
    %c0_5 = arith.constant 0 : index
    %c1 = arith.constant 1 : index
    %c0_6 = arith.constant 0 : index
    %5 = vector.load %arg1[%c0_4, %c0_5, %c1, %c0_6] : memref<1x10x10x8xbf16, #tpu.memory_space<vmem>>, vector<1x8x8x8xbf16>
    %6 = vector.shape_cast %5 : vector<1x8x8x8xbf16> to vector<8x8x8xbf16>
    %7 = vector.shape_cast %6 : vector<8x8x8xbf16> to vector<64x8xbf16>
    %c0_7 = arith.constant 0 : index
    %c1_8 = arith.constant 1 : index
    %c0_9 = arith.constant 0 : index
    %c0_10 = arith.constant 0 : index
    %8 = vector.load %arg1[%c0_7, %c1_8, %c0_9, %c0_10] : memref<1x10x10x8xbf16, #tpu.memory_space<vmem>>, vector<1x8x8x8xbf16>
    %9 = vector.shape_cast %8 : vector<1x8x8x8xbf16> to vector<8x8x8xbf16>
    %10 = vector.shape_cast %9 : vector<8x8x8xbf16> to vector<64x8xbf16>
    %c0_11 = arith.constant 0 : index
    %c1_12 = arith.constant 1 : index
    %c1_13 = arith.constant 1 : index
    %c0_14 = arith.constant 0 : index
    %11 = vector.load %arg1[%c0_11, %c1_12, %c1_13, %c0_14] : memref<1x10x10x8xbf16, #tpu.memory_space<vmem>>, vector<1x8x8x8xbf16>
    %12 = vector.shape_cast %11 : vector<1x8x8x8xbf16> to vector<8x8x8xbf16>
    %13 = vector.shape_cast %12 : vector<8x8x8xbf16> to vector<64x8xbf16>
    %14 = tpu.concatenate %4, %7, %10, %13 in 1 : vector<64x8xbf16>, vector<64x8xbf16>, vector<64x8xbf16>, vector<64x8xbf16> -> vector<64x32xbf16>
    %c0_15 = arith.constant 0 : index
    %c0_16 = arith.constant 0 : index
    %c0_17 = arith.constant 0 : index
    %c0_18 = arith.constant 0 : index
    %15 = vector.load %arg2[%c0_15, %c0_16, %c0_17, %c0_18] : memref<2x2x32x128xbf16, #tpu.memory_space<vmem>>, vector<1x1x32x128xbf16>
    %16 = vector.shape_cast %15 : vector<1x1x32x128xbf16> to vector<32x128xbf16>
    %cst_19 = arith.constant dense<0.000000e+00> : vector<64x128xf32>
    %17 = tpu.matmul %14, %16, %cst_19 {dimension_numbers = #tpu.dot_dimension_numbers<[1], [0], [0], [1], [0, 0, 1, 1], [], []>} : vector<64x32xbf16>, vector<32x128xbf16>, vector<64x128xf32> -> vector<64x128xf32>
    %cst_20 = arith.constant dense<0.000000e+00> : vector<128xf32>
    %18 = vector.multi_reduction <add>, %17, %cst_20 [0] : vector<64x128xf32> to vector<128xf32>
    %19 = vector.shape_cast %18 : vector<128xf32> to vector<1x128xf32>
    %20 = arith.addf %0, %19 : vector<1x128xf32>
    %21 = arith.mulf %17, %17 : vector<64x128xf32>
    %cst_21 = arith.constant dense<0.000000e+00> : vector<128xf32>
    %22 = vector.multi_reduction <add>, %21, %cst_21 [0] : vector<64x128xf32> to vector<128xf32>
    %23 = vector.shape_cast %22 : vector<128xf32> to vector<1x128xf32>
    %24 = arith.addf %1, %23 : vector<1x128xf32>
    %c0_22 = arith.constant 0 : index
    %c0_23 = arith.constant 0 : index
    %c1_24 = arith.constant 1 : index
    %c0_25 = arith.constant 0 : index
    %25 = vector.load %arg1[%c0_22, %c0_23, %c1_24, %c0_25] : memref<1x10x10x8xbf16, #tpu.memory_space<vmem>>, vector<1x8x8x8xbf16>
    %26 = vector.shape_cast %25 : vector<1x8x8x8xbf16> to vector<8x8x8xbf16>
    %27 = vector.shape_cast %26 : vector<8x8x8xbf16> to vector<64x8xbf16>
    %c0_26 = arith.constant 0 : index
    %c0_27 = arith.constant 0 : index
    %c2 = arith.constant 2 : index
    %c0_28 = arith.constant 0 : index
    %28 = vector.load %arg1[%c0_26, %c0_27, %c2, %c0_28] : memref<1x10x10x8xbf16, #tpu.memory_space<vmem>>, vector<1x8x8x8xbf16>
    %29 = vector.shape_cast %28 : vector<1x8x8x8xbf16> to vector<8x8x8xbf16>
    %30 = vector.shape_cast %29 : vector<8x8x8xbf16> to vector<64x8xbf16>
    %c0_29 = arith.constant 0 : index
    %c1_30 = arith.constant 1 : index
    %c1_31 = arith.constant 1 : index
    %c0_32 = arith.constant 0 : index
    %31 = vector.load %arg1[%c0_29, %c1_30, %c1_31, %c0_32] : memref<1x10x10x8xbf16, #tpu.memory_space<vmem>>, vector<1x8x8x8xbf16>
    %32 = vector.shape_cast %31 : vector<1x8x8x8xbf16> to vector<8x8x8xbf16>
    %33 = vector.shape_cast %32 : vector<8x8x8xbf16> to vector<64x8xbf16>
    %c0_33 = arith.constant 0 : index
    %c1_34 = arith.constant 1 : index
    %c2_35 = arith.constant 2 : index
    %c0_36 = arith.constant 0 : index
    %34 = vector.load %arg1[%c0_33, %c1_34, %c2_35, %c0_36] : memref<1x10x10x8xbf16, #tpu.memory_space<vmem>>, vector<1x8x8x8xbf16>
    %35 = vector.shape_cast %34 : vector<1x8x8x8xbf16> to vector<8x8x8xbf16>
    %36 = vector.shape_cast %35 : vector<8x8x8xbf16> to vector<64x8xbf16>
    %37 = tpu.concatenate %27, %30, %33, %36 in 1 : vector<64x8xbf16>, vector<64x8xbf16>, vector<64x8xbf16>, vector<64x8xbf16> -> vector<64x32xbf16>
    %c0_37 = arith.constant 0 : index
    %c1_38 = arith.constant 1 : index
    %c0_39 = arith.constant 0 : index
    %c0_40 = arith.constant 0 : index
    %38 = vector.load %arg2[%c0_37, %c1_38, %c0_39, %c0_40] : memref<2x2x32x128xbf16, #tpu.memory_space<vmem>>, vector<1x1x32x128xbf16>
    %39 = vector.shape_cast %38 : vector<1x1x32x128xbf16> to vector<32x128xbf16>
    %cst_41 = arith.constant dense<0.000000e+00> : vector<64x128xf32>
    %40 = tpu.matmul %37, %39, %cst_41 {dimension_numbers = #tpu.dot_dimension_numbers<[1], [0], [0], [1], [0, 0, 1, 1], [], []>} : vector<64x32xbf16>, vector<32x128xbf16>, vector<64x128xf32> -> vector<64x128xf32>
    %cst_42 = arith.constant dense<0.000000e+00> : vector<128xf32>
    %41 = vector.multi_reduction <add>, %40, %cst_42 [0] : vector<64x128xf32> to vector<128xf32>
    %42 = vector.shape_cast %41 : vector<128xf32> to vector<1x128xf32>
    %43 = arith.addf %20, %42 : vector<1x128xf32>
    %44 = arith.mulf %40, %40 : vector<64x128xf32>
    %cst_43 = arith.constant dense<0.000000e+00> : vector<128xf32>
    %45 = vector.multi_reduction <add>, %44, %cst_43 [0] : vector<64x128xf32> to vector<128xf32>
    %46 = vector.shape_cast %45 : vector<128xf32> to vector<1x128xf32>
    %47 = arith.addf %24, %46 : vector<1x128xf32>
    %48 = tpu.concatenate %17, %40 in 1 : vector<64x128xf32>, vector<64x128xf32> -> vector<64x256xf32>
    %49 = vector.shape_cast %48 : vector<64x256xf32> to vector<8x8x256xf32>
    %50 = arith.truncf %49 : vector<8x8x256xf32> to vector<8x8x256xbf16>
    %c0_44 = arith.constant 0 : index
    %c0_45 = arith.constant 0 : index
    %c0_46 = arith.constant 0 : index
    %c0_47 = arith.constant 0 : index
    %c0_48 = arith.constant 0 : index
    %51 = vector.load %arg3[%c0_44, %c0_45, %c0_46, %c0_47, %c0_48] : memref<1x8x2x8x256xbf16, #tpu.memory_space<vmem>>, vector<1x8x1x8x256xbf16>
    %52 = vector.shape_cast %51 : vector<1x8x1x8x256xbf16> to vector<8x8x256xbf16>
    %53 = vector.shape_cast %50 : vector<8x8x256xbf16> to vector<1x8x1x8x256xbf16>
    tpu.vector_store %arg3[%c0_44, %c0_45, %c0_46, %c0_47, %c0_48], %53 {strides = array<i32>} : memref<1x8x2x8x256xbf16, #tpu.memory_space<vmem>>, vector<1x8x1x8x256xbf16>,
    %c0_49 = arith.constant 0 : index
    %c1_50 = arith.constant 1 : index
    %c0_51 = arith.constant 0 : index
    %c0_52 = arith.constant 0 : index
    %54 = vector.load %arg1[%c0_49, %c1_50, %c0_51, %c0_52] : memref<1x10x10x8xbf16, #tpu.memory_space<vmem>>, vector<1x8x8x8xbf16>
    %55 = vector.shape_cast %54 : vector<1x8x8x8xbf16> to vector<8x8x8xbf16>
    %56 = vector.shape_cast %55 : vector<8x8x8xbf16> to vector<64x8xbf16>
    %c0_53 = arith.constant 0 : index
    %c1_54 = arith.constant 1 : index
    %c1_55 = arith.constant 1 : index
    %c0_56 = arith.constant 0 : index
    %57 = vector.load %arg1[%c0_53, %c1_54, %c1_55, %c0_56] : memref<1x10x10x8xbf16, #tpu.memory_space<vmem>>, vector<1x8x8x8xbf16>
    %58 = vector.shape_cast %57 : vector<1x8x8x8xbf16> to vector<8x8x8xbf16>
    %59 = vector.shape_cast %58 : vector<8x8x8xbf16> to vector<64x8xbf16>
    %c0_57 = arith.constant 0 : index
    %c2_58 = arith.constant 2 : index
    %c0_59 = arith.constant 0 : index
    %c0_60 = arith.constant 0 : index
    %60 = vector.load %arg1[%c0_57, %c2_58, %c0_59, %c0_60] : memref<1x10x10x8xbf16, #tpu.memory_space<vmem>>, vector<1x8x8x8xbf16>
    %61 = vector.shape_cast %60 : vector<1x8x8x8xbf16> to vector<8x8x8xbf16>
    %62 = vector.shape_cast %61 : vector<8x8x8xbf16> to vector<64x8xbf16>
    %c0_61 = arith.constant 0 : index
    %c2_62 = arith.constant 2 : index
    %c1_63 = arith.constant 1 : index
    %c0_64 = arith.constant 0 : index
    %63 = vector.load %arg1[%c0_61, %c2_62, %c1_63, %c0_64] : memref<1x10x10x8xbf16, #tpu.memory_space<vmem>>, vector<1x8x8x8xbf16>
    %64 = vector.shape_cast %63 : vector<1x8x8x8xbf16> to vector<8x8x8xbf16>
    %65 = vector.shape_cast %64 : vector<8x8x8xbf16> to vector<64x8xbf16>
    %66 = tpu.concatenate %56, %59, %62, %65 in 1 : vector<64x8xbf16>, vector<64x8xbf16>, vector<64x8xbf16>, vector<64x8xbf16> -> vector<64x32xbf16>
    %c1_65 = arith.constant 1 : index
    %c0_66 = arith.constant 0 : index
    %c0_67 = arith.constant 0 : index
    %c0_68 = arith.constant 0 : index
    %67 = vector.load %arg2[%c1_65, %c0_66, %c0_67, %c0_68] : memref<2x2x32x128xbf16, #tpu.memory_space<vmem>>, vector<1x1x32x128xbf16>
    %68 = vector.shape_cast %67 : vector<1x1x32x128xbf16> to vector<32x128xbf16>
    %cst_69 = arith.constant dense<0.000000e+00> : vector<64x128xf32>
    %69 = tpu.matmul %66, %68, %cst_69 {dimension_numbers = #tpu.dot_dimension_numbers<[1], [0], [0], [1], [0, 0, 1, 1], [], []>} : vector<64x32xbf16>, vector<32x128xbf16>, vector<64x128xf32> -> vector<64x128xf32>
    %cst_70 = arith.constant dense<0.000000e+00> : vector<128xf32>
    %70 = vector.multi_reduction <add>, %69, %cst_70 [0] : vector<64x128xf32> to vector<128xf32>
    %71 = vector.shape_cast %70 : vector<128xf32> to vector<1x128xf32>
    %72 = arith.addf %43, %71 : vector<1x128xf32>
    %73 = arith.mulf %69, %69 : vector<64x128xf32>
    %cst_71 = arith.constant dense<0.000000e+00> : vector<128xf32>
    %74 = vector.multi_reduction <add>, %73, %cst_71 [0] : vector<64x128xf32> to vector<128xf32>
    %75 = vector.shape_cast %74 : vector<128xf32> to vector<1x128xf32>
    %76 = arith.addf %47, %75 : vector<1x128xf32>
    %c0_72 = arith.constant 0 : index
    %c1_73 = arith.constant 1 : index
    %c1_74 = arith.constant 1 : index
    %c0_75 = arith.constant 0 : index
    %77 = vector.load %arg1[%c0_72, %c1_73, %c1_74, %c0_75] : memref<1x10x10x8xbf16, #tpu.memory_space<vmem>>, vector<1x8x8x8xbf16>
    %78 = vector.shape_cast %77 : vector<1x8x8x8xbf16> to vector<8x8x8xbf16>
    %79 = vector.shape_cast %78 : vector<8x8x8xbf16> to vector<64x8xbf16>
    %c0_76 = arith.constant 0 : index
    %c1_77 = arith.constant 1 : index
    %c2_78 = arith.constant 2 : index
    %c0_79 = arith.constant 0 : index
    %80 = vector.load %arg1[%c0_76, %c1_77, %c2_78, %c0_79] : memref<1x10x10x8xbf16, #tpu.memory_space<vmem>>, vector<1x8x8x8xbf16>
    %81 = vector.shape_cast %80 : vector<1x8x8x8xbf16> to vector<8x8x8xbf16>
    %82 = vector.shape_cast %81 : vector<8x8x8xbf16> to vector<64x8xbf16>
    %c0_80 = arith.constant 0 : index
    %c2_81 = arith.constant 2 : index
    %c1_82 = arith.constant 1 : index
    %c0_83 = arith.constant 0 : index
    %83 = vector.load %arg1[%c0_80, %c2_81, %c1_82, %c0_83] : memref<1x10x10x8xbf16, #tpu.memory_space<vmem>>, vector<1x8x8x8xbf16>
    %84 = vector.shape_cast %83 : vector<1x8x8x8xbf16> to vector<8x8x8xbf16>
    %85 = vector.shape_cast %84 : vector<8x8x8xbf16> to vector<64x8xbf16>
    %c0_84 = arith.constant 0 : index
    %c2_85 = arith.constant 2 : index
    %c2_86 = arith.constant 2 : index
    %c0_87 = arith.constant 0 : index
    %86 = vector.load %arg1[%c0_84, %c2_85, %c2_86, %c0_87] : memref<1x10x10x8xbf16, #tpu.memory_space<vmem>>, vector<1x8x8x8xbf16>
    %87 = vector.shape_cast %86 : vector<1x8x8x8xbf16> to vector<8x8x8xbf16>
    %88 = vector.shape_cast %87 : vector<8x8x8xbf16> to vector<64x8xbf16>
    %89 = tpu.concatenate %79, %82, %85, %88 in 1 : vector<64x8xbf16>, vector<64x8xbf16>, vector<64x8xbf16>, vector<64x8xbf16> -> vector<64x32xbf16>
    %c1_88 = arith.constant 1 : index
    %c1_89 = arith.constant 1 : index
    %c0_90 = arith.constant 0 : index
    %c0_91 = arith.constant 0 : index
    %90 = vector.load %arg2[%c1_88, %c1_89, %c0_90, %c0_91] : memref<2x2x32x128xbf16, #tpu.memory_space<vmem>>, vector<1x1x32x128xbf16>
    %91 = vector.shape_cast %90 : vector<1x1x32x128xbf16> to vector<32x128xbf16>
    %cst_92 = arith.constant dense<0.000000e+00> : vector<64x128xf32>
    %92 = tpu.matmul %89, %91, %cst_92 {dimension_numbers = #tpu.dot_dimension_numbers<[1], [0], [0], [1], [0, 0, 1, 1], [], []>} : vector<64x32xbf16>, vector<32x128xbf16>, vector<64x128xf32> -> vector<64x128xf32>
    %cst_93 = arith.constant dense<0.000000e+00> : vector<128xf32>
    %93 = vector.multi_reduction <add>, %92, %cst_93 [0] : vector<64x128xf32> to vector<128xf32>
    %94 = vector.shape_cast %93 : vector<128xf32> to vector<1x128xf32>
    %95 = arith.addf %72, %94 : vector<1x128xf32>
    %96 = arith.mulf %92, %92 : vector<64x128xf32>
    %cst_94 = arith.constant dense<0.000000e+00> : vector<128xf32>
    %97 = vector.multi_reduction <add>, %96, %cst_94 [0] : vector<64x128xf32> to vector<128xf32>
    %98 = vector.shape_cast %97 : vector<128xf32> to vector<1x128xf32>
    %99 = arith.addf %76, %98 : vector<1x128xf32>
    %100 = tpu.concatenate %69, %92 in 1 : vector<64x128xf32>, vector<64x128xf32> -> vector<64x256xf32>
    %101 = vector.shape_cast %100 : vector<64x256xf32> to vector<8x8x256xf32>
    %102 = arith.truncf %101 : vector<8x8x256xf32> to vector<8x8x256xbf16>
    %c0_95 = arith.constant 0 : index
    %c0_96 = arith.constant 0 : index
    %c1_97 = arith.constant 1 : index
    %c0_98 = arith.constant 0 : index
    %c0_99 = arith.constant 0 : index
    %103 = vector.load %arg3[%c0_95, %c0_96, %c1_97, %c0_98, %c0_99] : memref<1x8x2x8x256xbf16, #tpu.memory_space<vmem>>, vector<1x8x1x8x256xbf16>
    %104 = vector.shape_cast %103 : vector<1x8x1x8x256xbf16> to vector<8x8x256xbf16>
    %105 = vector.shape_cast %102 : vector<8x8x256xbf16> to vector<1x8x1x8x256xbf16>
    tpu.vector_store %arg3[%c0_95, %c0_96, %c1_97, %c0_98, %c0_99], %105 {strides = array<i32>} : memref<1x8x2x8x256xbf16, #tpu.memory_space<vmem>>, vector<1x8x1x8x256xbf16>,
    %cst_100 = arith.constant 0.000000e+00 : f32
    %106 = vector.broadcast %cst_100 : f32 to vector<6x128xf32>
    %107 = tpu.concatenate %95, %99, %106 in 0 : vector<1x128xf32>, vector<1x128xf32>, vector<6x128xf32> -> vector<8x128xf32>
    %108 = vector.shape_cast %107 : vector<8x128xf32> to vector<1x8x128xf32>
    %c0_101 = arith.constant 0 : index
    %c0_102 = arith.constant 0 : index
    %c0_103 = arith.constant 0 : index
    %109 = vector.load %arg4[%c0_101, %c0_102, %c0_103] : memref<1x8x128xf32, #tpu.memory_space<vmem>>, vector<1x8x128xf32>
    tpu.vector_store %arg4[%c0_101, %c0_102, %c0_103], %108 {strides = array<i32>} : memref<1x8x128xf32, #tpu.memory_space<vmem>>, vector<1x8x128xf32>,
    return
  }
  func.func @transform_0(%arg0: i32) -> (i32, i32, i32, i32) {
    %c0_i32 = arith.constant 0 : i32
    %c0_i32_0 = arith.constant 0 : i32
    %c0_i32_1 = arith.constant 0 : i32
    %c0_i32_2 = arith.constant 0 : i32
    return %arg0, %c0_i32, %c0_i32_0, %c0_i32_1 : i32, i32, i32, i32
  }
  func.func @transform_1(%arg0: i32) -> (i32, i32, i32, i32) {
    %c0_i32 = arith.constant 0 : i32
    %c0_i32_0 = arith.constant 0 : i32
    %c0_i32_1 = arith.constant 0 : i32
    %c0_i32_2 = arith.constant 0 : i32
    %c0_i32_3 = arith.constant 0 : i32
    return %c0_i32, %c0_i32_0, %c0_i32_1, %c0_i32_2 : i32, i32, i32, i32
  }
  func.func @transform_2(%arg0: i32) -> (i32, i32, i32, i32, i32) {
    %c0_i32 = arith.constant 0 : i32
    %c0_i32_0 = arith.constant 0 : i32
    %c0_i32_1 = arith.constant 0 : i32
    %c0_i32_2 = arith.constant 0 : i32
    %c0_i32_3 = arith.constant 0 : i32
    return %arg0, %c0_i32, %c0_i32_0, %c0_i32_1, %c0_i32_2 : i32, i32, i32, i32, i32
  }
  func.func @transform_3(%arg0: i32) -> (i32, i32, i32) {
    %c0_i32 = arith.constant 0 : i32
    %c0_i32_0 = arith.constant 0 : i32
    %c0_i32_1 = arith.constant 0 : i32
    return %arg0, %c0_i32, %c0_i32_0 : i32, i32, i32
  }
}

module attributes {stable_mosaic.version = 11 : i64} {
  func.func @kernel(%arg0: i32, %arg1: memref<1x16x16x128xbf16, #tpu.memory_space<vmem>>, %arg2: memref<1x16x16x4xbf16, #tpu.memory_space<vmem>>, %arg3: memref<1x128xf32, #tpu.memory_space<vmem>>, %arg4: memref<1x128xf32, #tpu.memory_space<vmem>>, %arg5: memref<3x384x128xbf16, #tpu.memory_space<vmem>>, %arg6: memref<3x12x128xbf16, #tpu.memory_space<vmem>>, %arg7: memref<1x16x16x128xbf16, #tpu.memory_space<vmem>>, %arg8: memref<1x8x128xf32, #tpu.memory_space<vmem>>, %arg9: memref<18x18x128xbf16, #tpu.memory_space<vmem>>, %arg10: memref<18x18x4xbf16, #tpu.memory_space<vmem>>, %arg11: memref<256x128xf32, #tpu.memory_space<vmem>>) attributes {dimension_semantics = [#tpu.dimension_semantics<parallel>], iteration_bounds = array<i64: 2>, scalar_prefetch = 0 : i64, scratch_operands = 3 : i64, tpu.core_type = #tpu.core_type<tc>, window_params = [{transform_indices = @transform_0, window_bounds = array<i64: 1, 16, 16, 128>}, {transform_indices = @transform_1, window_bounds = array<i64: 1, 16, 16, 4>}, {pipeline_mode = #tpu.pipeline_mode<synchronous>, transform_indices = @transform_2, window_bounds = array<i64: 1, 128>}, {pipeline_mode = #tpu.pipeline_mode<synchronous>, transform_indices = @transform_3, window_bounds = array<i64: 1, 128>}, {pipeline_mode = #tpu.pipeline_mode<synchronous>, transform_indices = @transform_4, window_bounds = array<i64: 3, 384, 128>}, {pipeline_mode = #tpu.pipeline_mode<synchronous>, transform_indices = @transform_5, window_bounds = array<i64: 3, 12, 128>}, {transform_indices = @transform_6, window_bounds = array<i64: 1, 16, 16, 128>}, {transform_indices = @transform_7, window_bounds = array<i64: 1, 8, 128>}]} {
    %cst = arith.constant 0.000000e+00 : bf16
    %0 = vector.broadcast %cst : bf16 to vector<18x18x128xbf16>
    %c0 = arith.constant 0 : index
    %c0_0 = arith.constant 0 : index
    %c0_1 = arith.constant 0 : index
    %1 = vector.load %arg9[%c0, %c0_0, %c0_1] : memref<18x18x128xbf16, #tpu.memory_space<vmem>>, vector<18x18x128xbf16>
    tpu.vector_store %arg9[%c0, %c0_0, %c0_1], %0 {strides = array<i32>} : memref<18x18x128xbf16, #tpu.memory_space<vmem>>, vector<18x18x128xbf16>,
    %c0_2 = arith.constant 0 : index
    %c0_3 = arith.constant 0 : index
    %c0_4 = arith.constant 0 : index
    %c0_5 = arith.constant 0 : index
    %2 = vector.load %arg1[%c0_2, %c0_3, %c0_4, %c0_5] : memref<1x16x16x128xbf16, #tpu.memory_space<vmem>>, vector<1x16x16x128xbf16>
    %3 = vector.shape_cast %2 : vector<1x16x16x128xbf16> to vector<16x16x128xbf16>
    %4 = arith.extf %3 : vector<16x16x128xbf16> to vector<16x16x128xf32>
    %c0_6 = arith.constant 0 : index
    %c0_7 = arith.constant 0 : index
    %5 = vector.load %arg3[%c0_6, %c0_7] : memref<1x128xf32, #tpu.memory_space<vmem>>, vector<1x128xf32>
    %6 = vector.shape_cast %5 : vector<1x128xf32> to vector<128xf32>
    %7 = vector.shape_cast %6 : vector<128xf32> to vector<1x1x128xf32>
    %8 = vector.broadcast %7 : vector<1x1x128xf32> to vector<16x16x128xf32>
    %9 = arith.mulf %4, %8 : vector<16x16x128xf32>
    %c0_8 = arith.constant 0 : index
    %c0_9 = arith.constant 0 : index
    %10 = vector.load %arg4[%c0_8, %c0_9] : memref<1x128xf32, #tpu.memory_space<vmem>>, vector<1x128xf32>
    %11 = vector.shape_cast %10 : vector<1x128xf32> to vector<128xf32>
    %12 = vector.shape_cast %11 : vector<128xf32> to vector<1x1x128xf32>
    %13 = vector.broadcast %12 : vector<1x1x128xf32> to vector<16x16x128xf32>
    %14 = arith.addf %9, %13 : vector<16x16x128xf32>
    %cst_10 = arith.constant 0.000000e+00 : f32
    %15 = vector.broadcast %cst_10 : f32 to vector<16x16x128xf32>
    %16 = arith.maximumf %14, %15 : vector<16x16x128xf32>
    %17 = arith.truncf %16 : vector<16x16x128xf32> to vector<16x16x128xbf16>
    %c1 = arith.constant 1 : index
    %c1_11 = arith.constant 1 : index
    %c0_12 = arith.constant 0 : index
    %18 = vector.load %arg9[%c1, %c1_11, %c0_12] : memref<18x18x128xbf16, #tpu.memory_space<vmem>>, vector<16x16x128xbf16>
    tpu.vector_store %arg9[%c1, %c1_11, %c0_12], %17 {strides = array<i32>} : memref<18x18x128xbf16, #tpu.memory_space<vmem>>, vector<16x16x128xbf16>,
    %cst_13 = arith.constant 0.000000e+00 : bf16
    %19 = vector.broadcast %cst_13 : bf16 to vector<18x18x4xbf16>
    %c0_14 = arith.constant 0 : index
    %c0_15 = arith.constant 0 : index
    %c0_16 = arith.constant 0 : index
    %20 = vector.load %arg10[%c0_14, %c0_15, %c0_16] : memref<18x18x4xbf16, #tpu.memory_space<vmem>>, vector<18x18x4xbf16>
    tpu.vector_store %arg10[%c0_14, %c0_15, %c0_16], %19 {strides = array<i32>} : memref<18x18x4xbf16, #tpu.memory_space<vmem>>, vector<18x18x4xbf16>,
    %c0_17 = arith.constant 0 : index
    %c0_18 = arith.constant 0 : index
    %c0_19 = arith.constant 0 : index
    %c0_20 = arith.constant 0 : index
    %21 = vector.load %arg2[%c0_17, %c0_18, %c0_19, %c0_20] : memref<1x16x16x4xbf16, #tpu.memory_space<vmem>>, vector<1x16x16x4xbf16>
    %22 = vector.shape_cast %21 : vector<1x16x16x4xbf16> to vector<16x16x4xbf16>
    %c1_21 = arith.constant 1 : index
    %c1_22 = arith.constant 1 : index
    %c0_23 = arith.constant 0 : index
    %23 = vector.load %arg10[%c1_21, %c1_22, %c0_23] : memref<18x18x4xbf16, #tpu.memory_space<vmem>>, vector<16x16x4xbf16>
    tpu.vector_store %arg10[%c1_21, %c1_22, %c0_23], %22 {strides = array<i32>} : memref<18x18x4xbf16, #tpu.memory_space<vmem>>, vector<16x16x4xbf16>,
    %cst_24 = arith.constant 0.000000e+00 : f32
    %24 = vector.broadcast %cst_24 : f32 to vector<256x128xf32>
    %c0_25 = arith.constant 0 : index
    %c0_26 = arith.constant 0 : index
    %25 = vector.load %arg11[%c0_25, %c0_26] : memref<256x128xf32, #tpu.memory_space<vmem>>, vector<256x128xf32>
    tpu.vector_store %arg11[%c0_25, %c0_26], %24 {strides = array<i32>} : memref<256x128xf32, #tpu.memory_space<vmem>>, vector<256x128xf32>,
    %c0_27 = arith.constant 0 : index
    %c0_28 = arith.constant 0 : index
    %c0_29 = arith.constant 0 : index
    %26 = vector.load %arg9[%c0_27, %c0_28, %c0_29] : memref<18x18x128xbf16, #tpu.memory_space<vmem>>, vector<16x16x128xbf16>
    %27 = vector.shape_cast %26 : vector<16x16x128xbf16> to vector<256x128xbf16>
    %c0_30 = arith.constant 0 : index
    %c1_31 = arith.constant 1 : index
    %c0_32 = arith.constant 0 : index
    %28 = vector.load %arg9[%c0_30, %c1_31, %c0_32] : memref<18x18x128xbf16, #tpu.memory_space<vmem>>, vector<16x16x128xbf16>
    %29 = vector.shape_cast %28 : vector<16x16x128xbf16> to vector<256x128xbf16>
    %c0_33 = arith.constant 0 : index
    %c2 = arith.constant 2 : index
    %c0_34 = arith.constant 0 : index
    %30 = vector.load %arg9[%c0_33, %c2, %c0_34] : memref<18x18x128xbf16, #tpu.memory_space<vmem>>, vector<16x16x128xbf16>
    %31 = vector.shape_cast %30 : vector<16x16x128xbf16> to vector<256x128xbf16>
    %32 = tpu.concatenate %27, %29, %31 in 1 : vector<256x128xbf16>, vector<256x128xbf16>, vector<256x128xbf16> -> vector<256x384xbf16>
    %c0_35 = arith.constant 0 : index
    %c0_36 = arith.constant 0 : index
    %c0_37 = arith.constant 0 : index
    %33 = vector.load %arg5[%c0_35, %c0_36, %c0_37] : memref<3x384x128xbf16, #tpu.memory_space<vmem>>, vector<1x384x128xbf16>
    %34 = vector.shape_cast %33 : vector<1x384x128xbf16> to vector<384x128xbf16>
    %cst_38 = arith.constant dense<0.000000e+00> : vector<256x128xf32>
    %35 = tpu.matmul %32, %34, %cst_38 {dimension_numbers = #tpu.dot_dimension_numbers<[1], [0], [0], [1], [0, 0, 1, 1], [], []>} : vector<256x384xbf16>, vector<384x128xbf16>, vector<256x128xf32> -> vector<256x128xf32>
    %c0_39 = arith.constant 0 : index
    %c0_40 = arith.constant 0 : index
    %c0_41 = arith.constant 0 : index
    %36 = vector.load %arg10[%c0_39, %c0_40, %c0_41] : memref<18x18x4xbf16, #tpu.memory_space<vmem>>, vector<16x16x4xbf16>
    %37 = vector.shape_cast %36 : vector<16x16x4xbf16> to vector<256x4xbf16>
    %c0_42 = arith.constant 0 : index
    %c1_43 = arith.constant 1 : index
    %c0_44 = arith.constant 0 : index
    %38 = vector.load %arg10[%c0_42, %c1_43, %c0_44] : memref<18x18x4xbf16, #tpu.memory_space<vmem>>, vector<16x16x4xbf16>
    %39 = vector.shape_cast %38 : vector<16x16x4xbf16> to vector<256x4xbf16>
    %c0_45 = arith.constant 0 : index
    %c2_46 = arith.constant 2 : index
    %c0_47 = arith.constant 0 : index
    %40 = vector.load %arg10[%c0_45, %c2_46, %c0_47] : memref<18x18x4xbf16, #tpu.memory_space<vmem>>, vector<16x16x4xbf16>
    %41 = vector.shape_cast %40 : vector<16x16x4xbf16> to vector<256x4xbf16>
    %42 = tpu.concatenate %37, %39, %41 in 1 : vector<256x4xbf16>, vector<256x4xbf16>, vector<256x4xbf16> -> vector<256x12xbf16>
    %c0_48 = arith.constant 0 : index
    %c0_49 = arith.constant 0 : index
    %c0_50 = arith.constant 0 : index
    %43 = vector.load %arg6[%c0_48, %c0_49, %c0_50] : memref<3x12x128xbf16, #tpu.memory_space<vmem>>, vector<1x12x128xbf16>
    %44 = vector.shape_cast %43 : vector<1x12x128xbf16> to vector<12x128xbf16>
    %cst_51 = arith.constant dense<0.000000e+00> : vector<256x128xf32>
    %45 = tpu.matmul %42, %44, %cst_51 {dimension_numbers = #tpu.dot_dimension_numbers<[1], [0], [0], [1], [0, 0, 1, 1], [], []>} : vector<256x12xbf16>, vector<12x128xbf16>, vector<256x128xf32> -> vector<256x128xf32>
    %46 = arith.addf %35, %45 : vector<256x128xf32>
    %c0_52 = arith.constant 0 : index
    %c0_53 = arith.constant 0 : index
    %47 = vector.load %arg11[%c0_52, %c0_53] : memref<256x128xf32, #tpu.memory_space<vmem>>, vector<256x128xf32>
    %48 = arith.addf %47, %46 : vector<256x128xf32>
    %c0_54 = arith.constant 0 : index
    %c0_55 = arith.constant 0 : index
    %49 = vector.load %arg11[%c0_54, %c0_55] : memref<256x128xf32, #tpu.memory_space<vmem>>, vector<256x128xf32>
    tpu.vector_store %arg11[%c0_54, %c0_55], %48 {strides = array<i32>} : memref<256x128xf32, #tpu.memory_space<vmem>>, vector<256x128xf32>,
    %c1_56 = arith.constant 1 : index
    %c0_57 = arith.constant 0 : index
    %c0_58 = arith.constant 0 : index
    %50 = vector.load %arg9[%c1_56, %c0_57, %c0_58] : memref<18x18x128xbf16, #tpu.memory_space<vmem>>, vector<16x16x128xbf16>
    %51 = vector.shape_cast %50 : vector<16x16x128xbf16> to vector<256x128xbf16>
    %c1_59 = arith.constant 1 : index
    %c1_60 = arith.constant 1 : index
    %c0_61 = arith.constant 0 : index
    %52 = vector.load %arg9[%c1_59, %c1_60, %c0_61] : memref<18x18x128xbf16, #tpu.memory_space<vmem>>, vector<16x16x128xbf16>
    %53 = vector.shape_cast %52 : vector<16x16x128xbf16> to vector<256x128xbf16>
    %c1_62 = arith.constant 1 : index
    %c2_63 = arith.constant 2 : index
    %c0_64 = arith.constant 0 : index
    %54 = vector.load %arg9[%c1_62, %c2_63, %c0_64] : memref<18x18x128xbf16, #tpu.memory_space<vmem>>, vector<16x16x128xbf16>
    %55 = vector.shape_cast %54 : vector<16x16x128xbf16> to vector<256x128xbf16>
    %56 = tpu.concatenate %51, %53, %55 in 1 : vector<256x128xbf16>, vector<256x128xbf16>, vector<256x128xbf16> -> vector<256x384xbf16>
    %c1_65 = arith.constant 1 : index
    %c0_66 = arith.constant 0 : index
    %c0_67 = arith.constant 0 : index
    %57 = vector.load %arg5[%c1_65, %c0_66, %c0_67] : memref<3x384x128xbf16, #tpu.memory_space<vmem>>, vector<1x384x128xbf16>
    %58 = vector.shape_cast %57 : vector<1x384x128xbf16> to vector<384x128xbf16>
    %cst_68 = arith.constant dense<0.000000e+00> : vector<256x128xf32>
    %59 = tpu.matmul %56, %58, %cst_68 {dimension_numbers = #tpu.dot_dimension_numbers<[1], [0], [0], [1], [0, 0, 1, 1], [], []>} : vector<256x384xbf16>, vector<384x128xbf16>, vector<256x128xf32> -> vector<256x128xf32>
    %c1_69 = arith.constant 1 : index
    %c0_70 = arith.constant 0 : index
    %c0_71 = arith.constant 0 : index
    %60 = vector.load %arg10[%c1_69, %c0_70, %c0_71] : memref<18x18x4xbf16, #tpu.memory_space<vmem>>, vector<16x16x4xbf16>
    %61 = vector.shape_cast %60 : vector<16x16x4xbf16> to vector<256x4xbf16>
    %c1_72 = arith.constant 1 : index
    %c1_73 = arith.constant 1 : index
    %c0_74 = arith.constant 0 : index
    %62 = vector.load %arg10[%c1_72, %c1_73, %c0_74] : memref<18x18x4xbf16, #tpu.memory_space<vmem>>, vector<16x16x4xbf16>
    %63 = vector.shape_cast %62 : vector<16x16x4xbf16> to vector<256x4xbf16>
    %c1_75 = arith.constant 1 : index
    %c2_76 = arith.constant 2 : index
    %c0_77 = arith.constant 0 : index
    %64 = vector.load %arg10[%c1_75, %c2_76, %c0_77] : memref<18x18x4xbf16, #tpu.memory_space<vmem>>, vector<16x16x4xbf16>
    %65 = vector.shape_cast %64 : vector<16x16x4xbf16> to vector<256x4xbf16>
    %66 = tpu.concatenate %61, %63, %65 in 1 : vector<256x4xbf16>, vector<256x4xbf16>, vector<256x4xbf16> -> vector<256x12xbf16>
    %c1_78 = arith.constant 1 : index
    %c0_79 = arith.constant 0 : index
    %c0_80 = arith.constant 0 : index
    %67 = vector.load %arg6[%c1_78, %c0_79, %c0_80] : memref<3x12x128xbf16, #tpu.memory_space<vmem>>, vector<1x12x128xbf16>
    %68 = vector.shape_cast %67 : vector<1x12x128xbf16> to vector<12x128xbf16>
    %cst_81 = arith.constant dense<0.000000e+00> : vector<256x128xf32>
    %69 = tpu.matmul %66, %68, %cst_81 {dimension_numbers = #tpu.dot_dimension_numbers<[1], [0], [0], [1], [0, 0, 1, 1], [], []>} : vector<256x12xbf16>, vector<12x128xbf16>, vector<256x128xf32> -> vector<256x128xf32>
    %70 = arith.addf %59, %69 : vector<256x128xf32>
    %c0_82 = arith.constant 0 : index
    %c0_83 = arith.constant 0 : index
    %71 = vector.load %arg11[%c0_82, %c0_83] : memref<256x128xf32, #tpu.memory_space<vmem>>, vector<256x128xf32>
    %72 = arith.addf %71, %70 : vector<256x128xf32>
    %c0_84 = arith.constant 0 : index
    %c0_85 = arith.constant 0 : index
    %73 = vector.load %arg11[%c0_84, %c0_85] : memref<256x128xf32, #tpu.memory_space<vmem>>, vector<256x128xf32>
    tpu.vector_store %arg11[%c0_84, %c0_85], %72 {strides = array<i32>} : memref<256x128xf32, #tpu.memory_space<vmem>>, vector<256x128xf32>,
    %c2_86 = arith.constant 2 : index
    %c0_87 = arith.constant 0 : index
    %c0_88 = arith.constant 0 : index
    %74 = vector.load %arg9[%c2_86, %c0_87, %c0_88] : memref<18x18x128xbf16, #tpu.memory_space<vmem>>, vector<16x16x128xbf16>
    %75 = vector.shape_cast %74 : vector<16x16x128xbf16> to vector<256x128xbf16>
    %c2_89 = arith.constant 2 : index
    %c1_90 = arith.constant 1 : index
    %c0_91 = arith.constant 0 : index
    %76 = vector.load %arg9[%c2_89, %c1_90, %c0_91] : memref<18x18x128xbf16, #tpu.memory_space<vmem>>, vector<16x16x128xbf16>
    %77 = vector.shape_cast %76 : vector<16x16x128xbf16> to vector<256x128xbf16>
    %c2_92 = arith.constant 2 : index
    %c2_93 = arith.constant 2 : index
    %c0_94 = arith.constant 0 : index
    %78 = vector.load %arg9[%c2_92, %c2_93, %c0_94] : memref<18x18x128xbf16, #tpu.memory_space<vmem>>, vector<16x16x128xbf16>
    %79 = vector.shape_cast %78 : vector<16x16x128xbf16> to vector<256x128xbf16>
    %80 = tpu.concatenate %75, %77, %79 in 1 : vector<256x128xbf16>, vector<256x128xbf16>, vector<256x128xbf16> -> vector<256x384xbf16>
    %c2_95 = arith.constant 2 : index
    %c0_96 = arith.constant 0 : index
    %c0_97 = arith.constant 0 : index
    %81 = vector.load %arg5[%c2_95, %c0_96, %c0_97] : memref<3x384x128xbf16, #tpu.memory_space<vmem>>, vector<1x384x128xbf16>
    %82 = vector.shape_cast %81 : vector<1x384x128xbf16> to vector<384x128xbf16>
    %cst_98 = arith.constant dense<0.000000e+00> : vector<256x128xf32>
    %83 = tpu.matmul %80, %82, %cst_98 {dimension_numbers = #tpu.dot_dimension_numbers<[1], [0], [0], [1], [0, 0, 1, 1], [], []>} : vector<256x384xbf16>, vector<384x128xbf16>, vector<256x128xf32> -> vector<256x128xf32>
    %c2_99 = arith.constant 2 : index
    %c0_100 = arith.constant 0 : index
    %c0_101 = arith.constant 0 : index
    %84 = vector.load %arg10[%c2_99, %c0_100, %c0_101] : memref<18x18x4xbf16, #tpu.memory_space<vmem>>, vector<16x16x4xbf16>
    %85 = vector.shape_cast %84 : vector<16x16x4xbf16> to vector<256x4xbf16>
    %c2_102 = arith.constant 2 : index
    %c1_103 = arith.constant 1 : index
    %c0_104 = arith.constant 0 : index
    %86 = vector.load %arg10[%c2_102, %c1_103, %c0_104] : memref<18x18x4xbf16, #tpu.memory_space<vmem>>, vector<16x16x4xbf16>
    %87 = vector.shape_cast %86 : vector<16x16x4xbf16> to vector<256x4xbf16>
    %c2_105 = arith.constant 2 : index
    %c2_106 = arith.constant 2 : index
    %c0_107 = arith.constant 0 : index
    %88 = vector.load %arg10[%c2_105, %c2_106, %c0_107] : memref<18x18x4xbf16, #tpu.memory_space<vmem>>, vector<16x16x4xbf16>
    %89 = vector.shape_cast %88 : vector<16x16x4xbf16> to vector<256x4xbf16>
    %90 = tpu.concatenate %85, %87, %89 in 1 : vector<256x4xbf16>, vector<256x4xbf16>, vector<256x4xbf16> -> vector<256x12xbf16>
    %c2_108 = arith.constant 2 : index
    %c0_109 = arith.constant 0 : index
    %c0_110 = arith.constant 0 : index
    %91 = vector.load %arg6[%c2_108, %c0_109, %c0_110] : memref<3x12x128xbf16, #tpu.memory_space<vmem>>, vector<1x12x128xbf16>
    %92 = vector.shape_cast %91 : vector<1x12x128xbf16> to vector<12x128xbf16>
    %cst_111 = arith.constant dense<0.000000e+00> : vector<256x128xf32>
    %93 = tpu.matmul %90, %92, %cst_111 {dimension_numbers = #tpu.dot_dimension_numbers<[1], [0], [0], [1], [0, 0, 1, 1], [], []>} : vector<256x12xbf16>, vector<12x128xbf16>, vector<256x128xf32> -> vector<256x128xf32>
    %94 = arith.addf %83, %93 : vector<256x128xf32>
    %c0_112 = arith.constant 0 : index
    %c0_113 = arith.constant 0 : index
    %95 = vector.load %arg11[%c0_112, %c0_113] : memref<256x128xf32, #tpu.memory_space<vmem>>, vector<256x128xf32>
    %96 = arith.addf %95, %94 : vector<256x128xf32>
    %c0_114 = arith.constant 0 : index
    %c0_115 = arith.constant 0 : index
    %97 = vector.load %arg11[%c0_114, %c0_115] : memref<256x128xf32, #tpu.memory_space<vmem>>, vector<256x128xf32>
    tpu.vector_store %arg11[%c0_114, %c0_115], %96 {strides = array<i32>} : memref<256x128xf32, #tpu.memory_space<vmem>>, vector<256x128xf32>,
    %c0_116 = arith.constant 0 : index
    %c0_117 = arith.constant 0 : index
    %98 = vector.load %arg11[%c0_116, %c0_117] : memref<256x128xf32, #tpu.memory_space<vmem>>, vector<256x128xf32>
    %99 = vector.shape_cast %98 : vector<256x128xf32> to vector<1x16x16x128xf32>
    %100 = arith.truncf %99 : vector<1x16x16x128xf32> to vector<1x16x16x128xbf16>
    %c0_118 = arith.constant 0 : index
    %c0_119 = arith.constant 0 : index
    %c0_120 = arith.constant 0 : index
    %c0_121 = arith.constant 0 : index
    %101 = vector.load %arg7[%c0_118, %c0_119, %c0_120, %c0_121] : memref<1x16x16x128xbf16, #tpu.memory_space<vmem>>, vector<1x16x16x128xbf16>
    tpu.vector_store %arg7[%c0_118, %c0_119, %c0_120, %c0_121], %100 {strides = array<i32>} : memref<1x16x16x128xbf16, #tpu.memory_space<vmem>>, vector<1x16x16x128xbf16>,
    %cst_122 = arith.constant dense<0.000000e+00> : vector<128xf32>
    %102 = vector.multi_reduction <add>, %98, %cst_122 [0] : vector<256x128xf32> to vector<128xf32>
    %103 = vector.shape_cast %102 : vector<128xf32> to vector<1x128xf32>
    %104 = arith.mulf %98, %98 : vector<256x128xf32>
    %cst_123 = arith.constant dense<0.000000e+00> : vector<128xf32>
    %105 = vector.multi_reduction <add>, %104, %cst_123 [0] : vector<256x128xf32> to vector<128xf32>
    %106 = vector.shape_cast %105 : vector<128xf32> to vector<1x128xf32>
    %cst_124 = arith.constant 0.000000e+00 : f32
    %107 = vector.broadcast %cst_124 : f32 to vector<6x128xf32>
    %108 = tpu.concatenate %103, %106, %107 in 0 : vector<1x128xf32>, vector<1x128xf32>, vector<6x128xf32> -> vector<8x128xf32>
    %109 = vector.shape_cast %108 : vector<8x128xf32> to vector<1x8x128xf32>
    %c0_125 = arith.constant 0 : index
    %c0_126 = arith.constant 0 : index
    %c0_127 = arith.constant 0 : index
    %110 = vector.load %arg8[%c0_125, %c0_126, %c0_127] : memref<1x8x128xf32, #tpu.memory_space<vmem>>, vector<1x8x128xf32>
    tpu.vector_store %arg8[%c0_125, %c0_126, %c0_127], %109 {strides = array<i32>} : memref<1x8x128xf32, #tpu.memory_space<vmem>>, vector<1x8x128xf32>,
    return
  }
  func.func @transform_0(%arg0: i32) -> (i32, i32, i32, i32) {
    %c0_i32 = arith.constant 0 : i32
    %c0_i32_0 = arith.constant 0 : i32
    %c0_i32_1 = arith.constant 0 : i32
    %c0_i32_2 = arith.constant 0 : i32
    return %arg0, %c0_i32, %c0_i32_0, %c0_i32_1 : i32, i32, i32, i32
  }
  func.func @transform_1(%arg0: i32) -> (i32, i32, i32, i32) {
    %c0_i32 = arith.constant 0 : i32
    %c0_i32_0 = arith.constant 0 : i32
    %c0_i32_1 = arith.constant 0 : i32
    %c0_i32_2 = arith.constant 0 : i32
    return %arg0, %c0_i32, %c0_i32_0, %c0_i32_1 : i32, i32, i32, i32
  }
  func.func @transform_2(%arg0: i32) -> (i32, i32) {
    %c0_i32 = arith.constant 0 : i32
    %c0_i32_0 = arith.constant 0 : i32
    %c0_i32_1 = arith.constant 0 : i32
    return %c0_i32, %c0_i32_0 : i32, i32
  }
  func.func @transform_3(%arg0: i32) -> (i32, i32) {
    %c0_i32 = arith.constant 0 : i32
    %c0_i32_0 = arith.constant 0 : i32
    %c0_i32_1 = arith.constant 0 : i32
    return %c0_i32, %c0_i32_0 : i32, i32
  }
  func.func @transform_4(%arg0: i32) -> (i32, i32, i32) {
    %c0_i32 = arith.constant 0 : i32
    %c0_i32_0 = arith.constant 0 : i32
    %c0_i32_1 = arith.constant 0 : i32
    %c0_i32_2 = arith.constant 0 : i32
    return %c0_i32, %c0_i32_0, %c0_i32_1 : i32, i32, i32
  }
  func.func @transform_5(%arg0: i32) -> (i32, i32, i32) {
    %c0_i32 = arith.constant 0 : i32
    %c0_i32_0 = arith.constant 0 : i32
    %c0_i32_1 = arith.constant 0 : i32
    %c0_i32_2 = arith.constant 0 : i32
    return %c0_i32, %c0_i32_0, %c0_i32_1 : i32, i32, i32
  }
  func.func @transform_6(%arg0: i32) -> (i32, i32, i32, i32) {
    %c0_i32 = arith.constant 0 : i32
    %c0_i32_0 = arith.constant 0 : i32
    %c0_i32_1 = arith.constant 0 : i32
    %c0_i32_2 = arith.constant 0 : i32
    return %arg0, %c0_i32, %c0_i32_0, %c0_i32_1 : i32, i32, i32, i32
  }
  func.func @transform_7(%arg0: i32) -> (i32, i32, i32) {
    %c0_i32 = arith.constant 0 : i32
    %c0_i32_0 = arith.constant 0 : i32
    %c0_i32_1 = arith.constant 0 : i32
    return %arg0, %c0_i32, %c0_i32_0 : i32, i32, i32
  }
}

module attributes {stable_mosaic.version = 11 : i64} {
  func.func @_bn_relu_kernel(%arg0: i32, %arg1: memref<512x128xbf16, #tpu.memory_space<vmem>>, %arg2: memref<1x128xf32, #tpu.memory_space<vmem>>, %arg3: memref<1x128xf32, #tpu.memory_space<vmem>>, %arg4: memref<512x128xf32, #tpu.memory_space<vmem>>) attributes {dimension_semantics = [#tpu.dimension_semantics<parallel>], iteration_bounds = array<i64: 1>, scalar_prefetch = 0 : i64, scratch_operands = 0 : i64, tpu.core_type = #tpu.core_type<tc>, window_params = [{transform_indices = @transform_0, window_bounds = array<i64: 512, 128>}, {pipeline_mode = #tpu.pipeline_mode<synchronous>, transform_indices = @transform_1, window_bounds = array<i64: 1, 128>}, {pipeline_mode = #tpu.pipeline_mode<synchronous>, transform_indices = @transform_2, window_bounds = array<i64: 1, 128>}, {transform_indices = @transform_3, window_bounds = array<i64: 512, 128>}]} {
    %c0 = arith.constant 0 : index
    %c0_0 = arith.constant 0 : index
    %0 = vector.load %arg1[%c0, %c0_0] : memref<512x128xbf16, #tpu.memory_space<vmem>>, vector<512x128xbf16>
    %1 = arith.extf %0 : vector<512x128xbf16> to vector<512x128xf32>
    %c0_1 = arith.constant 0 : index
    %c0_2 = arith.constant 0 : index
    %2 = vector.load %arg2[%c0_1, %c0_2] : memref<1x128xf32, #tpu.memory_space<vmem>>, vector<1x128xf32>
    %3 = vector.broadcast %2 : vector<1x128xf32> to vector<512x128xf32>
    %4 = arith.mulf %1, %3 : vector<512x128xf32>
    %c0_3 = arith.constant 0 : index
    %c0_4 = arith.constant 0 : index
    %5 = vector.load %arg3[%c0_3, %c0_4] : memref<1x128xf32, #tpu.memory_space<vmem>>, vector<1x128xf32>
    %6 = vector.broadcast %5 : vector<1x128xf32> to vector<512x128xf32>
    %7 = arith.addf %4, %6 : vector<512x128xf32>
    %cst = arith.constant 0.000000e+00 : f32
    %8 = vector.broadcast %cst : f32 to vector<512x128xf32>
    %9 = arith.maximumf %7, %8 : vector<512x128xf32>
    %c0_5 = arith.constant 0 : index
    %c0_6 = arith.constant 0 : index
    %10 = vector.load %arg4[%c0_5, %c0_6] : memref<512x128xf32, #tpu.memory_space<vmem>>, vector<512x128xf32>
    tpu.vector_store %arg4[%c0_5, %c0_6], %9 {strides = array<i32>} : memref<512x128xf32, #tpu.memory_space<vmem>>, vector<512x128xf32>,
    return
  }
  func.func @transform_0(%arg0: i32) -> (i32, i32) {
    %c0_i32 = arith.constant 0 : i32
    %c0_i32_0 = arith.constant 0 : i32
    return %arg0, %c0_i32 : i32, i32
  }
  func.func @transform_1(%arg0: i32) -> (i32, i32) {
    %c0_i32 = arith.constant 0 : i32
    %c0_i32_0 = arith.constant 0 : i32
    %c0_i32_1 = arith.constant 0 : i32
    return %c0_i32, %c0_i32_0 : i32, i32
  }
  func.func @transform_2(%arg0: i32) -> (i32, i32) {
    %c0_i32 = arith.constant 0 : i32
    %c0_i32_0 = arith.constant 0 : i32
    %c0_i32_1 = arith.constant 0 : i32
    return %c0_i32, %c0_i32_0 : i32, i32
  }
  func.func @transform_3(%arg0: i32) -> (i32, i32) {
    %c0_i32 = arith.constant 0 : i32
    %c0_i32_0 = arith.constant 0 : i32
    return %arg0, %c0_i32 : i32, i32
  }
}

</mosaic_0001>

<bundles_post_ra>
// kernel: upsample_block_forward.5
= control target key start
LH: loop header
LB: loop body
LE: loop exit
PB: predicated region body
PF: predicated region fallthrough
CT: control target
= control target key end

     0   :  { %s1017_s0 = inlined_call_operand.vmem [shape: bf16[512,128], index: 0, kind: input, shape index: {}]   ;;  %s1018_s1 = inlined_call_operand.vmem [shape: f32[1,128], index: 1, kind: input, shape index: {}]   ;;  %s1019_s2 = inlined_call_operand.vmem [shape: f32[1,128], index: 2, kind: input, shape index: {}]   ;;  %s1020_s3 = inlined_call_operand.vmem [shape: f32[512,128], index: 3, kind: output, shape index: {}]  }
   0x1   :  { %v411_v0 = vld [vmem:[%s1017_s0] sm:$0xff]   ;;  %v538_v5 = vld [vmem:[%s1017_s0 + $0x8] sm:$0xff]   ;;  %v539_v8 = vld [vmem:[%s1017_s0 + $0x10] sm:$0xff]  }
   0x2   :  { %v597_v1 = vld [vmem:[%s1018_s1] ss:$0 sm:$0xff]  ;;  %v412_v2 = vunpack.c.l.bf16 %v411_v0  ;;  %v413_v4 = vunpack.c.h.bf16 %v411_v0  ;;  %v416_v6 = vunpack.c.l.bf16 %v538_v5  ;;  %v417_v7 = vunpack.c.h.bf16 %v538_v5  ;;  %v540_v9 = vld [vmem:[%s1017_s0 + $0x18] sm:$0xff]   ;;  %v542_v31 = vld [vmem:[%s1017_s0 + $0x28] sm:$0xff]  }
   0x3   :  { %v602_v3 = vld [vmem:[%s1019_s2] ss:$0 sm:$0xff]  ;;  %v420_v12 = vunpack.c.l.bf16 %v539_v8  ;;  %v421_v13 = vunpack.c.h.bf16 %v539_v8  ;;  %v424_v16 = vunpack.c.l.bf16 %v540_v9  ;;  %v425_v17 = vunpack.c.h.bf16 %v540_v9  ;;  %v543_v36 = vld [vmem:[%s1017_s0 + $0x30] sm:$0xff]   ;;  %v544_v41 = vld [vmem:[%s1017_s0 + $0x38] sm:$0xff]  }
   0x4   :  { %v146_v10 = vmul.f32 %v597_v1, %v412_v2  ;;  %v147_v11 = vmul.f32 %v597_v1, %v413_v4  ;;  %v148_v14 = vmul.f32 %v597_v1, %v416_v6  ;;  %v149_v15 = vmul.f32 %v597_v1, %v417_v7  ;;  %v541_v26 = vld [vmem:[%s1017_s0 + $0x20] sm:$0xff]   ;;  %v546_v5 = vld [vmem:[%s1017_s0 + $0x48] sm:$0xff]  }
   0x5   :  { %v150_v20 = vmul.f32 %v597_v1, %v420_v12  ;;  %v151_v21 = vmul.f32 %v597_v1, %v421_v13  ;;  %v152_v24 = vmul.f32 %v597_v1, %v424_v16  ;;  %v153_v25 = vmul.f32 %v597_v1, %v425_v17  ;;  %v545_v62 = vld [vmem:[%s1017_s0 + $0x40] sm:$0xff]  }
   0x6   :  { %v214_v18 = vadd.f32 %v602_v3, %v146_v10  ;;  %v215_v19 = vadd.f32 %v602_v3, %v147_v11  ;;  %v216_v22 = vadd.f32 %v602_v3, %v148_v14  ;;  %v217_v23 = vadd.f32 %v602_v3, %v149_v15  ;;  %v547_v10 = vld [vmem:[%s1017_s0 + $0x50] sm:$0xff]   ;;  %v548_v15 = vld [vmem:[%s1017_s0 + $0x58] sm:$0xff]  }
   0x7   :  { %v218_v29 = vadd.f32 %v602_v3, %v150_v20  ;;  %v219_v30 = vadd.f32 %v602_v3, %v151_v21  ;;  %v220_v34 = vadd.f32 %v602_v3, %v152_v24  ;;  %v221_v35 = vadd.f32 %v602_v3, %v153_v25 }
   0x8   :  { %v278_v27 = vmax.f32 %v214_v18, 0.0  ;;  %v279_v28 = vmax.f32 %v215_v19, 0.0  ;;  %v280_v32 = vmax.f32 %v216_v22, 0.0  ;;  %v281_v33 = vmax.f32 %v217_v23, 0.0 }
   0x9   :  { %v282_v37 = vmax.f32 %v218_v29, 0.0  ;;  %v283_v38 = vmax.f32 %v219_v30, 0.0  ;;  %v428_v39 = vunpack.c.l.bf16 %v541_v26  ;;  %v429_v40 = vunpack.c.h.bf16 %v541_v26 }
   0xa   :  { %342 = vst [vmem:[%s1020_s3] sm:$0xff] %v278_v27  ;;  %v284_v42 = vmax.f32 %v220_v34, 0.0  ;;  %v285_v43 = vmax.f32 %v221_v35, 0.0  ;;  %v432_v44 = vunpack.c.l.bf16 %v542_v31  ;;  %v433_v45 = vunpack.c.h.bf16 %v542_v31 }
   0xb   :  { %343 = vst [vmem:[%s1020_s3 + $0x8] sm:$0xff] %v279_v28  ;;  %v154_v46 = vmul.f32 %v597_v1, %v428_v39  ;;  %v155_v47 = vmul.f32 %v597_v1, %v429_v40  ;;  %v436_v48 = vunpack.c.l.bf16 %v543_v36  ;;  %v437_v49 = vunpack.c.h.bf16 %v543_v36  ;;  %v549_v36 = vld [vmem:[%s1017_s0 + $0x60] sm:$0xff]  }
   0xc   :  { %344 = vst [vmem:[%s1020_s3 + $0x10] sm:$0xff] %v280_v32  ;;  %v156_v50 = vmul.f32 %v597_v1, %v432_v44  ;;  %v157_v51 = vmul.f32 %v597_v1, %v433_v45  ;;  %v440_v52 = vunpack.c.l.bf16 %v544_v41  ;;  %v441_v53 = vunpack.c.h.bf16 %v544_v41  ;;  %v550_v41 = vld [vmem:[%s1017_s0 + $0x68] sm:$0xff]  }
   0xd   :  { %345 = vst [vmem:[%s1020_s3 + $0x18] sm:$0xff] %v281_v33  ;;  %v222_v54 = vadd.f32 %v602_v3, %v154_v46  ;;  %v223_v55 = vadd.f32 %v602_v3, %v155_v47  ;;  %v158_v56 = vmul.f32 %v597_v1, %v436_v48  ;;  %v159_v57 = vmul.f32 %v597_v1, %v437_v49  ;;  %v551_v46 = vld [vmem:[%s1017_s0 + $0x70] sm:$0xff]  }
   0xe   :  { %346 = vst [vmem:[%s1020_s3 + $0x20] sm:$0xff] %v282_v37  ;;  %v224_v58 = vadd.f32 %v602_v3, %v156_v50  ;;  %v225_v59 = vadd.f32 %v602_v3, %v157_v51  ;;  %v160_v60 = vmul.f32 %v597_v1, %v440_v52  ;;  %v161_v61 = vmul.f32 %v597_v1, %v441_v53  ;;  %v552_v51 = vld [vmem:[%s1017_s0 + $0x78] sm:$0xff]  }
   0xf   :  { %347 = vst [vmem:[%s1020_s3 + $0x28] sm:$0xff] %v283_v38  ;;  %v286_v63 = vmax.f32 %v222_v54, 0.0  ;;  %v287_v0 = vmax.f32 %v223_v55, 0.0  ;;  %v226_v2 = vadd.f32 %v602_v3, %v158_v56  ;;  %v227_v4 = vadd.f32 %v602_v3, %v159_v57 }
  0x10   :  { %348 = vst [vmem:[%s1020_s3 + $0x30] sm:$0xff] %v284_v42  ;;  %v288_v6 = vmax.f32 %v224_v58, 0.0  ;;  %v289_v7 = vmax.f32 %v225_v59, 0.0  ;;  %v228_v8 = vadd.f32 %v602_v3, %v160_v60  ;;  %v229_v9 = vadd.f32 %v602_v3, %v161_v61 }
  0x11   :  { %349 = vst [vmem:[%s1020_s3 + $0x38] sm:$0xff] %v285_v43  ;;  %v290_v11 = vmax.f32 %v226_v2, 0.0  ;;  %v291_v12 = vmax.f32 %v227_v4, 0.0  ;;  %v444_v13 = vunpack.c.l.bf16 %v545_v62  ;;  %v445_v14 = vunpack.c.h.bf16 %v545_v62 }
  0x12   :  { %350 = vst [vmem:[%s1020_s3 + $0x40] sm:$0xff] %v286_v63  ;;  %v292_v16 = vmax.f32 %v228_v8, 0.0  ;;  %v293_v17 = vmax.f32 %v229_v9, 0.0  ;;  %v448_v18 = vunpack.c.l.bf16 %v546_v5  ;;  %v449_v19 = vunpack.c.h.bf16 %v546_v5 }
  0x13   :  { %351 = vst [vmem:[%s1020_s3 + $0x48] sm:$0xff] %v287_v0  ;;  %v162_v20 = vmul.f32 %v597_v1, %v444_v13  ;;  %v163_v21 = vmul.f32 %v597_v1, %v445_v14  ;;  %v452_v22 = vunpack.c.l.bf16 %v547_v10  ;;  %v453_v23 = vunpack.c.h.bf16 %v547_v10  ;;  %v553_v10 = vld [vmem:[%s1017_s0 + $0x80] sm:$0xff]  }
  0x14   :  { %352 = vst [vmem:[%s1020_s3 + $0x50] sm:$0xff] %v288_v6  ;;  %v164_v24 = vmul.f32 %v597_v1, %v448_v18  ;;  %v165_v25 = vmul.f32 %v597_v1, %v449_v19  ;;  %v456_v26 = vunpack.c.l.bf16 %v548_v15  ;;  %v457_v27 = vunpack.c.h.bf16 %v548_v15  ;;  %v554_v15 = vld [vmem:[%s1017_s0 + $0x88] sm:$0xff]  }
  0x15   :  { %353 = vst [vmem:[%s1020_s3 + $0x58] sm:$0xff] %v289_v7  ;;  %v230_v28 = vadd.f32 %v602_v3, %v162_v20  ;;  %v231_v29 = vadd.f32 %v602_v3, %v163_v21  ;;  %v166_v30 = vmul.f32 %v597_v1, %v452_v22  ;;  %v167_v31 = vmul.f32 %v597_v1, %v453_v23  ;;  %v555_v20 = vld [vmem:[%s1017_s0 + $0x90] sm:$0xff]  }
  0x16   :  { %354 = vst [vmem:[%s1020_s3 + $0x60] sm:$0xff] %v290_v11  ;;  %v232_v32 = vadd.f32 %v602_v3, %v164_v24  ;;  %v233_v33 = vadd.f32 %v602_v3, %v165_v25  ;;  %v168_v34 = vmul.f32 %v597_v1, %v456_v26  ;;  %v169_v35 = vmul.f32 %v597_v1, %v457_v27  ;;  %v556_v25 = vld [vmem:[%s1017_s0 + $0x98] sm:$0xff]  }
  0x17   :  { %355 = vst [vmem:[%s1020_s3 + $0x68] sm:$0xff] %v291_v12  ;;  %v294_v37 = vmax.f32 %v230_v28, 0.0  ;;  %v295_v38 = vmax.f32 %v231_v29, 0.0  ;;  %v234_v39 = vadd.f32 %v602_v3, %v166_v30  ;;  %v235_v40 = vadd.f32 %v602_v3, %v167_v31 }
  0x18   :  { %356 = vst [vmem:[%s1020_s3 + $0x70] sm:$0xff] %v292_v16  ;;  %v296_v42 = vmax.f32 %v232_v32, 0.0  ;;  %v297_v43 = vmax.f32 %v233_v33, 0.0  ;;  %v236_v44 = vadd.f32 %v602_v3, %v168_v34  ;;  %v237_v45 = vadd.f32 %v602_v3, %v169_v35 }
  0x19   :  { %357 = vst [vmem:[%s1020_s3 + $0x78] sm:$0xff] %v293_v17  ;;  %v298_v47 = vmax.f32 %v234_v39, 0.0  ;;  %v299_v48 = vmax.f32 %v235_v40, 0.0  ;;  %v460_v49 = vunpack.c.l.bf16 %v549_v36  ;;  %v461_v50 = vunpack.c.h.bf16 %v549_v36 }
  0x1a   :  { %358 = vst [vmem:[%s1020_s3 + $0x80] sm:$0xff] %v294_v37  ;;  %v300_v52 = vmax.f32 %v236_v44, 0.0  ;;  %v301_v53 = vmax.f32 %v237_v45, 0.0  ;;  %v464_v54 = vunpack.c.l.bf16 %v550_v41  ;;  %v465_v55 = vunpack.c.h.bf16 %v550_v41 }
  0x1b   :  { %359 = vst [vmem:[%s1020_s3 + $0x88] sm:$0xff] %v295_v38  ;;  %v170_v56 = vmul.f32 %v597_v1, %v460_v49  ;;  %v171_v57 = vmul.f32 %v597_v1, %v461_v50  ;;  %v468_v58 = vunpack.c.l.bf16 %v551_v46  ;;  %v469_v59 = vunpack.c.h.bf16 %v551_v46  ;;  %v557_v46 = vld [vmem:[%s1017_s0 + $0xa0] sm:$0xff]  }
  0x1c   :  { %360 = vst [vmem:[%s1020_s3 + $0x90] sm:$0xff] %v296_v42  ;;  %v172_v60 = vmul.f32 %v597_v1, %v464_v54  ;;  %v173_v61 = vmul.f32 %v597_v1, %v465_v55  ;;  %v472_v62 = vunpack.c.l.bf16 %v552_v51  ;;  %v473_v63 = vunpack.c.h.bf16 %v552_v51  ;;  %v558_v51 = vld [vmem:[%s1017_s0 + $0xa8] sm:$0xff]  }
  0x1d   :  { %361 = vst [vmem:[%s1020_s3 + $0x98] sm:$0xff] %v297_v43  ;;  %v238_v0 = vadd.f32 %v602_v3, %v170_v56  ;;  %v239_v2 = vadd.f32 %v602_v3, %v171_v57  ;;  %v174_v4 = vmul.f32 %v597_v1, %v468_v58  ;;  %v175_v5 = vmul.f32 %v597_v1, %v469_v59  ;;  %v559_v56 = vld [vmem:[%s1017_s0 + $0xb0] sm:$0xff]  }
  0x1e   :  { %362 = vst [vmem:[%s1020_s3 + $0xa0] sm:$0xff] %v298_v47  ;;  %v240_v6 = vadd.f32 %v602_v3, %v172_v60  ;;  %v241_v7 = vadd.f32 %v602_v3, %v173_v61  ;;  %v176_v8 = vmul.f32 %v597_v1, %v472_v62  ;;  %v177_v9 = vmul.f32 %v597_v1, %v473_v63  ;;  %v560_v61 = vld [vmem:[%s1017_s0 + $0xb8] sm:$0xff]  }
  0x1f   :  { %363 = vst [vmem:[%s1020_s3 + $0xa8] sm:$0xff] %v299_v48  ;;  %v302_v11 = vmax.f32 %v238_v0, 0.0  ;;  %v303_v12 = vmax.f32 %v239_v2, 0.0  ;;  %v242_v13 = vadd.f32 %v602_v3, %v174_v4  ;;  %v243_v14 = vadd.f32 %v602_v3, %v175_v5 }
  0x20   :  { %364 = vst [vmem:[%s1020_s3 + $0xb0] sm:$0xff] %v300_v52  ;;  %v304_v16 = vmax.f32 %v240_v6, 0.0  ;;  %v305_v17 = vmax.f32 %v241_v7, 0.0  ;;  %v244_v18 = vadd.f32 %v602_v3, %v176_v8  ;;  %v245_v19 = vadd.f32 %v602_v3, %v177_v9 }
  0x21   :  { %365 = vst [vmem:[%s1020_s3 + $0xb8] sm:$0xff] %v301_v53  ;;  %v306_v21 = vmax.f32 %v242_v13, 0.0  ;;  %v307_v22 = vmax.f32 %v243_v14, 0.0  ;;  %v476_v23 = vunpack.c.l.bf16 %v553_v10  ;;  %v477_v24 = vunpack.c.h.bf16 %v553_v10 }
  0x22   :  { %366 = vst [vmem:[%s1020_s3 + $0xc0] sm:$0xff] %v302_v11  ;;  %v308_v26 = vmax.f32 %v244_v18, 0.0  ;;  %v309_v27 = vmax.f32 %v245_v19, 0.0  ;;  %v480_v28 = vunpack.c.l.bf16 %v554_v15  ;;  %v481_v29 = vunpack.c.h.bf16 %v554_v15 }
  0x23   :  { %367 = vst [vmem:[%s1020_s3 + $0xc8] sm:$0xff] %v303_v12  ;;  %v178_v30 = vmul.f32 %v597_v1, %v476_v23  ;;  %v179_v31 = vmul.f32 %v597_v1, %v477_v24  ;;  %v484_v32 = vunpack.c.l.bf16 %v555_v20  ;;  %v485_v33 = vunpack.c.h.bf16 %v555_v20  ;;  %v561_v20 = vld [vmem:[%s1017_s0 + $0xc0] sm:$0xff]  }
  0x24   :  { %368 = vst [vmem:[%s1020_s3 + $0xd0] sm:$0xff] %v304_v16  ;;  %v180_v34 = vmul.f32 %v597_v1, %v480_v28  ;;  %v181_v35 = vmul.f32 %v597_v1, %v481_v29  ;;  %v488_v36 = vunpack.c.l.bf16 %v556_v25  ;;  %v489_v37 = vunpack.c.h.bf16 %v556_v25  ;;  %v562_v25 = vld [vmem:[%s1017_s0 + $0xc8] sm:$0xff]  }
  0x25   :  { %369 = vst [vmem:[%s1020_s3 + $0xd8] sm:$0xff] %v305_v17  ;;  %v246_v38 = vadd.f32 %v602_v3, %v178_v30  ;;  %v247_v39 = vadd.f32 %v602_v3, %v179_v31  ;;  %v182_v40 = vmul.f32 %v597_v1, %v484_v32  ;;  %v183_v41 = vmul.f32 %v597_v1, %v485_v33  ;;  %v563_v30 = vld [vmem:[%s1017_s0 + $0xd0] sm:$0xff]  }
  0x26   :  { %370 = vst [vmem:[%s1020_s3 + $0xe0] sm:$0xff] %v306_v21  ;;  %v248_v42 = vadd.f32 %v602_v3, %v180_v34  ;;  %v249_v43 = vadd.f32 %v602_v3, %v181_v35  ;;  %v184_v44 = vmul.f32 %v597_v1, %v488_v36  ;;  %v185_v45 = vmul.f32 %v597_v1, %v489_v37  ;;  %v564_v35 = vld [vmem:[%s1017_s0 + $0xd8] sm:$0xff]  }
  0x27   :  { %371 = vst [vmem:[%s1020_s3 + $0xe8] sm:$0xff] %v307_v22  ;;  %v310_v47 = vmax.f32 %v246_v38, 0.0  ;;  %v311_v48 = vmax.f32 %v247_v39, 0.0  ;;  %v250_v49 = vadd.f32 %v602_v3, %v182_v40  ;;  %v251_v50 = vadd.f32 %v602_v3, %v183_v41 }
  0x28   :  { %372 = vst [vmem:[%s1020_s3 + $0xf0] sm:$0xff] %v308_v26  ;;  %v312_v52 = vmax.f32 %v248_v42, 0.0  ;;  %v313_v53 = vmax.f32 %v249_v43, 0.0  ;;  %v252_v54 = vadd.f32 %v602_v3, %v184_v44  ;;  %v253_v55 = vadd.f32 %v602_v3, %v185_v45 }
  0x29   :  { %373 = vst [vmem:[%s1020_s3 + $0xf8] sm:$0xff] %v309_v27  ;;  %v314_v57 = vmax.f32 %v250_v49, 0.0  ;;  %v315_v58 = vmax.f32 %v251_v50, 0.0  ;;  %v492_v59 = vunpack.c.l.bf16 %v557_v46  ;;  %v493_v60 = vunpack.c.h.bf16 %v557_v46 }
  0x2a   :  { %374 = vst [vmem:[%s1020_s3 + $0x100] sm:$0xff] %v310_v47  ;;  %v316_v62 = vmax.f32 %v252_v54, 0.0  ;;  %v317_v63 = vmax.f32 %v253_v55, 0.0  ;;  %v496_v0 = vunpack.c.l.bf16 %v558_v51  ;;  %v497_v2 = vunpack.c.h.bf16 %v558_v51 }
  0x2b   :  { %375 = vst [vmem:[%s1020_s3 + $0x108] sm:$0xff] %v311_v48  ;;  %v186_v4 = vmul.f32 %v597_v1, %v492_v59  ;;  %v187_v5 = vmul.f32 %v597_v1, %v493_v60  ;;  %v500_v6 = vunpack.c.l.bf16 %v559_v56  ;;  %v501_v7 = vunpack.c.h.bf16 %v559_v56  ;;  %v565_v56 = vld [vmem:[%s1017_s0 + $0xe0] sm:$0xff]  }
  0x2c   :  { %376 = vst [vmem:[%s1020_s3 + $0x110] sm:$0xff] %v312_v52  ;;  %v188_v8 = vmul.f32 %v597_v1, %v496_v0  ;;  %v189_v9 = vmul.f32 %v597_v1, %v497_v2  ;;  %v504_v10 = vunpack.c.l.bf16 %v560_v61  ;;  %v505_v11 = vunpack.c.h.bf16 %v560_v61  ;;  %v566_v61 = vld [vmem:[%s1017_s0 + $0xe8] sm:$0xff]  }
  0x2d   :  { %377 = vst [vmem:[%s1020_s3 + $0x118] sm:$0xff] %v313_v53  ;;  %v254_v12 = vadd.f32 %v602_v3, %v186_v4  ;;  %v255_v13 = vadd.f32 %v602_v3, %v187_v5  ;;  %v190_v14 = vmul.f32 %v597_v1, %v500_v6  ;;  %v191_v15 = vmul.f32 %v597_v1, %v501_v7  ;;  %v567_v4 = vld [vmem:[%s1017_s0 + $0xf0] sm:$0xff]  }
  0x2e   :  { %378 = vst [vmem:[%s1020_s3 + $0x120] sm:$0xff] %v314_v57  ;;  %v256_v16 = vadd.f32 %v602_v3, %v188_v8  ;;  %v257_v17 = vadd.f32 %v602_v3, %v189_v9  ;;  %v192_v18 = vmul.f32 %v597_v1, %v504_v10  ;;  %v193_v19 = vmul.f32 %v597_v1, %v505_v11  ;;  %v568_v9 = vld [vmem:[%s1017_s0 + $0xf8] sm:$0xff]  }
  0x2f   :  { %379 = vst [vmem:[%s1020_s3 + $0x128] sm:$0xff] %v315_v58  ;;  %v318_v21 = vmax.f32 %v254_v12, 0.0  ;;  %v319_v22 = vmax.f32 %v255_v13, 0.0  ;;  %v258_v23 = vadd.f32 %v602_v3, %v190_v14  ;;  %v259_v24 = vadd.f32 %v602_v3, %v191_v15 }
  0x30   :  { %380 = vst [vmem:[%s1020_s3 + $0x130] sm:$0xff] %v316_v62  ;;  %v320_v26 = vmax.f32 %v256_v16, 0.0  ;;  %v321_v27 = vmax.f32 %v257_v17, 0.0  ;;  %v260_v28 = vadd.f32 %v602_v3, %v192_v18  ;;  %v261_v29 = vadd.f32 %v602_v3, %v193_v19 }
  0x31   :  { %381 = vst [vmem:[%s1020_s3 + $0x138] sm:$0xff] %v317_v63  ;;  %v322_v31 = vmax.f32 %v258_v23, 0.0  ;;  %v323_v32 = vmax.f32 %v259_v24, 0.0  ;;  %v508_v33 = vunpack.c.l.bf16 %v561_v20  ;;  %v509_v34 = vunpack.c.h.bf16 %v561_v20 }
  0x32   :  { %382 = vst [vmem:[%s1020_s3 + $0x140] sm:$0xff] %v318_v21  ;;  %v324_v36 = vmax.f32 %v260_v28, 0.0  ;;  %v325_v37 = vmax.f32 %v261_v29, 0.0  ;;  %v512_v38 = vunpack.c.l.bf16 %v562_v25  ;;  %v513_v39 = vunpack.c.h.bf16 %v562_v25 }
  0x33   :  { %383 = vst [vmem:[%s1020_s3 + $0x148] sm:$0xff] %v319_v22  ;;  %v194_v40 = vmul.f32 %v597_v1, %v508_v33  ;;  %v195_v41 = vmul.f32 %v597_v1, %v509_v34  ;;  %v516_v42 = vunpack.c.l.bf16 %v563_v30  ;;  %v517_v43 = vunpack.c.h.bf16 %v563_v30 }
  0x34   :  { %384 = vst [vmem:[%s1020_s3 + $0x150] sm:$0xff] %v320_v26  ;;  %v196_v44 = vmul.f32 %v597_v1, %v512_v38  ;;  %v197_v45 = vmul.f32 %v597_v1, %v513_v39  ;;  %v520_v46 = vunpack.c.l.bf16 %v564_v35  ;;  %v521_v47 = vunpack.c.h.bf16 %v564_v35 }
  0x35   :  { %385 = vst [vmem:[%s1020_s3 + $0x158] sm:$0xff] %v321_v27  ;;  %v262_v48 = vadd.f32 %v602_v3, %v194_v40  ;;  %v263_v49 = vadd.f32 %v602_v3, %v195_v41  ;;  %v198_v50 = vmul.f32 %v597_v1, %v516_v42  ;;  %v199_v51 = vmul.f32 %v597_v1, %v517_v43 }
  0x36   :  { %386 = vst [vmem:[%s1020_s3 + $0x160] sm:$0xff] %v322_v31  ;;  %v264_v52 = vadd.f32 %v602_v3, %v196_v44  ;;  %v265_v53 = vadd.f32 %v602_v3, %v197_v45  ;;  %v200_v54 = vmul.f32 %v597_v1, %v520_v46  ;;  %v201_v55 = vmul.f32 %v597_v1, %v521_v47 }
  0x37   :  { %387 = vst [vmem:[%s1020_s3 + $0x168] sm:$0xff] %v323_v32  ;;  %v326_v57 = vmax.f32 %v262_v48, 0.0  ;;  %v327_v58 = vmax.f32 %v263_v49, 0.0  ;;  %v266_v59 = vadd.f32 %v602_v3, %v198_v50  ;;  %v267_v60 = vadd.f32 %v602_v3, %v199_v51 }
  0x38   :  { %388 = vst [vmem:[%s1020_s3 + $0x170] sm:$0xff] %v324_v36  ;;  %v328_v62 = vmax.f32 %v264_v52, 0.0  ;;  %v329_v63 = vmax.f32 %v265_v53, 0.0  ;;  %v268_v0 = vadd.f32 %v602_v3, %v200_v54  ;;  %v269_v2 = vadd.f32 %v602_v3, %v201_v55 }
  0x39   :  { %389 = vst [vmem:[%s1020_s3 + $0x178] sm:$0xff] %v325_v37  ;;  %v330_v5 = vmax.f32 %v266_v59, 0.0  ;;  %v331_v6 = vmax.f32 %v267_v60, 0.0  ;;  %v524_v7 = vunpack.c.l.bf16 %v565_v56  ;;  %v525_v8 = vunpack.c.h.bf16 %v565_v56 }
  0x3a   :  { %390 = vst [vmem:[%s1020_s3 + $0x180] sm:$0xff] %v326_v57  ;;  %v332_v10 = vmax.f32 %v268_v0, 0.0  ;;  %v333_v11 = vmax.f32 %v269_v2, 0.0  ;;  %v528_v12 = vunpack.c.l.bf16 %v566_v61  ;;  %v529_v13 = vunpack.c.h.bf16 %v566_v61 }
  0x3b   :  { %391 = vst [vmem:[%s1020_s3 + $0x188] sm:$0xff] %v327_v58  ;;  %v202_v14 = vmul.f32 %v597_v1, %v524_v7  ;;  %v203_v15 = vmul.f32 %v597_v1, %v525_v8  ;;  %v532_v16 = vunpack.c.l.bf16 %v567_v4  ;;  %v533_v17 = vunpack.c.h.bf16 %v567_v4 }
  0x3c   :  { %392 = vst [vmem:[%s1020_s3 + $0x190] sm:$0xff] %v328_v62  ;;  %v204_v18 = vmul.f32 %v597_v1, %v528_v12  ;;  %v205_v19 = vmul.f32 %v597_v1, %v529_v13  ;;  %v536_v20 = vunpack.c.l.bf16 %v568_v9  ;;  %v537_v21 = vunpack.c.h.bf16 %v568_v9 }
  0x3d   :  { %393 = vst [vmem:[%s1020_s3 + $0x198] sm:$0xff] %v329_v63  ;;  %v270_v22 = vadd.f32 %v602_v3, %v202_v14  ;;  %v271_v23 = vadd.f32 %v602_v3, %v203_v15  ;;  %v206_v24 = vmul.f32 %v597_v1, %v532_v16  ;;  %v207_v25 = vmul.f32 %v597_v1, %v533_v17 }
  0x3e   :  { %394 = vst [vmem:[%s1020_s3 + $0x1a0] sm:$0xff] %v330_v5  ;;  %v272_v26 = vadd.f32 %v602_v3, %v204_v18  ;;  %v273_v27 = vadd.f32 %v602_v3, %v205_v19  ;;  %v208_v28 = vmul.f32 %v597_v1, %v536_v20  ;;  %v209_v29 = vmul.f32 %v597_v1, %v537_v21 }
  0x3f   :  { %395 = vst [vmem:[%s1020_s3 + $0x1a8] sm:$0xff] %v331_v6  ;;  %v334_v30 = vmax.f32 %v270_v22, 0.0  ;;  %v335_v31 = vmax.f32 %v271_v23, 0.0  ;;  %v274_v32 = vadd.f32 %v602_v3, %v206_v24  ;;  %v275_v33 = vadd.f32 %v602_v3, %v207_v25 }
  0x40   :  { %396 = vst [vmem:[%s1020_s3 + $0x1b0] sm:$0xff] %v332_v10  ;;  %v336_v34 = vmax.f32 %v272_v26, 0.0  ;;  %v337_v35 = vmax.f32 %v273_v27, 0.0  ;;  %v276_v36 = vadd.f32 %v602_v3, %v208_v28  ;;  %v277_v1 = vadd.f32 %v602_v3, %v209_v29 }
  0x41   :  { %397 = vst [vmem:[%s1020_s3 + $0x1b8] sm:$0xff] %v333_v11  ;;  %v338_v37 = vmax.f32 %v274_v32, 0.0  ;;  %v339_v38 = vmax.f32 %v275_v33, 0.0 }
  0x42   :  { %398 = vst [vmem:[%s1020_s3 + $0x1c0] sm:$0xff] %v334_v30  ;;  %v340_v39 = vmax.f32 %v276_v36, 0.0  ;;  %v341_v3 = vmax.f32 %v277_v1, 0.0 }
  0x43   :  { %399 = vst [vmem:[%s1020_s3 + $0x1c8] sm:$0xff] %v335_v31 }
  0x44   :  { %400 = vst [vmem:[%s1020_s3 + $0x1d0] sm:$0xff] %v336_v34 }
  0x45   :  { %401 = vst [vmem:[%s1020_s3 + $0x1d8] sm:$0xff] %v337_v35 }
  0x46   :  { %402 = vst [vmem:[%s1020_s3 + $0x1e0] sm:$0xff] %v338_v37 }
  0x47   :  { %403 = vst [vmem:[%s1020_s3 + $0x1e8] sm:$0xff] %v339_v38 }
  0x48   :  { %404 = vst [vmem:[%s1020_s3 + $0x1f0] sm:$0xff] %v340_v39 }
  0x49   :  { %405 = vst [vmem:[%s1020_s3 + $0x1f8] sm:$0xff] %v341_v3 }

// kernel: upsample_block_forward.3
= control target key start
LH: loop header
LB: loop body
LE: loop exit
PB: predicated region body
PF: predicated region fallthrough
CT: control target
= control target key end

     0   :  { %s2113_s12 = smov 0   ;;  %s2757_s0 = inlined_call_operand.vmem [shape: bf16[2,10,10,8], index: 0, kind: input, shape index: {}]   ;;  %s2758_s1 = inlined_call_operand.vmem [shape: bf16[2,2,32,128], index: 1, kind: input, shape index: {}]   ;;  %s2759_s2 = inlined_call_operand.vmem [shape: bf16[2,8,2,8,256], index: 2, kind: output, shape index: {0}]   ;;  %s2760_s3 = inlined_call_operand.vmem [shape: f32[2,8,128], index: 3, kind: output, shape index: {1}]  }
   0x1 LB: > { %s1798_s13 = sadd.s32 4294967295, %s2088_s12   ;;  %p1802_p0 = scmp.ge.s32.totalorder %s2088_s12, 1  ;;  %s2088_s12 = sphi %s2113_s12, %s14_s12  }
   0x2   : > { %p140_p1 = scmp.lt.s32.totalorder %s2088_s12, 3 }
   0x4   : > { %p141_p2 = pnand %p1802_p0, %p140_p1 }
   0x5   : > { %p168_p3 = scmp.lt.s32.totalorder (!%p141_p2), %s1798_s13, 1  ;;  %s2090_s18 = smov (!%p141_p2), 16  }
   0x6   : > { %144 = sbr.rel (%p141_p2) target bundleno = 423 (0x1a7), region = 28  ;;  %s2091_s19 = smov (!%p141_p2), 8  }
   0x7   : > { %s2092_s20 = smov (!%p141_p2), 24  }
   0xb   : > { %s2766_s13 = smov (!%p168_p3, %s1798_s13), 1  ;;  %vm676_vm0 = vcmask 1042432   ;;  %vm677_vm1 = vcmask 1046532   ;;  %vm199_vm3 = vsmask.f32 3328  ;;  %vm531_vm6 = vcmask 64512  }
   0xc   : > { %s2070_s14 = smul.u32 80, %s2766_s13  ;;  %vm2129_vm2 = vmor %vm676_vm0, %vm677_vm1  ;;  %vm200_vm4 = vsmask.f32 7440  ;;  %vm544_vm7 = vcmask 130048   ;;  %vm553_vm8 = vcmask 195584   ;;  %vm578_vm9 = vcmask 261120  }
   0xd   : > { %vm2184_vm5 = vmor %vm199_vm3, %vm200_vm4  ;;  %s2045_s10 = sshll.u32 %s2766_s13, 7  ;;  %s1806_s16 = sshll.u32 %s2766_s13, 3  ;;  %vm1707_vm10 = vcmask 1040384   ;;  %vm1709_vm11 = vcmask 1041408  }
   0xe   : > { %s2127_s17 = scalar_lea.vmem %s2757_s0, %s2070_s14  ;;  %s2726_s15 = scalar_lea.vmem %s2759_s2, %s2045_s10 }
   0xf   : > { %v1957_v1 = vld [vmem:[%s2127_s17 + $0x10] sm:$0xf]  ;;  %v2062_v2 = vld [vmem:[%s2127_s17 + $0x14] sm:$0xf0]  ;;  %v1915_v3 = vld [vmem:[%s2127_s17 + $0xc] sm:$0x1] }
  0x10   : > { %v1958_v4 = vor.u32 %v2062_v2, %v1957_v1  ;;  %v2137_v5 = vld [vmem:[%s2127_s17 + $0x14] sm:$0x1]  ;;  %v1987_v6 = vld [vmem:[%s2127_s17 + $0x8] sm:$0xe]  ;;  %v1988_v7 = vld [vmem:[%s2127_s17 + $0x10] sm:$0xe] }
  0x11   : > { %v989_v8 = vshll.u32 %v2137_v5, 16  ;;  %v1995_v9 = vrot.slane %v1987_v6, 9  ;;  %v1438_v10 = vrot.slane %v1915_v3, 5  ;;  %v1996_v11 = vrot.slane %v1988_v7, 9  ;;  %v2143_v12 = vld [vmem:[%s2127_s17 + $0x4] sm:$0x1] }
  0x12   : > { %1266 = vrot.lane.b32.xlu0 %v1958_v4, %s2090_s18  ;;  %v1442_v13 = vrot.slane %v2137_v5, 5  ;;  %v975_v14 = vshll.u32 %v1915_v3, 16  ;;  %v2148_v15 = vld [vmem:[%s2127_s17 + $0xc] sm:$0x1]  ;;  %v652_v16 = vld [vmem:[%s2127_s17] sm:$0xe] }
  0x13   : > { %v1439_v17 = vsel %vm2129_vm2, %v1995_v9, %v1438_v10  ;;  %v653_v18 = vld [vmem:[%s2127_s17 + $0x8] sm:$0xe]  ;;  %v1867_v19 = vrot.slane %v652_v16, 9  ;;  %v681_v20 = vrot.slane %v2143_v12, 5  ;;  %v685_v21 = vrot.slane %v2148_v15, 5 }
  0x14   : > { %v1443_v22 = vsel %vm2129_vm2, %v1996_v11, %v1442_v13  ;;  %v1524_v23 = vunpack.c.l.b16 %v1439_v17  ;;  %v1868_v24 = vrot.slane %v653_v18, 9  ;;  %v1841_v25 = vld [vmem:[%s2127_s17 + $0x8] sm:$0xf]  ;;  %v2050_v26 = vld [vmem:[%s2127_s17 + $0xc] sm:$0xf0]  ;;  %v2160_v27 = vrot.slane %v975_v14, 5 }
  0x15   : > { %v1525_v28 = vunpack.c.l.b16 %v1443_v22  ;;  %v682_v29 = vsel %vm2129_vm2, %v1867_v19, %v681_v20  ;;  %v1842_v30 = vor.u32 %v2050_v26, %v1841_v25  ;;  %v1931_v31 = vld [vmem:[%s2127_s17 + $0x14] sm:$0x1]  ;;  %v1932_v32 = vld [vmem:[%s2127_s17 + $0x1c] sm:$0x1]  ;;  %v2003_v33 = vld [vmem:[%s2127_s17 + $0x10] sm:$0xe] }
  0x16   : > { %v686_v34 = vsel %vm2129_vm2, %v1868_v24, %v685_v21  ;;  %v767_v35 = vunpack.c.l.b16 %v682_v29  ;;  %v2004_v36 = vld [vmem:[%s2127_s17 + $0x18] sm:$0xe]  ;;  %v2011_v37 = vrot.slane %v2003_v33, 9  ;;  %v1494_v38 = vrot.slane %v1931_v31, 5  ;;  %v1907_v39 = vld [vmem:[%s2127_s17 + $0x8] sm:$0xf] }
  0x17   : > { %v1532_v40 = vpack.c.b16 %v1525_v28, %v1524_v23  ;;  %v768_v41 = vunpack.c.l.b16 %v686_v34  ;;  %503 = vrot.lane.b32.xlu2 %v1842_v30, %s2090_s18  ;;  %v2012_v42 = vrot.slane %v2004_v36, 9  ;;  %v1498_v43 = vrot.slane %v1932_v32, 5  ;;  %v1908_v44 = vld [vmem:[%s2127_s17 + $0x10] sm:$0xf]  ;;  %v1924_v54 = vld [vmem:[%s2127_s17 + $0x18] sm:$0xf] }
  0x18   : > { %v1495_v45 = vsel %vm2129_vm2, %v2011_v37, %v1494_v38  ;;  %v966_v46 = vshrl.u32 %v1907_v39, 16  ;;  %v969_v47 = vshll.u32 %v1907_v39, 16  ;;  %v980_v48 = vshrl.u32 %v1908_v44, 16  ;;  %v1923_v49 = vld [vmem:[%s2127_s17 + $0x10] sm:$0xf] }
  0x19   : > { %1536 = vrot.lane.b32.xlu1 %v1532_v40, %s2091_s19  ;;  %v775_v50 = vpack.c.b16 %v768_v41, %v767_v35  ;;  %v1499_v51 = vsel %vm2129_vm2, %v2012_v42, %v1498_v43  ;;  %v1552_v52 = vunpack.c.l.b16 %v1495_v45  ;;  %v983_v53 = vshll.u32 %v1908_v44, 16  ;;  %v1807_v4 = vld [vmem:[%s2127_s17 + $0x8] sm:$0xf]  ;;  %v2189_v11 = vld [vmem:[%s2127_s17 + $0xc] sm:$0x1] }
  0x1a   : > { %v1553_v55 = vunpack.c.l.b16 %v1499_v51  ;;  %v968_v56 = vrot.slane %v966_v46, 4  ;;  %v971_v57 = vrot.slane %v969_v47, 5  ;;  %v982_v58 = vrot.slane %v980_v48, 4  ;;  %v1808_v23 = vld [vmem:[%s2127_s17 + $0x10] sm:$0xf] }
  0x1b   : > { %779 = vrot.lane.b32.xlu0 %v775_v50, %s2091_s19  ;;  %v985_v59 = vrot.slane %v983_v53, 5  ;;  %v991_v60 = vrot.slane %v989_v8, 5  ;;  %v1095_v61 = vshrl.u32 %v1923_v49, 16  ;;  %v1098_v62 = vshll.u32 %v1923_v49, 16  ;;  %v183_v35 = vld [vmem:[%s2127_s17] sm:$0xf] }
  0x1c   : > { %v1560_v63 = vpack.c.b16 %v1553_v55, %v1552_v52  ;;  %v972_v1 = vor.u32 %v971_v57, %v968_v56  ;;  %v1104_v2 = vshll.u32 %v1931_v31, 16  ;;  %v1109_v3 = vshrl.u32 %v1924_v54, 16  ;;  %v2200_v31 = vld [vmem:[%s2127_s17 + $0x14] sm:$0x1]  ;;  %v184_v44 = vld [vmem:[%s2127_s17 + $0x8] sm:$0xf] }
  0x1d   : > { %v986_v6 = vor.u32 %v985_v59, %v982_v58  ;;  %v1097_v7 = vrot.slane %v1095_v61, 4  ;;  %v1100_v9 = vrot.slane %v1098_v62, 5  ;;  %v1112_v10 = vshll.u32 %v1924_v54, 16  ;;  %v1909_v57 = vld [vmem:[%s2127_s17 + $0x18] sm:$0xf] }
  0x1e   : > { %v973_v8 = vrot.slane %v972_v1, 4  ;;  %v1106_v13 = vrot.slane %v1104_v2, 5  ;;  %v1111_v14 = vrot.slane %v1109_v3, 4  ;;  %v1118_v16 = vshll.u32 %v1932_v32, 16  ;;  %v1910_v62 = vld [vmem:[%s2127_s17 + $0x20] sm:$0xf] }
  0x1f   : > { %v987_v17 = vrot.slane %v986_v6, 4  ;;  %v1101_v18 = vor.u32 %v1100_v9, %v1097_v7  ;;  %v1114_v19 = vrot.slane %v1112_v10, 5  ;;  %v332_v20 = vshrl.u32 %v1807_v4, 16  ;;  %v1941_v5 = vld [vmem:[%s2127_s17 + $0x8] sm:$0xf] }
  0x20   : > { %v978_v21 = vsel %vm2184_vm5, %v973_v8, %v2160_v27  ;;  %v1120_v22 = vrot.slane %v1118_v16, 5  ;;  %v335_v24 = vshll.u32 %v1807_v4, 16  ;;  %v341_v25 = vshll.u32 %v2189_v11, 16  ;;  %v1918_v8 = vld [vmem:[%s2127_s17 + $0x24] sm:$0x1] }
  0x21   : > { %1564 = vrot.lane.b32.xlu1 %v1560_v63, %s2092_s20  ;;  %v992_v26 = vsel %vm2184_vm5, %v987_v17, %v991_v60  ;;  %v1226_v28 = vunpack.c.l.b16 %v978_v21  ;;  %v1102_v29 = vrot.slane %v1101_v18, 4  ;;  %v1115_v30 = vor.u32 %v1114_v19, %v1111_v14  ;;  %v1917_v63 = vld [vmem:[%s2127_s17 + $0x1c] sm:$0x1]  ;;  %v2226_v21 = vld [vmem:[%s2127_s17 + $0x20] sm:$0xf] }
  0x22   : > { %v1227_v32 = vunpack.c.l.b16 %v992_v26  ;;  %v334_v27 = vrot.slane %v332_v20, 4  ;;  %v337_v33 = vrot.slane %v335_v24, 5  ;;  %v343_v34 = vrot.slane %v341_v25, 5  ;;  %v1989_v26 = vld [vmem:[%s2127_s17 + $0x18] sm:$0xe] }
  0x23   : > { %v1107_v36 = vsel %vm2184_vm5, %v1102_v29, %v1106_v13  ;;  %v1116_v37 = vrot.slane %v1115_v30, 4  ;;  %v346_v38 = vshrl.u32 %v1808_v23, 16  ;;  %v349_v39 = vshll.u32 %v1808_v23, 16 }
  0x24   : > { %v2205_v40 = vpack.c.b16 %v1227_v32, %v1226_v28  ;;  %v1274_v41 = vunpack.c.l.b16 %v1107_v36  ;;  %v338_v42 = vor.u32 %v337_v33, %v334_v27  ;;  %v355_v43 = vshll.u32 %v2200_v31, 16  ;;  %v1990_v27 = vld [vmem:[%s2127_s17 + $0x20] sm:$0xe] }
  0x25   : > { %v1121_v45 = vsel %vm2184_vm5, %v1116_v37, %v1120_v22  ;;  %v348_v46 = vrot.slane %v346_v38, 4  ;;  %v351_v47 = vrot.slane %v349_v39, 5  ;;  %v203_v48 = vshrl.u32 %v183_v35, 16  ;;  %v2229_v22 = vld [vmem:[%s2127_s17 + $0x24] sm:$0xf0] }
  0x26   : > { %1238 = vrot.lane.b32.xlu0 %v2205_v40, %s2091_s19  ;;  %v1275_v49 = vunpack.c.l.b16 %v1121_v45  ;;  %v339_v50 = vrot.slane %v338_v42, 4  ;;  %v357_v51 = vrot.slane %v355_v43, 5  ;;  %v206_v52 = vshll.u32 %v183_v35, 16  ;;  %v1925_v37 = vld [vmem:[%s2127_s17 + $0x20] sm:$0xf] }
  0x27   : > { %v352_v53 = vor.u32 %v351_v47, %v348_v46  ;;  %v205_v54 = vrot.slane %v203_v48, 4  ;;  %v212_v55 = vshll.u32 %v2143_v12, 16  ;;  %v217_v56 = vshrl.u32 %v184_v44, 16 }
  0x28   : > { %v1282_v58 = vpack.c.b16 %v1275_v49, %v1274_v41  ;;  %v344_v59 = vsel %vm2184_vm5, %v339_v50, %v343_v34  ;;  %v208_v60 = vrot.slane %v206_v52, 5  ;;  %v220_v61 = vshll.u32 %v184_v44, 16  ;;  %v1926_v50 = vld [vmem:[%s2127_s17 + $0x28] sm:$0xf] }
  0x29   : > { %v353_v1 = vrot.slane %v352_v53, 4  ;;  %v511_v2 = vunpack.c.l.b16 %v344_v59  ;;  %v214_v3 = vrot.slane %v212_v55, 5  ;;  %v219_v4 = vrot.slane %v217_v56, 4  ;;  %v2253_v56 = vld [vmem:[%s2127_s17 + $0x2c] sm:$0x1] }
  0x2a   : > { %1544 = vrot.lane.b32.xlu2 %v1282_v58, %s2090_s18  ;;  %1286 = vrot.lane.b32.xlu1 %v1282_v58, %s2092_s20  ;;  %v209_v12 = vor.u32 %v208_v60, %v205_v54  ;;  %v222_v6 = vrot.slane %v220_v61, 5  ;;  %v226_v7 = vshll.u32 %v2148_v15, 16  ;;  %v994_v9 = vshrl.u32 %v1909_v57, 16  ;;  %v1875_v58 = vld [vmem:[%s2127_s17 + $0x8] sm:$0xe] }
  0x2b   : > { %v358_v10 = vsel %vm2184_vm5, %v353_v1, %v357_v51  ;;  %v997_v13 = vshll.u32 %v1909_v57, 16  ;;  %v1003_v14 = vshll.u32 %v1917_v63, 16  ;;  %v1008_v16 = vshrl.u32 %v1910_v62, 16  ;;  %v2246_v51 = vld [vmem:[%s2127_s17 + $0x24] sm:$0x1] }
  0x2c   : > { %v512_v17 = vunpack.c.l.b16 %v358_v10  ;;  %v210_v18 = vrot.slane %v209_v12, 4  ;;  %v223_v19 = vor.u32 %v222_v6, %v219_v4  ;;  %v228_v20 = vrot.slane %v226_v7, 5  ;;  %v1876_v7 = vld [vmem:[%s2127_s17 + $0x10] sm:$0xe] }
  0x2d   : > { %v996_v15 = vrot.slane %v994_v9, 4  ;;  %v999_v23 = vrot.slane %v997_v13, 5  ;;  %v1005_v24 = vrot.slane %v1003_v14, 5  ;;  %v1010_v25 = vrot.slane %v1008_v16, 4  ;;  %v2266_v16 = vld [vmem:[%s2127_s17 + $0x14] sm:$0x1] }
  0x2e   : > { %v519_v28 = vpack.c.b16 %v512_v17, %v511_v2  ;;  %v215_v29 = vsel %vm2184_vm5, %v210_v18, %v214_v3  ;;  %v224_v30 = vrot.slane %v223_v19, 4  ;;  %v1011_v32 = vshll.u32 %v1910_v62, 16  ;;  %v654_v17 = vld [vmem:[%s2127_s17 + $0x10] sm:$0xe] }
  0x2f   : > { %v463_v33 = vunpack.c.l.b16 %v215_v29  ;;  %v1000_v34 = vor.u32 %v999_v23, %v996_v15  ;;  %v1017_v35 = vshll.u32 %v1918_v8, 16  ;;  %v1962_v36 = vor.u32 %v2229_v22, %v2226_v21  ;;  %v655_v22 = vld [vmem:[%s2127_s17 + $0x18] sm:$0xe]  ;;  %v2278_v29 = vld [vmem:[%s2127_s17 + $0x1c] sm:$0x1] }
  0x30   : > { %787 = vrot.lane.b32.xlu0 %v519_v28, %s2090_s18  ;;  %v229_v38 = vsel %vm2184_vm5, %v224_v30, %v228_v20  ;;  %v1013_v39 = vrot.slane %v1011_v32, 5  ;;  %v1997_v41 = vrot.slane %v1989_v26, 9  ;;  %v1446_v42 = vrot.slane %v1917_v63, 5  ;;  %v2005_v32 = vld [vmem:[%s2127_s17 + $0x20] sm:$0xe] }
  0x31   : > { %v464_v43 = vunpack.c.l.b16 %v229_v38  ;;  %v1001_v44 = vrot.slane %v1000_v34, 4  ;;  %v1019_v45 = vrot.slane %v1017_v35, 5  ;;  %v1998_v46 = vrot.slane %v1990_v27, 9  ;;  %v2006_v35 = vld [vmem:[%s2127_s17 + $0x28] sm:$0xe] }
  0x32   : > { %523 = vrot.lane.b32.xlu1 %v519_v28, %s2092_s20  ;;  %v1014_v47 = vor.u32 %v1013_v39, %v1010_v25  ;;  %v1447_v48 = vsel %vm2129_vm2, %v1997_v41, %v1446_v42  ;;  %v1450_v49 = vrot.slane %v1918_v8, 5  ;;  %v1123_v52 = vshrl.u32 %v1925_v37, 16  ;;  %v1809_v41 = vld [vmem:[%s2127_s17 + $0x18] sm:$0xf] }
  0x33   : > { %v2248_v53 = vpack.c.b16 %v464_v43, %v463_v33  ;;  %v1006_v54 = vsel %vm2184_vm5, %v1001_v44, %v1005_v24  ;;  %v1526_v55 = vunpack.c.l.b16 %v1447_v48  ;;  %v1126_v57 = vshll.u32 %v1925_v37, 16 }
  0x34   : > { %v1015_v59 = vrot.slane %v1014_v47, 4  ;;  %v1228_v60 = vunpack.c.l.b16 %v1006_v54  ;;  %v1451_v61 = vsel %vm2129_vm2, %v1998_v46, %v1450_v49  ;;  %v1125_v62 = vrot.slane %v1123_v52, 4 }
  0x35   : > { %475 = vrot.lane.b32.xlu2 %v2248_v53, %s2091_s19  ;;  %v1527_v63 = vunpack.c.l.b16 %v1451_v61  ;;  %v1128_v1 = vrot.slane %v1126_v57, 5  ;;  %v1132_v2 = vshll.u32 %v2246_v51, 16  ;;  %v1137_v3 = vshrl.u32 %v1926_v50, 16  ;;  %v1810_v57 = vld [vmem:[%s2127_s17 + $0x20] sm:$0xf] }
  0x36   : > { %v1020_v4 = vsel %vm2184_vm5, %v1015_v59, %v1019_v45  ;;  %v1140_v12 = vshll.u32 %v1926_v50, 16  ;;  %v1146_v6 = vshll.u32 %v2253_v56, 16  ;;  %v1883_v9 = vrot.slane %v1875_v58, 9  ;;  %v2298_v50 = vld [vmem:[%s2127_s17 + $0x1c] sm:$0x1] }
  0x37   : > { %v1229_v10 = vunpack.c.l.b16 %v1020_v4  ;;  %v1533_v8 = vpack.c.b16 %v1527_v63, %v1526_v55  ;;  %v1129_v13 = vor.u32 %v1128_v1, %v1125_v62  ;;  %v1134_v14 = vrot.slane %v1132_v2, 5  ;;  %v185_v62 = vld [vmem:[%s2127_s17 + $0x10] sm:$0xf] }
  0x38   : > { %v1139_v18 = vrot.slane %v1137_v3, 4  ;;  %v1142_v19 = vrot.slane %v1140_v12, 5  ;;  %v1148_v20 = vrot.slane %v1146_v6, 5  ;;  %v737_v21 = vrot.slane %v2189_v11, 5 }
  0x39   : > { %v2271_v15 = vpack.c.b16 %v1229_v10, %v1228_v60  ;;  %v1130_v23 = vrot.slane %v1129_v13, 4  ;;  %v1884_v24 = vrot.slane %v1876_v7, 9  ;;  %v741_v25 = vrot.slane %v2200_v31, 5 }
  0x3a   : > { %1268 = vrot.lane.b32.xlu1 %v1962_v36, %s2090_s18  ;;  %v1143_v26 = vor.u32 %v1142_v19, %v1139_v18  ;;  %v738_v28 = vsel %vm2129_vm2, %v1883_v9, %v737_v21  ;;  %v1869_v30 = vrot.slane %v654_v17, 9  ;;  %v689_v11 = vrot.slane %v2266_v16, 5  ;;  %v186_v9 = vld [vmem:[%s2127_s17 + $0x18] sm:$0xf] }
  0x3b   : > { %1240 = vrot.lane.b32.xlu0 %v2271_v15, %s2091_s19  ;;  %v1135_v27 = vsel %vm2184_vm5, %v1130_v23, %v1134_v14  ;;  %v742_v31 = vsel %vm2129_vm2, %v1884_v24, %v741_v25  ;;  %v795_v33 = vunpack.c.l.b16 %v738_v28  ;;  %v1870_v34 = vrot.slane %v655_v22, 9  ;;  %v1911_v22 = vld [vmem:[%s2127_s17 + $0x28] sm:$0xf] }
  0x3c   : > { %v1144_v36 = vrot.slane %v1143_v26, 4  ;;  %v1276_v37 = vunpack.c.l.b16 %v1135_v27  ;;  %v796_v38 = vunpack.c.l.b16 %v742_v31  ;;  %v690_v39 = vsel %vm2129_vm2, %v1869_v30, %v689_v11 }
  0x3d   : > { %v693_v42 = vrot.slane %v2278_v29, 5  ;;  %v769_v43 = vunpack.c.l.b16 %v690_v39  ;;  %v2013_v44 = vrot.slane %v2005_v32, 9  ;;  %v1502_v45 = vrot.slane %v2246_v51, 5  ;;  %v1920_v39 = vld [vmem:[%s2127_s17 + $0x34] sm:$0x1] }
  0x3e   : > { %v1149_v46 = vsel %vm2184_vm5, %v1144_v36, %v1148_v20  ;;  %v803_v47 = vpack.c.b16 %v796_v38, %v795_v33  ;;  %v2014_v48 = vrot.slane %v2006_v35, 9  ;;  %v1506_v49 = vrot.slane %v2253_v56, 5  ;;  %v2309_v56 = vld [vmem:[%s2127_s17 + $0x24] sm:$0x1]  ;;  %v1919_v33 = vld [vmem:[%s2127_s17 + $0x2c] sm:$0x1] }
  0x3f   : > { %v1277_v52 = vunpack.c.l.b16 %v1149_v46  ;;  %v694_v54 = vsel %vm2129_vm2, %v1870_v34, %v693_v42  ;;  %v1503_v55 = vsel %vm2129_vm2, %v2013_v44, %v1502_v45  ;;  %v360_v58 = vshrl.u32 %v1809_v41, 16  ;;  %v1912_v38 = vld [vmem:[%s2127_s17 + $0x30] sm:$0xf] }
  0x40   : > { %807 = vrot.lane.b32.xlu2 %v803_v47, %s2092_s20  ;;  %v770_v51 = vunpack.c.l.b16 %v694_v54  ;;  %v1507_v59 = vsel %vm2129_vm2, %v2014_v48, %v1506_v49  ;;  %v1554_v60 = vunpack.c.l.b16 %v1503_v55  ;;  %v363_v61 = vshll.u32 %v1809_v41, 16  ;;  %v2332_v49 = vld [vmem:[%s2127_s17 + $0x34] sm:$0xf0] }
  0x41   : > { %v1283_v63 = vpack.c.b16 %v1277_v52, %v1276_v37  ;;  %v1555_v1 = vunpack.c.l.b16 %v1507_v59  ;;  %v362_v2 = vrot.slane %v360_v58, 4  ;;  %v369_v3 = vshll.u32 %v2298_v50, 16  ;;  %v2335_v52 = vld [vmem:[%s2127_s17 + $0x18] sm:$0xf] }
  0x42   : > { %v776_v4 = vpack.c.b16 %v770_v51, %v769_v43  ;;  %v365_v12 = vrot.slane %v363_v61, 5  ;;  %v374_v6 = vshrl.u32 %v1810_v57, 16  ;;  %v377_v7 = vshll.u32 %v1810_v57, 16  ;;  %v2340_v51 = vld [vmem:[%s2127_s17 + $0x1c] sm:$0xf0] }
  0x43   : > { %1538 = vrot.lane.b32.xlu0 %v1533_v8, %s2091_s19  ;;  %1546 = vrot.lane.b32.xlu1 %v1283_v63, %s2090_s18  ;;  %v1561_v10 = vpack.c.b16 %v1555_v1, %v1554_v60  ;;  %v371_v13 = vrot.slane %v369_v3, 5  ;;  %v383_v14 = vshll.u32 %v2309_v56, 16  ;;  %v231_v17 = vshrl.u32 %v185_v62, 16 }
  0x44   : > { %v366_v18 = vor.u32 %v365_v12, %v362_v2  ;;  %v376_v19 = vrot.slane %v374_v6, 4  ;;  %v379_v20 = vrot.slane %v377_v7, 5  ;;  %v234_v21 = vshll.u32 %v185_v62, 16  ;;  %v1992_v12 = vld [vmem:[%s2127_s17 + $0x30] sm:$0xe] }
  0x45   : > { %v385_v23 = vrot.slane %v383_v14, 5  ;;  %v233_v24 = vrot.slane %v231_v17, 4  ;;  %v240_v25 = vshll.u32 %v2266_v16, 16  ;;  %v245_v26 = vshrl.u32 %v186_v9, 16 }
  0x46   : > { %v367_v8 = vrot.slane %v366_v18, 4  ;;  %v380_v28 = vor.u32 %v379_v20, %v376_v19  ;;  %v236_v30 = vrot.slane %v234_v21, 5  ;;  %v248_v11 = vshll.u32 %v186_v9, 16 }
  0x47   : > { %v242_v32 = vrot.slane %v240_v25, 5  ;;  %v247_v27 = vrot.slane %v245_v26, 4  ;;  %v254_v31 = vshll.u32 %v2278_v29, 16  ;;  %v1022_v34 = vshrl.u32 %v1911_v22, 16  ;;  %v2327_v29 = vld [vmem:[%s2127_s17 + $0x30] sm:$0xf] }
  0x48   : > { %1288 = vrot.lane.b32.xlu2 %v1283_v63, %s2092_s20  ;;  %v372_v16 = vsel %vm2184_vm5, %v367_v8, %v371_v13  ;;  %v381_v35 = vrot.slane %v380_v28, 4  ;;  %v237_v36 = vor.u32 %v236_v30, %v233_v24  ;;  %v250_v37 = vrot.slane %v248_v11, 5  ;;  %v1991_v63 = vld [vmem:[%s2127_s17 + $0x28] sm:$0xe]  ;;  %v1927_v13 = vld [vmem:[%s2127_s17 + $0x30] sm:$0xf] }
  0x49   : > { %v513_v41 = vunpack.c.l.b16 %v372_v16  ;;  %v256_v42 = vrot.slane %v254_v31, 5  ;;  %v1024_v43 = vrot.slane %v1022_v34, 4  ;;  %v1025_v44 = vshll.u32 %v1911_v22, 16  ;;  %v1928_v26 = vld [vmem:[%s2127_s17 + $0x38] sm:$0xf] }
  0x4a   : > { %v386_v45 = vsel %vm2184_vm5, %v381_v35, %v385_v23  ;;  %v238_v46 = vrot.slane %v237_v36, 4  ;;  %v251_v47 = vor.u32 %v250_v37, %v247_v27  ;;  %v1031_v48 = vshll.u32 %v1919_v33, 16  ;;  %v2359_v8 = vld [vmem:[%s2127_s17 + $0x34] sm:$0x1]  ;;  %v1877_v37 = vld [vmem:[%s2127_s17 + $0x18] sm:$0xe] }
  0x4b   : > { %781 = vrot.lane.b32.xlu0 %v776_v4, %s2091_s19  ;;  %1566 = vrot.lane.b32.xlu1 %v1561_v10, %s2092_s20  ;;  %v514_v54 = vunpack.c.l.b16 %v386_v45  ;;  %v1027_v55 = vrot.slane %v1025_v44, 5  ;;  %v1036_v57 = vshrl.u32 %v1912_v38, 16  ;;  %v1039_v58 = vshll.u32 %v1912_v38, 16 }
  0x4c   : > { %v243_v59 = vsel %vm2184_vm5, %v238_v46, %v242_v32  ;;  %v252_v60 = vrot.slane %v251_v47, 4  ;;  %v1033_v61 = vrot.slane %v1031_v48, 5  ;;  %v1045_v62 = vshll.u32 %v1920_v39, 16  ;;  %v2381_v48 = vld [vmem:[%s2127_s17 + $0x24] sm:$0x1] }
  0x4d   : > { %v520_v1 = vpack.c.b16 %v514_v54, %v513_v41  ;;  %v465_v2 = vunpack.c.l.b16 %v243_v59  ;;  %v1028_v3 = vor.u32 %v1027_v55, %v1024_v43  ;;  %v1038_v4 = vrot.slane %v1036_v57, 4  ;;  %v1878_v43 = vld [vmem:[%s2127_s17 + $0x20] sm:$0xe] }
  0x4e   : > { %v257_v6 = vsel %vm2184_vm5, %v252_v60, %v256_v42  ;;  %v1041_v7 = vrot.slane %v1039_v58, 5  ;;  %v1047_v9 = vrot.slane %v1045_v62, 5  ;;  %v1966_v10 = vor.u32 %v2332_v49, %v2327_v29  ;;  %v656_v54 = vld [vmem:[%s2127_s17 + $0x20] sm:$0xe]  ;;  %v657_v60 = vld [vmem:[%s2127_s17 + $0x28] sm:$0xe] }
  0x4f   : > { %v466_v14 = vunpack.c.l.b16 %v257_v6  ;;  %v1029_v17 = vrot.slane %v1028_v3, 4  ;;  %v1846_v18 = vor.u32 %v2340_v51, %v2335_v52  ;;  %v1999_v19 = vrot.slane %v1991_v63, 9  ;;  %v1812_v51 = vld [vmem:[%s2127_s17 + $0x30] sm:$0xf] }
  0x50   : > { %v1042_v20 = vor.u32 %v1041_v7, %v1038_v4  ;;  %v1454_v21 = vrot.slane %v1919_v33, 5  ;;  %v2000_v22 = vrot.slane %v1992_v12, 9  ;;  %v1458_v23 = vrot.slane %v1920_v39, 5  ;;  %v2366_v33 = vld [vmem:[%s2127_s17 + $0x3c] sm:$0x1] }
  0x51   : > { %v2353_v24 = vpack.c.b16 %v466_v14, %v465_v2  ;;  %v1034_v25 = vsel %vm2184_vm5, %v1029_v17, %v1033_v61  ;;  %v1151_v28 = vshrl.u32 %v1927_v13, 16  ;;  %v1154_v30 = vshll.u32 %v1927_v13, 16  ;;  %v2389_v2 = vld [vmem:[%s2127_s17 + $0x2c] sm:$0x1]  ;;  %v2007_v7 = vld [vmem:[%s2127_s17 + $0x30] sm:$0xe] }
  0x52   : > { %v1043_v11 = vrot.slane %v1042_v20, 4  ;;  %v1230_v32 = vunpack.c.l.b16 %v1034_v25  ;;  %v1455_v27 = vsel %vm2129_vm2, %v1999_v19, %v1454_v21  ;;  %v1459_v31 = vsel %vm2129_vm2, %v2000_v22, %v1458_v23  ;;  %v2008_v19 = vld [vmem:[%s2127_s17 + $0x38] sm:$0xe] }
  0x53   : > { %789 = vrot.lane.b32.xlu0 %v520_v1, %s2090_s18  ;;  %525 = vrot.lane.b32.xlu1 %v520_v1, %s2092_s20  ;;  %v1528_v34 = vunpack.c.l.b16 %v1455_v27  ;;  %v1529_v16 = vunpack.c.l.b16 %v1459_v31  ;;  %v1153_v35 = vrot.slane %v1151_v28, 4  ;;  %v1156_v36 = vrot.slane %v1154_v30, 5  ;;  %v1811_v28 = vld [vmem:[%s2127_s17 + $0x28] sm:$0xf] }
  0x54   : > { %477 = vrot.lane.b32.xlu2 %v2353_v24, %s2091_s19  ;;  %v1048_v38 = vsel %vm2184_vm5, %v1043_v11, %v1047_v9  ;;  %v1160_v39 = vshll.u32 %v2359_v8, 16  ;;  %v1165_v41 = vshrl.u32 %v1928_v26, 16  ;;  %v1168_v42 = vshll.u32 %v1928_v26, 16  ;;  %v2419_v11 = vld [vmem:[%s2127_s17 + $0x2c] sm:$0x1] }
  0x55   : > { %v1231_v44 = vunpack.c.l.b16 %v1048_v38  ;;  %v2377_v45 = vpack.c.b16 %v1529_v16, %v1528_v34  ;;  %v1157_v46 = vor.u32 %v1156_v36, %v1153_v35  ;;  %v1174_v47 = vshll.u32 %v2366_v33, 16 }
  0x56   : > { %v1162_v55 = vrot.slane %v1160_v39, 5  ;;  %v1167_v57 = vrot.slane %v1165_v41, 4  ;;  %v1170_v58 = vrot.slane %v1168_v42, 5  ;;  %v1885_v59 = vrot.slane %v1877_v37, 9  ;;  %v187_v41 = vld [vmem:[%s2127_s17 + $0x20] sm:$0xf] }
  0x57   : > { %v2385_v61 = vpack.c.b16 %v1231_v44, %v1230_v32  ;;  %v1158_v62 = vrot.slane %v1157_v46, 4  ;;  %v1176_v63 = vrot.slane %v1174_v47, 5  ;;  %v745_v1 = vrot.slane %v2298_v50, 5 }
  0x58   : > { %v1171_v3 = vor.u32 %v1170_v58, %v1167_v57  ;;  %v1886_v4 = vrot.slane %v1878_v43, 9  ;;  %v749_v12 = vrot.slane %v2309_v56, 5  ;;  %v1871_v6 = vrot.slane %v656_v54, 9  ;;  %v188_v57 = vld [vmem:[%s2127_s17 + $0x28] sm:$0xf] }
  0x59   : > { %v1163_v9 = vsel %vm2184_vm5, %v1158_v62, %v1162_v55  ;;  %v746_v13 = vsel %vm2129_vm2, %v1885_v59, %v745_v1  ;;  %v697_v14 = vrot.slane %v2381_v48, 5  ;;  %v1872_v17 = vrot.slane %v657_v60, 9 }
  0x5a   : > { %v1172_v50 = vrot.slane %v1171_v3, 4  ;;  %v1278_v20 = vunpack.c.l.b16 %v1163_v9  ;;  %v750_v21 = vsel %vm2129_vm2, %v1886_v4, %v749_v12  ;;  %v797_v56 = vunpack.c.l.b16 %v746_v13  ;;  %v1913_v12 = vld [vmem:[%s2127_s17 + $0x38] sm:$0xf] }
  0x5b   : > { %1242 = vrot.lane.b32.xlu0 %v2385_v61, %s2091_s19  ;;  %1270 = vrot.lane.b32.xlu1 %v1966_v10, %s2090_s18  ;;  %v798_v22 = vunpack.c.l.b16 %v750_v21  ;;  %v698_v23 = vsel %vm2129_vm2, %v1871_v6, %v697_v14  ;;  %v701_v25 = vrot.slane %v2389_v2, 5  ;;  %v2015_v26 = vrot.slane %v2007_v7, 9 }
  0x5c   : > { %505 = vrot.lane.b32.xlu2 %v1846_v18, %s2090_s18  ;;  %v1177_v30 = vsel %vm2184_vm5, %v1172_v50, %v1176_v63  ;;  %v771_v29 = vunpack.c.l.b16 %v698_v23  ;;  %v1510_v49 = vrot.slane %v2359_v8, 5  ;;  %v2016_v10 = vrot.slane %v2008_v19, 9  ;;  %v2428_v18 = vld [vmem:[%s2127_s17 + $0x34] sm:$0x1]  ;;  %v2444_v50 = vld [vmem:[%s2127_s17 + $0x3c] sm:$0x1] }
  0x5d   : > { %v1279_v32 = vunpack.c.l.b16 %v1177_v30  ;;  %v804_v27 = vpack.c.b16 %v798_v22, %v797_v56  ;;  %v702_v31 = vsel %vm2129_vm2, %v1872_v17, %v701_v25  ;;  %v1514_v34 = vrot.slane %v2366_v33, 5  ;;  %v1914_v56 = vld [vmem:[%s2127_s17 + $0x40] sm:$0xf] }
  0x5e   : > { %v772_v16 = vunpack.c.l.b16 %v702_v31  ;;  %v1511_v52 = vsel %vm2129_vm2, %v2015_v26, %v1510_v49  ;;  %v388_v8 = vshrl.u32 %v1811_v28, 16  ;;  %v391_v35 = vshll.u32 %v1811_v28, 16 }
  0x5f   : > { %v1284_v36 = vpack.c.b16 %v1279_v32, %v1278_v20  ;;  %v1515_v37 = vsel %vm2129_vm2, %v2016_v10, %v1514_v34  ;;  %v1556_v38 = vunpack.c.l.b16 %v1511_v52  ;;  %v397_v39 = vshll.u32 %v2419_v11, 16 }
  0x60   : > { %v777_v42 = vpack.c.b16 %v772_v16, %v771_v29  ;;  %v1557_v33 = vunpack.c.l.b16 %v1515_v37  ;;  %v390_v43 = vrot.slane %v388_v8, 4  ;;  %v393_v44 = vrot.slane %v391_v35, 5  ;;  %v1993_v8 = vld [vmem:[%s2127_s17 + $0x38] sm:$0xe] }
  0x61   : > { %v399_v46 = vrot.slane %v397_v39, 5  ;;  %v402_v47 = vshrl.u32 %v1812_v51, 16  ;;  %v405_v54 = vshll.u32 %v1812_v51, 16  ;;  %v411_v55 = vshll.u32 %v2428_v18, 16  ;;  %v1929_v39 = vld [vmem:[%s2127_s17 + $0x40] sm:$0xf] }
  0x62   : > { %v1562_v58 = vpack.c.b16 %v1557_v33, %v1556_v38  ;;  %v394_v59 = vor.u32 %v393_v44, %v390_v43  ;;  %v259_v60 = vshrl.u32 %v187_v41, 16  ;;  %v262_v62 = vshll.u32 %v187_v41, 16 }
  0x63   : > { %1540 = vrot.lane.b32.xlu0 %v2377_v45, %s2091_s19  ;;  %1548 = vrot.lane.b32.xlu1 %v1284_v36, %s2090_s18  ;;  %v404_v63 = vrot.slane %v402_v47, 4  ;;  %v407_v1 = vrot.slane %v405_v54, 5  ;;  %v413_v3 = vrot.slane %v411_v55, 5  ;;  %v268_v4 = vshll.u32 %v2381_v48, 16  ;;  %v1994_v47 = vld [vmem:[%s2127_s17 + $0x40] sm:$0xe] }
  0x64   : > { %809 = vrot.lane.b32.xlu2 %v804_v27, %s2092_s20  ;;  %v395_v6 = vrot.slane %v394_v59, 4  ;;  %v261_v7 = vrot.slane %v259_v60, 4  ;;  %v264_v9 = vrot.slane %v262_v62, 5  ;;  %v273_v13 = vshrl.u32 %v188_v57, 16  ;;  %v1922_v27 = vld [vmem:[%s2127_s17 + $0x44] sm:$0x1] }
  0x65   : > { %v408_v14 = vor.u32 %v407_v1, %v404_v63  ;;  %v270_v17 = vrot.slane %v268_v4, 5  ;;  %v276_v19 = vshll.u32 %v188_v57, 16  ;;  %v282_v45 = vshll.u32 %v2389_v2, 16  ;;  %v2467_v57 = vld [vmem:[%s2127_s17 + $0x44] sm:$0xf0] }
  0x66   : > { %v400_v20 = vsel %vm2184_vm5, %v395_v6, %v399_v46  ;;  %v265_v21 = vor.u32 %v264_v9, %v261_v7  ;;  %v275_v48 = vrot.slane %v273_v13, 4  ;;  %v1050_v22 = vshrl.u32 %v1913_v12, 16  ;;  %v2461_v46 = vld [vmem:[%s2127_s17 + $0x40] sm:$0xf]  ;;  %v2473_v63 = vld [vmem:[%s2127_s17 + $0x2c] sm:$0xf0] }
  0x67   : > { %v409_v23 = vrot.slane %v408_v14, 4  ;;  %v515_v25 = vunpack.c.l.b16 %v400_v20  ;;  %v278_v26 = vrot.slane %v276_v19, 5  ;;  %v284_v28 = vrot.slane %v282_v45, 5  ;;  %v1930_v6 = vld [vmem:[%s2127_s17 + $0x48] sm:$0xf] }
  0x68   : > { %v266_v30 = vrot.slane %v265_v21, 4  ;;  %v1052_v29 = vrot.slane %v1050_v22, 4  ;;  %v1053_v49 = vshll.u32 %v1913_v12, 16  ;;  %v1059_v2 = vshll.u32 %v2444_v50, 16  ;;  %v2487_v19 = vld [vmem:[%s2127_s17 + $0x4c] sm:$0x1] }
  0x69   : > { %v414_v10 = vsel %vm2184_vm5, %v409_v23, %v413_v3  ;;  %v279_v32 = vor.u32 %v278_v26, %v275_v48  ;;  %v1064_v31 = vshrl.u32 %v1914_v56, 16  ;;  %v1067_v34 = vshll.u32 %v1914_v56, 16  ;;  %v1879_v56 = vld [vmem:[%s2127_s17 + $0x28] sm:$0xe] }
  0x6a   : > { %v516_v16 = vunpack.c.l.b16 %v414_v10  ;;  %v271_v52 = vsel %vm2184_vm5, %v266_v30, %v270_v17  ;;  %v1055_v51 = vrot.slane %v1053_v49, 5  ;;  %v1061_v43 = vrot.slane %v1059_v2, 5  ;;  %v2484_v17 = vld [vmem:[%s2127_s17 + $0x44] sm:$0x1]  ;;  %v2504_v30 = vld [vmem:[%s2127_s17 + $0x34] sm:$0x1] }
  0x6b   : > { %783 = vrot.lane.b32.xlu0 %v777_v42, %s2091_s19  ;;  %1568 = vrot.lane.b32.xlu1 %v1562_v58, %s2092_s20  ;;  %v280_v35 = vrot.slane %v279_v32, 4  ;;  %v1066_v37 = vrot.slane %v1064_v31, 4  ;;  %v1069_v38 = vrot.slane %v1067_v34, 5  ;;  %v467_v41 = vunpack.c.l.b16 %v271_v52  ;;  %v2470_v58 = vld [vmem:[%s2127_s17 + $0x28] sm:$0xf] }
  0x6c   : > { %1290 = vrot.lane.b32.xlu2 %v1284_v36, %s2092_s20  ;;  %v1056_v33 = vor.u32 %v1055_v51, %v1052_v29  ;;  %v1073_v44 = vshll.u32 %v1922_v27, 16  ;;  %v521_v42 = vpack.c.b16 %v516_v16, %v515_v25  ;;  %v2001_v36 = vrot.slane %v1993_v8, 9  ;;  %v2511_v32 = vld [vmem:[%s2127_s17 + $0x3c] sm:$0x1]  ;;  %v658_v51 = vld [vmem:[%s2127_s17 + $0x30] sm:$0xe] }
  0x6d   : > { %v285_v54 = vsel %vm2184_vm5, %v280_v35, %v284_v28  ;;  %v1070_v55 = vor.u32 %v1069_v38, %v1066_v37  ;;  %v1462_v1 = vrot.slane %v2444_v50, 5  ;;  %v2002_v4 = vrot.slane %v1994_v47, 9  ;;  %v1880_v28 = vld [vmem:[%s2127_s17 + $0x30] sm:$0xe]  ;;  %v659_v8 = vld [vmem:[%s2127_s17 + $0x38] sm:$0xe] }
  0x6e   : > { %v468_v59 = vunpack.c.l.b16 %v285_v54  ;;  %v1057_v60 = vrot.slane %v1056_v33, 4  ;;  %v1075_v62 = vrot.slane %v1073_v44, 5  ;;  %v1466_v12 = vrot.slane %v1922_v27, 5  ;;  %v2069_v27 = vld [vmem:[%s2758_s1 + $0x38] sm:$0xff]  ;;  %v2067_v33 = vld [vmem:[%s2758_s1 + $0x28] sm:$0xff] }
  0x6f   : > { %v1071_v3 = vrot.slane %v1070_v55, 4  ;;  %v1179_v7 = vshrl.u32 %v1929_v39, 16  ;;  %v1970_v14 = vor.u32 %v2467_v57, %v2461_v46  ;;  %v1182_v45 = vshll.u32 %v1929_v39, 16  ;;  %1631 = vmatpush.bf16.msra.mxu3 %v2069_v27  ;;  %1353 = vmatpush.bf16.msra.mxu2 %v2067_v33  ;;  %v190_v33 = vld [vmem:[%s2127_s17 + $0x38] sm:$0xf] }
  0x70   : > { %v2477_v9 = vpack.c.b16 %v468_v59, %v467_v41  ;;  %v1062_v13 = vsel %vm2184_vm5, %v1057_v60, %v1061_v43  ;;  %v1850_v21 = vor.u32 %v2473_v63, %v2470_v58  ;;  %v2495_v48 = vsel %vm2129_vm2, %v2001_v36, %v1462_v1  ;;  %v2068_v41 = vld [vmem:[%s2758_s1 + $0x30] sm:$0xff]  ;;  %v2009_v59 = vld [vmem:[%s2127_s17 + $0x40] sm:$0xe] }
  0x71   : > { %v1076_v50 = vsel %vm2184_vm5, %v1071_v3, %v1075_v62  ;;  %v1232_v20 = vunpack.c.l.b16 %v1062_v13  ;;  %v2500_v23 = vsel %vm2129_vm2, %v2002_v4, %v1466_v12  ;;  %v1181_v25 = vrot.slane %v1179_v7, 4  ;;  %v2010_v12 = vld [vmem:[%s2127_s17 + $0x48] sm:$0xe]  ;;  %v2066_v7 = vld [vmem:[%s2758_s1 + $0x20] sm:$0xff] }
  0x72   : > { %v1233_v22 = vunpack.c.l.b16 %v1076_v50  ;;  %v1184_v26 = vrot.slane %v1182_v45, 5  ;;  %v1188_v29 = vshll.u32 %v2484_v17, 16  ;;  %v1193_v49 = vshrl.u32 %v1930_v6, 16 }
  0x73   : > { %791 = vrot.lane.b32.xlu0 %v521_v42, %s2090_s18  ;;  %527 = vrot.lane.b32.xlu1 %v521_v42, %s2092_s20  ;;  %v1196_v2 = vshll.u32 %v1930_v6, 16  ;;  %v1202_v10 = vshll.u32 %v2487_v19, 16  ;;  %v1530_v34 = vunpack.c.l.b16 %v2495_v48  ;;  %v1887_v52 = vrot.slane %v1879_v56, 9  ;;  %v2057_v6 = vld [vmem:[%s2758_s1 + $0x18] sm:$0xff] }
  0x74   : > { %479 = vrot.lane.b32.xlu2 %v2477_v9, %s2091_s19  ;;  %v2518_v31 = vpack.c.b16 %v1233_v22, %v1232_v20  ;;  %v1185_v16 = vor.u32 %v1184_v26, %v1181_v25  ;;  %v1190_v35 = vrot.slane %v1188_v29, 5  ;;  %v1195_v37 = vrot.slane %v1193_v49, 4  ;;  %1632 = vmatpush.bf16.msra.mxu3 %v2068_v41  ;;  %v1813_v22 = vld [vmem:[%s2127_s17 + $0x38] sm:$0xf]  ;;  %v1814_v26 = vld [vmem:[%s2127_s17 + $0x40] sm:$0xf] }
  0x75   : > { %v1198_v38 = vrot.slane %v1196_v2, 5  ;;  %v1204_v39 = vrot.slane %v1202_v10, 5  ;;  %v753_v44 = vrot.slane %v2419_v11, 5  ;;  %v1888_v47 = vrot.slane %v1880_v28, 9  ;;  %v2570_v28 = vld [vmem:[%s2127_s17 + $0x3c] sm:$0x1]  ;;  %874 = vmatpush.bf16.msra.mxu1 %v2057_v6  ;;  %1354 = vmatpush.bf16.msra.mxu2 %v2066_v7 }
  0x76   : > { %v1186_v43 = vrot.slane %v1185_v16, 4  ;;  %v757_v42 = vrot.slane %v2428_v18, 5  ;;  %v1873_v55 = vrot.slane %v658_v51, 9  ;;  %v705_v58 = vrot.slane %v2504_v30, 5  ;;  %v2575_v49 = vld [vmem:[%s2127_s17 + $0x44] sm:$0x1] }
  0x77   : > { %v1199_v54 = vor.u32 %v1198_v38, %v1195_v37  ;;  %v1874_v36 = vrot.slane %v659_v8, 9  ;;  %v754_v62 = vsel %vm2129_vm2, %v1887_v52, %v753_v44  ;;  %v709_v63 = vrot.slane %v2511_v32, 5  ;;  %v189_v2 = vld [vmem:[%s2127_s17 + $0x30] sm:$0xf]  ;;  %v2055_v16 = vld [vmem:[%s2758_s1 + $0x8] sm:$0xff] }
  0x78   : > { %v1191_v60 = vsel %vm2184_vm5, %v1186_v43, %v1190_v35  ;;  %v758_v11 = vsel %vm2129_vm2, %v1888_v47, %v757_v42  ;;  %v1531_v18 = vunpack.c.l.b16 %v2500_v23  ;;  %v799_v3 = vunpack.c.l.b16 %v754_v62  ;;  %v2056_v52 = vld [vmem:[%s2758_s1 + $0x10] sm:$0xff]  ;;  %593 = vmatpush.bf16.msra.mxu0 %v2055_v16 }
  0x79   : > { %v1200_v1 = vrot.slane %v1199_v54, 4  ;;  %v800_v4 = vunpack.c.l.b16 %v758_v11  ;;  %v2550_v13 = vsel %vm2129_vm2, %v1873_v55, %v705_v58  ;;  %v2554_v45 = vsel %vm2129_vm2, %v1874_v36, %v709_v63  ;;  %875 = vmatpush.bf16.msra.mxu1 %v2056_v52 }
  0x7a   : > { %v2017_v50 = vrot.slane %v2009_v59, 9  ;;  %v1518_v20 = vrot.slane %v2484_v17, 5  ;;  %v1280_v56 = vunpack.c.l.b16 %v1191_v60  ;;  %v2018_v25 = vrot.slane %v2010_v12, 9 }
  0x7b   : > { %1244 = vrot.lane.b32.xlu0 %v2518_v31, %s2091_s19  ;;  %1272 = vrot.lane.b32.xlu1 %v1970_v14, %s2090_s18  ;;  %v1205_v48 = vsel %vm2184_vm5, %v1200_v1, %v1204_v39  ;;  %v1522_v17 = vrot.slane %v2487_v19, 5  ;;  %v1535_v29 = vpack.c.b16 %v1531_v18, %v1530_v34  ;;  %v805_v46 = vpack.c.b16 %v800_v4, %v799_v3 }
  0x7c   : > { %507 = vrot.lane.b32.xlu2 %v1850_v21, %s2090_s18  ;;  %v1281_v23 = vunpack.c.l.b16 %v1205_v48  ;;  %v773_v57 = vunpack.c.l.b16 %v2550_v13  ;;  %v774_v14 = vunpack.c.l.b16 %v2554_v45  ;;  %v2578_v21 = vpop.permute.xlu2 %503  ;;  %v1519_v19 = vsel %vm2129_vm2, %v2017_v50, %v1518_v20  ;;  %v2054_v45 = vld [vmem:[%s2758_s1] sm:$0xff] }
  0x7d   : > { %v1523_v10 = vsel %vm2129_vm2, %v2018_v25, %v1522_v17  ;;  %v416_v27 = vshrl.u32 %v1813_v22, 16  ;;  %v419_v34 = vshll.u32 %v1813_v22, 16  ;;  %v425_v8 = vshll.u32 %v2570_v28, 16  ;;  %594 = vmatpush.bf16.msra.mxu0 %v2054_v45 }
  0x7e   : > { %v1285_v51 = vpack.c.b16 %v1281_v23, %v1280_v56  ;;  %v430_v35 = vshrl.u32 %v1814_v26, 16  ;;  %v433_v37 = vshll.u32 %v1814_v26, 16  ;;  %v439_v41 = vshll.u32 %v2575_v49, 16 }
  0x7f   : > { %v418_v38 = vrot.slane %v416_v27, 4  ;;  %v421_v39 = vrot.slane %v419_v34, 5  ;;  %v287_v43 = vshrl.u32 %v189_v2, 16  ;;  %v1558_v44 = vunpack.c.l.b16 %v1519_v19 }
  0x80   : > { %v1559_v47 = vunpack.c.l.b16 %v1523_v10  ;;  %v432_v42 = vrot.slane %v430_v35, 4  ;;  %v435_v54 = vrot.slane %v433_v37, 5  ;;  %v427_v58 = vrot.slane %v425_v8, 5  ;;  %v2058_v8 = vld [vmem:[%s2127_s17 + $0xc] sm:$0xf0] }
  0x81   : > { %v422_v55 = vor.u32 %v421_v39, %v418_v38  ;;  %v289_v36 = vrot.slane %v287_v43, 4  ;;  %v290_v59 = vshll.u32 %v189_v2, 16  ;;  %v296_v62 = vshll.u32 %v2504_v30, 16  ;;  %v1881_v37 = vld [vmem:[%s2127_s17 + $0x38] sm:$0xe] }
  0x82   : > { %v436_v60 = vor.u32 %v435_v54, %v432_v42  ;;  %v301_v11 = vshrl.u32 %v190_v33, 16  ;;  %v304_v63 = vshll.u32 %v190_v33, 16  ;;  %v441_v3 = vrot.slane %v439_v41, 5  ;;  %v1853_v33 = vld [vmem:[%s2127_s17 + $0x38] sm:$0xf] }
  0x83   : > { %1542 = vrot.lane.b32.xlu0 %v1535_v29, %s2091_s19  ;;  %1550 = vrot.lane.b32.xlu1 %v1285_v51, %s2090_s18  ;;  %v423_v1 = vrot.slane %v422_v55, 4  ;;  %v292_v4 = vrot.slane %v290_v59, 5  ;;  %v310_v12 = vshll.u32 %v2511_v32, 16  ;;  %v298_v30 = vrot.slane %v296_v62, 5  ;;  %v2053_v43 = vld [vmem:[%s2127_s17 + $0x3c] sm:$0xf0] }
  0x84   : > { %811 = vrot.lane.b32.xlu2 %v805_v46, %s2092_s20  ;;  %v2597_v18 = vpop.permute.xlu0 %1266  ;;  %v437_v6 = vrot.slane %v436_v60, 4  ;;  %v303_v7 = vrot.slane %v301_v11, 4  ;;  %v306_v13 = vrot.slane %v304_v63, 5  ;;  %v778_v20 = vpack.c.b16 %v774_v14, %v773_v57  ;;  %v1545_v23 = vpop.permute.xlu2 %1544  ;;  %v1825_v62 = vld [vmem:[%s2127_s17] sm:$0xf] }
  0x85   : > { %v293_v50 = vor.u32 %v292_v4, %v289_v36  ;;  %v1563_v48 = vpack.c.b16 %v1559_v47, %v1558_v44  ;;  %v312_v22 = vrot.slane %v310_v12, 5  ;;  %v428_v25 = vsel %vm2184_vm5, %v423_v1, %v427_v58  ;;  %v2046_v11 = vld [vmem:[%s2127_s17 + $0x4] sm:$0xf0] }
  0x86   : > { %v307_v56 = vor.u32 %v306_v13, %v303_v7  ;;  %v442_v32 = vsel %vm2184_vm5, %v437_v6, %v441_v3  ;;  %v517_v57 = vunpack.c.l.b16 %v428_v25  ;;  %v1942_v41 = vor.u32 %v2058_v8, %v1941_v5 }
  0x87   : > { %v294_v17 = vrot.slane %v293_v50, 4  ;;  %v518_v14 = vunpack.c.l.b16 %v442_v32  ;;  %v1889_v44 = vrot.slane %v1881_v37, 9  ;;  %v761_v47 = vrot.slane %v2570_v28, 5 }
  0x88   : > { %v308_v26 = vrot.slane %v307_v56, 4  ;;  %v765_v54 = vrot.slane %v2575_v49, 5  ;;  %v1854_v58 = vor.u32 %v2053_v43, %v1853_v33  ;;  %v1826_v4 = vor.u32 %v2046_v11, %v1825_v62  ;;  %v2059_v56 = vld [vmem:[%s2127_s17 + $0x1c] sm:$0xf0]  ;;  %v1949_v43 = vld [vmem:[%s2127_s17 + $0x28] sm:$0xf] }
  0x89   : > { %v299_v29 = vsel %vm2184_vm5, %v294_v17, %v298_v30  ;;  %v522_v34 = vpack.c.b16 %v518_v14, %v517_v57  ;;  %v762_v59 = vsel %vm2129_vm2, %v1889_v44, %v761_v47  ;;  %v2060_v44 = vld [vmem:[%s2127_s17 + $0x2c] sm:$0xf0] }
  0x8a   : > { %v313_v2 = vsel %vm2184_vm5, %v308_v26, %v312_v22  ;;  %v469_v19 = vunpack.c.l.b16 %v299_v29  ;;  %v801_v49 = vunpack.c.l.b16 %v762_v59  ;;  %v1950_v47 = vor.u32 %v2060_v44, %v1949_v43 }
  0x8b   : > { %785 = vrot.lane.b32.xlu0 %v778_v20, %s2091_s19  ;;  %1570 = vrot.lane.b32.xlu1 %v1563_v48, %s2092_s20  ;;  %v1537_v46 = vpop.permute.xlu1 %1536  ;;  %v470_v10 = vunpack.c.l.b16 %v313_v2  ;;  %v1829_v2 = vld [vmem:[%s2127_s17 + $0x10] sm:$0xf] }
  0x8c   : > { %1292 = vrot.lane.b32.xlu2 %v1285_v51, %s2092_s20  ;;  %v1574_v16 = vsel %vm531_vm6, %v2205_v40, %v1537_v46  ;;  %v1882_v51 = vld [vmem:[%s2127_s17 + $0x40] sm:$0xe] }
  0x8d   : > { %v780_v27 = vpop.permute.xlu0 %779  ;;  %v2616_v52 = vpack.c.b16 %v470_v10, %v469_v19  ;;  %v1585_v39 = vsel %vm544_vm7, %v1574_v16, %v1545_v23  ;;  %v1890_v42 = vrot.slane %v1882_v51, 9  ;;  %v2047_v19 = vld [vmem:[%s2127_s17 + $0x14] sm:$0xf0] }
  0x8e   : > { %v817_v7 = vsel %vm531_vm6, %v2248_v53, %v780_v27  ;;  %v1945_v53 = vld [vmem:[%s2127_s17 + $0x18] sm:$0xf]  ;;  %v1830_v16 = vor.u32 %v2047_v19, %v1829_v2 }
  0x8f   : > { %v476_v35 = vpop.permute.xlu2 %475  ;;  %v766_v60 = vsel %vm2129_vm2, %v1890_v42, %v765_v54  ;;  %v1946_v22 = vor.u32 %v2059_v56, %v1945_v53 }
  0x90   : > { %v802_v3 = vunpack.c.l.b16 %v766_v60  ;;  %v534_v6 = vsel %vm531_vm6, %v1826_v4, %v476_v35 }
  0x91   : > { %v546_v20 = vsel %vm544_vm7, %v534_v6, %v2578_v21 }
  0x92   : > { %v806_v0 = vpack.c.b16 %v802_v3, %v801_v49 }
  0x93   : > { %793 = vrot.lane.b32.xlu0 %v522_v34, %s2090_s18  ;;  %529 = vrot.lane.b32.xlu1 %v522_v34, %s2092_s20  ;;  %v1565_v38 = vpop.permute.xlu1 %1564 }
  0x94   : > { %481 = vrot.lane.b32.xlu2 %v2616_v52, %s2091_s19  ;;  %v1593_v40 = vsel %vm553_vm8, %v1585_v39, %v1565_v38  ;;  %s181_s19 = scalar_lea.vmem %s2760_s3, %s1806_s16 }
  0x95   : > { %2031 = vmatmul.msk.bf16.vlgmr.msra.gmra.mxu3 %vm578_vm9, %v1593_v40 }
  0x98   : > { %v1239_v55 = vpop.permute.xlu0 %1238 }
  0x99   : > { %v1296_v36 = vsel %vm531_vm6, %v1942_v41, %v1239_v55 }
  0x9a   : > { %v808_v63 = vpop.permute.xlu2 %807  ;;  %v1307_v28 = vsel %vm544_vm7, %v1296_v36, %v2597_v18 }
  0x9c   : > { %509 = vrot.lane.b32.xlu2 %v1854_v58, %s2090_s18  ;;  %v1287_v1 = vpop.permute.xlu1 %1286 }
  0x9d   : > { %v1315_v12 = vsel %vm553_vm8, %v1307_v28, %v1287_v1  ;;  %v2048_v1 = vld [vmem:[%s2127_s17 + $0x24] sm:$0xf0] }
  0x9e   : > { %1983 = vmatmul.msk.bf16.vlgmr.msra.gmra.mxu2 %vm578_vm9, %v1315_v12 }
  0xa2   : > { %v788_v13 = vpop.permute.xlu0 %787  ;;  %v1289_v30 = vpop.permute.xlu2 %1288 }
  0xa3   : > { %v828_v45 = vsel %vm544_vm7, %v817_v7, %v788_v13 }
  0xa4   : > { %v836_v18 = vsel %vm553_vm8, %v828_v45, %v808_v63  ;;  %v524_v50 = vpop.permute.xlu1 %523  ;;  %813 = vrot.lane.b32.xlu2 %v806_v0, %s2092_s20  ;;  %v1833_v63 = vld [vmem:[%s2127_s17 + $0x20] sm:$0xf] }
  0xa5   : > { %1903 = vmatmul.msk.bf16.vlgmr.msra.gmra.mxu1 %vm578_vm9, %v836_v18  ;;  %v555_v48 = vsel %vm553_vm8, %v546_v20, %v524_v50  ;;  %v1834_v4 = vor.u32 %v2048_v1, %v1833_v63  ;;  %v1953_v20 = vld [vmem:[%s2127_s17 + $0x38] sm:$0xf] }
  0xa6   : > { %1863 = vmatmul.msk.bf16.vlgmr.msra.gmra.mxu0 %vm578_vm9, %v555_v48  ;;  %v2061_v48 = vld [vmem:[%s2127_s17 + $0x3c] sm:$0xf0] }
  0xa7   : > { %v1954_v56 = vor.u32 %v2061_v48, %v1953_v20 }
  0xac   : > { %v1269_v23 = vpop.permute.xlu1 %1268 }
  0xad   : > { %v1241_v25 = vpop.permute.xlu0 %1240 }
  0xae   : > { %v1299_v32 = vsel %vm531_vm6, %v1946_v22, %v1241_v25  ;;  %v478_v17 = vpop.permute.xlu2 %477 }
  0xaf   : > { %v1309_v26 = vsel %vm544_vm7, %v1299_v32, %v1269_v23  ;;  %v537_v35 = vsel %vm531_vm6, %v1830_v16, %v478_v17 }
  0xb0   : > { %v1317_v21 = vsel %vm553_vm8, %v1309_v26, %v1289_v30 }
  0xb1   : > { %1984 = vmatmul.msk.bf16.gmra.mxu2 %vm578_vm9, %v1317_v21 }
  0xb5   : > { %v1539_v29 = vpop.permute.xlu0 %1538  ;;  %v1547_v46 = vpop.permute.xlu1 %1546 }
  0xb6   : > { %v506_v57 = vpop.permute.xlu2 %505  ;;  %v1577_v14 = vsel %vm531_vm6, %v2271_v15, %v1539_v29 }
  0xb7   : > { %v1587_v10 = vsel %vm544_vm7, %v1577_v14, %v1547_v46  ;;  %v548_v37 = vsel %vm544_vm7, %v537_v35, %v506_v57  ;;  %v1837_v46 = vld [vmem:[%s2127_s17 + $0x30] sm:$0xf]  ;;  %v2049_v57 = vld [vmem:[%s2127_s17 + $0x34] sm:$0xf0] }
  0xbd   : > { %v782_v27 = vpop.permute.xlu0 %781  ;;  %v1567_v34 = vpop.permute.xlu1 %1566 }
  0xbe   : > { %v810_v5 = vpop.permute.xlu2 %809  ;;  %v1595_v8 = vsel %vm553_vm8, %v1587_v10, %v1567_v34  ;;  %v820_v15 = vsel %vm531_vm6, %v2353_v24, %v782_v27  ;;  %v1838_v27 = vor.u32 %v2049_v57, %v1837_v46 }
  0xbf   : > { %2032 = vmatmul.msk.bf16.gmra.mxu3 %vm578_vm9, %v1595_v8 }
  0xc5   : > { %v790_v51 = vpop.permute.xlu0 %789  ;;  %v526_v38 = vpop.permute.xlu1 %525 }
  0xc6   : > { %v830_v39 = vsel %vm544_vm7, %v820_v15, %v790_v51  ;;  %v1291_v40 = vpop.permute.xlu2 %1290  ;;  %v557_v41 = vsel %vm553_vm8, %v548_v37, %v526_v38 }
  0xc7   : > { %v838_v33 = vsel %vm553_vm8, %v830_v39, %v810_v5  ;;  %1864 = vmatmul.msk.bf16.gmra.mxu0 %vm578_vm9, %v557_v41 }
  0xc8   : > { %1904 = vmatmul.msk.bf16.gmra.mxu1 %vm578_vm9, %v838_v33 }
  0xcd   : > { %v1243_v42 = vpop.permute.xlu0 %1242  ;;  %v1271_v24 = vpop.permute.xlu1 %1270 }
  0xce   : > { %v1302_v54 = vsel %vm531_vm6, %v1950_v47, %v1243_v42  ;;  %v480_v55 = vpop.permute.xlu2 %479 }
  0xcf   : > { %v1311_v58 = vsel %vm544_vm7, %v1302_v54, %v1271_v24  ;;  %v540_v6 = vsel %vm531_vm6, %v1834_v4, %v480_v55 }
  0xd0   : > { %v1319_v36 = vsel %vm553_vm8, %v1311_v58, %v1291_v40 }
  0xd1   : > { %1985 = vmatmul.msk.bf16.gmra.mxu2 %vm578_vm9, %v1319_v36 }
  0xd5   : > { %v1541_v59 = vpop.permute.xlu0 %1540  ;;  %v1549_v60 = vpop.permute.xlu1 %1548 }
  0xd6   : > { %v508_v62 = vpop.permute.xlu2 %507  ;;  %v1580_v11 = vsel %vm531_vm6, %v2385_v61, %v1541_v59 }
  0xd7   : > { %v1589_v28 = vsel %vm544_vm7, %v1580_v11, %v1549_v60  ;;  %v550_v7 = vsel %vm544_vm7, %v540_v6, %v508_v62 }
  0xdd   : > { %v784_v49 = vpop.permute.xlu0 %783  ;;  %v1569_v3 = vpop.permute.xlu1 %1568 }
  0xde   : > { %v812_v12 = vpop.permute.xlu2 %811  ;;  %v1597_v0 = vsel %vm553_vm8, %v1589_v28, %v1569_v3  ;;  %v823_v61 = vsel %vm531_vm6, %v2477_v9, %v784_v49 }
  0xdf   : > { %2033 = vmatmul.msk.bf16.gmra.mxu3 %vm578_vm9, %v1597_v0 }
  0xe5   : > { %v792_v13 = vpop.permute.xlu0 %791  ;;  %v528_v45 = vpop.permute.xlu1 %527 }
  0xe6   : > { %v832_v18 = vsel %vm544_vm7, %v823_v61, %v792_v13  ;;  %v559_v50 = vsel %vm553_vm8, %v550_v7, %v528_v45  ;;  %v1293_v53 = vpop.permute.xlu2 %1292 }
  0xe7   : > { %v840_v30 = vsel %vm553_vm8, %v832_v18, %v812_v12  ;;  %1865 = vmatmul.msk.bf16.gmra.mxu0 %vm578_vm9, %v559_v50 }
  0xe8   : > { %1905 = vmatmul.msk.bf16.gmra.mxu1 %vm578_vm9, %v840_v30 }
  0xed   : > { %v1245_v22 = vpop.permute.xlu0 %1244  ;;  %v1273_v9 = vpop.permute.xlu1 %1272 }
  0xee   : > { %v1305_v23 = vsel %vm531_vm6, %v1954_v56, %v1245_v22  ;;  %v482_v17 = vpop.permute.xlu2 %481 }
  0xef   : > { %v1313_v25 = vsel %vm544_vm7, %v1305_v23, %v1273_v9  ;;  %v543_v16 = vsel %vm531_vm6, %v1838_v27, %v482_v17 }
  0xf0   : > { %v1321_v32 = vsel %vm553_vm8, %v1313_v25, %v1293_v53 }
  0xf1   : > { %1986 = vmatmul.msk.bf16.gmra.mxu2 %vm578_vm9, %v1321_v32 }
  0xf5   : > { %v1543_v26 = vpop.permute.xlu0 %1542  ;;  %v1551_v21 = vpop.permute.xlu1 %1550 }
  0xf6   : > { %v1583_v29 = vsel %vm531_vm6, %v2518_v31, %v1543_v26  ;;  %v510_v14 = vpop.permute.xlu2 %509 }
  0xf7   : > { %v1591_v2 = vsel %vm544_vm7, %v1583_v29, %v1551_v21  ;;  %v552_v8 = vsel %vm544_vm7, %v543_v16, %v510_v14 }
  0xfd   : > { %v786_v19 = vpop.permute.xlu0 %785  ;;  %v1571_v10 = vpop.permute.xlu1 %1570 }
  0xfe   : > { %v1599_v34 = vsel %vm553_vm8, %v1591_v2, %v1571_v10  ;;  %v814_v5 = vpop.permute.xlu2 %813  ;;  %v826_v31 = vsel %vm531_vm6, %v2616_v52, %v786_v19 }
  0xff   : > { %2034 = vmatmul.msk.bf16.gmra.mxu3 %vm578_vm9, %v1599_v34 }
 0x105   : > { %v794_v35 = vpop.permute.xlu0 %793  ;;  %v530_v37 = vpop.permute.xlu1 %529 }
 0x106   : > { %v834_v15 = vsel %vm544_vm7, %v826_v31, %v794_v35  ;;  %v561_v51 = vsel %vm553_vm8, %v552_v8, %v530_v37 }
 0x107   : > { %v842_v38 = vsel %vm553_vm8, %v834_v15, %v814_v5  ;;  %1866 = vmatmul.msk.bf16.gmra.mxu0 %vm578_vm9, %v561_v51 }
 0x108   : > { %1906 = vmatmul.msk.bf16.gmra.mxu1 %vm578_vm9, %v842_v38 }
 0x118   : > { %v1634_v39 = vpop.f32.mrf.mxu3 }
 0x119   : > { %v1668_v41 = vmul.f32 %v1634_v39, %v1634_v39 }
 0x120   : > { %v1636_v40 = vpop.f32.mrf.mxu3 }
 0x121   : > { %v1356_v52 = vpop.f32.mrf.mxu2  ;;  %v1654_v33 = vadd.f32 %v1636_v40, %v1634_v39  ;;  %v1669_v43 = vmul.f32 %v1636_v40, %v1636_v40 }
 0x122   : > { %v877_v44 = vpop.f32.mrf.mxu1  ;;  %v1690_v47 = vpack.c.bf16 %v1634_v39, %v1356_v52  ;;  %v1390_v58 = vmul.f32 %v1356_v52, %v1356_v52 }
 0x123   : > { %v1676_v42 = vadd.f32 %v1669_v43, %v1668_v41  ;;  %v596_v24 = vpop.f32.mrf.mxu0  ;;  %v911_v11 = vmul.f32 %v877_v44, %v877_v44 }
 0x124   : > { %2035 = vst [vmem:[%s2726_s15 + $0x8] sm:$0xff] %v1690_v47  ;;  %v933_v54 = vpack.c.bf16 %v877_v44, %v596_v24  ;;  %v630_v63 = vmul.f32 %v596_v24, %v596_v24 }
 0x126   : > { %941 = vst [vmem:[%s2726_s15] sm:$0xff] %v933_v54 }
 0x129   : > { %v1358_v55 = vpop.f32.mrf.mxu2 }
 0x12a   : > { %v879_v36 = vpop.f32.mrf.mxu1  ;;  %v1376_v59 = vadd.f32 %v1358_v55, %v1356_v52  ;;  %v1391_v60 = vmul.f32 %v1358_v55, %v1358_v55  ;;  %v1691_v62 = vpack.c.bf16 %v1636_v40, %v1358_v55 }
 0x12b   : > { %v897_v1 = vadd.f32 %v879_v36, %v877_v44  ;;  %v912_v28 = vmul.f32 %v879_v36, %v879_v36  ;;  %v598_v49 = vpop.f32.mrf.mxu0 }
 0x12c   : > { %v1398_v3 = vadd.f32 %v1391_v60, %v1390_v58  ;;  %2036 = vst [vmem:[%s2726_s15 + $0x18] sm:$0xff] %v1691_v62  ;;  %v616_v4 = vadd.f32 %v598_v49, %v596_v24  ;;  %v631_v12 = vmul.f32 %v598_v49, %v598_v49  ;;  %v934_v0 = vpack.c.bf16 %v879_v36, %v598_v49 }
 0x12d   : > { %v919_v6 = vadd.f32 %v912_v28, %v911_v11 }
 0x12e   : > { %v638_v7 = vadd.f32 %v631_v12, %v630_v63  ;;  %942 = vst [vmem:[%s2726_s15 + $0x10] sm:$0xff] %v934_v0 }
 0x134   : > { %v1361_v61 = vpop.f32.mrf.mxu2 }
 0x135   : > { %v1377_v13 = vadd.f32 %v1376_v59, %v1361_v61  ;;  %v1392_v45 = vmul.f32 %v1361_v61, %v1361_v61 }
 0x137   : > { %v1399_v18 = vadd.f32 %v1398_v3, %v1392_v45 }
 0x13c   : > { %v1363_v32 = vpop.f32.mrf.mxu2 }
 0x13d   : > { %v1393_v51 = vmul.f32 %v1363_v32, %v1363_v32  ;;  %v1378_v39 = vadd.f32 %v1377_v13, %v1363_v32 }
 0x13f   : > { %v1400_v40 = vadd.f32 %v1399_v18, %v1393_v51 }
 0x142   : > { %v1639_v50 = vpop.f32.mrf.mxu3 }
 0x143   : > { %v1655_v30 = vadd.f32 %v1654_v33, %v1639_v50  ;;  %v1670_v20 = vmul.f32 %v1639_v50, %v1639_v50  ;;  %v1692_v48 = vpack.c.bf16 %v1639_v50, %v1361_v61 }
 0x144   : > { %v601_v53 = vpop.f32.mrf.mxu0 }
 0x145   : > { %v882_v56 = vpop.f32.mrf.mxu1  ;;  %v1677_v22 = vadd.f32 %v1676_v42, %v1670_v20  ;;  %2037 = vst [vmem:[%s2726_s15 + $0x28] sm:$0xff] %v1692_v48  ;;  %v617_v9 = vadd.f32 %v616_v4, %v601_v53  ;;  %v632_v33 = vmul.f32 %v601_v53, %v601_v53 }
 0x146   : > { %v898_v23 = vadd.f32 %v897_v1, %v882_v56  ;;  %v935_v25 = vpack.c.bf16 %v882_v56, %v601_v53  ;;  %v913_v52 = vmul.f32 %v882_v56, %v882_v56 }
 0x147   : > { %v639_v60 = vadd.f32 %v638_v7, %v632_v33 }
 0x148   : > { %943 = vst [vmem:[%s2726_s15 + $0x20] sm:$0xff] %v935_v25  ;;  %v920_v59 = vadd.f32 %v919_v6, %v913_v52 }
 0x14a   : > { %v1641_v17 = vpop.f32.mrf.mxu3 }
 0x14b   : > { %v1656_v26 = vadd.f32 %v1655_v30, %v1641_v17  ;;  %v1693_v21 = vpack.c.bf16 %v1641_v17, %v1363_v32  ;;  %v1671_v44 = vmul.f32 %v1641_v17, %v1641_v17 }
 0x14c   : > { %v603_v29 = vpop.f32.mrf.mxu0 }
 0x14d   : > { %v884_v46 = vpop.f32.mrf.mxu1  ;;  %2038 = vst [vmem:[%s2726_s15 + $0x38] sm:$0xff] %v1693_v21  ;;  %v633_v54 = vmul.f32 %v603_v29, %v603_v29  ;;  %v1678_v63 = vadd.f32 %v1677_v22, %v1671_v44  ;;  %v618_v1 = vadd.f32 %v617_v9, %v603_v29 }
 0x14e   : > { %v936_v57 = vpack.c.bf16 %v884_v46, %v603_v29  ;;  %v914_v62 = vmul.f32 %v884_v46, %v884_v46  ;;  %v899_v4 = vadd.f32 %v898_v23, %v884_v46 }
 0x14f   : > { %v640_v12 = vadd.f32 %v639_v60, %v633_v54 }
 0x150   : > { %944 = vst [vmem:[%s2726_s15 + $0x30] sm:$0xff] %v936_v57  ;;  %v921_v6 = vadd.f32 %v920_v59, %v914_v62 }
 0x154   : > { %v1366_v14 = vpop.f32.mrf.mxu2 }
 0x155   : > { %v1394_v38 = vmul.f32 %v1366_v14, %v1366_v14  ;;  %v1379_v47 = vadd.f32 %v1378_v39, %v1366_v14 }
 0x157   : > { %v1401_v42 = vadd.f32 %v1400_v40, %v1394_v38 }
 0x15c   : > { %v1368_v16 = vpop.f32.mrf.mxu2 }
 0x15d   : > { %v1395_v41 = vmul.f32 %v1368_v16, %v1368_v16  ;;  %v1380_v55 = vadd.f32 %v1379_v47, %v1368_v16 }
 0x15f   : > { %v1402_v58 = vadd.f32 %v1401_v42, %v1395_v41 }
 0x162   : > { %v1644_v2 = vpop.f32.mrf.mxu3 }
 0x163   : > { %v1694_v19 = vpack.c.bf16 %v1644_v2, %v1366_v14  ;;  %v1672_v11 = vmul.f32 %v1644_v2, %v1644_v2  ;;  %v1657_v7 = vadd.f32 %v1656_v26, %v1644_v2 }
 0x164   : > { %v606_v10 = vpop.f32.mrf.mxu0 }
 0x165   : > { %v887_v27 = vpop.f32.mrf.mxu1  ;;  %2039 = vst [vmem:[%s2726_s15 + $0x48] sm:$0xff] %v1694_v19  ;;  %v634_v61 = vmul.f32 %v606_v10, %v606_v10  ;;  %v1679_v20 = vadd.f32 %v1678_v63, %v1672_v11  ;;  %v619_v48 = vadd.f32 %v618_v1, %v606_v10 }
 0x166   : > { %v937_v34 = vpack.c.bf16 %v887_v27, %v606_v10  ;;  %v915_v0 = vmul.f32 %v887_v27, %v887_v27  ;;  %v900_v25 = vadd.f32 %v899_v4, %v887_v27 }
 0x167   : > { %v641_v17 = vadd.f32 %v640_v12, %v634_v61 }
 0x168   : > { %945 = vst [vmem:[%s2726_s15 + $0x40] sm:$0xff] %v937_v34  ;;  %v922_v32 = vadd.f32 %v921_v6, %v915_v0 }
 0x16a   : > { %v1646_v5 = vpop.f32.mrf.mxu3 }
 0x16b   : > { %v1695_v8 = vpack.c.bf16 %v1646_v5, %v1368_v16  ;;  %v1673_v13 = vmul.f32 %v1646_v5, %v1646_v5  ;;  %v1658_v21 = vadd.f32 %v1657_v7, %v1646_v5 }
 0x16c   : > { %v608_v31 = vpop.f32.mrf.mxu0 }
 0x16d   : > { %v889_v35 = vpop.f32.mrf.mxu1  ;;  %2040 = vst [vmem:[%s2726_s15 + $0x58] sm:$0xff] %v1695_v8  ;;  %v635_v22 = vmul.f32 %v608_v31, %v608_v31  ;;  %v1680_v29 = vadd.f32 %v1679_v20, %v1673_v13  ;;  %v620_v26 = vadd.f32 %v619_v48, %v608_v31 }
 0x16e   : > { %v938_v37 = vpack.c.bf16 %v889_v35, %v608_v31  ;;  %v916_v56 = vmul.f32 %v889_v35, %v889_v35  ;;  %v901_v19 = vadd.f32 %v900_v25, %v889_v35 }
 0x16f   : > { %v642_v10 = vadd.f32 %v641_v17, %v635_v22 }
 0x170   : > { %946 = vst [vmem:[%s2726_s15 + $0x50] sm:$0xff] %v938_v37  ;;  %v923_v34 = vadd.f32 %v922_v32, %v916_v56 }
 0x174   : > { %v1371_v15 = vpop.f32.mrf.mxu2 }
 0x175   : > { %v1396_v24 = vmul.f32 %v1371_v15, %v1371_v15  ;;  %v1381_v28 = vadd.f32 %v1380_v55, %v1371_v15 }
 0x177   : > { %v1403_v49 = vadd.f32 %v1402_v58, %v1396_v24 }
 0x17c   : > { %v2740_v43 = vpop.f32.mrf.mxu2 }
 0x17d   : > { %v1397_v36 = vmul.f32 %v2740_v43, %v2740_v43  ;;  %v1382_v45 = vadd.f32 %v1381_v28, %v2740_v43 }
 0x17f   : > { %v1404_v18 = vadd.f32 %v1403_v49, %v1397_v36  ;;  %v1383_v46 = vrot.slane %v1382_v45, 4 }
 0x181   : > { %v1405_v57 = vrot.slane %v1404_v18, 4  ;;  %v1384_v5 = vadd.f32 %v1383_v46, %v1382_v45 }
 0x182   : > { %v1649_v3 = vpop.f32.mrf.mxu3 }
 0x183   : > { %v1696_v50 = vpack.c.bf16 %v1649_v3, %v1371_v15  ;;  %v1674_v9 = vmul.f32 %v1649_v3, %v1649_v3  ;;  %v1659_v2 = vadd.f32 %v1658_v21, %v1649_v3  ;;  %v1406_v39 = vadd.f32 %v1405_v57, %v1404_v18 }
 0x184   : > { %v611_v30 = vpop.f32.mrf.mxu0  ;;  %v1385_v60 = vrot.slane %v1384_v5, 2 }
 0x185   : > { %v892_v53 = vpop.f32.mrf.mxu1  ;;  %2041 = vst [vmem:[%s2726_s15 + $0x68] sm:$0xff] %v1696_v50  ;;  %v636_v14 = vmul.f32 %v611_v30, %v611_v30  ;;  %v1681_v8 = vadd.f32 %v1680_v29, %v1674_v9  ;;  %v621_v15 = vadd.f32 %v620_v26, %v611_v30  ;;  %v1407_v49 = vrot.slane %v1406_v39, 2 }
 0x186   : > { %v939_v23 = vpack.c.bf16 %v892_v53, %v611_v30  ;;  %v917_v16 = vmul.f32 %v892_v53, %v892_v53  ;;  %v902_v40 = vadd.f32 %v901_v19, %v892_v53  ;;  %v1386_v13 = vadd.f32 %v1385_v60, %v1384_v5 }
 0x187   : > { %v643_v41 = vadd.f32 %v642_v10, %v636_v14  ;;  %v1408_v7 = vadd.f32 %v1407_v49, %v1406_v39 }
 0x188   : > { %947 = vst [vmem:[%s2726_s15 + $0x60] sm:$0xff] %v939_v23  ;;  %v924_v42 = vadd.f32 %v923_v34, %v917_v16  ;;  %v1387_v9 = vrot.slane %v1386_v13, 1 }
 0x189   : > { %v1409_v29 = vrot.slane %v1408_v7, 1 }
 0x18a   : > { %v1651_v37 = vpop.f32.mrf.mxu3  ;;  %v1388_v26 = vadd.f32 %v1387_v9, %v1386_v13 }
 0x18b   : > { %v1660_v51 = vadd.f32 %v1659_v2, %v1651_v37  ;;  %v1675_v27 = vmul.f32 %v1651_v37, %v1651_v37  ;;  %v1697_v38 = vpack.c.bf16 %v1651_v37, %v2740_v43  ;;  %v1410_v16 = vadd.f32 %v1409_v29, %v1408_v7 }
 0x18c   : > { %v613_v52 = vpop.f32.mrf.mxu0 }
 0x18d   : > { %v894_v33 = vpop.f32.mrf.mxu1  ;;  %v1661_v35 = vrot.slane %v1660_v51, 4  ;;  %v1682_v31 = vadd.f32 %v1681_v8, %v1675_v27  ;;  %2042 = vst [vmem:[%s2726_s15 + $0x78] sm:$0xff] %v1697_v38  ;;  %v622_v44 = vadd.f32 %v621_v15, %v613_v52  ;;  %v637_v47 = vmul.f32 %v613_v52, %v613_v52 }
 0x18e   : > { %v903_v24 = vadd.f32 %v902_v40, %v894_v33  ;;  %v918_v54 = vmul.f32 %v894_v33, %v894_v33  ;;  %v940_v55 = vpack.c.bf16 %v894_v33, %v613_v52 }
 0x18f   : > { %v1662_v58 = vadd.f32 %v1661_v35, %v1660_v51  ;;  %v1683_v36 = vrot.slane %v1682_v31, 4  ;;  %v623_v59 = vrot.slane %v622_v44, 4  ;;  %v644_v43 = vadd.f32 %v643_v41, %v637_v47 }
 0x190   : > { %v904_v62 = vrot.slane %v903_v24, 4  ;;  %v925_v11 = vadd.f32 %v924_v42, %v918_v54  ;;  %948 = vst [vmem:[%s2726_s15 + $0x70] sm:$0xff] %v940_v55 }
 0x191   : > { %v1684_v63 = vadd.f32 %v1683_v36, %v1682_v31  ;;  %v624_v1 = vadd.f32 %v623_v59, %v622_v44  ;;  %v645_v28 = vrot.slane %v644_v43, 4  ;;  %v1663_v12 = vrot.slane %v1662_v58, 2 }
 0x192   : > { %v905_v3 = vadd.f32 %v904_v62, %v903_v24  ;;  %v926_v4 = vrot.slane %v925_v11, 4 }
 0x193   : > { %v625_v0 = vrot.slane %v624_v1, 2  ;;  %v646_v61 = vadd.f32 %v645_v28, %v644_v43  ;;  %v1685_v50 = vrot.slane %v1684_v63, 2  ;;  %v1664_v53 = vadd.f32 %v1663_v12, %v1662_v58 }
 0x194   : > { %v906_v45 = vrot.slane %v905_v3, 2  ;;  %v927_v18 = vadd.f32 %v926_v4, %v925_v11 }
 0x195   : > { %v626_v30 = vadd.f32 %v625_v0, %v624_v1  ;;  %v647_v6 = vrot.slane %v646_v61, 2  ;;  %v1686_v32 = vadd.f32 %v1685_v50, %v1684_v63  ;;  %v1665_v14 = vrot.slane %v1664_v53, 1 }
 0x196   : > { %v907_v20 = vadd.f32 %v906_v45, %v905_v3  ;;  %v928_v48 = vrot.slane %v927_v18, 2 }
 0x197   : > { %v627_v56 = vrot.slane %v626_v30, 1  ;;  %v648_v22 = vadd.f32 %v647_v6, %v646_v61  ;;  %v1687_v34 = vrot.slane %v1686_v32, 1  ;;  %v1666_v8 = vadd.f32 %v1665_v14, %v1664_v53 }
 0x198   : > { %v908_v23 = vrot.slane %v907_v20, 1  ;;  %v929_v25 = vadd.f32 %v928_v48, %v927_v18 }
 0x199   : > { %v628_v17 = vadd.f32 %v627_v56, %v626_v30  ;;  %v649_v21 = vrot.slane %v648_v22, 1  ;;  %v1688_v51 = vadd.f32 %v1687_v34, %v1686_v32 }
 0x19a   : > { %v909_v46 = vadd.f32 %v908_v23, %v907_v20  ;;  %v930_v57 = vrot.slane %v929_v25, 1 }
 0x19b   : > { %v650_v19 = vadd.f32 %v649_v21, %v648_v22 }
 0x19c   : > { %v931_v2 = vadd.f32 %v930_v57, %v929_v25  ;;  %v910_v10 = vadd.f32 %v909_v46, %v628_v17 }
 0x19e   : > { %v932_v37 = vadd.f32 %v931_v2, %v650_v19  ;;  %v1389_v15 = vadd.f32 %v1388_v26, %v910_v10 }
 0x1a0   : > { %v1411_v27 = vadd.f32 %v1410_v16, %v932_v37  ;;  %v1667_v38 = vadd.f32 %v1666_v8, %v1389_v15 }
 0x1a2   : > { %v1689_v5 = vadd.f32 %v1688_v51, %v1411_v27 }
 0x1a4   : > { %v1708_v39 = vsel %vm1707_vm10, %v1667_v38, %v1689_v5 }
 0x1a5   : > { %v1710_v40 = vsel %vm1709_vm11, %v1708_v39, 0.0 }
 0x1a6   : > { %1711 = vst [vmem:[%s181_s19] sm:$0xff] %v1710_v40 }
 0x1a7 PF: > { %s14_s12 = sadd.s32 1, %s2088_s12  }
 0x1a8   : > { %p11_p4 = scmp.ge.s32.totalorder %s14_s12, 4  }
 0x1aa   :  { %13 = sbr.rel (!%p11_p4) target bundleno = 1 (0x1), region = 76 }

// kernel: upsample_block_forward.4
= control target key start
LH: loop header
LB: loop body
LE: loop exit
PB: predicated region body
PF: predicated region fallthrough
CT: control target
= control target key end

     0   :  { %s10487_s24 = smov 0   ;;  %s13700_s0 = inlined_call_operand.vmem [shape: bf16[2,16,16,128], index: 0, kind: input, shape index: {}]   ;;  %s13701_s1 = inlined_call_operand.vmem [shape: bf16[2,16,16,4], index: 1, kind: input, shape index: {}]   ;;  %s13702_s2 = inlined_call_operand.vmem [shape: f32[1,128], index: 2, kind: input, shape index: {}]   ;;  %s13703_s3 = inlined_call_operand.vmem [shape: f32[1,128], index: 3, kind: input, shape index: {}]   ;;  %s13704_s4 = inlined_call_operand.vmem [shape: bf16[3,384,128], index: 4, kind: input, shape index: {}]   ;;  %s13705_s5 = inlined_call_operand.vmem [shape: bf16[3,12,128], index: 5, kind: input, shape index: {}]   ;;  %s13706_s6 = inlined_call_operand.vmem [shape: bf16[2,16,16,128], index: 6, kind: output, shape index: {0}]   ;;  %s13707_s7 = inlined_call_operand.vmem [shape: f32[2,8,128], index: 7, kind: output, shape index: {1}]  }
   0x1 LB: > { %s9126_s25 = sadd.s32 4294967295, %s10442_s24   ;;  %p9130_p0 = scmp.ge.s32.totalorder %s10442_s24, 1  ;;  %s10442_s24 = sphi %s10487_s24, %s18_s24  }
   0x2   : > { %p250_p1 = scmp.lt.s32.totalorder %s10442_s24, 3 }
   0x4   : > { %p251_p2 = pnand %p9130_p0, %p250_p1 }
   0x6   : > { %254 = sbr.rel (%p251_p2) target bundleno = 1249 (0x4e1), region = 44 }
   0xb   : > { %vm1006_vm0 = vcmask 27648   ;;  %vm1009_vm1 = vcmask 24576   ;;  %v10444_v0 = vmov 0   ;;  %vm1611_vm2 = vsmask.f32 3328  ;;  %s10445_s26 = smov 4  }
   0xc   : > { %1007 = vst.msk [vmem:[#allocation3] sm:$0xf] %vm1006_vm0, %v10444_v0  ;;  %vm1612_vm3 = vsmask.f32 7440  ;;  %vm2062_vm5 = vcmask 1042432   ;;  %vm2063_vm6 = vcmask 1046532  }
   0xd   : > { %1008 = vst.msk [vmem:[#allocation3 + $0x4] sm:$0xf] %vm1006_vm0, %v10444_v0  ;;  %vm10520_vm4 = vmor %vm1611_vm2, %vm1612_vm3  ;;  %s10446_s27 = smov 8   ;;  %p291_p3 = scmp.lt.s32.totalorder %s9126_s25, 1  ;;  %vm565_vm8 = vsmask.f32 256 }
   0xe   : > { %1010 = vst.msk [vmem:[#allocation3 + $0x8] sm:$0x1] %vm1009_vm1, %v10444_v0  ;;  %vm10562_vm7 = vmor %vm2062_vm5, %vm2063_vm6  ;;  %vm566_vm9 = vsmask.f32 4368  ;;  %vm890_vm10 = vsmask.f32 7938 }
   0xf   : > { %311 = vst [vmem:[#allocation2] sm:$0xf] %v10444_v0  ;;  %s13850_s25 = smov (!%p291_p3, %s9126_s25), 1  ;;  %vm10692_vm11 = vmor %vm565_vm8, %vm566_vm9  ;;  %vm3265_vm14 = vcmask 31744   ;;  %vm3387_vm15 = vcmask 1045504   ;;  %vm3354_vm2 = vcmask 97280  }
  0x10   : > { %312 = vst [vmem:[#allocation2 + $0x4] sm:$0xf] %v10444_v0  ;;  %s10647_s28 = sshll.u32 %s13850_s25, 7  ;;  %vm10700_vm12 = vmand %vm1006_vm0, %vm890_vm10  ;;  %vm889_vm3 = vcmask 1043456   ;;  %vm896_vm5 = vcmask 1040384  }
  0x11   : > { %313 = vst [vmem:[#allocation2 + $0x8] sm:$0x1] %v10444_v0  ;;  %s10659_s8 = scalar_lea.vmem %s13701_s1, %s10647_s28  ;;  %vm10710_vm13 = vmand %vm1009_vm1, %vm565_vm8  ;;  %s10975_s18 = scalar_lea.vmem %s13700_s0, %s10647_s28 }
  0x12   : > { %314 = vst [vmem:[#allocation2 + $0xc] sm:$0xf] %v10444_v0  ;;  %v1062_v35 = vld [vmem:[%s10659_s8] sm:$0xf]  ;;  %v1063_v36 = vld [vmem:[%s10659_s8 + $0x4] sm:$0xf]  ;;  %vm11027_vm6 = vmand %vm889_vm3, %vm890_vm10  ;;  %s13482_s20 = scalar_lea.vmem %s13706_s6, %s10647_s28 }
  0x13   : > { %v2433_v1 = vld [vmem:[#allocation3] sm:$0xf]  ;;  %315 = vst [vmem:[#allocation2 + $0x10] sm:$0xf] %v10444_v0  ;;  %v1095_v37 = vshrl.u32 %v1062_v35, 16  ;;  %v1103_v38 = vshrl.u32 %v1063_v36, 16  ;;  %vm11033_vm9 = vmand %vm896_vm5, %vm565_vm8 }
  0x14   : > { %v10506_v2 = vld [vmem:[#allocation3 + $0x4] sm:$0xf]  ;;  %v2482_v3 = vshrl.u32 %v2433_v1, 16  ;;  %v2485_v4 = vshll.u32 %v2433_v1, 16  ;;  %316 = vst [vmem:[#allocation2 + $0x14] sm:$0x1] %v10444_v0 }
  0x15   : > { %v10509_v5 = vld [vmem:[#allocation3 + $0x8] sm:$0x1]  ;;  %v2491_v6 = vshll.u32 %v10506_v2, 16  ;;  %v2495_v7 = vshrl.u32 %v10506_v2, 16  ;;  %317 = vst [vmem:[#allocation2 + $0x18] sm:$0xf] %v10444_v0 }
  0x16   : > { %v2484_v8 = vrot.slane %v2482_v3, 4  ;;  %v2487_v9 = vrot.slane %v2485_v4, 5  ;;  %v2501_v10 = vshll.u32 %v10509_v5, 16  ;;  %318 = vst [vmem:[#allocation2 + $0x1c] sm:$0xf] %v10444_v0  ;;  %v2931_v24 = vrot.slane %v10506_v2, 5 }
  0x17   : > { %v2493_v11 = vrot.slane %v2491_v6, 5  ;;  %v2497_v12 = vrot.slane %v2495_v7, 4  ;;  %319 = vst [vmem:[#allocation2 + $0x20] sm:$0x1] %v10444_v0  ;;  %v2865_v25 = vld [vmem:[#allocation3] sm:$0xe] }
  0x18   : > { %v2488_v13 = vor.u32 %v2487_v9, %v2484_v8  ;;  %320 = vst [vmem:[#allocation2 + $0x24] sm:$0xf] %v10444_v0  ;;  %v2503_v16 = vrot.slane %v2501_v10, 5  ;;  %v9218_v26 = vrot.slane %v2865_v25, 9  ;;  %v2933_v27 = vrot.slane %v2931_v24, 4  ;;  %s9137_s28 = sshll.u32 %s13850_s25, 3 }
  0x19   : > { %v2498_v15 = vor.u32 %v2497_v12, %v2493_v11  ;;  %321 = vst [vmem:[#allocation2 + $0x28] sm:$0xf] %v10444_v0  ;;  %v2934_v29 = vrot.slane %v10509_v5, 5  ;;  %v1097_v39 = vrot.slane %v1095_v37, 7  ;;  %v1098_v40 = vshll.u32 %v1062_v35, 16  ;;  %s309_s23 = scalar_lea.vmem %s13707_s7, %s9137_s28 }
  0x1a   : > { %v2489_v17 = vrot.slane %v2488_v13, 4  ;;  %322 = vst [vmem:[#allocation2 + $0x2c] sm:$0x1] %v10444_v0  ;;  %v2932_v30 = vsel %vm10562_vm7, %v9218_v26, %v2931_v24  ;;  %v1105_v41 = vrot.slane %v1103_v38, 7  ;;  %v1106_v42 = vshll.u32 %v1063_v36, 16 }
  0x1b   : > { %v2499_v18 = vrot.slane %v2498_v15, 4  ;;  %323 = vst [vmem:[#allocation2 + $0x30] sm:$0xf] %v10444_v0  ;;  %v2935_v31 = vsel %vm10562_vm7, %v2933_v27, %v2934_v29  ;;  %v3185_v32 = vunpack.c.l.b16 %v2932_v30  ;;  %v1100_v44 = vor.u32 %v1098_v40, %v1097_v39  ;;  %v1064_v54 = vld [vmem:[%s10659_s8 + $0x8] sm:$0xf] }
  0x1c   : > { %v2494_v19 = vsel %vm10520_vm4, %v2489_v17, %v2493_v11  ;;  %324 = vst [vmem:[#allocation2 + $0x34] sm:$0xf] %v10444_v0  ;;  %v3186_v33 = vunpack.c.l.b16 %v2935_v31  ;;  %v1101_v45 = vrot.slane %v1097_v39, 4  ;;  %v1108_v46 = vor.u32 %v1106_v42, %v1105_v41  ;;  %v1065_v55 = vld [vmem:[%s10659_s8 + $0xc] sm:$0xf] }
  0x1d   : > { %v2504_v20 = vsel %vm10520_vm4, %v2499_v18, %v2503_v16  ;;  %v3105_v21 = vunpack.c.l.b16 %v2494_v19  ;;  %325 = vst [vmem:[#allocation2 + $0x38] sm:$0x1] %v10444_v0  ;;  %v1110_v49 = vrot.slane %v1105_v41, 4  ;;  %v1112_v56 = vshrl.u32 %v1064_v54, 16  ;;  %v1066_v2 = vld [vmem:[%s10659_s8 + $0x10] sm:$0xf] }
  0x1e   : > { %v3106_v22 = vunpack.c.l.b16 %v2504_v20  ;;  %326 = vst [vmem:[#allocation2 + $0x3c] sm:$0xf] %v10444_v0  ;;  %v3217_v34 = vpack.c.b16 %v3186_v33, %v3185_v32  ;;  %v1109_v52 = vsel %vm10692_vm11, %v1101_v45, %v1108_v46  ;;  %v1115_v57 = vshll.u32 %v1064_v54, 16  ;;  %v1067_v3 = vld [vmem:[%s10659_s8 + $0x14] sm:$0xf] }
  0x1f   : > { %327 = vst [vmem:[#allocation2 + $0x40] sm:$0xf] %v10444_v0  ;;  %v1120_v58 = vshrl.u32 %v1065_v55, 16  ;;  %v1123_v59 = vshll.u32 %v1065_v55, 16  ;;  %v1114_v63 = vrot.slane %v1112_v56, 7  ;;  %v1129_v4 = vshrl.u32 %v1066_v2, 16 }
  0x20   : > { %v3137_v23 = vpack.c.b16 %v3106_v22, %v3105_v21  ;;  %328 = vst [vmem:[#allocation2 + $0x44] sm:$0x1] %v10444_v0  ;;  %v1132_v5 = vshll.u32 %v1066_v2, 16  ;;  %v1137_v10 = vshrl.u32 %v1067_v3, 16  ;;  %v1140_v11 = vshll.u32 %v1067_v3, 16 }
  0x21   : > { %329 = vst [vmem:[#allocation2 + $0x48] sm:$0xf] %v10444_v0  ;;  %v1122_v1 = vrot.slane %v1120_v58, 7  ;;  %v1117_v6 = vor.u32 %v1115_v57, %v1114_v63  ;;  %v1118_v7 = vrot.slane %v1114_v63, 4 }
  0x22   : > { %3153 = vrot.lane.b32.xlu0 %v3137_v23, %s10445_s26  ;;  %330 = vst [vmem:[#allocation2 + $0x4c] sm:$0xf] %v10444_v0  ;;  %v1139_v19 = vrot.slane %v1137_v10, 7 }
  0x23   : > { %331 = vst [vmem:[#allocation2 + $0x50] sm:$0x1] %v10444_v0  ;;  %v1125_v8 = vor.u32 %v1123_v59, %v1122_v1  ;;  %v1127_v9 = vrot.slane %v1122_v1, 4 }
  0x24   : > { %332 = vst [vmem:[#allocation2 + $0x54] sm:$0xf] %v10444_v0  ;;  %v1142_v22 = vor.u32 %v1140_v11, %v1139_v19  ;;  %v1144_v30 = vrot.slane %v1139_v19, 4 }
  0x25   : > { %333 = vst [vmem:[#allocation2 + $0x58] sm:$0xf] %v10444_v0  ;;  %v1126_v12 = vsel %vm10692_vm11, %v1118_v7, %v1125_v8 }
  0x26   : > { %334 = vst [vmem:[#allocation2 + $0x5c] sm:$0x1] %v10444_v0 }
  0x27   : > { %335 = vst [vmem:[#allocation2 + $0x60] sm:$0xf] %v10444_v0 }
  0x28   : > { %336 = vst [vmem:[#allocation2 + $0x64] sm:$0xf] %v10444_v0 }
  0x29   : > { %337 = vst [vmem:[#allocation2 + $0x68] sm:$0x1] %v10444_v0 }
  0x2a   : > { %338 = vst [vmem:[#allocation2 + $0x6c] sm:$0xf] %v10444_v0  ;;  %3233 = vrot.lane.b32.xlu0 %v3217_v34, %s10446_s27 }
  0x2b   : > { %339 = vst [vmem:[#allocation2 + $0x70] sm:$0xf] %v10444_v0 }
  0x2c   : > { %340 = vst [vmem:[#allocation2 + $0x74] sm:$0x1] %v10444_v0 }
  0x2d   : > { %341 = vst [vmem:[#allocation2 + $0x78] sm:$0xf] %v10444_v0 }
  0x2e   : > { %342 = vst [vmem:[#allocation2 + $0x7c] sm:$0xf] %v10444_v0 }
  0x2f   : > { %343 = vst [vmem:[#allocation2 + $0x80] sm:$0x1] %v10444_v0 }
  0x30   : > { %344 = vst [vmem:[#allocation2 + $0x84] sm:$0xf] %v10444_v0 }
  0x31   : > { %345 = vst [vmem:[#allocation2 + $0x88] sm:$0xf] %v10444_v0 }
  0x32   : > { %346 = vst [vmem:[#allocation2 + $0x8c] sm:$0x1] %v10444_v0 }
  0x33   : > { %347 = vst [vmem:[#allocation2 + $0x90] sm:$0xf] %v10444_v0 }
  0x34   : > { %348 = vst [vmem:[#allocation2 + $0x94] sm:$0xf] %v10444_v0 }
  0x35   : > { %349 = vst [vmem:[#allocation2 + $0x98] sm:$0x1] %v10444_v0 }
  0x36   : > { %350 = vst [vmem:[#allocation2 + $0x9c] sm:$0xf] %v10444_v0 }
  0x37   : > { %351 = vst [vmem:[#allocation2 + $0xa0] sm:$0xf] %v10444_v0 }
  0x38   : > { %352 = vst [vmem:[#allocation2 + $0xa4] sm:$0x1] %v10444_v0 }
  0x39   : > { %353 = vst [vmem:[#allocation2 + $0xa8] sm:$0xf] %v10444_v0 }
  0x3a   : > { %354 = vst [vmem:[#allocation2 + $0xac] sm:$0xf] %v10444_v0 }
  0x3b   : > { %355 = vst [vmem:[#allocation2 + $0xb0] sm:$0x1] %v10444_v0 }
  0x3c   : > { %356 = vst [vmem:[#allocation2 + $0xb4] sm:$0xf] %v10444_v0 }
  0x3d   : > { %357 = vst [vmem:[#allocation2 + $0xb8] sm:$0xf] %v10444_v0 }
  0x3e   : > { %358 = vst [vmem:[#allocation2 + $0xbc] sm:$0x1] %v10444_v0 }
  0x3f   : > { %359 = vst [vmem:[#allocation2 + $0xc0] sm:$0xf] %v10444_v0 }
  0x40   : > { %360 = vst [vmem:[#allocation2 + $0xc4] sm:$0xf] %v10444_v0 }
  0x41   : > { %361 = vst [vmem:[#allocation2 + $0xc8] sm:$0x1] %v10444_v0 }
  0x42   : > { %362 = vst [vmem:[#allocation2 + $0xcc] sm:$0xf] %v10444_v0 }
  0x43   : > { %363 = vst [vmem:[#allocation2 + $0xd0] sm:$0xf] %v10444_v0 }
  0x44   : > { %364 = vst [vmem:[#allocation2 + $0xd4] sm:$0x1] %v10444_v0 }
  0x45   : > { %1011 = vst.msk [vmem:[#allocation3 + $0xc] sm:$0xf] %vm1006_vm0, %v10444_v0 }
  0x46   : > { %1012 = vst.msk [vmem:[#allocation3 + $0x10] sm:$0xf] %vm1006_vm0, %v10444_v0 }
  0x47   : > { %1013 = vst.msk [vmem:[#allocation3 + $0x14] sm:$0x1] %vm1009_vm1, %v10444_v0 }
  0x48   : > { %1014 = vst.msk [vmem:[#allocation3 + $0x18] sm:$0xf] %vm1006_vm0, %v10444_v0 }
  0x49   : > { %1015 = vst.msk [vmem:[#allocation3 + $0x1c] sm:$0xf] %vm1006_vm0, %v10444_v0 }
  0x4a   : > { %1016 = vst.msk [vmem:[#allocation3 + $0x20] sm:$0x1] %vm1009_vm1, %v10444_v0 }
  0x4b   : > { %1017 = vst.msk [vmem:[#allocation3 + $0x24] sm:$0xf] %vm1006_vm0, %v10444_v0 }
  0x4c   : > { %1018 = vst.msk [vmem:[#allocation3 + $0x28] sm:$0xf] %vm1006_vm0, %v10444_v0  ;;  %v1417_v48 = vld [vmem:[#allocation3 + $0xc] sm:$0xf] }
  0x4d   : > { %1019 = vst.msk [vmem:[#allocation3 + $0x2c] sm:$0x1] %vm1009_vm1, %v10444_v0  ;;  %v1418_v53 = vsel %vm10700_vm12, %v1100_v44, %v1417_v48 }
  0x4e   : > { %1020 = vst.msk [vmem:[#allocation3 + $0x30] sm:$0xf] %vm1006_vm0, %v10444_v0  ;;  %v1423_v51 = vld [vmem:[#allocation3 + $0x14] sm:$0x1] }
  0x4f   : > { %1021 = vst.msk [vmem:[#allocation3 + $0x34] sm:$0xf] %vm1006_vm0, %v10444_v0  ;;  %v1424_v60 = vsel %vm10710_vm13, %v1110_v49, %v1423_v51  ;;  %v1426_v61 = vld [vmem:[#allocation3 + $0x18] sm:$0xf] }
  0x50   : > { %1022 = vst.msk [vmem:[#allocation3 + $0x38] sm:$0x1] %vm1009_vm1, %v10444_v0  ;;  %v1427_v13 = vsel %vm10700_vm12, %v1117_v6, %v1426_v61 }
  0x51   : > { %1023 = vst.msk [vmem:[#allocation3 + $0x3c] sm:$0xf] %vm1006_vm0, %v10444_v0  ;;  %v1430_v62 = vld [vmem:[#allocation3 + $0x20] sm:$0x1] }
  0x52   : > { %1024 = vst.msk [vmem:[#allocation3 + $0x40] sm:$0xf] %vm1006_vm0, %v10444_v0  ;;  %v1431_v15 = vsel %vm10710_vm13, %v1127_v9, %v1430_v62  ;;  %v1433_v16 = vld [vmem:[#allocation3 + $0x24] sm:$0xf] }
  0x53   : > { %1025 = vst.msk [vmem:[#allocation3 + $0x44] sm:$0x1] %vm1009_vm1, %v10444_v0 }
  0x54   : > { %1026 = vst.msk [vmem:[#allocation3 + $0x48] sm:$0xf] %vm1006_vm0, %v10444_v0  ;;  %v1437_v24 = vld [vmem:[#allocation3 + $0x2c] sm:$0x1] }
  0x55   : > { %1027 = vst.msk [vmem:[#allocation3 + $0x4c] sm:$0xf] %vm1006_vm0, %v10444_v0  ;;  %v1438_v49 = vsel %vm10710_vm13, %v1144_v30, %v1437_v24 }
  0x56   : > { %1028 = vst.msk [vmem:[#allocation3 + $0x50] sm:$0x1] %vm1009_vm1, %v10444_v0 }
  0x57   : > { %1029 = vst.msk [vmem:[#allocation3 + $0x54] sm:$0xf] %vm1006_vm0, %v10444_v0 }
  0x58   : > { %1030 = vst.msk [vmem:[#allocation3 + $0x58] sm:$0xf] %vm1006_vm0, %v10444_v0 }
  0x59   : > { %1031 = vst.msk [vmem:[#allocation3 + $0x5c] sm:$0x1] %vm1009_vm1, %v10444_v0 }
  0x5a   : > { %1032 = vst.msk [vmem:[#allocation3 + $0x60] sm:$0xf] %vm1006_vm0, %v10444_v0 }
  0x5b   : > { %1033 = vst.msk [vmem:[#allocation3 + $0x64] sm:$0xf] %vm1006_vm0, %v10444_v0 }
  0x5c   : > { %1034 = vst.msk [vmem:[#allocation3 + $0x68] sm:$0x1] %vm1009_vm1, %v10444_v0 }
  0x5d   : > { %1035 = vst.msk [vmem:[#allocation3 + $0x6c] sm:$0xf] %vm1006_vm0, %v10444_v0 }
  0x5e   : > { %1036 = vst.msk [vmem:[#allocation3 + $0x70] sm:$0xf] %vm1006_vm0, %v10444_v0 }
  0x5f   : > { %1037 = vst.msk [vmem:[#allocation3 + $0x74] sm:$0x1] %vm1009_vm1, %v10444_v0 }
  0x60   : > { %1038 = vst.msk [vmem:[#allocation3 + $0x78] sm:$0xf] %vm1006_vm0, %v10444_v0 }
  0x61   : > { %1039 = vst.msk [vmem:[#allocation3 + $0x7c] sm:$0xf] %vm1006_vm0, %v10444_v0 }
  0x62   : > { %1040 = vst.msk [vmem:[#allocation3 + $0x80] sm:$0x1] %vm1009_vm1, %v10444_v0 }
  0x63   : > { %1041 = vst.msk [vmem:[#allocation3 + $0x84] sm:$0xf] %vm1006_vm0, %v10444_v0 }
  0x64   : > { %1042 = vst.msk [vmem:[#allocation3 + $0x88] sm:$0xf] %vm1006_vm0, %v10444_v0 }
  0x65   : > { %1043 = vst.msk [vmem:[#allocation3 + $0x8c] sm:$0x1] %vm1009_vm1, %v10444_v0 }
  0x66   : > { %1044 = vst.msk [vmem:[#allocation3 + $0x90] sm:$0xf] %vm1006_vm0, %v10444_v0 }
  0x67   : > { %1045 = vst.msk [vmem:[#allocation3 + $0x94] sm:$0xf] %vm1006_vm0, %v10444_v0 }
  0x68   : > { %1046 = vst.msk [vmem:[#allocation3 + $0x98] sm:$0x1] %vm1009_vm1, %v10444_v0 }
  0x69   : > { %1047 = vst.msk [vmem:[#allocation3 + $0x9c] sm:$0xf] %vm1006_vm0, %v10444_v0 }
  0x6a   : > { %1048 = vst.msk [vmem:[#allocation3 + $0xa0] sm:$0xf] %vm1006_vm0, %v10444_v0 }
  0x6b   : > { %1049 = vst.msk [vmem:[#allocation3 + $0xa4] sm:$0x1] %vm1009_vm1, %v10444_v0 }
  0x6c   : > { %1050 = vst.msk [vmem:[#allocation3 + $0xa8] sm:$0xf] %vm1006_vm0, %v10444_v0 }
  0x6d   : > { %1051 = vst.msk [vmem:[#allocation3 + $0xac] sm:$0xf] %vm1006_vm0, %v10444_v0 }
  0x6e   : > { %1052 = vst.msk [vmem:[#allocation3 + $0xb0] sm:$0x1] %vm1009_vm1, %v10444_v0 }
  0x6f   : > { %1053 = vst.msk [vmem:[#allocation3 + $0xb4] sm:$0xf] %vm1006_vm0, %v10444_v0 }
  0x70   : > { %1054 = vst.msk [vmem:[#allocation3 + $0xb8] sm:$0xf] %vm1006_vm0, %v10444_v0 }
  0x71   : > { %1055 = vst.msk [vmem:[#allocation3 + $0xbc] sm:$0x1] %vm1009_vm1, %v10444_v0 }
  0x72   : > { %1056 = vst.msk [vmem:[#allocation3 + $0xc0] sm:$0xf] %vm1006_vm0, %v10444_v0 }
  0x73   : > { %1057 = vst.msk [vmem:[#allocation3 + $0xc4] sm:$0xf] %vm1006_vm0, %v10444_v0 }
  0x74   : > { %1058 = vst.msk [vmem:[#allocation3 + $0xc8] sm:$0x1] %vm1009_vm1, %v10444_v0 }
  0x75   : > { %1059 = vst.msk [vmem:[#allocation3 + $0xcc] sm:$0xf] %vm1006_vm0, %v10444_v0 }
  0x76   : > { %1060 = vst.msk [vmem:[#allocation3 + $0xd0] sm:$0xf] %vm1006_vm0, %v10444_v0 }
  0x77   : > { %1061 = vst.msk [vmem:[#allocation3 + $0xd4] sm:$0x1] %vm1009_vm1, %v10444_v0  ;;  %v1131_v0 = vrot.slane %v1129_v4, 7  ;;  %vm3314_vm1 = vcmask 64512  }
  0x78   : > { %1419 = vst [vmem:[#allocation3 + $0xc] sm:$0xf] %v1418_v53 }
  0x79   : > { %1420 = vst.msk [vmem:[#allocation3 + $0x10] sm:$0xf] %vm1006_vm0, %v1109_v52  ;;  %v1134_v17 = vor.u32 %v1132_v5, %v1131_v0  ;;  %v1135_v18 = vrot.slane %v1131_v0, 4 }
  0x7a   : > { %1425 = vst [vmem:[#allocation3 + $0x14] sm:$0x1] %v1424_v60 }
  0x7b   : > { %1428 = vst [vmem:[#allocation3 + $0x18] sm:$0xf] %v1427_v13  ;;  %v1434_v23 = vsel %vm10700_vm12, %v1134_v17, %v1433_v16  ;;  %v1143_v35 = vsel %vm10692_vm11, %v1135_v18, %v1142_v22 }
  0x7c   : > { %1429 = vst.msk [vmem:[#allocation3 + $0x1c] sm:$0xf] %vm1006_vm0, %v1126_v12 }
  0x7d   : > { %1432 = vst [vmem:[#allocation3 + $0x20] sm:$0x1] %v1431_v15 }
  0x7e   : > { %1435 = vst [vmem:[#allocation3 + $0x24] sm:$0xf] %v1434_v23 }
  0x7f   : > { %v2435_v20 = vld [vmem:[#allocation3 + $0xc] sm:$0xf]  ;;  %1436 = vst.msk [vmem:[#allocation3 + $0x28] sm:$0xf] %vm1006_vm0, %v1143_v35 }
  0x80   : > { %v2866_v21 = vld [vmem:[#allocation3 + $0xc] sm:$0xe]  ;;  %v2436_v25 = vld [vmem:[#allocation3 + $0x10] sm:$0xf]  ;;  %v2506_v26 = vshrl.u32 %v2435_v20, 16  ;;  %v2509_v27 = vshll.u32 %v2435_v20, 16 }
  0x81   : > { %v9219_v29 = vrot.slane %v2866_v21, 9  ;;  %v2466_v31 = vld [vmem:[#allocation3 + $0x14] sm:$0x1]  ;;  %v2515_v32 = vshll.u32 %v2436_v25, 16  ;;  %v2519_v33 = vshrl.u32 %v2436_v25, 16  ;;  %v2938_v34 = vrot.slane %v2436_v25, 5 }
  0x82   : > { %v2508_v36 = vrot.slane %v2506_v26, 4  ;;  %v2511_v37 = vrot.slane %v2509_v27, 5  ;;  %v2525_v38 = vshll.u32 %v2466_v31, 16  ;;  %v2941_v39 = vrot.slane %v2466_v31, 5  ;;  %v2437_v48 = vld [vmem:[#allocation3 + $0x18] sm:$0xf] }
  0x83   : > { %v2517_v40 = vrot.slane %v2515_v32, 5  ;;  %v2521_v41 = vrot.slane %v2519_v33, 4  ;;  %v10744_v42 = vsel %vm10562_vm7, %v9219_v29, %v2938_v34  ;;  %v2940_v44 = vrot.slane %v2938_v34, 4  ;;  %v10753_v53 = vld [vmem:[#allocation3 + $0x1c] sm:$0xf]  ;;  %v10102_v32 = vld [vmem:[%s13704_s4 + $0x78] sm:$0xff] }
  0x84   : > { %v2512_v45 = vor.u32 %v2511_v37, %v2508_v36  ;;  %v2527_v46 = vrot.slane %v2525_v38, 5  ;;  %v2530_v54 = vshrl.u32 %v2437_v48, 16  ;;  %v2533_v55 = vshll.u32 %v2437_v48, 16  ;;  %1439 = vst [vmem:[#allocation3 + $0x2c] sm:$0x1] %v1438_v49  ;;  %v10110_v33 = vld [vmem:[%s13704_s4 + $0xb8] sm:$0xff]  ;;  %3713 = vmatpush.bf16.msra.mxu2 %v10102_v32 }
  0x85   : > { %v2522_v51 = vor.u32 %v2521_v41, %v2517_v40  ;;  %v10751_v52 = vsel %vm10562_vm7, %v2940_v44, %v2941_v39  ;;  %v3187_v57 = vunpack.c.l.b16 %v10744_v42  ;;  %v10756_v58 = vld [vmem:[#allocation3 + $0x20] sm:$0x1]  ;;  %v2539_v59 = vshll.u32 %v10753_v53, 16  ;;  %v2439_v0 = vld [vmem:[#allocation3 + $0x24] sm:$0xf]  ;;  %3802 = vmatpush.bf16.msra.mxu3 %v10110_v33  ;;  %v10107_v33 = vld [vmem:[%s13704_s4 + $0xa0] sm:$0xff] }
  0x86   : > { %v2513_v56 = vrot.slane %v2512_v45, 4  ;;  %v2543_v60 = vshrl.u32 %v10753_v53, 16  ;;  %v2532_v62 = vrot.slane %v2530_v54, 4  ;;  %v2535_v63 = vrot.slane %v2533_v55, 5  ;;  %v2868_v10 = vld [vmem:[#allocation3 + $0x24] sm:$0xe] }
  0x87   : > { %v2523_v61 = vrot.slane %v2522_v51, 4  ;;  %v2549_v1 = vshll.u32 %v10756_v58, 16  ;;  %v3188_v3 = vunpack.c.l.b16 %v10751_v52  ;;  %v2541_v4 = vrot.slane %v2539_v59, 5  ;;  %v2440_v13 = vld [vmem:[#allocation3 + $0x28] sm:$0xf]  ;;  %v10094_v34 = vld [vmem:[%s13704_s4 + $0x38] sm:$0xff] }
  0x88   : > { %v2518_v2 = vsel %vm10520_vm4, %v2513_v56, %v2517_v40  ;;  %v2545_v5 = vrot.slane %v2543_v60, 4  ;;  %v2536_v8 = vor.u32 %v2535_v63, %v2532_v62  ;;  %v2554_v15 = vshrl.u32 %v2439_v0, 16  ;;  %v2867_v21 = vld [vmem:[#allocation3 + $0x18] sm:$0xe]  ;;  %v1068_v44 = vld [vmem:[%s10659_s8 + $0x18] sm:$0xf]  ;;  %3624 = vmatpush.bf16.msra.mxu1 %v10094_v34 }
  0x89   : > { %v2528_v6 = vsel %vm10520_vm4, %v2523_v61, %v2527_v46  ;;  %v3107_v7 = vunpack.c.l.b16 %v2518_v2  ;;  %v2551_v9 = vrot.slane %v2549_v1, 5  ;;  %v2557_v16 = vshll.u32 %v2439_v0, 16  ;;  %v10101_v45 = vld [vmem:[%s13704_s4 + $0x70] sm:$0xff]  ;;  %v1069_v63 = vld [vmem:[%s10659_s8 + $0x1c] sm:$0xf]  ;;  %v10108_v0 = vld [vmem:[%s13704_s4 + $0xa8] sm:$0xff] }
  0x8a   : > { %v3108_v11 = vunpack.c.l.b16 %v2528_v6  ;;  %v2546_v12 = vor.u32 %v2545_v5, %v2541_v4  ;;  %v2537_v17 = vrot.slane %v2536_v8, 4  ;;  %v2563_v18 = vshll.u32 %v2440_v13, 16  ;;  %v10109_v52 = vld [vmem:[%s13704_s4 + $0xb0] sm:$0xff]  ;;  %3714 = vmatpush.bf16.msra.mxu2 %v10101_v45  ;;  %v1072_v34 = vld [vmem:[%s10659_s8 + $0x28] sm:$0xf]  ;;  %v10091_v45 = vld [vmem:[%s13704_s4 + $0x20] sm:$0xff] }
  0x8b   : > { %v2567_v19 = vshrl.u32 %v2440_v13, 16  ;;  %v9221_v20 = vrot.slane %v2868_v10, 9  ;;  %v2468_v24 = vld [vmem:[#allocation3 + $0x2c] sm:$0x1]  ;;  %v2556_v25 = vrot.slane %v2554_v15, 4  ;;  %v2559_v26 = vrot.slane %v2557_v16, 5  ;;  %3803 = vmatpush.bf16.msra.mxu3 %v10109_v52 }
  0x8c   : > { %v3138_v22 = vpack.c.b16 %v3108_v11, %v3107_v7  ;;  %v2547_v23 = vrot.slane %v2546_v12, 4  ;;  %v2542_v27 = vsel %vm10520_vm4, %v2537_v17, %v2541_v4  ;;  %v2565_v29 = vrot.slane %v2563_v18, 5  ;;  %v1070_v4 = vld [vmem:[%s10659_s8 + $0x20] sm:$0xf]  ;;  %v1071_v15 = vld [vmem:[%s10659_s8 + $0x24] sm:$0xf] }
  0x8d   : > { %v2569_v30 = vrot.slane %v2567_v19, 4  ;;  %v2573_v31 = vshll.u32 %v2468_v24, 16  ;;  %v3109_v36 = vunpack.c.l.b16 %v2542_v27  ;;  %v2560_v37 = vor.u32 %v2559_v26, %v2556_v25  ;;  %v1440_v19 = vld [vmem:[#allocation3 + $0x30] sm:$0xf]  ;;  %v1444_v25 = vld [vmem:[#allocation3 + $0x38] sm:$0x1] }
  0x8e   : > { %3155 = vrot.lane.b32.xlu1 %v3138_v22, %s10445_s26  ;;  %v2552_v35 = vsel %vm10520_vm4, %v2547_v23, %v2551_v9  ;;  %v2952_v38 = vrot.slane %v2440_v13, 5  ;;  %v2955_v42 = vrot.slane %v2468_v24, 5  ;;  %v9220_v51 = vrot.slane %v2867_v21, 9  ;;  %v10100_v9 = vld [vmem:[%s13704_s4 + $0x68] sm:$0xff]  ;;  %v10099_v27 = vld [vmem:[%s13704_s4 + $0x60] sm:$0xff]  ;;  %v10098_v52 = vld [vmem:[%s13704_s4 + $0x58] sm:$0xff] }
  0x8f   : > { %v3110_v39 = vunpack.c.l.b16 %v2552_v35  ;;  %v2570_v40 = vor.u32 %v2569_v30, %v2565_v29  ;;  %v2575_v41 = vrot.slane %v2573_v31, 5  ;;  %v2561_v46 = vrot.slane %v2560_v37, 4  ;;  %v10092_v21 = vld [vmem:[%s13704_s4 + $0x28] sm:$0xff]  ;;  %3715 = vmatpush.bf16.msra.mxu2 %v10100_v9  ;;  %3804 = vmatpush.bf16.msra.mxu3 %v10108_v0 }
  0x90   : > { %v2953_v48 = vsel %vm10562_vm7, %v9221_v20, %v2952_v38  ;;  %v2954_v49 = vrot.slane %v2952_v38, 4  ;;  %v3218_v54 = vpack.c.b16 %v3188_v3, %v3187_v57  ;;  %v2945_v59 = vrot.slane %v10753_v53, 5 }
  0x91   : > { %v3139_v55 = vpack.c.b16 %v3110_v39, %v3109_v36  ;;  %v2571_v56 = vrot.slane %v2570_v40, 4  ;;  %v2566_v60 = vsel %vm10520_vm4, %v2561_v46, %v2565_v29  ;;  %v2948_v62 = vrot.slane %v10756_v58, 5  ;;  %v10093_v58 = vld [vmem:[%s13704_s4 + $0x30] sm:$0xff]  ;;  %v1073_v40 = vld [vmem:[%s10659_s8 + $0x2c] sm:$0xf] }
  0x92   : > { %v2956_v61 = vsel %vm10562_vm7, %v2954_v49, %v2955_v42  ;;  %v1146_v1 = vshrl.u32 %v1068_v44, 16  ;;  %v3111_v57 = vunpack.c.l.b16 %v2566_v60  ;;  %v3191_v3 = vunpack.c.l.b16 %v2953_v48  ;;  %3625 = vmatpush.bf16.msra.mxu1 %v10093_v58  ;;  %v1447_v39 = vld [vmem:[#allocation3 + $0x3c] sm:$0xf] }
  0x93   : > { %3157 = vrot.lane.b32.xlu2 %v3139_v55, %s10445_s26  ;;  %v2576_v2 = vsel %vm10520_vm4, %v2571_v56, %v2575_v41  ;;  %v2946_v53 = vsel %vm10562_vm7, %v9220_v51, %v2945_v59  ;;  %v3192_v6 = vunpack.c.l.b16 %v2956_v61  ;;  %v2947_v7 = vrot.slane %v2945_v59, 4  ;;  %v1451_v51 = vld [vmem:[#allocation3 + $0x44] sm:$0x1]  ;;  %3716 = vmatpush.bf16.msra.mxu2 %v10099_v27 }
  0x94   : > { %v3112_v5 = vunpack.c.l.b16 %v2576_v2  ;;  %v1148_v8 = vrot.slane %v1146_v1, 7  ;;  %v3189_v10 = vunpack.c.l.b16 %v2946_v53  ;;  %v1149_v11 = vshll.u32 %v1068_v44, 16  ;;  %3805 = vmatpush.bf16.msra.mxu3 %v10107_v33  ;;  %v10106_v61 = vld [vmem:[%s13704_s4 + $0x98] sm:$0xff] }
  0x95   : > { %v1154_v12 = vshrl.u32 %v1069_v63, 16  ;;  %v1157_v13 = vshll.u32 %v1069_v63, 16  ;;  %v2949_v17 = vsel %vm10562_vm7, %v2947_v7, %v2948_v62  ;;  %v1163_v20 = vshrl.u32 %v1070_v4, 16  ;;  %v10090_v62 = vld [vmem:[%s13704_s4 + $0x18] sm:$0xff]  ;;  %v10097_v7 = vld [vmem:[%s13704_s4 + $0x50] sm:$0xff] }
  0x96   : > { %3235 = vrot.lane.b32.xlu1 %v3218_v54, %s10446_s27  ;;  %v3140_v16 = vpack.c.b16 %v3112_v5, %v3111_v57  ;;  %v1152_v18 = vrot.slane %v1148_v8, 4  ;;  %v3190_v22 = vunpack.c.l.b16 %v2949_v17  ;;  %v1151_v23 = vor.u32 %v1149_v11, %v1148_v8  ;;  %3626 = vmatpush.bf16.msra.mxu1 %v10092_v21  ;;  %v1454_v57 = vld [vmem:[#allocation3 + $0x48] sm:$0xf]  ;;  %v1458_v5 = vld [vmem:[#allocation3 + $0x50] sm:$0x1]  ;;  %v10105_v8 = vld [vmem:[%s13704_s4 + $0x90] sm:$0xff] }
  0x97   : > { %v1156_v24 = vrot.slane %v1154_v12, 7  ;;  %v1166_v26 = vshll.u32 %v1070_v4, 16  ;;  %v3220_v29 = vpack.c.b16 %v3192_v6, %v3191_v3  ;;  %v1165_v30 = vrot.slane %v1163_v20, 7  ;;  %v1563_v6 = vld [vmem:[#allocation2] sm:$0xf]  ;;  %3717 = vmatpush.bf16.msra.mxu2 %v10098_v52  ;;  %v10089_v11 = vld [vmem:[%s13704_s4 + $0x10] sm:$0xff] }
  0x98   : > { %3159 = vrot.lane.b32.xlu0 %v3140_v16, %s10445_s26  ;;  %v1171_v31 = vshrl.u32 %v1071_v15, 16  ;;  %v1174_v32 = vshll.u32 %v1071_v15, 16  ;;  %v3219_v35 = vpack.c.b16 %v3190_v22, %v3189_v10  ;;  %v1441_v38 = vsel %vm10700_vm12, %v1151_v23, %v1440_v19  ;;  %3806 = vmatpush.bf16.msra.mxu3 %v10106_v61  ;;  %v10866_v12 = vld [vmem:[#allocation2 + $0x4] sm:$0xf]  ;;  %v10096_v20 = vld [vmem:[%s13704_s4 + $0x48] sm:$0xff] }
  0x99   : > { %v1159_v36 = vor.u32 %v1157_v13, %v1156_v24  ;;  %v1161_v37 = vrot.slane %v1156_v24, 4  ;;  %1442 = vst [vmem:[#allocation3 + $0x30] sm:$0xf] %v1441_v38  ;;  %v1168_v41 = vor.u32 %v1166_v26, %v1165_v30  ;;  %v1169_v42 = vrot.slane %v1165_v30, 4  ;;  %v10104_v24 = vld [vmem:[%s13704_s4 + $0x88] sm:$0xff] }
  0x9a   : > { %v1173_v44 = vrot.slane %v1171_v31, 7  ;;  %v1180_v46 = vshrl.u32 %v1072_v34, 16  ;;  %v1183_v54 = vshll.u32 %v1072_v34, 16  ;;  %v1188_v55 = vshrl.u32 %v1073_v40, 16  ;;  %3627 = vmatpush.bf16.msra.mxu1 %v10091_v45 }
  0x9b   : > { %3237 = vrot.lane.b32.xlu2 %v3219_v35, %s10446_s27  ;;  %v1160_v48 = vsel %vm10692_vm11, %v1152_v18, %v1159_v36  ;;  %v1445_v49 = vsel %vm10710_vm13, %v1161_v37, %v1444_v25  ;;  %v1448_v60 = vsel %vm10700_vm12, %v1168_v41, %v1447_v39  ;;  %v1191_v2 = vshll.u32 %v1073_v40, 16  ;;  %3718 = vmatpush.bf16.msra.mxu2 %v10097_v7 }
  0x9c   : > { %1443 = vst.msk [vmem:[#allocation3 + $0x34] sm:$0xf] %vm1006_vm0, %v1160_v48  ;;  %v1176_v56 = vor.u32 %v1174_v32, %v1173_v44  ;;  %v1178_v59 = vrot.slane %v1173_v44, 4  ;;  %v1182_v63 = vrot.slane %v1180_v46, 7  ;;  %v1190_v1 = vrot.slane %v1188_v55, 7  ;;  %3807 = vmatpush.bf16.msra.mxu3 %v10105_v8  ;;  %v10088_v46 = vld [vmem:[%s13704_s4 + $0x8] sm:$0xff] }
  0x9d   : > { %1446 = vst [vmem:[#allocation3 + $0x38] sm:$0x1] %v1445_v49  ;;  %v1615_v13 = vshrl.u32 %v1563_v6, 16  ;;  %v1618_v15 = vshll.u32 %v1563_v6, 16  ;;  %v10095_v55 = vld [vmem:[%s13704_s4 + $0x40] sm:$0xff] }
  0x9e   : > { %3239 = vrot.lane.b32.xlu1 %v3220_v29, %s10446_s27  ;;  %v1177_v3 = vsel %vm10692_vm11, %v1169_v42, %v1176_v56  ;;  %1449 = vst [vmem:[#allocation3 + $0x3c] sm:$0xf] %v1448_v60  ;;  %v1452_v53 = vsel %vm10710_vm13, %v1178_v59, %v1451_v51  ;;  %v1185_v4 = vor.u32 %v1183_v54, %v1182_v63  ;;  %v1186_v58 = vrot.slane %v1182_v63, 4  ;;  %v10103_v63 = vld [vmem:[%s13704_s4 + $0x80] sm:$0xff] }
  0x9f   : > { %1450 = vst.msk [vmem:[#allocation3 + $0x40] sm:$0xf] %vm1006_vm0, %v1177_v3  ;;  %v1193_v9 = vor.u32 %v1191_v2, %v1190_v1  ;;  %v1195_v0 = vrot.slane %v1190_v1, 4  ;;  %3628 = vmatpush.bf16.msra.mxu1 %v10090_v62  ;;  %v10879_v25 = vrot.slane %v1615_v13, 4  ;;  %v10881_v27 = vrot.slane %v1618_v15, 5  ;;  %3719 = vmatpush.bf16.msra.mxu2 %v10096_v20 }
  0xa0   : > { %1453 = vst [vmem:[#allocation3 + $0x44] sm:$0x1] %v1452_v53  ;;  %v1455_v10 = vsel %vm10700_vm12, %v1185_v4, %v1454_v57  ;;  %v2869_v16 = vld [vmem:[#allocation3 + $0x30] sm:$0xe]  ;;  %v1624_v29 = vshll.u32 %v10866_v12, 16  ;;  %3808 = vmatpush.bf16.msra.mxu3 %v10104_v24  ;;  %v10159_v53 = vld [vmem:[%s13704_s4 + $0x138] sm:$0xff] }
  0xa1   : > { %v2441_v17 = vld [vmem:[#allocation3 + $0x30] sm:$0xf]  ;;  %v1194_v18 = vsel %vm10692_vm11, %v1186_v58, %v1193_v9  ;;  %1456 = vst [vmem:[#allocation3 + $0x48] sm:$0xf] %v1455_v10  ;;  %v1459_v19 = vsel %vm10710_vm13, %v1195_v0, %v1458_v5  ;;  %v9222_v21 = vrot.slane %v2869_v16, 9  ;;  %v1621_v39 = vor.u32 %v10881_v27, %v10879_v25  ;;  %v10087_v58 = vld [vmem:[%s13704_s4] sm:$0xff] }
  0xa2   : > { %v2578_v22 = vshrl.u32 %v2441_v17, 16  ;;  %v2581_v23 = vshll.u32 %v2441_v17, 16  ;;  %1457 = vst.msk [vmem:[#allocation3 + $0x4c] sm:$0xf] %vm1006_vm0, %v1194_v18  ;;  %v1628_v25 = vshrl.u32 %v10866_v12, 16 }
  0xa3   : > { %v2442_v26 = vld [vmem:[#allocation3 + $0x34] sm:$0xf]  ;;  %1460 = vst [vmem:[#allocation3 + $0x50] sm:$0x1] %v1459_v19  ;;  %3629 = vmatpush.bf16.msra.mxu1 %v10089_v11  ;;  %3720 = vmatpush.bf16.msra.mxu2 %v10095_v55 }
  0xa4   : > { %v2469_v30 = vld [vmem:[#allocation3 + $0x38] sm:$0x1]  ;;  %v2959_v31 = vrot.slane %v2442_v26, 5  ;;  %v2580_v32 = vrot.slane %v2578_v22, 4  ;;  %v2583_v33 = vrot.slane %v2581_v23, 5  ;;  %v2587_v34 = vshll.u32 %v2442_v26, 16  ;;  %3809 = vmatpush.bf16.msra.mxu3 %v10103_v63 }
  0xa5   : > { %v2962_v35 = vrot.slane %v2469_v30, 5  ;;  %v2443_v36 = vld [vmem:[#allocation3 + $0x3c] sm:$0xf]  ;;  %v2591_v37 = vshrl.u32 %v2442_v26, 16  ;;  %v2597_v38 = vshll.u32 %v2469_v30, 16  ;;  %v10071_v23 = vld [vmem:[#allocation2] sm:$0xff] }
  0xa6   : > { %v2960_v40 = vsel %vm10562_vm7, %v9222_v21, %v2959_v31  ;;  %v2961_v41 = vrot.slane %v2959_v31, 4  ;;  %v10888_v42 = vld [vmem:[#allocation3 + $0x40] sm:$0xf]  ;;  %v2602_v44 = vshrl.u32 %v2443_v36, 16  ;;  %v2605_v45 = vshll.u32 %v2443_v36, 16 }
  0xa7   : > { %v3193_v48 = vunpack.c.l.b16 %v2960_v40  ;;  %v10893_v49 = vld [vmem:[#allocation3 + $0x44] sm:$0x1]  ;;  %v2611_v51 = vshll.u32 %v10888_v42, 16  ;;  %v2615_v52 = vshrl.u32 %v10888_v42, 16  ;;  %v2584_v54 = vor.u32 %v2583_v33, %v2580_v32  ;;  %3630 = vmatpush.bf16.msra.mxu1 %v10088_v46  ;;  %6129 = vmatpush.bf16.msrb.mxu2 %v10159_v53  ;;  %v2870_v63 = vld [vmem:[#allocation3 + $0x3c] sm:$0xe] }
  0xa8   : > { %v2963_v56 = vsel %vm10562_vm7, %v2961_v41, %v2962_v35  ;;  %v2604_v59 = vrot.slane %v2602_v44, 4  ;;  %v2607_v60 = vrot.slane %v2605_v45, 5  ;;  %v2621_v61 = vshll.u32 %v10893_v49, 16  ;;  %v2445_v62 = vld [vmem:[#allocation3 + $0x48] sm:$0xf] }
  0xa9   : > { %v3194_v1 = vunpack.c.l.b16 %v2963_v56  ;;  %v2613_v2 = vrot.slane %v2611_v51, 5  ;;  %v2617_v57 = vrot.slane %v2615_v52, 4  ;;  %v2585_v3 = vrot.slane %v2584_v54, 4  ;;  %v2446_v8 = vld [vmem:[#allocation3 + $0x4c] sm:$0xf] }
  0xaa   : > { %v2608_v4 = vor.u32 %v2607_v60, %v2604_v59  ;;  %v2623_v5 = vrot.slane %v2621_v61, 5  ;;  %v2589_v6 = vrot.slane %v2587_v34, 5  ;;  %v2593_v7 = vrot.slane %v2591_v37, 4  ;;  %v2471_v17 = vld [vmem:[#allocation3 + $0x50] sm:$0x1] }
  0xab   : > { %v3221_v9 = vpack.c.b16 %v3194_v1, %v3193_v48  ;;  %v2618_v0 = vor.u32 %v2617_v57, %v2613_v2  ;;  %v2599_v10 = vrot.slane %v2597_v38, 5  ;;  %v2626_v11 = vshrl.u32 %v2445_v62, 16  ;;  %v2871_v32 = vld [vmem:[#allocation3 + $0x48] sm:$0xe]  ;;  %3631 = vmatpush.bf16.msra.mxu1 %v10087_v58  ;;  %v10921_v56 = vld [vmem:[#allocation2 + $0x8] sm:$0x1] }
  0xac   : > { %v2609_v13 = vrot.slane %v2608_v4, 4  ;;  %v2590_v15 = vsel %vm10520_vm4, %v2585_v3, %v2589_v6  ;;  %v2594_v16 = vor.u32 %v2593_v7, %v2589_v6  ;;  %v2629_v18 = vshll.u32 %v2445_v62, 16  ;;  %v10167_v6 = vld [vmem:[%s13704_s4 + $0x178] sm:$0xff] }
  0xad   : > { %3241 = vrot.lane.b32.xlu0 %v3221_v9, %s10446_s27  ;;  %v2619_v19 = vrot.slane %v2618_v0, 4  ;;  %v3113_v20 = vunpack.c.l.b16 %v2590_v15  ;;  %v2628_v21 = vrot.slane %v2626_v11, 4  ;;  %v2635_v22 = vshll.u32 %v2446_v8, 16  ;;  %v1998_v0 = vld [vmem:[#allocation2] sm:$0xe]  ;;  %6218 = vmatpush.bf16.msrb.mxu3 %v10167_v6 }
  0xae   : > { %v2614_v24 = vsel %vm10520_vm4, %v2609_v13, %v2613_v2  ;;  %v2595_v26 = vrot.slane %v2594_v16, 4  ;;  %v2631_v30 = vrot.slane %v2629_v18, 5  ;;  %v2639_v31 = vshrl.u32 %v2446_v8, 16  ;;  %3632 = vmatmul.bf16.vlgmr.msra.gmra.mxu1 %v10071_v23 }
  0xaf   : > { %v2624_v33 = vsel %vm10520_vm4, %v2619_v19, %v2623_v5  ;;  %v3115_v34 = vunpack.c.l.b16 %v2614_v24  ;;  %v2637_v35 = vrot.slane %v2635_v22, 5  ;;  %v2645_v36 = vshll.u32 %v2471_v17, 16  ;;  %v3154_v5 = vpop.permute.xlu0 %3153  ;;  %v1074_v19 = vld [vmem:[%s10659_s8 + $0x30] sm:$0xf]  ;;  %v1075_v24 = vld [vmem:[%s10659_s8 + $0x34] sm:$0xf] }
  0xb0   : > { %v3116_v37 = vunpack.c.l.b16 %v2624_v33  ;;  %v2600_v38 = vsel %vm10520_vm4, %v2595_v26, %v2599_v10  ;;  %v2632_v40 = vor.u32 %v2631_v30, %v2628_v21  ;;  %v2641_v41 = vrot.slane %v2639_v31, 4 }
  0xb1   : > { %v3114_v44 = vunpack.c.l.b16 %v2600_v38  ;;  %v2647_v45 = vrot.slane %v2645_v36, 5  ;;  %v9224_v46 = vrot.slane %v2871_v32, 9  ;;  %v2973_v48 = vrot.slane %v2446_v8, 5 }
  0xb2   : > { %v3142_v51 = vpack.c.b16 %v3116_v37, %v3115_v34  ;;  %v2633_v52 = vrot.slane %v2632_v40, 4  ;;  %v2642_v54 = vor.u32 %v2641_v41, %v2637_v35  ;;  %v2976_v55 = vrot.slane %v2471_v17, 5 }
  0xb3   : > { %v3141_v59 = vpack.c.b16 %v3114_v44, %v3113_v20  ;;  %v2974_v60 = vsel %vm10562_vm7, %v9224_v46, %v2973_v48  ;;  %v2975_v61 = vrot.slane %v2973_v48, 4  ;;  %v1622_v62 = vrot.slane %v1621_v39, 4  ;;  %v10111_v39 = vld [vmem:[#allocation3] sm:$0xff]  ;;  %v10127_v46 = vld [vmem:[%s13705_s5] sm:$0x30] }
  0xb4   : > { %3163 = vrot.lane.b32.xlu1 %v3142_v51, %s10445_s26  ;;  %v2638_v1 = vsel %vm10520_vm4, %v2633_v52, %v2637_v35  ;;  %v2643_v2 = vrot.slane %v2642_v54, 4  ;;  %v3197_v57 = vunpack.c.l.b16 %v2974_v60  ;;  %v1626_v3 = vrot.slane %v1624_v29, 5  ;;  %v10151_v29 = vld [vmem:[%s13704_s4 + $0xf8] sm:$0xff] }
  0xb5   : > { %3161 = vrot.lane.b32.xlu2 %v3141_v59, %s10445_s26  ;;  %v3117_v53 = vunpack.c.l.b16 %v2638_v1  ;;  %v2977_v4 = vsel %vm10562_vm7, %v2975_v61, %v2976_v55  ;;  %v1634_v27 = vshll.u32 %v10921_v56, 16  ;;  %v9223_v9 = vrot.slane %v2870_v63, 9  ;;  %6040 = vmatpush.bf16.msrb.mxu1 %v10151_v29  ;;  %v1461_v55 = vld [vmem:[#allocation3 + $0x54] sm:$0xf] }
  0xb6   : > { %v2648_v7 = vsel %vm10520_vm4, %v2643_v2, %v2647_v45  ;;  %v3198_v8 = vunpack.c.l.b16 %v2977_v4  ;;  %v1627_v58 = vsel %vm10520_vm4, %v1622_v62, %v1626_v3  ;;  %v1630_v11 = vrot.slane %v1628_v25, 4  ;;  %v9300_v45 = vld [vmem:[%s13705_s5] sm:$0xf]  ;;  %v1465_v62 = vld [vmem:[#allocation3 + $0x5c] sm:$0x1] }
  0xb7   : > { %v3118_v10 = vunpack.c.l.b16 %v2648_v7  ;;  %v1636_v13 = vrot.slane %v1634_v27, 5  ;;  %v2257_v15 = vunpack.c.l.b16 %v1627_v58  ;;  %v2966_v17 = vrot.slane %v10888_v42, 5  ;;  %v3234_v63 = vpop.permute.xlu0 %3233  ;;  %v10184_v4 = vld [vmem:[%s13705_s5 + $0x8] sm:$0x30]  ;;  %v10243_v25 = vld [vmem:[%s10975_s18] sm:$0xff]  }
  0xb8   : > { %v3223_v16 = vpack.c.b16 %v3198_v8, %v3197_v57  ;;  %v2969_v18 = vrot.slane %v10893_v49, 5  ;;  %v1631_v21 = vor.u32 %v1630_v11, %v1626_v3  ;;  %v3268_v22 = vsel %vm3265_vm14, %v10111_v39, %v3154_v5  ;;  %v10992_v5 = vld [vmem:[%s13702_s2] ss:$0 sm:$0xff] }
  0xb9   : > { %v3143_v20 = vpack.c.b16 %v3118_v10, %v3117_v53  ;;  %v9138_v23 = vrot.slane %v1998_v0, 9  ;;  %v2967_v26 = vsel %vm10562_vm7, %v9223_v9, %v2966_v17  ;;  %v2968_v30 = vrot.slane %v2966_v17, 4  ;;  %v9626_v53 = vld [vmem:[%s13705_s5 + $0x8] sm:$0xf]  ;;  %v11004_v10 = vld [vmem:[%s13703_s3] ss:$0 sm:$0xff] }
  0xba   : > { %v2067_v31 = vrot.slane %v10866_v12, 5  ;;  %v2070_v32 = vrot.slane %v10921_v56, 5  ;;  %v1632_v42 = vrot.slane %v1631_v21, 4  ;;  %v3195_v49 = vunpack.c.l.b16 %v2967_v26 }
  0xbb   : > { %3165 = vrot.lane.b32.xlu0 %v3143_v20, %s10445_s26  ;;  %v1197_v33 = vshrl.u32 %v1074_v19, 16  ;;  %v1200_v34 = vshll.u32 %v1074_v19, 16  ;;  %v2970_v35 = vsel %vm10562_vm7, %v2968_v30, %v2969_v18  ;;  %v1205_v38 = vshrl.u32 %v1075_v24, 16 }
  0xbc   : > { %3245 = vrot.lane.b32.xlu1 %v3223_v16, %s10446_s27  ;;  %v2068_v36 = vsel %vm10562_vm7, %v9138_v23, %v2067_v31  ;;  %v2069_v37 = vrot.slane %v2067_v31, 4  ;;  %v1637_v12 = vsel %vm10520_vm4, %v1632_v42, %v1636_v13  ;;  %v3196_v40 = vunpack.c.l.b16 %v2970_v35  ;;  %v1076_v31 = vld [vmem:[%s10659_s8 + $0x38] sm:$0xf] }
  0xbd   : > { %v2321_v41 = vunpack.c.l.b16 %v2068_v36  ;;  %v1199_v44 = vrot.slane %v1197_v33, 7  ;;  %v2258_v48 = vunpack.c.l.b16 %v1637_v12  ;;  %v1207_v52 = vrot.slane %v1205_v38, 7  ;;  %v1077_v12 = vld [vmem:[%s10659_s8 + $0x3c] sm:$0xf] }
  0xbe   : > { %v2071_v51 = vsel %vm10562_vm7, %v2069_v37, %v2070_v32  ;;  %v1208_v54 = vshll.u32 %v1075_v24, 16  ;;  %v3222_v56 = vpack.c.b16 %v3196_v40, %v3195_v49  ;;  %v9301_v3 = vor.u32 %v10127_v46, %v9300_v45  ;;  %v10386_v32 = vld [vmem:[%s10975_s18 + $0x8] sm:$0xff]  }
  0xbf   : > { %v2322_v59 = vunpack.c.l.b16 %v2071_v51  ;;  %v1202_v60 = vor.u32 %v1200_v34, %v1199_v44  ;;  %v1203_v61 = vrot.slane %v1199_v44, 4  ;;  %v2289_v1 = vpack.c.b16 %v2258_v48, %v2257_v15 }
  0xc0   : > { %v1210_v2 = vor.u32 %v1208_v54, %v1207_v52  ;;  %v1212_v57 = vrot.slane %v1207_v52, 4  ;;  %3243 = vrot.lane.b32.xlu2 %v3222_v56, %s10446_s27  ;;  %v3389_v7 = vsel %vm3387_vm15, %v9301_v3, 0  ;;  %v3316_v8 = vsel %vm3314_vm1, %v3268_v22, %v3234_v63  ;;  %v892_v56 = vld [vmem:[#allocation2 + $0xc] sm:$0xf]  ;;  %v1468_v3 = vld [vmem:[#allocation3 + $0x60] sm:$0xf] }
  0xc1   : > { %v2353_v27 = vpack.c.b16 %v2322_v59, %v2321_v41  ;;  %v1462_v39 = vsel %vm10700_vm12, %v1202_v60, %v1461_v55  ;;  %3721 = vmatmul.bf16.vlgmr.msra.gmra.mxu2 %v2289_v1  ;;  %3398 = vmatpush.bf16.msra.mxu0 %v3389_v7  ;;  %v9627_v58 = vor.u32 %v10184_v4, %v9626_v53  ;;  %v10244_v9 = vunpack.c.l.bf16 %v10243_v25  ;;  %v898_v1 = vld [vmem:[#allocation2 + $0x14] sm:$0x1] }
  0xc2   : > { %v1211_v6 = vsel %vm10692_vm11, %v1203_v61, %v1210_v2  ;;  %1463 = vst [vmem:[#allocation3 + $0x54] sm:$0xf] %v1462_v39  ;;  %v1466_v29 = vsel %vm10710_vm13, %v1212_v57, %v1465_v62  ;;  %v10245_v0 = vunpack.c.h.bf16 %v10243_v25  ;;  %v1214_v49 = vshrl.u32 %v1076_v31, 16 }
  0xc3   : > { %3810 = vmatmul.bf16.vlgmr.msra.gmra.mxu3 %v2353_v27  ;;  %1464 = vst.msk [vmem:[#allocation3 + $0x58] sm:$0xf] %vm1006_vm0, %v1211_v6  ;;  %v5805_v11 = vsel %vm3387_vm15, %v9627_v58, 0  ;;  %v433_v13 = vmul.f32 %v10992_v5, %v10244_v9  ;;  %v10248_v33 = vunpack.c.l.bf16 %v10386_v32  ;;  %v10249_v34 = vunpack.c.h.bf16 %v10386_v32 }
  0xc4   : > { %1467 = vst [vmem:[#allocation3 + $0x5c] sm:$0x1] %v1466_v29  ;;  %v434_v15 = vmul.f32 %v10992_v5, %v10245_v0  ;;  %9302 = vmatmul.msk.bf16.vlgmr.msra.gmra.mxu0 %vm3354_vm2, %v3316_v8  ;;  %v1216_v48 = vrot.slane %v1214_v49, 7  ;;  %v1217_v51 = vshll.u32 %v1076_v31, 16  ;;  %v1222_v59 = vshrl.u32 %v1077_v12, 16 }
  0xc5   : > { %5814 = vmatpush.bf16.msrb.mxu0 %v5805_v11  ;;  %v469_v16 = vadd.f32 %v11004_v10, %v433_v13  ;;  %v1225_v60 = vshll.u32 %v1077_v12, 16  ;;  %v13721_v63 = vmov 0  ;;  %v435_v29 = vmul.f32 %v10992_v5, %v10248_v33  ;;  %v1472_v11 = vld [vmem:[#allocation3 + $0x68] sm:$0x1] }
  0xc6   : > { %v470_v17 = vadd.f32 %v11004_v10, %v434_v15  ;;  %v13722_v63 = vsel %vm11033_vm9, 4294967295, %v13721_v63  ;;  %v1219_v2 = vor.u32 %v1217_v51, %v1216_v48  ;;  %v1220_v57 = vrot.slane %v1216_v48, 4 }
  0xc7   : > { %v501_v19 = vmax.f32 %v469_v16, 0.0  ;;  %13723 = vst [vmem:[#allocation5_spill] sm:$0xff] %v13722_v63  ;;  %v1224_v27 = vrot.slane %v1222_v59, 7  ;;  %v436_v7 = vmul.f32 %v10992_v5, %v10249_v34  ;;  %v471_v13 = vadd.f32 %v11004_v10, %v435_v29 }
  0xc8   : > { %v502_v20 = vmax.f32 %v470_v17, 0.0  ;;  %v1469_v6 = vsel %vm10700_vm12, %v1219_v2, %v1468_v3 }
  0xc9   : > { %v2872_v18 = vld [vmem:[#allocation3 + $0x54] sm:$0xe]  ;;  %v533_v26 = vpack.c.bf16 %v501_v19, %v501_v19  ;;  %v1227_v9 = vor.u32 %v1225_v60, %v1224_v27  ;;  %v1229_v0 = vrot.slane %v1224_v27, 4  ;;  %v472_v15 = vadd.f32 %v11004_v10, %v436_v7  ;;  %1470 = vst [vmem:[#allocation3 + $0x60] sm:$0xf] %v1469_v6 }
  0xca   : > { %v11012_v21 = vld [vmem:[#allocation3 + $0x58] sm:$0xf]  ;;  %v9225_v22 = vrot.slane %v2872_v18, 9  ;;  %v534_v30 = vpack.c.bf16 %v502_v20, %v502_v20  ;;  %v503_v18 = vmax.f32 %v471_v13, 0.0 }
  0xcb   : > { %v11014_v23 = vld [vmem:[#allocation3 + $0x5c] sm:$0x1]  ;;  %v2980_v24 = vrot.slane %v11012_v21, 5  ;;  %v569_v37 = vshrl.u32 %v533_v26, 16  ;;  %v572_v38 = vshll.u32 %v533_v26, 16  ;;  %v1228_v16 = vsel %vm10692_vm11, %v1220_v57, %v1227_v9 }
  0xcc   : > { %v2983_v42 = vrot.slane %v11014_v23, 5  ;;  %v577_v41 = vshrl.u32 %v534_v30, 16  ;;  %v580_v44 = vshll.u32 %v534_v30, 16  ;;  %v1473_v17 = vsel %vm10710_vm13, %v1229_v0, %v1472_v11  ;;  %1471 = vst.msk [vmem:[#allocation3 + $0x64] sm:$0xf] %vm1006_vm0, %v1228_v16 }
  0xcd   : > { %v2981_v35 = vsel %vm10562_vm7, %v9225_v22, %v2980_v24  ;;  %v2982_v36 = vrot.slane %v2980_v24, 4  ;;  %v571_v46 = vrot.slane %v569_v37, 7  ;;  %v504_v19 = vmax.f32 %v472_v15, 0.0  ;;  %1474 = vst [vmem:[#allocation3 + $0x68] sm:$0x1] %v1473_v17  ;;  %v11060_v24 = vld [vmem:[%s10975_s18 + $0x10] sm:$0xff]  }
  0xce   : > { %v3199_v40 = vunpack.c.l.b16 %v2981_v35  ;;  %v579_v54 = vrot.slane %v577_v41, 7  ;;  %v11055_v20 = vpack.c.bf16 %v503_v18, %v503_v18  ;;  %v10253_v49 = vunpack.c.h.bf16 %v11060_v24 }
  0xcf   : > { %v2984_v45 = vsel %vm10562_vm7, %v2982_v36, %v2983_v42  ;;  %v574_v61 = vor.u32 %v572_v38, %v571_v46  ;;  %v575_v62 = vrot.slane %v571_v46, 4  ;;  %v11057_v22 = vpack.c.bf16 %v504_v19, %v504_v19 }
  0xd0   : > { %v3200_v52 = vunpack.c.l.b16 %v2984_v45  ;;  %v582_v4 = vor.u32 %v580_v44, %v579_v54  ;;  %v584_v25 = vrot.slane %v579_v54, 4  ;;  %v586_v31 = vshrl.u32 %v11055_v20, 16 }
  0xd1   : > { %v893_v39 = vsel %vm11027_vm6, %v574_v61, %v892_v56  ;;  %v589_v32 = vshll.u32 %v11055_v20, 16  ;;  %v10252_v42 = vunpack.c.l.bf16 %v11060_v24  ;;  %v594_v37 = vshrl.u32 %v11057_v22, 16 }
  0xd2   : > { %v3224_v53 = vpack.c.b16 %v3200_v52, %v3199_v40  ;;  %v583_v8 = vsel %vm10692_vm11, %v575_v62, %v582_v4  ;;  %894 = vst [vmem:[#allocation2 + $0xc] sm:$0xf] %v893_v39  ;;  %v899_v58 = vsel %vm11033_vm9, %v584_v25, %v898_v1  ;;  %v11067_v44 = vrot.slane %v586_v31, 7  ;;  %v2449_v52 = vld [vmem:[#allocation3 + $0x60] sm:$0xf] }
  0xd3   : > { %895 = vst [vmem:[#allocation2 + $0x10] sm:$0xf] %v583_v8  ;;  %v11071_v61 = vld [vmem:[#allocation3 + $0x64] sm:$0xf]  ;;  %v2674_v3 = vshrl.u32 %v2449_v52, 16  ;;  %v2677_v27 = vshll.u32 %v2449_v52, 16 }
  0xd4   : > { %3247 = vrot.lane.b32.xlu0 %v3224_v53, %s10446_s27  ;;  %900 = vst [vmem:[#allocation2 + $0x14] sm:$0x1] %v899_v58  ;;  %v11073_v57 = vld [vmem:[#allocation3 + $0x68] sm:$0x1]  ;;  %v2683_v39 = vshll.u32 %v11071_v61, 16  ;;  %v2687_v8 = vshrl.u32 %v11071_v61, 16 }
  0xd5   : > { %v2676_v7 = vrot.slane %v2674_v3, 4  ;;  %v2447_v58 = vld [vmem:[#allocation3 + $0x54] sm:$0xf]  ;;  %v2679_v0 = vrot.slane %v2677_v27, 5  ;;  %v2693_v13 = vshll.u32 %v11073_v57, 16 }
  0xd6   : > { %v2685_v11 = vrot.slane %v2683_v39, 5  ;;  %v2689_v17 = vrot.slane %v2687_v8, 4  ;;  %v2650_v18 = vshrl.u32 %v2447_v58, 16  ;;  %v901_v52 = vld [vmem:[#allocation2 + $0x18] sm:$0xf] }
  0xd7   : > { %v2695_v31 = vrot.slane %v2693_v13, 5  ;;  %v10388_v13 = vld [vmem:[%s10975_s18 + $0x18] sm:$0xff]  }
  0xd9   : > { %v1565_v26 = vld [vmem:[#allocation2 + $0xc] sm:$0xf] }
  0xda   : > { %v1999_v30 = vld [vmem:[#allocation2 + $0xc] sm:$0xe]  ;;  %v1566_v33 = vld [vmem:[#allocation2 + $0x10] sm:$0xf]  ;;  %v1639_v34 = vshrl.u32 %v1565_v26, 16  ;;  %v1642_v35 = vshll.u32 %v1565_v26, 16 }
  0xdb   : > { %v9139_v36 = vrot.slane %v1999_v30, 9  ;;  %v1596_v38 = vld [vmem:[#allocation2 + $0x14] sm:$0x1]  ;;  %v1648_v12 = vshll.u32 %v1566_v33, 16  ;;  %v1652_v40 = vshrl.u32 %v1566_v33, 16  ;;  %v2074_v41 = vrot.slane %v1566_v33, 5 }
  0xdc   : > { %v1641_v45 = vrot.slane %v1639_v34, 4  ;;  %v1644_v46 = vrot.slane %v1642_v35, 5  ;;  %v1658_v48 = vshll.u32 %v1596_v38, 16  ;;  %v2077_v51 = vrot.slane %v1596_v38, 5  ;;  %v10072_v25 = vld [vmem:[#allocation2 + $0xc] sm:$0xff] }
  0xdd   : > { %v1650_v54 = vrot.slane %v1648_v12, 5  ;;  %v1654_v56 = vrot.slane %v1652_v40, 4  ;;  %v2075_v59 = vsel %vm10562_vm7, %v9139_v36, %v2074_v41  ;;  %v2076_v60 = vrot.slane %v2074_v41, 4  ;;  %3637 = vmatmul.bf16.gmra.mxu1 %v10072_v25  ;;  %v1079_v25 = vld [vmem:[%s10659_s8 + $0x44] sm:$0xf] }
  0xde   : > { %v1645_v62 = vor.u32 %v1644_v46, %v1641_v45  ;;  %v1660_v1 = vrot.slane %v1658_v48, 5  ;;  %v2323_v2 = vunpack.c.l.b16 %v2075_v59  ;;  %v2680_v30 = vor.u32 %v2679_v0, %v2676_v7  ;;  %v10166_v7 = vld [vmem:[%s13704_s4 + $0x170] sm:$0xff] }
  0xdf   : > { %v1655_v53 = vor.u32 %v1654_v56, %v1650_v54  ;;  %v2078_v4 = vsel %vm10562_vm7, %v2076_v60, %v2077_v51  ;;  %v2690_v34 = vor.u32 %v2689_v17, %v2685_v11  ;;  %v2652_v35 = vrot.slane %v2650_v18, 4  ;;  %6219 = vmatpush.bf16.msrb.mxu3 %v10166_v7 }
  0xe0   : > { %v1646_v6 = vrot.slane %v1645_v62, 4  ;;  %v2324_v29 = vunpack.c.l.b16 %v2078_v4  ;;  %v2653_v36 = vshll.u32 %v2447_v58, 16  ;;  %v2681_v38 = vrot.slane %v2680_v30, 4  ;;  %v1078_v62 = vld [vmem:[%s10659_s8 + $0x40] sm:$0xf] }
  0xe1   : > { %v1656_v9 = vrot.slane %v1655_v53, 4  ;;  %v2659_v12 = vshll.u32 %v11012_v21, 16  ;;  %v2663_v40 = vshrl.u32 %v11012_v21, 16  ;;  %v2669_v41 = vshll.u32 %v11014_v23, 16  ;;  %v905_v4 = vld [vmem:[#allocation2 + $0x20] sm:$0x1] }
  0xe2   : > { %v1651_v15 = vsel %vm10520_vm4, %v1646_v6, %v1650_v54  ;;  %v2354_v16 = vpack.c.b16 %v2324_v29, %v2323_v2  ;;  %v2691_v46 = vrot.slane %v2690_v34, 4  ;;  %v2655_v48 = vrot.slane %v2653_v36, 5  ;;  %v1479_v36 = vld [vmem:[#allocation3 + $0x74] sm:$0x1] }
  0xe3   : > { %v1661_v19 = vsel %vm10520_vm4, %v1656_v9, %v1660_v1  ;;  %v2259_v26 = vunpack.c.l.b16 %v1651_v15  ;;  %v591_v51 = vor.u32 %v589_v32, %v11067_v44  ;;  %v2686_v54 = vsel %vm10520_vm4, %v2681_v38, %v2685_v11 }
  0xe4   : > { %v2260_v33 = vunpack.c.l.b16 %v1661_v19  ;;  %3815 = vmatmul.bf16.gmra.mxu3 %v2354_v16  ;;  %v2661_v56 = vrot.slane %v2659_v12, 5  ;;  %v2665_v59 = vrot.slane %v2663_v40, 4  ;;  %v2671_v60 = vrot.slane %v2669_v41, 5  ;;  %v1475_v19 = vld [vmem:[#allocation3 + $0x6c] sm:$0xf] }
  0xe5   : > { %v2696_v21 = vsel %vm10520_vm4, %v2691_v46, %v2695_v31  ;;  %v3121_v23 = vunpack.c.l.b16 %v2686_v54  ;;  %v2656_v1 = vor.u32 %v2655_v48, %v2652_v35  ;;  %v592_v2 = vrot.slane %v11067_v44, 4  ;;  %v10158_v44 = vld [vmem:[%s13704_s4 + $0x130] sm:$0xff]  ;;  %v11127_v48 = vld [vmem:[%s10659_s8 + $0x48] sm:$0xf] }
  0xe6   : > { %v2290_v45 = vpack.c.b16 %v2260_v33, %v2259_v26  ;;  %v3122_v3 = vunpack.c.l.b16 %v2696_v21  ;;  %v2666_v20 = vor.u32 %v2665_v59, %v2661_v56  ;;  %v596_v32 = vrot.slane %v594_v37, 7  ;;  %6130 = vmatpush.bf16.msrb.mxu2 %v10158_v44  ;;  %v10113_v26 = vld [vmem:[#allocation3 + $0x18] sm:$0xff] }
  0xe7   : > { %v597_v53 = vshll.u32 %v11057_v22, 16  ;;  %v2657_v27 = vrot.slane %v2656_v1, 4  ;;  %v902_v39 = vsel %vm11027_vm6, %v591_v51, %v901_v52  ;;  %v1231_v6 = vshrl.u32 %v1078_v62, 16  ;;  %v11130_v51 = vld [vmem:[%s10659_s8 + $0x4c] sm:$0xf] }
  0xe8   : > { %3726 = vmatmul.bf16.gmra.mxu2 %v2290_v45  ;;  %v1234_v29 = vshll.u32 %v1078_v62, 16  ;;  %v3145_v37 = vpack.c.b16 %v3122_v3, %v3121_v23  ;;  %v2667_v8 = vrot.slane %v2666_v20, 4  ;;  %v601_v58 = vrot.slane %v596_v32, 4  ;;  %903 = vst [vmem:[#allocation2 + $0x18] sm:$0xf] %v902_v39 }
  0xe9   : > { %v599_v22 = vor.u32 %v597_v53, %v596_v32  ;;  %v2662_v9 = vsel %vm10520_vm4, %v2657_v27, %v2661_v56  ;;  %v1233_v0 = vrot.slane %v1231_v6, 7  ;;  %v1239_v11 = vshrl.u32 %v1079_v25, 16 }
  0xea   : > { %3169 = vrot.lane.b32.xlu1 %v3145_v37, %s10445_s26  ;;  %v2672_v15 = vsel %vm10520_vm4, %v2667_v8, %v2671_v60  ;;  %v3119_v16 = vunpack.c.l.b16 %v2662_v9  ;;  %v906_v18 = vsel %vm11033_vm9, %v601_v58, %v905_v4  ;;  %v1242_v35 = vshll.u32 %v1079_v25, 16 }
  0xeb   : > { %v600_v17 = vsel %vm10692_vm11, %v592_v2, %v599_v22  ;;  %v3120_v30 = vunpack.c.l.b16 %v2672_v15  ;;  %v1236_v31 = vor.u32 %v1234_v29, %v1233_v0  ;;  %v1237_v33 = vrot.slane %v1233_v0, 4  ;;  %907 = vst [vmem:[#allocation2 + $0x20] sm:$0x1] %v906_v18 }
  0xec   : > { %904 = vst [vmem:[#allocation2 + $0x1c] sm:$0xf] %v600_v17  ;;  %v1241_v34 = vrot.slane %v1239_v11, 7  ;;  %v437_v38 = vmul.f32 %v10992_v5, %v10252_v42  ;;  %v438_v12 = vmul.f32 %v10992_v5, %v10253_v49  ;;  %v10256_v40 = vunpack.c.l.bf16 %v10388_v13 }
  0xed   : > { %v3144_v41 = vpack.c.b16 %v3120_v30, %v3119_v16  ;;  %v1476_v46 = vsel %vm10700_vm12, %v1236_v31, %v1475_v19  ;;  %v10257_v52 = vunpack.c.h.bf16 %v10388_v13  ;;  %v3158_v54 = vpop.permute.xlu2 %3157  ;;  %v1248_v49 = vshrl.u32 %v11127_v48, 16  ;;  %v10150_v31 = vld [vmem:[%s13704_s4 + $0xf0] sm:$0xff] }
  0xee   : > { %v1246_v45 = vrot.slane %v1241_v34, 4  ;;  %v1244_v56 = vor.u32 %v1242_v35, %v1241_v34  ;;  %1477 = vst [vmem:[#allocation3 + $0x6c] sm:$0xf] %v1476_v46  ;;  %v473_v42 = vadd.f32 %v11004_v10, %v437_v38  ;;  %v11134_v24 = vadd.f32 %v11004_v10, %v438_v12  ;;  %6041 = vmatpush.bf16.msrb.mxu1 %v10150_v31  ;;  %v10112_v46 = vld [vmem:[#allocation3 + $0xc] sm:$0xff] }
  0xef   : > { %v11138_v59 = vsel %vm3265_vm14, %v10113_v26, %v3158_v54  ;;  %3167 = vrot.lane.b32.xlu2 %v3144_v41, %s10445_s26  ;;  %v1567_v60 = vld [vmem:[#allocation2 + $0x18] sm:$0xf]  ;;  %v1256_v23 = vshrl.u32 %v11130_v51, 16  ;;  %v439_v1 = vmul.f32 %v10992_v5, %v10256_v40  ;;  %v11148_v32 = vmul.f32 %v10992_v5, %v10257_v52 }
  0xf0   : > { %v2000_v62 = vld [vmem:[#allocation2 + $0x18] sm:$0xe]  ;;  %v1480_v21 = vsel %vm10710_vm13, %v1246_v45, %v1479_v36  ;;  %v1663_v2 = vshrl.u32 %v1567_v60, 16  ;;  %v1666_v3 = vshll.u32 %v1567_v60, 16  ;;  %v1245_v20 = vsel %vm10692_vm11, %v1237_v33, %v1244_v56 }
  0xf1   : > { %1481 = vst [vmem:[#allocation3 + $0x74] sm:$0x1] %v1480_v21  ;;  %v9140_v53 = vrot.slane %v2000_v62, 9  ;;  %v505_v4 = vmax.f32 %v473_v42, 0.0  ;;  %v506_v25 = vmax.f32 %v11134_v24, 0.0  ;;  %v11152_v27 = vrot.slane %v1248_v49, 7 }
  0xf2   : > { %1478 = vst.msk [vmem:[#allocation3 + $0x70] sm:$0xf] %vm1006_vm0, %v1245_v20  ;;  %v1665_v6 = vrot.slane %v1663_v2, 4  ;;  %v1668_v29 = vrot.slane %v1666_v3, 5  ;;  %v1251_v7 = vshll.u32 %v11127_v48, 16  ;;  %v11156_v37 = vadd.f32 %v11004_v10, %v439_v1 }
  0xf3   : > { %v1568_v39 = vld [vmem:[#allocation2 + $0x1c] sm:$0xf]  ;;  %v1597_v8 = vld [vmem:[#allocation2 + $0x20] sm:$0x1]  ;;  %v2987_v0 = vrot.slane %v11071_v61, 5  ;;  %v11159_v16 = vpack.c.bf16 %v505_v4, %v505_v4  ;;  %v2990_v31 = vrot.slane %v11073_v57, 5 }
  0xf4   : > { %v10073_v44 = vld [vmem:[#allocation2 + $0x18] sm:$0xff]  ;;  %v1672_v22 = vshll.u32 %v1568_v39, 16  ;;  %v1676_v58 = vshrl.u32 %v1568_v39, 16  ;;  %v2081_v9 = vrot.slane %v1568_v39, 5  ;;  %v1669_v11 = vor.u32 %v1668_v29, %v1665_v6  ;;  %v13004_v55 = vld [vmem:[#allocation2 + $0x20] sm:$0x1] }
  0xf5   : > { %v1682_v13 = vshll.u32 %v1597_v8, 16  ;;  %v2084_v15 = vrot.slane %v1597_v8, 5  ;;  %3642 = vmatmul.bf16.gmra.mxu1 %v10073_v44  ;;  %v2451_v30 = vld [vmem:[#allocation3 + $0x6c] sm:$0xf]  ;;  %v2873_v4 = vld [vmem:[#allocation3 + $0x60] sm:$0xe] }
  0xf6   : > { %v1674_v17 = vrot.slane %v1672_v22, 5  ;;  %v1678_v18 = vrot.slane %v1676_v58, 4  ;;  %v2082_v19 = vsel %vm10562_vm7, %v9140_v53, %v2081_v9  ;;  %v2083_v26 = vrot.slane %v2081_v9, 4  ;;  %v2874_v36 = vld [vmem:[#allocation3 + $0x6c] sm:$0xe] }
  0xf7   : > { %v1670_v33 = vrot.slane %v1669_v11, 4  ;;  %v1684_v34 = vrot.slane %v1682_v13, 5  ;;  %v2325_v61 = vunpack.c.l.b16 %v2082_v19  ;;  %v2698_v35 = vshrl.u32 %v2451_v30, 16  ;;  %v3989_v63 = vld [vmem:[#allocation2 + $0x18] sm:$0xf] }
  0xf8   : > { %v1679_v38 = vor.u32 %v1678_v18, %v1674_v17  ;;  %v2085_v12 = vsel %vm10562_vm7, %v2083_v26, %v2084_v15  ;;  %v2474_v40 = vld [vmem:[#allocation3 + $0x74] sm:$0x1]  ;;  %v2701_v41 = vshll.u32 %v2451_v30, 16  ;;  %v9227_v45 = vrot.slane %v2874_v36, 9 }
  0xf9   : > { %v1675_v52 = vsel %vm10520_vm4, %v1670_v33, %v1674_v17  ;;  %v2326_v54 = vunpack.c.l.b16 %v2085_v12  ;;  %v2452_v56 = vld [vmem:[#allocation3 + $0x70] sm:$0xf]  ;;  %v2700_v42 = vrot.slane %v2698_v35, 4  ;;  %v2717_v49 = vshll.u32 %v2474_v40, 16 }
  0xfa   : > { %v1680_v60 = vrot.slane %v1679_v38, 4  ;;  %v2261_v62 = vunpack.c.l.b16 %v1675_v52  ;;  %v2703_v21 = vrot.slane %v2701_v41, 5  ;;  %v2707_v1 = vshll.u32 %v2452_v56, 16 }
  0xfb   : > { %v2355_v2 = vpack.c.b16 %v2326_v54, %v2325_v61  ;;  %v2711_v3 = vshrl.u32 %v2452_v56, 16  ;;  %v2719_v20 = vrot.slane %v2717_v49, 5  ;;  %v2994_v53 = vrot.slane %v2452_v56, 5 }
  0xfc   : > { %v1685_v6 = vsel %vm10520_vm4, %v1680_v60, %v1684_v34  ;;  %v2704_v29 = vor.u32 %v2703_v21, %v2700_v42  ;;  %v2709_v44 = vrot.slane %v2707_v1, 5  ;;  %v2997_v8 = vrot.slane %v2474_v40, 5  ;;  %v10114_v21 = vld [vmem:[#allocation3 + $0x24] sm:$0xff] }
  0xfd   : > { %v2262_v58 = vunpack.c.l.b16 %v1685_v6  ;;  %3820 = vmatmul.bf16.gmra.mxu3 %v2355_v2  ;;  %v2713_v9 = vrot.slane %v2711_v3, 4  ;;  %v2995_v11 = vsel %vm10562_vm7, %v9227_v45, %v2994_v53  ;;  %v2996_v15 = vrot.slane %v2994_v53, 4  ;;  %v908_v2 = vld [vmem:[#allocation2 + $0x24] sm:$0xf]  ;;  %v1486_v6 = vld [vmem:[#allocation3 + $0x80] sm:$0x1] }
  0xfe   : > { %v2705_v13 = vrot.slane %v2704_v29, 4  ;;  %v3203_v17 = vunpack.c.l.b16 %v2995_v11  ;;  %v9226_v18 = vrot.slane %v2873_v4, 9  ;;  %v2989_v30 = vrot.slane %v2987_v0, 4  ;;  %v912_v4 = vld [vmem:[#allocation2 + $0x2c] sm:$0x1] }
  0xff   : > { %v2291_v19 = vpack.c.b16 %v2262_v58, %v2261_v62  ;;  %v2714_v26 = vor.u32 %v2713_v9, %v2709_v44  ;;  %v2998_v34 = vsel %vm10562_vm7, %v2996_v15, %v2997_v8  ;;  %v538_v35 = vpack.c.bf16 %v506_v25, %v506_v25  ;;  %v1482_v62 = vld [vmem:[#allocation3 + $0x78] sm:$0xf]  ;;  %v11212_v15 = vld [vmem:[%s10975_s18 + $0x20] sm:$0xff]  }
 0x100   : > { %v3156_v39 = vpop.permute.xlu1 %3155  ;;  %v2710_v33 = vsel %vm10520_vm4, %v2705_v13, %v2709_v44  ;;  %v2988_v61 = vsel %vm10562_vm7, %v9226_v18, %v2987_v0  ;;  %v3204_v12 = vunpack.c.l.b16 %v2998_v34  ;;  %v2991_v57 = vsel %vm10562_vm7, %v2989_v30, %v2990_v31  ;;  %v1083_v13 = vld [vmem:[%s10659_s8 + $0x54] sm:$0xf] }
 0x101   : > { %v3271_v22 = vsel %vm3265_vm14, %v10112_v46, %v3156_v39  ;;  %3731 = vmatmul.bf16.gmra.mxu2 %v2291_v19  ;;  %v2715_v36 = vrot.slane %v2714_v26, 4  ;;  %v3123_v38 = vunpack.c.l.b16 %v2710_v33  ;;  %v3201_v40 = vunpack.c.l.b16 %v2988_v61 }
 0x102   : > { %v3202_v41 = vunpack.c.l.b16 %v2991_v57  ;;  %v603_v45 = vshrl.u32 %v11159_v16, 16  ;;  %v606_v46 = vshll.u32 %v11159_v16, 16  ;;  %v3226_v52 = vpack.c.b16 %v3204_v12, %v3203_v17  ;;  %v3238_v17 = vpop.permute.xlu2 %3237 }
 0x103   : > { %v2720_v0 = vsel %vm10520_vm4, %v2715_v36, %v2719_v20  ;;  %v611_v24 = vshrl.u32 %v538_v35, 16  ;;  %v614_v54 = vshll.u32 %v538_v35, 16  ;;  %v1253_v60 = vor.u32 %v1251_v7, %v11152_v27 }
 0x104   : > { %v3124_v56 = vunpack.c.l.b16 %v2720_v0  ;;  %v3225_v42 = vpack.c.b16 %v3202_v41, %v3201_v40  ;;  %v605_v49 = vrot.slane %v603_v45, 7  ;;  %3251 = vrot.lane.b32.xlu1 %v3226_v52, %s10446_s27  ;;  %v1254_v3 = vrot.slane %v11152_v27, 4  ;;  %v1489_v52 = vld [vmem:[#allocation3 + $0x84] sm:$0xf] }
 0x105   : > { %v613_v16 = vrot.slane %v611_v24, 7  ;;  %v1258_v20 = vrot.slane %v1256_v23, 7  ;;  %v1259_v39 = vshll.u32 %v11130_v51, 16  ;;  %v1483_v23 = vsel %vm10700_vm12, %v1253_v60, %v1482_v62 }
 0x106   : > { %v3146_v53 = vpack.c.b16 %v3124_v56, %v3123_v38  ;;  %3249 = vrot.lane.b32.xlu2 %v3225_v42, %s10446_s27  ;;  %v608_v48 = vor.u32 %v606_v46, %v605_v49  ;;  %v609_v7 = vrot.slane %v605_v49, 4  ;;  %1484 = vst [vmem:[#allocation3 + $0x78] sm:$0xf] %v1483_v23  ;;  %v507_v51 = vmax.f32 %v11156_v37, 0.0 }
 0x107   : > { %v616_v44 = vor.u32 %v614_v54, %v613_v16  ;;  %v618_v8 = vrot.slane %v613_v16, 4  ;;  %v1263_v27 = vrot.slane %v1258_v20, 4  ;;  %v1261_v9 = vor.u32 %v1259_v39, %v1258_v20 }
 0x108   : > { %v3236_v25 = vpop.permute.xlu1 %3235  ;;  %3171 = vrot.lane.b32.xlu0 %v3146_v53, %s10445_s26  ;;  %v909_v58 = vsel %vm11027_vm6, %v608_v48, %v908_v2  ;;  %v476_v30 = vadd.f32 %v11004_v10, %v11148_v32  ;;  %v539_v31 = vpack.c.bf16 %v507_v51, %v507_v51  ;;  %v1273_v35 = vshrl.u32 %v1083_v13, 16 }
 0x109   : > { %v3318_v1 = vsel %vm3314_vm1, %v3271_v22, %v3236_v25  ;;  %v1082_v22 = vld [vmem:[%s10659_s8 + $0x50] sm:$0xf]  ;;  %v617_v18 = vsel %vm10692_vm11, %v609_v7, %v616_v44  ;;  %910 = vst [vmem:[#allocation2 + $0x24] sm:$0xf] %v909_v58  ;;  %v913_v19 = vsel %vm11033_vm9, %v618_v8, %v912_v4  ;;  %v1487_v26 = vsel %vm10710_vm13, %v1263_v27, %v1486_v6 }
 0x10a   : > { %9303 = vmatmul.msk.bf16.gmra.mxu0 %vm3354_vm2, %v3318_v1  ;;  %v3160_v29 = vpop.permute.xlu0 %3159  ;;  %911 = vst [vmem:[#allocation2 + $0x28] sm:$0xf] %v617_v18  ;;  %v1262_v37 = vsel %vm10692_vm11, %v1254_v3, %v1261_v9  ;;  %v1265_v33 = vshrl.u32 %v1082_v22, 16  ;;  %v1268_v34 = vshll.u32 %v1082_v22, 16  ;;  %v508_v61 = vmax.f32 %v476_v30, 0.0  ;;  %v10157_v1 = vld [vmem:[%s13704_s4 + $0x128] sm:$0xff] }
 0x10b   : > { %v3277_v11 = vsel %vm3265_vm14, %v10114_v21, %v3160_v29  ;;  %914 = vst [vmem:[#allocation2 + $0x2c] sm:$0x1] %v913_v19  ;;  %v1276_v36 = vshll.u32 %v1083_v13, 16  ;;  %v10260_v38 = vunpack.c.l.bf16 %v11212_v15  ;;  %v3320_v12 = vsel %vm3314_vm1, %v11138_v59, %v3238_v17  ;;  %6131 = vmatpush.bf16.msrb.mxu2 %v10157_v1  ;;  %v10115_v1 = vld [vmem:[#allocation3 + $0x30] sm:$0xff] }
 0x10c   : > { %1485 = vst.msk [vmem:[#allocation3 + $0x7c] sm:$0xf] %vm1006_vm0, %v1262_v37  ;;  %v620_v32 = vshrl.u32 %v539_v31, 16  ;;  %v623_v40 = vshll.u32 %v539_v31, 16  ;;  %v1267_v41 = vrot.slane %v1265_v33, 7  ;;  %v540_v46 = vpack.c.bf16 %v508_v61, %v508_v61 }
 0x10d   : > { %1488 = vst [vmem:[#allocation3 + $0x80] sm:$0x1] %v1487_v26  ;;  %v11231_v0 = vrot.slane %v1273_v35, 7  ;;  %v10261_v24 = vunpack.c.h.bf16 %v11212_v15  ;;  %v11237_v56 = vmul.f32 %v10992_v5, %v10260_v38  ;;  %v2875_v42 = vld [vmem:[#allocation3 + $0x78] sm:$0xe]  ;;  %v10165_v35 = vld [vmem:[%s13704_s4 + $0x168] sm:$0xff] }
 0x10e   : > { %v11234_v54 = vrot.slane %v620_v32, 7  ;;  %v1270_v25 = vor.u32 %v1268_v34, %v1267_v41  ;;  %v1271_v59 = vrot.slane %v1267_v41, 4  ;;  %v628_v49 = vshrl.u32 %v540_v46, 16  ;;  %v10149_v41 = vld [vmem:[%s13704_s4 + $0xe8] sm:$0xff]  ;;  %6220 = vmatpush.bf16.msrb.mxu3 %v10165_v35 }
 0x10f   : > { %v631_v60 = vshll.u32 %v540_v46, 16  ;;  %v1278_v62 = vor.u32 %v1276_v36, %v11231_v0  ;;  %v1280_v21 = vrot.slane %v11231_v0, 4  ;;  %v9228_v3 = vrot.slane %v2875_v42, 9  ;;  %6042 = vmatpush.bf16.msrb.mxu1 %v10149_v41 }
 0x110   : > { %v3240_v57 = vpop.permute.xlu1 %3239  ;;  %v1569_v16 = vld [vmem:[#allocation2 + $0x24] sm:$0xf]  ;;  %v11245_v20 = vor.u32 %v623_v40, %v11234_v54  ;;  %v626_v53 = vrot.slane %v11234_v54, 4  ;;  %v1490_v48 = vsel %vm10700_vm12, %v1270_v25, %v1489_v52  ;;  %v630_v58 = vrot.slane %v628_v49, 7  ;;  %v915_v40 = vld [vmem:[#allocation2 + $0x30] sm:$0xf] }
 0x111   : > { %v11229_v45 = vsel %vm3314_vm1, %v3277_v11, %v3240_v57  ;;  %v2001_v2 = vld [vmem:[#allocation2 + $0x24] sm:$0xe]  ;;  %v1570_v7 = vld [vmem:[#allocation2 + $0x28] sm:$0xf]  ;;  %v1687_v4 = vshrl.u32 %v1569_v16, 16  ;;  %v1690_v39 = vshll.u32 %v1569_v16, 16  ;;  %v1279_v44 = vsel %vm10692_vm11, %v1271_v59, %v1278_v62 }
 0x112   : > { %v9141_v6 = vrot.slane %v2001_v2, 9  ;;  %v10074_v29 = vld [vmem:[#allocation2 + $0x24] sm:$0xff]  ;;  %v1598_v8 = vld [vmem:[#allocation2 + $0x2c] sm:$0x1]  ;;  %v1696_v27 = vshll.u32 %v1570_v7, 16  ;;  %v1700_v23 = vshrl.u32 %v1570_v7, 16  ;;  %v633_v32 = vor.u32 %v631_v60, %v630_v58 }
 0x113   : > { %v2088_v22 = vrot.slane %v1570_v7, 5  ;;  %v1689_v9 = vrot.slane %v1687_v4, 4  ;;  %v1692_v11 = vrot.slane %v1690_v39, 5  ;;  %v1706_v51 = vshll.u32 %v1598_v8, 16  ;;  %3647 = vmatmul.bf16.gmra.mxu1 %v10074_v29  ;;  %v11252_v17 = vld [vmem:[#allocation3 + $0x7c] sm:$0xf]  ;;  %v3162_v4 = vpop.permute.xlu2 %3161 }
 0x114   : > { %v2091_v13 = vrot.slane %v1598_v8, 5  ;;  %v1698_v18 = vrot.slane %v1696_v27, 5  ;;  %v1702_v19 = vrot.slane %v1700_v23, 4  ;;  %v11256_v37 = vld [vmem:[#allocation3 + $0x80] sm:$0x1]  ;;  %v3001_v61 = vrot.slane %v11252_v17, 5 }
 0x115   : > { %v2089_v26 = vsel %vm10562_vm7, %v9141_v6, %v2088_v22  ;;  %v2090_v30 = vrot.slane %v2088_v22, 4  ;;  %v1693_v31 = vor.u32 %v1692_v11, %v1689_v9  ;;  %v1708_v33 = vrot.slane %v1706_v51, 5  ;;  %1491 = vst [vmem:[#allocation3 + $0x84] sm:$0xf] %v1490_v48  ;;  %v919_v25 = vld [vmem:[#allocation2 + $0x38] sm:$0x1] }
 0x116   : > { %v2327_v34 = vunpack.c.l.b16 %v2089_v26  ;;  %v1703_v36 = vor.u32 %v1702_v19, %v1698_v18  ;;  %v3004_v57 = vrot.slane %v11256_v37, 5  ;;  %1492 = vst.msk [vmem:[#allocation3 + $0x88] sm:$0xf] %vm1006_vm0, %v1279_v44  ;;  %v3002_v54 = vsel %vm10562_vm7, %v9228_v3, %v3001_v61  ;;  %v1493_v59 = vld [vmem:[#allocation3 + $0x8c] sm:$0x1] }
 0x117   : > { %v2092_v38 = vsel %vm10562_vm7, %v2090_v30, %v2091_v13  ;;  %v1694_v46 = vrot.slane %v1693_v31, 4  ;;  %v3205_v49 = vunpack.c.l.b16 %v3002_v54  ;;  %v634_v60 = vsel %vm10692_vm11, %v626_v53, %v633_v32  ;;  %v2453_v16 = vld [vmem:[#allocation3 + $0x78] sm:$0xf] }
 0x118   : > { %v2328_v52 = vunpack.c.l.b16 %v2092_v38  ;;  %v1704_v42 = vrot.slane %v1703_v36, 4  ;;  %v635_v62 = vrot.slane %v630_v58, 4  ;;  %v916_v7 = vsel %vm11027_vm6, %v11245_v20, %v915_v40  ;;  %918 = vst [vmem:[#allocation2 + $0x34] sm:$0xf] %v634_v60 }
 0x119   : > { %v1699_v2 = vsel %vm10520_vm4, %v1694_v46, %v1698_v18  ;;  %917 = vst [vmem:[#allocation2 + $0x30] sm:$0xf] %v916_v7  ;;  %v1494_v8 = vsel %vm10710_vm13, %v1280_v21, %v1493_v59  ;;  %v2722_v20 = vshrl.u32 %v2453_v16, 16  ;;  %v442_v27 = vmul.f32 %v10992_v5, %v10261_v24 }
 0x11a   : > { %9304 = vmatmul.msk.bf16.gmra.mxu0 %vm3354_vm2, %v3320_v12  ;;  %v3003_v12 = vrot.slane %v3001_v61, 4  ;;  %v2356_v48 = vpack.c.b16 %v2328_v52, %v2327_v34  ;;  %v1709_v53 = vsel %vm10520_vm4, %v1704_v42, %v1708_v33  ;;  %v2263_v39 = vunpack.c.l.b16 %v1699_v2  ;;  %1495 = vst [vmem:[#allocation3 + $0x8c] sm:$0x1] %v1494_v8 }
 0x11b   : > { %v920_v29 = vsel %vm11033_vm9, %v635_v62, %v919_v25  ;;  %v2264_v44 = vunpack.c.l.b16 %v1709_v53  ;;  %v11293_v58 = vsel %vm3265_vm14, %v10115_v1, %v3162_v4  ;;  %v2725_v9 = vshll.u32 %v2453_v16, 16 }
 0x11c   : > { %v3005_v3 = vsel %vm10562_vm7, %v3003_v12, %v3004_v57  ;;  %3825 = vmatmul.bf16.gmra.mxu3 %v2356_v48  ;;  %921 = vst [vmem:[#allocation2 + $0x38] sm:$0x1] %v920_v29  ;;  %v2455_v22 = vld [vmem:[#allocation3 + $0x84] sm:$0xf]  ;;  %v2731_v11 = vshll.u32 %v11252_v17, 16  ;;  %v2724_v21 = vrot.slane %v2722_v20, 4  ;;  %v11307_v38 = vadd.f32 %v11004_v10, %v11237_v56 }
 0x11d   : > { %v3206_v6 = vunpack.c.l.b16 %v3005_v3  ;;  %v2292_v51 = vpack.c.b16 %v2264_v44, %v2263_v39  ;;  %v11296_v13 = vld [vmem:[#allocation3 + $0x88] sm:$0xf]  ;;  %v2746_v0 = vshrl.u32 %v2455_v22, 16  ;;  %v2749_v18 = vshll.u32 %v2455_v22, 16 }
 0x11e   : > { %v2755_v15 = vshll.u32 %v11296_v13, 16  ;;  %v2759_v5 = vshrl.u32 %v11296_v13, 16  ;;  %v2727_v24 = vrot.slane %v2725_v9, 5  ;;  %v11301_v19 = vrot.slane %v2731_v11, 5 }
 0x11f   : > { %v3227_v23 = vpack.c.b16 %v3206_v6, %v3205_v49  ;;  %3736 = vmatmul.bf16.gmra.mxu2 %v2292_v51  ;;  %v2748_v26 = vrot.slane %v2746_v0, 4  ;;  %v2751_v30 = vrot.slane %v2749_v18, 5  ;;  %v2735_v31 = vshrl.u32 %v11252_v17, 16  ;;  %v1572_v34 = vld [vmem:[#allocation2 + $0x34] sm:$0xf] }
 0x120   : > { %v2741_v33 = vshll.u32 %v11256_v37, 16  ;;  %v2757_v61 = vrot.slane %v2755_v15, 5  ;;  %v2761_v35 = vrot.slane %v2759_v5, 4  ;;  %v2728_v36 = vor.u32 %v2727_v24, %v2724_v21  ;;  %v1571_v57 = vld [vmem:[#allocation2 + $0x30] sm:$0xf] }
 0x121   : > { %3253 = vrot.lane.b32.xlu0 %v3227_v23, %s10446_s27  ;;  %v1720_v32 = vshll.u32 %v1572_v34, 16  ;;  %v1724_v40 = vshrl.u32 %v1572_v34, 16  ;;  %v2002_v41 = vld [vmem:[#allocation2 + $0x30] sm:$0xe]  ;;  %v2752_v46 = vor.u32 %v2751_v30, %v2748_v26  ;;  %v478_v52 = vadd.f32 %v11004_v10, %v442_v27  ;;  %v11312_v48 = vld [vmem:[#allocation3 + $0x8c] sm:$0x1] }
 0x122   : > { %v1711_v12 = vshrl.u32 %v1571_v57, 16  ;;  %v1714_v17 = vshll.u32 %v1571_v57, 16  ;;  %v9142_v25 = vrot.slane %v2002_v41, 9  ;;  %v2095_v37 = vrot.slane %v1572_v34, 5  ;;  %v10075_v62 = vld [vmem:[#allocation2 + $0x30] sm:$0xff]  ;;  %v3242_v57 = vpop.permute.xlu0 %3241 }
 0x123   : > { %v1599_v54 = vld [vmem:[#allocation2 + $0x38] sm:$0x1]  ;;  %v1722_v59 = vrot.slane %v1720_v32, 5  ;;  %v1726_v42 = vrot.slane %v1724_v40, 4  ;;  %3652 = vmatmul.bf16.gmra.mxu1 %v10075_v62  ;;  %v2753_v4 = vrot.slane %v2752_v46, 4  ;;  %v2762_v6 = vor.u32 %v2761_v35, %v2757_v61 }
 0x124   : > { %v1730_v49 = vshll.u32 %v1599_v54, 16  ;;  %v2098_v60 = vrot.slane %v1599_v54, 5  ;;  %v1713_v1 = vrot.slane %v1711_v12, 4  ;;  %v1716_v56 = vrot.slane %v1714_v17, 5  ;;  %v1084_v21 = vld [vmem:[%s10659_s8 + $0x58] sm:$0xf] }
 0x125   : > { %v2096_v16 = vsel %vm10562_vm7, %v9142_v25, %v2095_v37  ;;  %v2097_v2 = vrot.slane %v2095_v37, 4  ;;  %v1727_v3 = vor.u32 %v1726_v42, %v1722_v59  ;;  %v2765_v29 = vshll.u32 %v11312_v48, 16  ;;  %v1085_v30 = vld [vmem:[%s10659_s8 + $0x5c] sm:$0xf]  ;;  %v1496_v42 = vld [vmem:[#allocation3 + $0x90] sm:$0xf] }
 0x126   : > { %v1732_v10 = vrot.slane %v1730_v49, 5  ;;  %v2329_v7 = vunpack.c.l.b16 %v2096_v16  ;;  %v1717_v53 = vor.u32 %v1716_v56, %v1713_v1  ;;  %v2758_v20 = vsel %vm10520_vm4, %v2753_v4, %v2757_v61  ;;  %v2876_v16 = vld [vmem:[#allocation3 + $0x84] sm:$0xe]  ;;  %v10116_v4 = vld [vmem:[#allocation3 + $0x3c] sm:$0xff] }
 0x127   : > { %v2099_v39 = vsel %vm10562_vm7, %v2097_v2, %v2098_v60  ;;  %v1728_v44 = vrot.slane %v1727_v3, 4  ;;  %v2729_v27 = vrot.slane %v2728_v36, 4  ;;  %v2763_v22 = vrot.slane %v2762_v6, 4 }
 0x128   : > { %v2330_v8 = vunpack.c.l.b16 %v2099_v39  ;;  %v1718_v23 = vrot.slane %v1717_v53, 4  ;;  %v2767_v9 = vrot.slane %v2765_v29, 5  ;;  %v3127_v11 = vunpack.c.l.b16 %v2758_v20  ;;  %v1500_v29 = vld [vmem:[#allocation3 + $0x98] sm:$0x1] }
 0x129   : > { %v2734_v0 = vsel %vm10520_vm4, %v2729_v27, %v11301_v19  ;;  %v2737_v18 = vrot.slane %v2735_v31, 4  ;;  %v2743_v26 = vrot.slane %v2741_v33, 5  ;;  %v509_v32 = vmax.f32 %v11307_v38, 0.0 }
 0x12a   : > { %9305 = vmatmul.msk.bf16.gmra.mxu0 %vm3354_vm2, %v11229_v45  ;;  %v1733_v45 = vsel %vm10520_vm4, %v1728_v44, %v1732_v10  ;;  %v2357_v51 = vpack.c.b16 %v2330_v8, %v2329_v7  ;;  %v1723_v15 = vsel %vm10520_vm4, %v1718_v23, %v1722_v59  ;;  %v2768_v24 = vsel %vm10520_vm4, %v2763_v22, %v2767_v9  ;;  %v3164_v44 = vpop.permute.xlu1 %3163  ;;  %v922_v8 = vld [vmem:[#allocation2 + $0x3c] sm:$0xf] }
 0x12b   : > { %v2266_v5 = vunpack.c.l.b16 %v1733_v45  ;;  %v2265_v34 = vunpack.c.l.b16 %v1723_v15  ;;  %v3128_v61 = vunpack.c.l.b16 %v2768_v24  ;;  %v2738_v35 = vor.u32 %v2737_v18, %v11301_v19  ;;  %v10391_v18 = vld [vmem:[%s10975_s18 + $0x30] sm:$0xff]  }
 0x12c   : > { %3830 = vmatmul.bf16.gmra.mxu3 %v2357_v51  ;;  %v3125_v36 = vunpack.c.l.b16 %v2734_v0  ;;  %v510_v31 = vmax.f32 %v478_v52, 0.0  ;;  %v1282_v40 = vshrl.u32 %v1084_v21, 16  ;;  %v1285_v41 = vshll.u32 %v1084_v21, 16  ;;  %v10390_v0 = vld [vmem:[%s10975_s18 + $0x28] sm:$0xff]  }
 0x12d   : > { %v2293_v46 = vpack.c.b16 %v2266_v5, %v2265_v34  ;;  %v3148_v54 = vpack.c.b16 %v3128_v61, %v3127_v11  ;;  %v2739_v12 = vrot.slane %v2738_v35, 4  ;;  %v1290_v17 = vshrl.u32 %v1085_v30, 16  ;;  %v3244_v61 = vpop.permute.xlu2 %3243 }
 0x12e   : > { %v541_v25 = vpack.c.bf16 %v509_v32, %v509_v32  ;;  %v542_v37 = vpack.c.bf16 %v510_v31, %v510_v31  ;;  %v1284_v33 = vrot.slane %v1282_v40, 7  ;;  %v1293_v59 = vshll.u32 %v1085_v30, 16  ;;  %v11364_v40 = vld [vmem:[%s10659_s8 + $0x60] sm:$0xf] }
 0x12f   : > { %3741 = vmatmul.bf16.gmra.mxu2 %v2293_v46  ;;  %3175 = vrot.lane.b32.xlu1 %v3148_v54, %s10445_s26  ;;  %v3324_v19 = vsel %vm3314_vm1, %v11293_v58, %v3242_v57  ;;  %v2744_v38 = vsel %vm10520_vm4, %v2739_v12, %v2743_v26  ;;  %v1292_v52 = vrot.slane %v1290_v17, 7  ;;  %v3008_v49 = vrot.slane %v11296_v13, 5  ;;  %v926_v13 = vld [vmem:[#allocation2 + $0x44] sm:$0x1]  ;;  %v11370_v54 = vld [vmem:[%s13702_s2] ss:$0 sm:$0xff] }
 0x130   : > { %v3126_v60 = vunpack.c.l.b16 %v2744_v38  ;;  %v637_v62 = vshrl.u32 %v541_v25, 16  ;;  %v640_v1 = vshll.u32 %v541_v25, 16  ;;  %v645_v56 = vshrl.u32 %v542_v37, 16 }
 0x131   : > { %v648_v2 = vshll.u32 %v542_v37, 16  ;;  %v1287_v3 = vor.u32 %v1285_v41, %v1284_v33  ;;  %v1288_v10 = vrot.slane %v1284_v33, 4  ;;  %v1295_v7 = vor.u32 %v1293_v59, %v1292_v52  ;;  %v1087_v41 = vld [vmem:[%s10659_s8 + $0x64] sm:$0xf] }
 0x132   : > { %v3147_v53 = vpack.c.b16 %v3126_v60, %v3125_v36  ;;  %v639_v39 = vrot.slane %v637_v62, 7  ;;  %v647_v58 = vrot.slane %v645_v56, 7  ;;  %v1297_v6 = vrot.slane %v1292_v52, 4 }
 0x133   : > { %v1296_v20 = vsel %vm10692_vm11, %v1288_v10, %v1295_v7  ;;  %v1497_v27 = vsel %vm10700_vm12, %v1287_v3, %v1496_v42  ;;  %v9229_v23 = vrot.slane %v2876_v16, 9  ;;  %v3011_v22 = vrot.slane %v11312_v48, 5 }
 0x134   : > { %3173 = vrot.lane.b32.xlu2 %v3147_v53, %s10445_s26  ;;  %v642_v9 = vor.u32 %v640_v1, %v639_v39  ;;  %v643_v11 = vrot.slane %v639_v39, 4  ;;  %v650_v45 = vor.u32 %v648_v2, %v647_v58  ;;  %v652_v51 = vrot.slane %v647_v58, 4  ;;  %1498 = vst [vmem:[#allocation3 + $0x90] sm:$0xf] %v1497_v27 }
 0x135   : > { %1499 = vst.msk [vmem:[#allocation3 + $0x94] sm:$0xf] %vm1006_vm0, %v1296_v20  ;;  %v1501_v21 = vsel %vm10710_vm13, %v1297_v6, %v1500_v29  ;;  %v3283_v15 = vsel %vm3265_vm14, %v10116_v4, %v3164_v44  ;;  %v3009_v5 = vsel %vm10562_vm7, %v9229_v23, %v3008_v49  ;;  %v3010_v48 = vrot.slane %v3008_v49, 4  ;;  %v11385_v49 = vld [vmem:[%s13703_s3] ss:$0 sm:$0xff] }
 0x136   : > { %v651_v24 = vsel %vm10692_vm11, %v643_v11, %v650_v45  ;;  %v923_v26 = vsel %vm11027_vm6, %v642_v9, %v922_v8  ;;  %v927_v30 = vsel %vm11033_vm9, %v652_v51, %v926_v13  ;;  %1502 = vst [vmem:[#allocation3 + $0x98] sm:$0x1] %v1501_v21  ;;  %v3207_v34 = vunpack.c.l.b16 %v3009_v5 }
 0x137   : > { %924 = vst [vmem:[#allocation2 + $0x3c] sm:$0xf] %v923_v26  ;;  %v3012_v35 = vsel %vm10562_vm7, %v3010_v48, %v3011_v22  ;;  %v10264_v36 = vunpack.c.l.bf16 %v10390_v0  ;;  %v10265_v57 = vunpack.c.h.bf16 %v10390_v0  ;;  %v10268_v32 = vunpack.c.l.bf16 %v10391_v18 }
 0x138   : > { %925 = vst [vmem:[#allocation2 + $0x40] sm:$0xf] %v651_v24  ;;  %v3208_v31 = vunpack.c.l.b16 %v3012_v35  ;;  %v10269_v46 = vunpack.c.h.bf16 %v10391_v18  ;;  %v1299_v25 = vshrl.u32 %v11364_v40, 16  ;;  %v1307_v37 = vshrl.u32 %v1087_v41, 16 }
 0x139   : > { %928 = vst [vmem:[#allocation2 + $0x44] sm:$0x1] %v927_v30  ;;  %v443_v12 = vmul.f32 %v11370_v54, %v10264_v36  ;;  %v444_v17 = vmul.f32 %v11370_v54, %v10265_v57  ;;  %v11376_v33 = vsel %vm3314_vm1, %v3283_v15, %v3244_v61  ;;  %v1310_v7 = vshll.u32 %v1087_v41, 16 }
 0x13a   : > { %9306 = vmatmul.msk.bf16.gmra.mxu0 %vm3354_vm2, %v3324_v19  ;;  %v3228_v59 = vpack.c.b16 %v3208_v31, %v3207_v34  ;;  %v445_v19 = vmul.f32 %v11370_v54, %v10268_v32  ;;  %v11380_v38 = vmul.f32 %v11370_v54, %v10269_v46  ;;  %v11393_v1 = vrot.slane %v1299_v25, 7 }
 0x13b   : > { %v2457_v52 = vld [vmem:[#allocation3 + $0x90] sm:$0xf]  ;;  %v11388_v60 = vadd.f32 %v11385_v49, %v443_v12  ;;  %v11391_v62 = vadd.f32 %v11385_v49, %v444_v17  ;;  %v11395_v56 = vrot.slane %v1307_v37, 7 }
 0x13c   : > { %v2877_v42 = vld [vmem:[#allocation3 + $0x90] sm:$0xe]  ;;  %v2458_v16 = vld [vmem:[#allocation3 + $0x94] sm:$0xf]  ;;  %v2770_v2 = vshrl.u32 %v2457_v52, 16  ;;  %v2773_v3 = vshll.u32 %v2457_v52, 16  ;;  %3255 = vrot.lane.b32.xlu2 %v3228_v59, %s10446_s27  ;;  %v11403_v20 = vadd.f32 %v11385_v49, %v445_v19 }
 0x13d   : > { %v9230_v10 = vrot.slane %v2877_v42, 9  ;;  %v2779_v4 = vshll.u32 %v2458_v16, 16  ;;  %v2783_v53 = vshrl.u32 %v2458_v16, 16  ;;  %v3015_v39 = vrot.slane %v2458_v16, 5  ;;  %v2477_v36 = vld [vmem:[#allocation3 + $0x98] sm:$0x1] }
 0x13e   : > { %v511_v58 = vmax.f32 %v11388_v60, 0.0  ;;  %v1573_v6 = vld [vmem:[#allocation2 + $0x3c] sm:$0xf]  ;;  %v2772_v44 = vrot.slane %v2770_v2, 4  ;;  %v2775_v8 = vrot.slane %v2773_v3, 5  ;;  %v11400_v13 = vor.u32 %v1310_v7, %v11395_v56 }
 0x13f   : > { %v2003_v29 = vld [vmem:[#allocation2 + $0x3c] sm:$0xe]  ;;  %v1574_v27 = vld [vmem:[#allocation2 + $0x40] sm:$0xf]  ;;  %v1735_v23 = vshrl.u32 %v1573_v6, 16  ;;  %v1738_v22 = vshll.u32 %v1573_v6, 16  ;;  %v3016_v45 = vsel %vm10562_vm7, %v9230_v10, %v3015_v39 }
 0x140   : > { %v9143_v9 = vrot.slane %v2003_v29, 9  ;;  %v10076_v11 = vld [vmem:[#allocation2 + $0x3c] sm:$0xff]  ;;  %v1600_v51 = vld [vmem:[#allocation2 + $0x44] sm:$0x1]  ;;  %v1744_v0 = vshll.u32 %v1574_v27, 16  ;;  %v1748_v18 = vshrl.u32 %v1574_v27, 16  ;;  %v2776_v15 = vor.u32 %v2775_v8, %v2772_v44 }
 0x141   : > { %v2102_v21 = vrot.slane %v1574_v27, 5  ;;  %v1737_v5 = vrot.slane %v1735_v23, 4  ;;  %v1740_v48 = vrot.slane %v1738_v22, 5  ;;  %v1754_v24 = vshll.u32 %v1600_v51, 16  ;;  %3657 = vmatmul.bf16.gmra.mxu1 %v10076_v11  ;;  %v10156_v23 = vld [vmem:[%s13704_s4 + $0x120] sm:$0xff] }
 0x142   : > { %v2105_v26 = vrot.slane %v1600_v51, 5  ;;  %v1746_v30 = vrot.slane %v1744_v0, 5  ;;  %v1750_v34 = vrot.slane %v1748_v18, 4  ;;  %v2777_v41 = vrot.slane %v2776_v15, 4  ;;  %v10164_v22 = vld [vmem:[%s13704_s4 + $0x160] sm:$0xff]  ;;  %6132 = vmatpush.bf16.msrb.mxu2 %v10156_v23 }
 0x143   : > { %v2103_v61 = vsel %vm10562_vm7, %v9143_v9, %v2102_v21  ;;  %v2104_v35 = vrot.slane %v2102_v21, 4  ;;  %v1741_v57 = vor.u32 %v1740_v48, %v1737_v5  ;;  %v1756_v32 = vrot.slane %v1754_v24, 5  ;;  %v1503_v48 = vld [vmem:[#allocation3 + $0x9c] sm:$0xf]  ;;  %v3166_v24 = vpop.permute.xlu0 %3165  ;;  %6221 = vmatpush.bf16.msrb.mxu3 %v10164_v22 }
 0x144   : > { %v2331_v31 = vunpack.c.l.b16 %v2103_v61  ;;  %v1751_v46 = vor.u32 %v1750_v34, %v1746_v30  ;;  %v2781_v17 = vrot.slane %v2779_v4, 5  ;;  %v2785_v25 = vrot.slane %v2783_v53, 4  ;;  %v1507_v34 = vld [vmem:[#allocation3 + $0xa4] sm:$0x1]  ;;  %v3246_v61 = vpop.permute.xlu1 %3245 }
 0x145   : > { %v2106_v12 = vsel %vm10562_vm7, %v2104_v35, %v2105_v26  ;;  %v1742_v37 = vrot.slane %v1741_v57, 4  ;;  %v2789_v19 = vshll.u32 %v2477_v36, 16  ;;  %v3017_v52 = vrot.slane %v3015_v39, 4  ;;  %v1088_v35 = vld [vmem:[%s10659_s8 + $0x68] sm:$0xf] }
 0x146   : > { %v2332_v59 = vunpack.c.l.b16 %v2106_v12  ;;  %v1752_v42 = vrot.slane %v1751_v46, 4  ;;  %v2782_v60 = vsel %vm10520_vm4, %v2777_v41, %v2781_v17  ;;  %v2786_v16 = vor.u32 %v2785_v25, %v2781_v17  ;;  %v929_v41 = vld [vmem:[#allocation2 + $0x48] sm:$0xf]  ;;  %v933_v46 = vld [vmem:[#allocation2 + $0x50] sm:$0x1] }
 0x147   : > { %v3018_v2 = vrot.slane %v2477_v36, 5  ;;  %v1747_v3 = vsel %vm10520_vm4, %v1742_v37, %v1746_v30  ;;  %v2791_v7 = vrot.slane %v2789_v19, 5  ;;  %v3129_v4 = vunpack.c.l.b16 %v2782_v60  ;;  %v1089_v19 = vld [vmem:[%s10659_s8 + $0x6c] sm:$0xf] }
 0x148   : > { %v2358_v10 = vpack.c.b16 %v2332_v59, %v2331_v31  ;;  %v1757_v53 = vsel %vm10520_vm4, %v1752_v42, %v1756_v32  ;;  %v2267_v6 = vunpack.c.l.b16 %v1747_v3  ;;  %v2787_v39 = vrot.slane %v2786_v16, 4 }
 0x149   : > { %v3019_v29 = vsel %vm10562_vm7, %v3017_v52, %v3018_v2  ;;  %v2268_v44 = vunpack.c.l.b16 %v1757_v53  ;;  %v3209_v8 = vunpack.c.l.b16 %v3016_v45  ;;  %v543_v11 = vpack.c.bf16 %v511_v58, %v511_v58  ;;  %v10117_v45 = vld [vmem:[#allocation3 + $0x48] sm:$0xff] }
 0x14a   : > { %9307 = vmatmul.msk.bf16.gmra.mxu0 %vm3354_vm2, %v11376_v33  ;;  %3835 = vmatmul.bf16.gmra.mxu3 %v2358_v10  ;;  %v3210_v27 = vunpack.c.l.b16 %v3019_v29  ;;  %v512_v33 = vmax.f32 %v11391_v62, 0.0  ;;  %v2792_v9 = vsel %vm10520_vm4, %v2787_v39, %v2791_v7  ;;  %v1302_v51 = vshll.u32 %v11364_v40, 16  ;;  %v10148_v62 = vld [vmem:[%s13704_s4 + $0xe0] sm:$0xff]  ;;  %v11455_v7 = vld [vmem:[%s10975_s18 + $0x38] sm:$0xff]  }
 0x14b   : > { %v1305_v0 = vrot.slane %v11393_v1, 4  ;;  %v2294_v18 = vpack.c.b16 %v2268_v44, %v2267_v6  ;;  %v3130_v21 = vunpack.c.l.b16 %v2792_v9  ;;  %v654_v26 = vshrl.u32 %v543_v11, 16  ;;  %6043 = vmatpush.bf16.msrb.mxu1 %v10148_v62  ;;  %v936_v9 = vld [vmem:[#allocation2 + $0x54] sm:$0xf] }
 0x14c   : > { %v3229_v15 = vpack.c.b16 %v3210_v27, %v3209_v8  ;;  %v544_v5 = vpack.c.bf16 %v512_v33, %v512_v33  ;;  %v657_v58 = vshll.u32 %v543_v11, 16  ;;  %v1304_v40 = vor.u32 %v1302_v51, %v11393_v1  ;;  %v1510_v27 = vld [vmem:[#allocation3 + $0xa8] sm:$0xf] }
 0x14d   : > { %v1313_v30 = vsel %vm10692_vm11, %v1305_v0, %v11400_v13  ;;  %3746 = vmatmul.bf16.gmra.mxu2 %v2294_v18  ;;  %v3149_v36 = vpack.c.b16 %v3130_v21, %v3129_v4  ;;  %v1314_v31 = vrot.slane %v11395_v56, 4  ;;  %v656_v1 = vrot.slane %v654_v26, 7 }
 0x14e   : > { %3257 = vrot.lane.b32.xlu1 %v3229_v15, %s10446_s27  ;;  %v662_v57 = vshrl.u32 %v544_v5, 16  ;;  %v665_v32 = vshll.u32 %v544_v5, 16  ;;  %1506 = vst.msk [vmem:[#allocation3 + $0xa0] sm:$0xf] %vm1006_vm0, %v1313_v30  ;;  %v1504_v13 = vsel %vm10700_vm12, %v1304_v40, %v1503_v48  ;;  %v3286_v12 = vsel %vm3265_vm14, %v10117_v45, %v3166_v24  ;;  %v940_v5 = vld [vmem:[#allocation2 + $0x5c] sm:$0x1] }
 0x14f   : > { %v482_v17 = vadd.f32 %v11385_v49, %v11380_v38  ;;  %3177 = vrot.lane.b32.xlu0 %v3149_v36, %s10445_s26  ;;  %1505 = vst [vmem:[#allocation3 + $0x9c] sm:$0xf] %v1504_v13  ;;  %v1508_v56 = vsel %vm10710_vm13, %v1314_v31, %v1507_v34  ;;  %v3328_v37 = vsel %vm3314_vm1, %v3286_v12, %v3246_v61  ;;  %v513_v59 = vmax.f32 %v11403_v20, 0.0 }
 0x150   : > { %v664_v25 = vrot.slane %v662_v57, 7  ;;  %v659_v52 = vor.u32 %v657_v58, %v656_v1  ;;  %v660_v42 = vrot.slane %v656_v1, 4  ;;  %1509 = vst [vmem:[#allocation3 + $0xa4] sm:$0x1] %v1508_v56  ;;  %v1316_v16 = vshrl.u32 %v1088_v35, 16 }
 0x151   : > { %v514_v60 = vmax.f32 %v482_v17, 0.0  ;;  %v545_v3 = vpack.c.bf16 %v513_v59, %v513_v59  ;;  %v1319_v10 = vshll.u32 %v1088_v35, 16  ;;  %v1324_v39 = vshrl.u32 %v1089_v19, 16 }
 0x152   : > { %v667_v2 = vor.u32 %v665_v32, %v664_v25  ;;  %v669_v38 = vrot.slane %v664_v25, 4  ;;  %v930_v4 = vsel %vm11027_vm6, %v659_v52, %v929_v41  ;;  %v1318_v6 = vrot.slane %v1316_v16, 7 }
 0x153   : > { %v546_v53 = vpack.c.bf16 %v514_v60, %v514_v60  ;;  %931 = vst [vmem:[#allocation2 + $0x48] sm:$0xf] %v930_v4  ;;  %v671_v44 = vshrl.u32 %v545_v3, 16  ;;  %v674_v8 = vshll.u32 %v545_v3, 16  ;;  %v10272_v51 = vunpack.c.l.bf16 %v11455_v7 }
 0x154   : > { %v668_v20 = vsel %vm10692_vm11, %v660_v42, %v667_v2  ;;  %v934_v29 = vsel %vm11033_vm9, %v669_v38, %v933_v46  ;;  %v1321_v11 = vor.u32 %v1319_v10, %v1318_v6  ;;  %v1322_v62 = vrot.slane %v1318_v6, 4  ;;  %v1514_v2 = vld [vmem:[#allocation3 + $0xb0] sm:$0x1]  ;;  %v10118_v6 = vld [vmem:[#allocation3 + $0x54] sm:$0xff] }
 0x155   : > { %932 = vst [vmem:[#allocation2 + $0x4c] sm:$0xf] %v668_v20  ;;  %v11463_v33 = vld [vmem:[#allocation3 + $0xa0] sm:$0xf]  ;;  %v679_v23 = vshrl.u32 %v546_v53, 16  ;;  %v682_v22 = vshll.u32 %v546_v53, 16  ;;  %v10273_v26 = vunpack.c.h.bf16 %v11455_v7 }
 0x156   : > { %935 = vst [vmem:[#allocation2 + $0x50] sm:$0x1] %v934_v29  ;;  %v3022_v0 = vrot.slane %v11463_v33, 5  ;;  %v673_v45 = vrot.slane %v671_v44, 7  ;;  %v11467_v18 = vrot.slane %v1324_v39, 7  ;;  %v1327_v48 = vshll.u32 %v1089_v19, 16 }
 0x157   : > { %v2878_v21 = vld [vmem:[#allocation3 + $0x9c] sm:$0xe]  ;;  %v681_v15 = vrot.slane %v679_v23, 7  ;;  %v1511_v24 = vsel %vm10700_vm12, %v1321_v11, %v1510_v27  ;;  %v11473_v58 = vld [vmem:[#allocation3 + $0xa4] sm:$0x1]  ;;  %v2803_v46 = vshll.u32 %v11463_v33, 16 }
 0x158   : > { %v9231_v40 = vrot.slane %v2878_v21, 9  ;;  %v3024_v30 = vrot.slane %v3022_v0, 4  ;;  %v676_v34 = vor.u32 %v674_v8, %v673_v45  ;;  %v677_v61 = vrot.slane %v673_v45, 4  ;;  %1512 = vst [vmem:[#allocation3 + $0xa8] sm:$0xf] %v1511_v24 }
 0x159   : > { %v3025_v35 = vrot.slane %v11473_v58, 5  ;;  %v684_v36 = vor.u32 %v682_v22, %v681_v15  ;;  %v686_v57 = vrot.slane %v681_v15, 4  ;;  %v1329_v32 = vor.u32 %v1327_v48, %v11467_v18 }
 0x15a   : > { %9308 = vmatmul.msk.bf16.gmra.mxu0 %vm3354_vm2, %v3328_v37  ;;  %v3023_v31 = vsel %vm10562_vm7, %v9231_v40, %v3022_v0  ;;  %v937_v1 = vsel %vm11027_vm6, %v676_v34, %v936_v9  ;;  %v1331_v41 = vrot.slane %v11467_v18, 4  ;;  %v1575_v13 = vld [vmem:[#allocation2 + $0x48] sm:$0xf]  ;;  %v3168_v9 = vpop.permute.xlu2 %3167 }
 0x15b   : > { %v2004_v12 = vld [vmem:[#allocation2 + $0x48] sm:$0xe]  ;;  %v3026_v17 = vsel %vm10562_vm7, %v3024_v30, %v3025_v35  ;;  %v3211_v25 = vunpack.c.l.b16 %v3023_v31  ;;  %v685_v56 = vsel %vm10692_vm11, %v677_v61, %v684_v36  ;;  %938 = vst [vmem:[#allocation2 + $0x54] sm:$0xf] %v937_v1  ;;  %v941_v37 = vsel %vm11033_vm9, %v686_v57, %v940_v5 }
 0x15c   : > { %v1576_v59 = vld [vmem:[#allocation2 + $0x4c] sm:$0xf]  ;;  %v1759_v19 = vshrl.u32 %v1575_v13, 16  ;;  %v1762_v52 = vshll.u32 %v1575_v13, 16  ;;  %v9144_v42 = vrot.slane %v2004_v12, 9  ;;  %v3212_v16 = vunpack.c.l.b16 %v3026_v17 }
 0x15d   : > { %v10077_v60 = vld [vmem:[#allocation2 + $0x48] sm:$0xff]  ;;  %v1601_v38 = vld [vmem:[#allocation2 + $0x50] sm:$0x1]  ;;  %v1768_v3 = vshll.u32 %v1576_v59, 16  ;;  %v1772_v10 = vshrl.u32 %v1576_v59, 16  ;;  %v2109_v4 = vrot.slane %v1576_v59, 5  ;;  %v1330_v53 = vsel %vm10692_vm11, %v1322_v62, %v1329_v32 }
 0x15e   : > { %v1761_v39 = vrot.slane %v1759_v19, 4  ;;  %v1764_v20 = vrot.slane %v1762_v52, 5  ;;  %v1778_v29 = vshll.u32 %v1601_v38, 16  ;;  %v2112_v44 = vrot.slane %v1601_v38, 5  ;;  %3662 = vmatmul.bf16.gmra.mxu1 %v10077_v60  ;;  %939 = vst [vmem:[#allocation2 + $0x58] sm:$0xf] %v685_v56 }
 0x15f   : > { %v1770_v8 = vrot.slane %v1768_v3, 5  ;;  %v1774_v27 = vrot.slane %v1772_v10, 4  ;;  %v2110_v23 = vsel %vm10562_vm7, %v9144_v42, %v2109_v4  ;;  %v2111_v22 = vrot.slane %v2109_v4, 4  ;;  %942 = vst [vmem:[#allocation2 + $0x5c] sm:$0x1] %v941_v37 }
 0x160   : > { %v1765_v11 = vor.u32 %v1764_v20, %v1761_v39  ;;  %v1780_v0 = vrot.slane %v1778_v29, 5  ;;  %v2333_v45 = vunpack.c.l.b16 %v2110_v23  ;;  %v3230_v18 = vpack.c.b16 %v3212_v16, %v3211_v25  ;;  %1513 = vst.msk [vmem:[#allocation3 + $0xac] sm:$0xf] %vm1006_vm0, %v1330_v53  ;;  %v2461_v62 = vld [vmem:[#allocation3 + $0xa8] sm:$0xf]  ;;  %v3248_v29 = vpop.permute.xlu0 %3247 }
 0x161   : > { %v1775_v21 = vor.u32 %v1774_v27, %v1770_v8  ;;  %v2113_v15 = vsel %vm10562_vm7, %v2111_v22, %v2112_v44  ;;  %v1515_v5 = vsel %vm10710_vm13, %v1331_v41, %v1514_v2  ;;  %v2818_v48 = vshrl.u32 %v2461_v62, 16  ;;  %v2459_v22 = vld [vmem:[#allocation3 + $0x9c] sm:$0xf] }
 0x162   : > { %v1766_v24 = vrot.slane %v1765_v11, 4  ;;  %v2334_v40 = vunpack.c.l.b16 %v2113_v15  ;;  %3259 = vrot.lane.b32.xlu0 %v3230_v18, %s10446_s27  ;;  %v1577_v30 = vld [vmem:[#allocation2 + $0x54] sm:$0xf]  ;;  %v2821_v61 = vshll.u32 %v2461_v62, 16  ;;  %v3289_v35 = vsel %vm3265_vm14, %v10118_v6, %v3168_v9  ;;  %1516 = vst [vmem:[#allocation3 + $0xb0] sm:$0x1] %v1515_v5 }
 0x163   : > { %v2005_v34 = vld [vmem:[#allocation2 + $0x54] sm:$0xe]  ;;  %v1776_v36 = vrot.slane %v1775_v21, 4  ;;  %v1783_v57 = vshrl.u32 %v1577_v30, 16  ;;  %v1786_v32 = vshll.u32 %v1577_v30, 16  ;;  %v2820_v41 = vrot.slane %v2818_v48, 4 }
 0x164   : > { %v9145_v31 = vrot.slane %v2005_v34, 9  ;;  %v1771_v1 = vsel %vm10520_vm4, %v1766_v24, %v1770_v8  ;;  %v2359_v13 = vpack.c.b16 %v2334_v40, %v2333_v45  ;;  %v2823_v12 = vrot.slane %v2821_v61, 5 }
 0x165   : > { %v1781_v17 = vsel %vm10520_vm4, %v1776_v36, %v1780_v0  ;;  %v2269_v25 = vunpack.c.l.b16 %v1771_v1  ;;  %v1578_v56 = vld [vmem:[#allocation2 + $0x58] sm:$0xf]  ;;  %v1785_v37 = vrot.slane %v1783_v57, 4  ;;  %v1788_v59 = vrot.slane %v1786_v32, 5 }
 0x166   : > { %v2270_v19 = vunpack.c.l.b16 %v1781_v17  ;;  %3840 = vmatmul.bf16.gmra.mxu3 %v2359_v13  ;;  %v1602_v52 = vld [vmem:[#allocation2 + $0x5c] sm:$0x1]  ;;  %v1792_v42 = vshll.u32 %v1578_v56, 16  ;;  %v1796_v60 = vshrl.u32 %v1578_v56, 16  ;;  %v2116_v16 = vrot.slane %v1578_v56, 5  ;;  %v10078_v11 = vld [vmem:[#allocation2 + $0x54] sm:$0xff] }
 0x167   : > { %v1789_v2 = vor.u32 %v1788_v59, %v1785_v37  ;;  %v1802_v38 = vshll.u32 %v1602_v52, 16  ;;  %v2119_v3 = vrot.slane %v1602_v52, 5  ;;  %v11504_v10 = vld [vmem:[#allocation3 + $0xac] sm:$0xf]  ;;  %v2824_v4 = vor.u32 %v2823_v12, %v2820_v41  ;;  %v1090_v41 = vld [vmem:[%s10659_s8 + $0x70] sm:$0xf] }
 0x168   : > { %v2295_v53 = vpack.c.b16 %v2270_v19, %v2269_v25  ;;  %v1794_v6 = vrot.slane %v1792_v42, 5  ;;  %v1798_v39 = vrot.slane %v1796_v60, 4  ;;  %v2117_v20 = vsel %vm10562_vm7, %v9145_v31, %v2116_v16 }
 0x169   : > { %v1790_v44 = vrot.slane %v1789_v2, 4  ;;  %v1804_v8 = vrot.slane %v1802_v38, 5  ;;  %v2118_v27 = vrot.slane %v2116_v16, 4  ;;  %v2335_v23 = vunpack.c.l.b16 %v2117_v20  ;;  %v11508_v0 = vld [vmem:[#allocation3 + $0xb0] sm:$0x1] }
 0x16a   : > { %3751 = vmatmul.bf16.gmra.mxu2 %v2295_v53  ;;  %v1799_v9 = vor.u32 %v1798_v39, %v1794_v6  ;;  %v2825_v45 = vrot.slane %v2824_v4, 4  ;;  %v2827_v18 = vshll.u32 %v11504_v10, 16  ;;  %v2831_v62 = vshrl.u32 %v11504_v10, 16 }
 0x16b   : > { %v1795_v21 = vsel %vm10520_vm4, %v1790_v44, %v1794_v6  ;;  %v2120_v15 = vsel %vm10562_vm7, %v2118_v27, %v2119_v3  ;;  %v2837_v5 = vshll.u32 %v11508_v0, 16  ;;  %v3330_v48 = vsel %vm3314_vm1, %v3289_v35, %v3248_v29  ;;  %v1517_v44 = vld [vmem:[#allocation3 + $0xb4] sm:$0xf] }
 0x16c   : > { %v1800_v24 = vrot.slane %v1799_v9, 4  ;;  %v11518_v40 = vunpack.c.l.b16 %v1795_v21  ;;  %v2336_v30 = vunpack.c.l.b16 %v2120_v15  ;;  %v2829_v34 = vrot.slane %v2827_v18, 5  ;;  %9309 = vmatmul.msk.bf16.gmra.mxu0 %vm3354_vm2, %v3330_v48  ;;  %v10163_v9 = vld [vmem:[%s13704_s4 + $0x158] sm:$0xff] }
 0x16d   : > { %v2833_v61 = vrot.slane %v2831_v62, 4  ;;  %v2839_v36 = vrot.slane %v2837_v5, 5  ;;  %v2794_v57 = vshrl.u32 %v2459_v22, 16  ;;  %v2797_v32 = vshll.u32 %v2459_v22, 16  ;;  %v10155_v22 = vld [vmem:[%s13704_s4 + $0x118] sm:$0xff]  ;;  %6222 = vmatpush.bf16.msrb.mxu3 %v10163_v9 }
 0x16e   : > { %v1805_v31 = vsel %vm10520_vm4, %v1800_v24, %v1804_v8  ;;  %v2360_v1 = vpack.c.b16 %v2336_v30, %v2335_v23  ;;  %3667 = vmatmul.bf16.gmra.mxu1 %v10078_v11  ;;  %v2830_v13 = vsel %vm10520_vm4, %v2825_v45, %v2829_v34  ;;  %v2805_v35 = vrot.slane %v2803_v46, 5  ;;  %v10119_v21 = vld [vmem:[#allocation3 + $0x60] sm:$0xff]  ;;  %6133 = vmatpush.bf16.msrb.mxu2 %v10155_v22  ;;  %v3400_v30 = vpop.f32.mrf.mxu0 }
 0x16f   : > { %v2272_v12 = vunpack.c.l.b16 %v1805_v31  ;;  %v2834_v17 = vor.u32 %v2833_v61, %v2829_v34  ;;  %v3133_v25 = vunpack.c.l.b16 %v2830_v13  ;;  %v2796_v56 = vrot.slane %v2794_v57, 4  ;;  %v10147_v15 = vld [vmem:[%s13704_s4 + $0xd8] sm:$0xff]  ;;  %v3170_v34 = vpop.permute.xlu1 %3169  ;;  %v3250_v31 = vpop.permute.xlu2 %3249 }
 0x170   : > { %v2799_v37 = vrot.slane %v2797_v32, 5  ;;  %v2807_v59 = vshrl.u32 %v11463_v33, 16  ;;  %v2813_v19 = vshll.u32 %v11473_v58, 16  ;;  %v447_v52 = vmul.f32 %v11370_v54, %v10272_v51  ;;  %v1091_v33 = vld [vmem:[%s10659_s8 + $0x74] sm:$0xf]  ;;  %6044 = vmatpush.bf16.msrb.mxu1 %v10147_v15 }
 0x171   : > { %v2296_v42 = vpack.c.b16 %v2272_v12, %v11518_v40  ;;  %v2835_v60 = vrot.slane %v2834_v17, 4  ;;  %v448_v46 = vmul.f32 %v11370_v54, %v10273_v26  ;;  %v1333_v16 = vshrl.u32 %v1090_v41, 16  ;;  %v1521_v17 = vld [vmem:[#allocation3 + $0xbc] sm:$0x1] }
 0x172   : > { %v2800_v2 = vor.u32 %v2799_v37, %v2796_v56  ;;  %v2809_v38 = vrot.slane %v2807_v59, 4  ;;  %v2815_v3 = vrot.slane %v2813_v19, 5  ;;  %v483_v4 = vadd.f32 %v11385_v49, %v447_v52  ;;  %v2879_v19 = vld [vmem:[#allocation3 + $0xa8] sm:$0xe] }
 0x173   : > { %v2840_v58 = vsel %vm10520_vm4, %v2835_v60, %v2839_v36  ;;  %v484_v53 = vadd.f32 %v11385_v49, %v448_v46  ;;  %v1335_v51 = vrot.slane %v1333_v16, 7  ;;  %v1336_v6 = vshll.u32 %v1090_v41, 16  ;;  %v3633_v41 = vpop.f32.mrf.mxu1  ;;  %v943_v46 = vld [vmem:[#allocation2 + $0x60] sm:$0xf]  ;;  %v3722_v16 = vpop.f32.mrf.mxu2 }
 0x174   : > { %v3134_v39 = vunpack.c.l.b16 %v2840_v58  ;;  %v2801_v20 = vrot.slane %v2800_v2, 4  ;;  %v2810_v29 = vor.u32 %v2809_v38, %v2805_v35  ;;  %v515_v7 = vmax.f32 %v483_v4, 0.0  ;;  %v947_v58 = vld [vmem:[#allocation2 + $0x68] sm:$0x1] }
 0x175   : > { %v516_v26 = vmax.f32 %v484_v53, 0.0  ;;  %v1338_v8 = vor.u32 %v1336_v6, %v1335_v51  ;;  %v1339_v27 = vrot.slane %v1335_v51, 4  ;;  %v1341_v23 = vshrl.u32 %v1091_v33, 16 }
 0x176   : > { %3845 = vmatmul.bf16.gmra.mxu3 %v2360_v1  ;;  %v3151_v11 = vpack.c.b16 %v3134_v39, %v3133_v25  ;;  %v2806_v45 = vsel %vm10520_vm4, %v2801_v20, %v2805_v35  ;;  %v2811_v18 = vrot.slane %v2810_v29, 4  ;;  %v547_v62 = vpack.c.bf16 %v515_v7, %v515_v7  ;;  %v3811_v39 = vpop.f32.mrf.mxu3 }
 0x177   : > { %v3131_v5 = vunpack.c.l.b16 %v2806_v45  ;;  %v548_v48 = vpack.c.bf16 %v516_v26, %v516_v26  ;;  %v1343_v24 = vrot.slane %v1341_v23, 7  ;;  %v1344_v40 = vshll.u32 %v1091_v33, 16 }
 0x178   : > { %3181 = vrot.lane.b32.xlu1 %v3151_v11, %s10445_s26  ;;  %v2816_v61 = vsel %vm10520_vm4, %v2811_v18, %v2815_v3  ;;  %v688_v36 = vshrl.u32 %v547_v62, 16  ;;  %v691_v57 = vshll.u32 %v547_v62, 16  ;;  %v1518_v32 = vsel %vm10700_vm12, %v1338_v8, %v1517_v44  ;;  %v10393_v3 = vld [vmem:[%s10975_s18 + $0x40] sm:$0xff]  }
 0x179   : > { %v3132_v1 = vunpack.c.l.b16 %v2816_v61  ;;  %v696_v13 = vshrl.u32 %v548_v48, 16  ;;  %v699_v35 = vshll.u32 %v548_v48, 16  ;;  %v1346_v12 = vor.u32 %v1344_v40, %v1343_v24  ;;  %1519 = vst [vmem:[#allocation3 + $0xb4] sm:$0xf] %v1518_v32 }
 0x17a   : > { %3756 = vmatmul.bf16.gmra.mxu2 %v2296_v42  ;;  %v690_v25 = vrot.slane %v688_v36, 7  ;;  %v1348_v56 = vrot.slane %v1343_v24, 4  ;;  %v3634_v37 = vadd.f32 %v3633_v41, %v3400_v30  ;;  %v3292_v59 = vsel %vm3265_vm14, %v10119_v21, %v3170_v34 }
 0x17b   : > { %v3150_v52 = vpack.c.b16 %v3132_v1, %v3131_v5  ;;  %v698_v60 = vrot.slane %v696_v13, 7  ;;  %v1347_v2 = vsel %vm10692_vm11, %v1339_v27, %v1346_v12  ;;  %v3332_v38 = vsel %vm3314_vm1, %v3292_v59, %v3250_v31  ;;  %v11575_v27 = vld [vmem:[%s10975_s18 + $0x48] sm:$0xff]  }
 0x17c   : > { %v693_v4 = vor.u32 %v691_v57, %v690_v25  ;;  %v694_v33 = vrot.slane %v690_v25, 4  ;;  %1520 = vst.msk [vmem:[#allocation3 + $0xb8] sm:$0xf] %vm1006_vm0, %v1347_v2  ;;  %v1522_v42 = vsel %vm10710_vm13, %v1348_v56, %v1521_v17  ;;  %v3723_v53 = vadd.f32 %v3722_v16, %v3634_v37  ;;  %9310 = vmatmul.msk.bf16.gmra.mxu0 %vm3354_vm2, %v3332_v38 }
 0x17d   : > { %3179 = vrot.lane.b32.xlu2 %v3150_v52, %s10445_s26  ;;  %v701_v51 = vor.u32 %v699_v35, %v698_v60  ;;  %v703_v6 = vrot.slane %v698_v60, 4  ;;  %1523 = vst [vmem:[#allocation3 + $0xbc] sm:$0x1] %v1522_v42  ;;  %v9232_v20 = vrot.slane %v2879_v19, 9  ;;  %v3029_v29 = vrot.slane %v11504_v10, 5 }
 0x17e   : > { %v944_v7 = vsel %vm11027_vm6, %v693_v4, %v943_v46  ;;  %v11571_v44 = vadd.f32 %v3811_v39, %v3723_v53  ;;  %v3032_v26 = vrot.slane %v11508_v0, 5  ;;  %v10276_v8 = vunpack.c.l.bf16 %v10393_v3 }
 0x17f   : > { %v702_v23 = vsel %vm10692_vm11, %v694_v33, %v701_v51  ;;  %945 = vst [vmem:[#allocation2 + $0x60] sm:$0xf] %v944_v7  ;;  %v948_v22 = vsel %vm11033_vm9, %v703_v6, %v947_v58  ;;  %v3030_v10 = vsel %vm10562_vm7, %v9232_v20, %v3029_v29  ;;  %v3031_v9 = vrot.slane %v3029_v29, 4 }
 0x180   : > { %946 = vst [vmem:[#allocation2 + $0x64] sm:$0xf] %v702_v23  ;;  %v2463_v11 = vld [vmem:[#allocation3 + $0xb4] sm:$0xf]  ;;  %v3213_v18 = vunpack.c.l.b16 %v3030_v10  ;;  %v10277_v62 = vunpack.c.h.bf16 %v10393_v3  ;;  %v449_v0 = vmul.f32 %v11370_v54, %v10276_v8  ;;  %v10280_v48 = vunpack.c.l.bf16 %v11575_v27  ;;  %v11601_v10 = vpop.f32.mrf.mxu1 }
 0x181   : > { %v2880_v45 = vld [vmem:[#allocation3 + $0xb4] sm:$0xe]  ;;  %949 = vst [vmem:[#allocation2 + $0x68] sm:$0x1] %v948_v22  ;;  %v2842_v21 = vshrl.u32 %v2463_v11, 16  ;;  %v2845_v15 = vshll.u32 %v2463_v11, 16  ;;  %v3033_v5 = vsel %vm10562_vm7, %v3031_v9, %v3032_v26  ;;  %v10281_v32 = vunpack.c.h.bf16 %v11575_v27 }
 0x182   : > { %v9233_v24 = vrot.slane %v2880_v45, 9  ;;  %v3214_v40 = vunpack.c.l.b16 %v3033_v5  ;;  %v450_v30 = vmul.f32 %v11370_v54, %v10277_v62  ;;  %v11589_v57 = vadd.f32 %v11385_v49, %v449_v0  ;;  %13724 = vst [vmem:[#allocation6_spill] sm:$0xff] %v11601_v10  ;;  %v11607_v5 = vpop.f32.mrf.mxu2 }
 0x183   : > { %v2464_v34 = vld [vmem:[#allocation3 + $0xb8] sm:$0xf]  ;;  %v2844_v61 = vrot.slane %v2842_v21, 4  ;;  %v2847_v36 = vrot.slane %v2845_v15, 5  ;;  %v11593_v56 = vmul.f32 %v11370_v54, %v10280_v48  ;;  %13725 = vst [vmem:[#allocation7_spill] sm:$0xff] %v11607_v5 }
 0x184   : > { %v2480_v31 = vld [vmem:[#allocation3 + $0xbc] sm:$0x1]  ;;  %v2851_v1 = vshll.u32 %v2464_v34, 16  ;;  %v2855_v13 = vshrl.u32 %v2464_v34, 16  ;;  %v3036_v35 = vrot.slane %v2464_v34, 5  ;;  %v3231_v41 = vpack.c.b16 %v3214_v40, %v3213_v18 }
 0x185   : > { %v2848_v12 = vor.u32 %v2847_v36, %v2844_v61  ;;  %v2861_v17 = vshll.u32 %v2480_v31, 16  ;;  %v3039_v25 = vrot.slane %v2480_v31, 5  ;;  %v486_v46 = vadd.f32 %v11385_v49, %v450_v30 }
 0x186   : > { %v1579_v37 = vld [vmem:[#allocation2 + $0x60] sm:$0xf]  ;;  %v2853_v19 = vrot.slane %v2851_v1, 5  ;;  %v2857_v52 = vrot.slane %v2855_v13, 4  ;;  %v3037_v60 = vsel %vm10562_vm7, %v9233_v24, %v3036_v35  ;;  %3261 = vrot.lane.b32.xlu2 %v3231_v41, %s10446_s27  ;;  %v3038_v30 = vrot.slane %v3036_v35, 4 }
 0x187   : > { %v2006_v59 = vld [vmem:[#allocation2 + $0x60] sm:$0xe]  ;;  %v1580_v16 = vld [vmem:[#allocation2 + $0x64] sm:$0xf]  ;;  %v1807_v2 = vshrl.u32 %v1579_v37, 16  ;;  %v1810_v38 = vshll.u32 %v1579_v37, 16  ;;  %v3215_v33 = vunpack.c.l.b16 %v3037_v60 }
 0x188   : > { %v9146_v3 = vrot.slane %v2006_v59, 9  ;;  %v10079_v4 = vld [vmem:[#allocation2 + $0x60] sm:$0xff]  ;;  %v1603_v58 = vld [vmem:[#allocation2 + $0x68] sm:$0x1]  ;;  %v1816_v42 = vshll.u32 %v1580_v16, 16  ;;  %v1820_v53 = vshrl.u32 %v1580_v16, 16  ;;  %v2858_v21 = vor.u32 %v2857_v52, %v2853_v19  ;;  %v11623_v52 = vpop.f32.mrf.mxu0 }
 0x189   : > { %v2123_v51 = vrot.slane %v1580_v16, 5  ;;  %v2849_v6 = vrot.slane %v2848_v12, 4  ;;  %v1809_v39 = vrot.slane %v1807_v2, 4  ;;  %v1812_v20 = vrot.slane %v1810_v38, 5  ;;  %3672 = vmatmul.bf16.gmra.mxu1 %v10079_v4  ;;  %v11610_v1 = vld [vmem:[#allocation3 + $0x10] sm:$0xf] }
 0x18a   : > { %v1826_v29 = vshll.u32 %v1603_v58, 16  ;;  %v2126_v7 = vrot.slane %v1603_v58, 5  ;;  %v1818_v26 = vrot.slane %v1816_v42, 5  ;;  %v1822_v8 = vrot.slane %v1820_v53, 4  ;;  %13727 = vst [vmem:[#allocation9_spill] sm:$0xff] %v11623_v52  ;;  %v10120_v38 = vld [vmem:[#allocation3 + $0x6c] sm:$0xff]  ;;  %v3172_v53 = vpop.permute.xlu0 %3171 }
 0x18b   : > { %v2124_v23 = vsel %vm10562_vm7, %v9146_v3, %v2123_v51  ;;  %v2125_v22 = vrot.slane %v2123_v51, 4  ;;  %v1813_v9 = vor.u32 %v1812_v20, %v1809_v39  ;;  %v2854_v18 = vsel %vm10520_vm4, %v2849_v6, %v2853_v19  ;;  %v5284_v60 = vld [vmem:[#allocation3 + $0xc] sm:$0xe]  ;;  %v11625_v4 = vld [vmem:[#allocation3 + $0x14] sm:$0x1] }
 0x18c   : > { %v1828_v11 = vrot.slane %v1826_v29, 5  ;;  %v2337_v45 = vunpack.c.l.b16 %v2124_v23  ;;  %v1823_v62 = vor.u32 %v1822_v8, %v1818_v26  ;;  %v2863_v15 = vrot.slane %v2861_v17, 5  ;;  %v11616_v17 = vpop.f32.mrf.mxu3  ;;  %v3638_v23 = vpop.f32.mrf.mxu1 }
 0x18d   : > { %v2127_v0 = vsel %vm10562_vm7, %v2125_v22, %v2126_v7  ;;  %v1814_v48 = vrot.slane %v1813_v9, 4  ;;  %v3135_v40 = vunpack.c.l.b16 %v2854_v18  ;;  %v2859_v61 = vrot.slane %v2858_v21, 4  ;;  %13726 = vst [vmem:[#allocation8_spill] sm:$0xff] %v11616_v17  ;;  %v3252_v7 = vpop.permute.xlu1 %3251  ;;  %v950_v9 = vld [vmem:[#allocation2 + $0x6c] sm:$0xf] }
 0x18e   : > { %v2338_v24 = vunpack.c.l.b16 %v2127_v0  ;;  %v1824_v34 = vrot.slane %v1823_v62, 4  ;;  %v517_v36 = vmax.f32 %v11589_v57, 0.0  ;;  %v518_v31 = vmax.f32 %v486_v46, 0.0 }
 0x18f   : > { %v1819_v13 = vsel %vm10520_vm4, %v1814_v48, %v1818_v26  ;;  %v3040_v12 = vsel %vm10562_vm7, %v3038_v30, %v3039_v25  ;;  %v5350_v37 = vrot.slane %v11610_v1, 5  ;;  %v2864_v57 = vsel %vm10520_vm4, %v2859_v61, %v2863_v15  ;;  %v954_v15 = vld [vmem:[#allocation2 + $0x74] sm:$0x1] }
 0x190   : > { %v2361_v41 = vpack.c.b16 %v2338_v24, %v2337_v45  ;;  %v1829_v35 = vsel %vm10520_vm4, %v1824_v34, %v1828_v11  ;;  %v2273_v59 = vunpack.c.l.b16 %v1819_v13  ;;  %v3216_v19 = vunpack.c.l.b16 %v3040_v12  ;;  %v3727_v11 = vpop.f32.mrf.mxu2  ;;  %v3405_v61 = vpop.f32.mrf.mxu0  ;;  %v4854_v12 = vld [vmem:[#allocation3 + $0x18] sm:$0xf] }
 0x191   : > { %v2274_v46 = vunpack.c.l.b16 %v1829_v35  ;;  %v3136_v16 = vunpack.c.l.b16 %v2864_v57  ;;  %v549_v2 = vpack.c.bf16 %v517_v36, %v517_v36  ;;  %v550_v25 = vpack.c.bf16 %v518_v31, %v518_v31 }
 0x192   : > { %3850 = vmatmul.bf16.gmra.mxu3 %v2361_v41  ;;  %v3232_v3 = vpack.c.b16 %v3216_v19, %v3215_v33  ;;  %v9542_v58 = vrot.slane %v5284_v60, 9  ;;  %v5352_v42 = vrot.slane %v5350_v37, 4  ;;  %v452_v51 = vmul.f32 %v11370_v54, %v10281_v32 }
 0x193   : > { %v2297_v6 = vpack.c.b16 %v2274_v46, %v2273_v59  ;;  %v3152_v39 = vpack.c.b16 %v3136_v16, %v3135_v40  ;;  %v705_v20 = vshrl.u32 %v549_v2, 16  ;;  %v708_v29 = vshll.u32 %v549_v2, 16  ;;  %v11652_v2 = vld [vmem:[%s10975_s18 + $0x50] sm:$0xff]  }
 0x194   : > { %3263 = vrot.lane.b32.xlu1 %v3232_v3, %s10446_s27  ;;  %v713_v26 = vshrl.u32 %v550_v25, 16  ;;  %v716_v8 = vshll.u32 %v550_v25, 16  ;;  %v5351_v33 = vsel %vm10562_vm7, %v9542_v58, %v5350_v37  ;;  %v5353_v27 = vrot.slane %v11625_v4, 5  ;;  %v11645_v37 = vld [vmem:[#allocation3 + $0x1c] sm:$0xf] }
 0x195   : > { %3761 = vmatmul.bf16.gmra.mxu2 %v2297_v6  ;;  %3183 = vrot.lane.b32.xlu0 %v3152_v39, %s10445_s26  ;;  %v707_v22 = vrot.slane %v705_v20, 7  ;;  %v3295_v54 = vsel %vm3265_vm14, %v10120_v38, %v3172_v53  ;;  %v5604_v45 = vunpack.c.l.b16 %v5351_v33  ;;  %v487_v62 = vadd.f32 %v11385_v49, %v11593_v56  ;;  %v3816_v56 = vpop.f32.mrf.mxu3  ;;  %v11659_v6 = vld [vmem:[#allocation3 + $0x20] sm:$0x1]  ;;  %v11661_v20 = vpop.f32.mrf.mxu1 }
 0x196   : > { %v715_v32 = vrot.slane %v713_v26, 7  ;;  %v3334_v18 = vsel %vm3314_vm1, %v3295_v54, %v3252_v7  ;;  %v5354_v48 = vsel %vm10562_vm7, %v5352_v42, %v5353_v27  ;;  %v488_v24 = vadd.f32 %v11385_v49, %v452_v51  ;;  %13728 = vst [vmem:[#allocation10_spill] sm:$0xff] %v11661_v20  ;;  %v957_v33 = vld [vmem:[#allocation2 + $0x78] sm:$0xf] }
 0x197   : > { %v710_v0 = vor.u32 %v708_v29, %v707_v22  ;;  %v711_v21 = vrot.slane %v707_v22, 4  ;;  %9311 = vmatmul.msk.bf16.gmra.mxu0 %vm3354_vm2, %v3334_v18  ;;  %v5605_v34 = vunpack.c.l.b16 %v5354_v48  ;;  %v519_v36 = vmax.f32 %v487_v62, 0.0  ;;  %v10162_v18 = vld [vmem:[%s13704_s4 + $0x150] sm:$0xff] }
 0x198   : > { %v718_v40 = vor.u32 %v716_v8, %v715_v32  ;;  %v720_v30 = vrot.slane %v715_v32, 4  ;;  %v3639_v13 = vadd.f32 %v3638_v23, %v3405_v61  ;;  %v520_v41 = vmax.f32 %v488_v24, 0.0  ;;  %v11666_v27 = vpop.f32.mrf.mxu2  ;;  %v961_v24 = vld [vmem:[#allocation2 + $0x80] sm:$0x1]  ;;  %6223 = vmatpush.bf16.msrb.mxu3 %v10162_v18 }
 0x199   : > { %v951_v31 = vsel %vm11027_vm6, %v710_v0, %v950_v9  ;;  %v5636_v59 = vpack.c.b16 %v5605_v34, %v5604_v45  ;;  %v551_v57 = vpack.c.bf16 %v519_v36, %v519_v36  ;;  %v4925_v46 = vshrl.u32 %v4854_v12, 16  ;;  %13729 = vst [vmem:[#allocation11_spill] sm:$0xff] %v11666_v27  ;;  %v11668_v9 = vpop.f32.mrf.mxu0  ;;  %v10154_v45 = vld [vmem:[%s13704_s4 + $0x110] sm:$0xff] }
 0x19a   : > { %v719_v35 = vsel %vm10692_vm11, %v711_v21, %v718_v40  ;;  %952 = vst [vmem:[#allocation2 + $0x6c] sm:$0xf] %v951_v31  ;;  %v955_v49 = vsel %vm11033_vm9, %v720_v30, %v954_v15  ;;  %v3728_v19 = vadd.f32 %v3727_v11, %v3639_v13  ;;  %v552_v60 = vpack.c.bf16 %v520_v41, %v520_v41 }
 0x19b   : > { %953 = vst [vmem:[#allocation2 + $0x70] sm:$0xf] %v719_v35  ;;  %v4928_v16 = vshll.u32 %v4854_v12, 16  ;;  %v722_v25 = vshrl.u32 %v551_v57, 16  ;;  %v725_v38 = vshll.u32 %v551_v57, 16  ;;  %v4934_v3 = vshll.u32 %v11645_v37, 16  ;;  %6134 = vmatpush.bf16.msrb.mxu2 %v10154_v45 }
 0x19c   : > { %956 = vst [vmem:[#allocation2 + $0x74] sm:$0x1] %v955_v49  ;;  %v4938_v58 = vshrl.u32 %v11645_v37, 16  ;;  %v11657_v42 = vadd.f32 %v3816_v56, %v3728_v19  ;;  %v730_v53 = vshrl.u32 %v552_v60, 16  ;;  %v733_v51 = vshll.u32 %v552_v60, 16  ;;  %v10146_v19 = vld [vmem:[%s13704_s4 + $0xd0] sm:$0xff] }
 0x19d   : > { %5652 = vrot.lane.b32.xlu0 %v5636_v59, %s10446_s27  ;;  %v4927_v39 = vrot.slane %v4925_v46, 4  ;;  %v724_v29 = vrot.slane %v722_v25, 7  ;;  %v4930_v7 = vrot.slane %v4928_v16, 5  ;;  %v11663_v26 = vrot.slane %v4934_v3, 5  ;;  %13730 = vst [vmem:[#allocation12_spill] sm:$0xff] %v11668_v9  ;;  %v11681_v59 = vpop.f32.mrf.mxu3  ;;  %6045 = vmatpush.bf16.msrb.mxu1 %v10146_v19 }
 0x19e   : > { %v4940_v8 = vrot.slane %v4938_v58, 4  ;;  %v732_v23 = vrot.slane %v730_v53, 7  ;;  %v10284_v22 = vunpack.c.l.bf16 %v11652_v2  ;;  %v4944_v11 = vshll.u32 %v11659_v6, 16  ;;  %13731 = vst [vmem:[#allocation13_spill] sm:$0xff] %v11681_v59 }
 0x19f   : > { %v727_v54 = vor.u32 %v725_v38, %v724_v29  ;;  %v728_v32 = vrot.slane %v724_v29, 4  ;;  %v10285_v62 = vunpack.c.h.bf16 %v11652_v2  ;;  %v4931_v40 = vor.u32 %v4930_v7, %v4927_v39 }
 0x1a0   : > { %v735_v15 = vor.u32 %v733_v51, %v732_v23  ;;  %v737_v48 = vrot.slane %v732_v23, 4  ;;  %v4941_v30 = vor.u32 %v4940_v8, %v11663_v26  ;;  %v10121_v51 = vld [vmem:[#allocation3 + $0x78] sm:$0xff]  ;;  %v4946_v8 = vrot.slane %v4944_v11, 5  ;;  %v3174_v23 = vpop.permute.xlu2 %3173 }
 0x1a1   : > { %v1581_v0 = vld [vmem:[#allocation2 + $0x6c] sm:$0xf]  ;;  %v958_v13 = vsel %vm11027_vm6, %v727_v54, %v957_v33  ;;  %v4932_v45 = vrot.slane %v4931_v40, 4  ;;  %v3298_v40 = vsel %vm3265_vm14, %v10121_v51, %v3174_v23 }
 0x1a2   : > { %v2007_v21 = vld [vmem:[#allocation2 + $0x6c] sm:$0xe]  ;;  %v1582_v34 = vld [vmem:[#allocation2 + $0x70] sm:$0xf]  ;;  %v1831_v61 = vshrl.u32 %v1581_v0, 16  ;;  %v1834_v36 = vshll.u32 %v1581_v0, 16  ;;  %v736_v57 = vsel %vm10692_vm11, %v728_v32, %v735_v15  ;;  %v962_v7 = vsel %vm11033_vm9, %v737_v48, %v961_v24 }
 0x1a3   : > { %v9147_v31 = vrot.slane %v2007_v21, 9  ;;  %v10080_v56 = vld [vmem:[#allocation2 + $0x6c] sm:$0xff]  ;;  %v1604_v41 = vld [vmem:[#allocation2 + $0x74] sm:$0x1]  ;;  %v1840_v12 = vshll.u32 %v1582_v34, 16  ;;  %v1844_v35 = vshrl.u32 %v1582_v34, 16  ;;  %v3643_v21 = vpop.f32.mrf.mxu1  ;;  %v4937_v24 = vsel %vm10520_vm4, %v4932_v45, %v11663_v26 }
 0x1a4   : > { %v2130_v49 = vrot.slane %v1582_v34, 5  ;;  %v1833_v60 = vrot.slane %v1831_v61, 4  ;;  %v1836_v46 = vrot.slane %v1834_v36, 5  ;;  %v1850_v16 = vshll.u32 %v1604_v41, 16  ;;  %3677 = vmatmul.bf16.gmra.mxu1 %v10080_v56  ;;  %959 = vst [vmem:[#allocation2 + $0x78] sm:$0xf] %v958_v13  ;;  %v3410_v34 = vpop.f32.mrf.mxu0  ;;  %v3732_v56 = vpop.f32.mrf.mxu2 }
 0x1a5   : > { %v2133_v25 = vrot.slane %v1604_v41, 5  ;;  %v1842_v38 = vrot.slane %v1840_v12, 5  ;;  %v1846_v3 = vrot.slane %v1844_v35, 4  ;;  %960 = vst [vmem:[#allocation2 + $0x7c] sm:$0xf] %v736_v57  ;;  %v4942_v15 = vrot.slane %v4941_v30, 4 }
 0x1a6   : > { %v2131_v58 = vsel %vm10562_vm7, %v9147_v31, %v2130_v49  ;;  %v2132_v53 = vrot.slane %v2130_v49, 4  ;;  %v1837_v39 = vor.u32 %v1836_v46, %v1833_v60  ;;  %v1852_v54 = vrot.slane %v1850_v16, 5  ;;  %963 = vst [vmem:[#allocation2 + $0x80] sm:$0x1] %v962_v7  ;;  %v11697_v61 = vld [vmem:[%s13702_s2] ss:$0 sm:$0xff] }
 0x1a7   : > { %v2339_v29 = vunpack.c.l.b16 %v2131_v58  ;;  %v1847_v33 = vor.u32 %v1846_v3, %v1842_v38  ;;  %v11700_v11 = vmul.f32 %v11697_v61, %v10284_v22  ;;  %v3644_v36 = vadd.f32 %v3643_v21, %v3410_v34 }
 0x1a8   : > { %v2134_v32 = vsel %vm10562_vm7, %v2132_v53, %v2133_v25  ;;  %v1838_v18 = vrot.slane %v1837_v39, 4  ;;  %v4947_v13 = vsel %vm10520_vm4, %v4942_v15, %v4946_v8  ;;  %v5526_v41 = vunpack.c.l.b16 %v4937_v24  ;;  %v3821_v53 = vpop.f32.mrf.mxu3 }
 0x1a9   : > { %v2340_v0 = vunpack.c.l.b16 %v2134_v32  ;;  %v1848_v48 = vrot.slane %v1847_v33, 4  ;;  %v5527_v57 = vunpack.c.l.b16 %v4947_v13  ;;  %v3733_v26 = vadd.f32 %v3732_v56, %v3644_v36  ;;  %v3254_v33 = vpop.permute.xlu0 %3253 }
 0x1aa   : > { %v1843_v30 = vsel %vm10520_vm4, %v1838_v18, %v1842_v38 }
 0x1ab   : > { %v2362_v31 = vpack.c.b16 %v2340_v0, %v2339_v29  ;;  %v1853_v22 = vsel %vm10520_vm4, %v1848_v48, %v1852_v54  ;;  %v2275_v12 = vunpack.c.l.b16 %v1843_v30  ;;  %v1583_v35 = vld [vmem:[#allocation2 + $0x78] sm:$0xf]  ;;  %v5557_v51 = vpack.c.b16 %v5527_v57, %v5526_v41  ;;  %v4852_v54 = vld [vmem:[#allocation3 + $0xc] sm:$0xf]  ;;  %v11742_v2 = vpop.f32.mrf.mxu1 }
 0x1ac   : > { %v2008_v49 = vld [vmem:[#allocation2 + $0x78] sm:$0xe]  ;;  %v2276_v19 = vunpack.c.l.b16 %v1853_v22  ;;  %v1584_v60 = vld [vmem:[#allocation2 + $0x7c] sm:$0xf]  ;;  %v1855_v46 = vshrl.u32 %v1583_v35, 16  ;;  %v1858_v16 = vshll.u32 %v1583_v35, 16  ;;  %v11712_v23 = vadd.f32 %v3821_v53, %v3733_v26 }
 0x1ad   : > { %3855 = vmatmul.bf16.gmra.mxu3 %v2362_v31  ;;  %v9148_v25 = vrot.slane %v2008_v49, 9  ;;  %v1864_v38 = vshll.u32 %v1584_v60, 16  ;;  %v1868_v3 = vshrl.u32 %v1584_v60, 16  ;;  %v2137_v58 = vrot.slane %v1584_v60, 5  ;;  %v1605_v29 = vld [vmem:[#allocation2 + $0x80] sm:$0x1]  ;;  %5574 = vrot.lane.b32.xlu1 %v5557_v51, %s10445_s26 }
 0x1ae   : > { %v2298_v39 = vpack.c.b16 %v2276_v19, %v2275_v12  ;;  %v1857_v7 = vrot.slane %v1855_v46, 4  ;;  %v1860_v8 = vrot.slane %v1858_v16, 5  ;;  %v1874_v18 = vshll.u32 %v1605_v29, 16  ;;  %v10081_v24 = vld [vmem:[#allocation2 + $0x78] sm:$0xff]  ;;  %13732 = vst [vmem:[#allocation14_spill] sm:$0xff] %v11742_v2 }
 0x1af   : > { %v1866_v32 = vrot.slane %v1864_v38, 5  ;;  %v1870_v45 = vrot.slane %v1868_v3, 4  ;;  %v2138_v0 = vsel %vm10562_vm7, %v9148_v25, %v2137_v58  ;;  %v2139_v15 = vrot.slane %v2137_v58, 4  ;;  %v4856_v16 = vld [vmem:[#allocation3 + $0x24] sm:$0xf] }
 0x1b0   : > { %3766 = vmatmul.bf16.gmra.mxu2 %v2298_v39  ;;  %v1861_v21 = vor.u32 %v1860_v8, %v1857_v7  ;;  %v2140_v34 = vrot.slane %v1605_v29, 5  ;;  %v2341_v48 = vunpack.c.l.b16 %v2138_v0  ;;  %v1876_v30 = vrot.slane %v1874_v18, 5  ;;  %v11728_v58 = vld [vmem:[#allocation3 + $0x28] sm:$0xf] }
 0x1b1   : > { %v1871_v36 = vor.u32 %v1870_v45, %v1866_v32  ;;  %v3336_v31 = vsel %vm3314_vm1, %v3298_v40, %v3254_v33  ;;  %v4901_v56 = vshrl.u32 %v4852_v54, 16  ;;  %v4904_v22 = vshll.u32 %v4852_v54, 16 }
 0x1b2   : > { %v1862_v13 = vrot.slane %v1861_v21, 4  ;;  %v2141_v41 = vsel %vm10562_vm7, %v2139_v15, %v2140_v34  ;;  %9312 = vmatmul.msk.bf16.gmra.mxu0 %vm3354_vm2, %v3336_v31  ;;  %v4910_v12 = vshll.u32 %v11610_v1, 16  ;;  %v4914_v26 = vshrl.u32 %v11610_v1, 16 }
 0x1b3   : > { %v1872_v35 = vrot.slane %v1871_v36, 4  ;;  %v2342_v49 = vunpack.c.l.b16 %v2141_v41  ;;  %v4903_v57 = vrot.slane %v4901_v56, 4  ;;  %v4906_v40 = vrot.slane %v4904_v22, 5  ;;  %v11751_v56 = vpop.f32.mrf.mxu3 }
 0x1b4   : > { %v1867_v19 = vsel %vm10520_vm4, %v1862_v13, %v1866_v32  ;;  %3682 = vmatmul.bf16.gmra.mxu1 %v10081_v24  ;;  %v4912_v60 = vrot.slane %v4910_v12, 5  ;;  %v4920_v46 = vshll.u32 %v11625_v4, 16  ;;  %v4916_v3 = vrot.slane %v4914_v26, 4  ;;  %v11736_v4 = vld [vmem:[%s13703_s3] ss:$0 sm:$0xff]  ;;  %v11744_v24 = vpop.f32.mrf.mxu2  ;;  %13735 = vst [vmem:[#allocation17_spill] sm:$0xff] %v11751_v56 }
 0x1b5   : > { %v1877_v25 = vsel %vm10520_vm4, %v1872_v35, %v1876_v30  ;;  %v2277_v38 = vunpack.c.l.b16 %v1867_v19  ;;  %v4907_v51 = vor.u32 %v4906_v40, %v4903_v57  ;;  %v454_v1 = vmul.f32 %v11697_v61, %v10285_v62  ;;  %13733 = vst [vmem:[#allocation15_spill] sm:$0xff] %v11744_v24  ;;  %v11748_v30 = vpop.f32.mrf.mxu0 }
 0x1b6   : > { %v2278_v53 = vunpack.c.l.b16 %v1877_v25  ;;  %v4922_v39 = vrot.slane %v4920_v46, 5  ;;  %v4917_v29 = vor.u32 %v4916_v3, %v4912_v60  ;;  %v489_v7 = vadd.f32 %v11736_v4, %v11700_v11  ;;  %13734 = vst [vmem:[#allocation16_spill] sm:$0xff] %v11748_v30  ;;  %v5286_v46 = vld [vmem:[#allocation3 + $0x24] sm:$0xe] }
 0x1b7   : > { %v4949_v8 = vshrl.u32 %v4856_v16, 16  ;;  %v4952_v33 = vshll.u32 %v4856_v16, 16  ;;  %v2363_v54 = vpack.c.b16 %v2342_v49, %v2341_v48  ;;  %v4908_v32 = vrot.slane %v4907_v51, 4  ;;  %v4886_v48 = vld [vmem:[#allocation3 + $0x2c] sm:$0x1] }
 0x1b8   : > { %v490_v45 = vadd.f32 %v11736_v4, %v454_v1  ;;  %v4958_v18 = vshll.u32 %v11728_v58, 16  ;;  %v4918_v62 = vrot.slane %v4917_v29, 4  ;;  %v521_v0 = vmax.f32 %v489_v7, 0.0  ;;  %v964_v29 = vld [vmem:[#allocation2 + $0x84] sm:$0xf] }
 0x1b9   : > { %v4951_v21 = vrot.slane %v4949_v8, 4  ;;  %v4954_v15 = vrot.slane %v4952_v33, 5  ;;  %v2299_v34 = vpack.c.b16 %v2278_v53, %v2277_v38  ;;  %v4913_v11 = vsel %vm10520_vm4, %v4908_v32, %v4912_v60 }
 0x1ba   : > { %v522_v36 = vmax.f32 %v490_v45, 0.0  ;;  %v4962_v31 = vshrl.u32 %v11728_v58, 16  ;;  %v4923_v13 = vsel %vm10520_vm4, %v4918_v62, %v4922_v39  ;;  %v5524_v41 = vunpack.c.l.b16 %v4913_v11  ;;  %v968_v45 = vld [vmem:[#allocation2 + $0x8c] sm:$0x1] }
 0x1bb   : > { %v553_v22 = vpack.c.bf16 %v521_v0, %v521_v0  ;;  %v4960_v12 = vrot.slane %v4958_v18, 5  ;;  %v5525_v35 = vunpack.c.l.b16 %v4923_v13  ;;  %v4955_v57 = vor.u32 %v4954_v15, %v4951_v21  ;;  %v10122_v0 = vld [vmem:[#allocation3 + $0x84] sm:$0xff]  ;;  %v5285_v13 = vld [vmem:[#allocation3 + $0x18] sm:$0xe] }
 0x1bc   : > { %v554_v49 = vpack.c.bf16 %v522_v36, %v522_v36  ;;  %v4964_v26 = vrot.slane %v4962_v31, 4  ;;  %v4968_v60 = vshll.u32 %v4886_v48, 16  ;;  %v9544_v8 = vrot.slane %v5286_v46, 9  ;;  %v3176_v31 = vpop.permute.xlu1 %3175  ;;  %v10396_v46 = vld [vmem:[%s10975_s18 + $0x58] sm:$0xff]  }
 0x1bd   : > { %3860 = vmatmul.bf16.gmra.mxu3 %v2363_v54  ;;  %v739_v19 = vshrl.u32 %v553_v22, 16  ;;  %v742_v40 = vshll.u32 %v553_v22, 16  ;;  %v5556_v16 = vpack.c.b16 %v5525_v35, %v5524_v41  ;;  %v4956_v3 = vrot.slane %v4955_v57, 4  ;;  %v3415_v36 = vpop.f32.mrf.mxu0 }
 0x1be   : > { %v747_v25 = vshrl.u32 %v554_v49, 16  ;;  %v750_v38 = vshll.u32 %v554_v49, 16  ;;  %v4965_v51 = vor.u32 %v4964_v26, %v4960_v12  ;;  %v4970_v1 = vrot.slane %v4968_v60, 5  ;;  %v3256_v49 = vpop.permute.xlu2 %3255 }
 0x1bf   : > { %v741_v53 = vrot.slane %v739_v19, 7  ;;  %5572 = vrot.lane.b32.xlu2 %v5556_v16, %s10445_s26  ;;  %v4961_v7 = vsel %vm10520_vm4, %v4956_v3, %v4960_v12  ;;  %v5364_v33 = vrot.slane %v11728_v58, 5  ;;  %v3648_v58 = vpop.f32.mrf.mxu1  ;;  %v5367_v12 = vrot.slane %v4886_v48, 5  ;;  %v3737_v19 = vpop.f32.mrf.mxu2 }
 0x1c0   : > { %3771 = vmatmul.bf16.gmra.mxu2 %v2299_v34  ;;  %v749_v39 = vrot.slane %v747_v25, 7  ;;  %v4966_v18 = vrot.slane %v4965_v51, 4  ;;  %v5528_v62 = vunpack.c.l.b16 %v4961_v7  ;;  %v3649_v60 = vadd.f32 %v3648_v58, %v3415_v36  ;;  %v3826_v16 = vpop.f32.mrf.mxu3 }
 0x1c1   : > { %v744_v54 = vor.u32 %v742_v40, %v741_v53  ;;  %v745_v32 = vrot.slane %v741_v53, 4  ;;  %v5365_v34 = vsel %vm10562_vm7, %v9544_v8, %v5364_v33  ;;  %v5366_v11 = vrot.slane %v5364_v33, 4 }
 0x1c2   : > { %v752_v21 = vor.u32 %v750_v38, %v749_v39  ;;  %v754_v15 = vrot.slane %v749_v39, 4  ;;  %v4971_v22 = vsel %vm10520_vm4, %v4966_v18, %v4970_v1  ;;  %v5608_v35 = vunpack.c.l.b16 %v5365_v34  ;;  %v11783_v18 = vld [vmem:[%s10975_s18 + $0x60] sm:$0xff]  }
 0x1c3   : > { %v965_v41 = vsel %vm11027_vm6, %v744_v54, %v964_v29  ;;  %v5529_v40 = vunpack.c.l.b16 %v4971_v22  ;;  %v5368_v25 = vsel %vm10562_vm7, %v5366_v11, %v5367_v12  ;;  %v3301_v48 = vsel %vm3265_vm14, %v10122_v0, %v3176_v31 }
 0x1c4   : > { %v753_v57 = vsel %vm10692_vm11, %v745_v32, %v752_v21  ;;  %966 = vst [vmem:[#allocation2 + $0x84] sm:$0xf] %v965_v41  ;;  %v969_v26 = vsel %vm11033_vm9, %v754_v15, %v968_v45  ;;  %v9543_v38 = vrot.slane %v5285_v13, 9  ;;  %v5357_v3 = vrot.slane %v11645_v37, 5 }
 0x1c5   : > { %967 = vst [vmem:[#allocation2 + $0x88] sm:$0xf] %v753_v57  ;;  %v5558_v53 = vpack.c.b16 %v5529_v40, %v5528_v62  ;;  %v5609_v51 = vunpack.c.l.b16 %v5368_v25  ;;  %v3738_v1 = vadd.f32 %v3737_v19, %v3649_v60  ;;  %v3338_v39 = vsel %vm3314_vm1, %v3301_v48, %v3256_v49 }
 0x1c6   : > { %970 = vst [vmem:[#allocation2 + $0x8c] sm:$0x1] %v969_v26  ;;  %9313 = vmatmul.msk.bf16.gmra.mxu0 %vm3354_vm2, %v3338_v39  ;;  %v5358_v29 = vsel %vm10562_vm7, %v9543_v38, %v5357_v3  ;;  %v5359_v7 = vrot.slane %v5357_v3, 4  ;;  %v5360_v8 = vrot.slane %v11659_v6, 5  ;;  %v10288_v33 = vunpack.c.l.bf16 %v10396_v46 }
 0x1c7   : > { %5576 = vrot.lane.b32.xlu0 %v5558_v53, %s10445_s26  ;;  %v5638_v54 = vpack.c.b16 %v5609_v51, %v5608_v35  ;;  %v11780_v37 = vadd.f32 %v3826_v16, %v3738_v1  ;;  %v5606_v32 = vunpack.c.l.b16 %v5358_v29  ;;  %v10289_v45 = vunpack.c.h.bf16 %v10396_v46  ;;  %v11793_v25 = vpop.f32.mrf.mxu1  ;;  %v11795_v48 = vpop.f32.mrf.mxu2 }
 0x1c8   : > { %v5361_v62 = vsel %vm10562_vm7, %v5359_v7, %v5360_v8  ;;  %v455_v0 = vmul.f32 %v11697_v61, %v10288_v33  ;;  %v10292_v36 = vunpack.c.l.bf16 %v11783_v18  ;;  %13736 = vst [vmem:[#allocation18_spill] sm:$0xff] %v11793_v25  ;;  %v11800_v1 = vpop.f32.mrf.mxu3  ;;  %v11802_v8 = vld [vmem:[#allocation3 + $0x34] sm:$0xf]  ;;  %v10293_v33 = vunpack.c.h.bf16 %v11783_v18 }
 0x1c9   : > { %5656 = vrot.lane.b32.xlu1 %v5638_v54, %s10446_s27  ;;  %v5607_v21 = vunpack.c.l.b16 %v5361_v62  ;;  %v456_v6 = vmul.f32 %v11697_v61, %v10289_v45  ;;  %13737 = vst [vmem:[#allocation19_spill] sm:$0xff] %v11795_v48  ;;  %v10161_v18 = vld [vmem:[%s13704_s4 + $0x148] sm:$0xff] }
 0x1ca   : > { %v491_v11 = vadd.f32 %v11736_v4, %v455_v0  ;;  %13738 = vst [vmem:[#allocation20_spill] sm:$0xff] %v11800_v1  ;;  %v11807_v0 = vpop.f32.mrf.mxu0  ;;  %6224 = vmatpush.bf16.msrb.mxu3 %v10161_v18 }
 0x1cb   : > { %v1585_v15 = vld [vmem:[#allocation2 + $0x84] sm:$0xf]  ;;  %v5637_v12 = vpack.c.b16 %v5607_v21, %v5606_v32  ;;  %v492_v19 = vadd.f32 %v11736_v4, %v456_v6  ;;  %13739 = vst [vmem:[#allocation21_spill] sm:$0xff] %v11807_v0  ;;  %v10153_v21 = vld [vmem:[%s13704_s4 + $0x108] sm:$0xff] }
 0x1cc   : > { %v2009_v34 = vld [vmem:[#allocation2 + $0x84] sm:$0xe]  ;;  %v1586_v31 = vld [vmem:[#allocation2 + $0x88] sm:$0xf]  ;;  %v1879_v13 = vshrl.u32 %v1585_v15, 16  ;;  %v1882_v41 = vshll.u32 %v1585_v15, 16  ;;  %6135 = vmatpush.bf16.msrb.mxu2 %v10153_v21 }
 0x1cd   : > { %v9149_v58 = vrot.slane %v2009_v34, 9  ;;  %v10082_v22 = vld [vmem:[#allocation2 + $0x84] sm:$0xff]  ;;  %v1606_v35 = vld [vmem:[#allocation2 + $0x8c] sm:$0x1]  ;;  %v1888_v49 = vshll.u32 %v1586_v31, 16  ;;  %v1892_v57 = vshrl.u32 %v1586_v31, 16  ;;  %5654 = vrot.lane.b32.xlu2 %v5637_v12, %s10446_s27 }
 0x1ce   : > { %v2144_v26 = vrot.slane %v1586_v31, 5  ;;  %v1881_v40 = vrot.slane %v1879_v13, 4  ;;  %v1884_v60 = vrot.slane %v1882_v41, 5  ;;  %v1898_v46 = vshll.u32 %v1606_v35, 16  ;;  %3687 = vmatmul.bf16.gmra.mxu1 %v10082_v22  ;;  %v5287_v6 = vld [vmem:[#allocation3 + $0x30] sm:$0xe] }
 0x1cf   : > { %v2147_v16 = vrot.slane %v1606_v35, 5  ;;  %v1890_v38 = vrot.slane %v1888_v49, 5  ;;  %v1894_v3 = vrot.slane %v1892_v57, 4  ;;  %v523_v7 = vmax.f32 %v491_v11, 0.0  ;;  %v10145_v31 = vld [vmem:[%s13704_s4 + $0xc8] sm:$0xff]  ;;  %v3742_v18 = vpop.f32.mrf.mxu2 }
 0x1d0   : > { %v2145_v53 = vsel %vm10562_vm7, %v9149_v58, %v2144_v26  ;;  %v2146_v51 = vrot.slane %v2144_v26, 4  ;;  %v1885_v39 = vor.u32 %v1884_v60, %v1881_v40  ;;  %v1900_v32 = vrot.slane %v1898_v46, 5  ;;  %6046 = vmatpush.bf16.msrb.mxu1 %v10145_v31 }
 0x1d1   : > { %v2343_v29 = vunpack.c.l.b16 %v2145_v53  ;;  %v1895_v54 = vor.u32 %v1894_v3, %v1890_v38  ;;  %v524_v62 = vmax.f32 %v492_v19, 0.0  ;;  %v555_v11 = vpack.c.bf16 %v523_v7, %v523_v7  ;;  %v11822_v19 = vld [vmem:[#allocation3 + $0x38] sm:$0x1] }
 0x1d2   : > { %v2148_v45 = vsel %vm10562_vm7, %v2146_v51, %v2147_v16  ;;  %v1886_v15 = vrot.slane %v1885_v39, 4  ;;  %v457_v13 = vmul.f32 %v11697_v61, %v10292_v36  ;;  %v9545_v22 = vrot.slane %v5287_v6, 9  ;;  %v10123_v16 = vld [vmem:[#allocation3 + $0x90] sm:$0xff]  ;;  %v3178_v51 = vpop.permute.xlu0 %3177  ;;  %v971_v7 = vld [vmem:[#allocation2 + $0x90] sm:$0xf] }
 0x1d3   : > { %v2344_v34 = vunpack.c.l.b16 %v2148_v45  ;;  %v1896_v41 = vrot.slane %v1895_v54, 4  ;;  %v556_v58 = vpack.c.bf16 %v524_v62, %v524_v62  ;;  %v5371_v12 = vrot.slane %v11802_v8, 5  ;;  %v3258_v62 = vpop.permute.xlu1 %3257 }
 0x1d4   : > { %v1891_v35 = vsel %vm10520_vm4, %v1886_v15, %v1890_v38  ;;  %v756_v57 = vshrl.u32 %v555_v11, 16  ;;  %v759_v26 = vshll.u32 %v555_v11, 16  ;;  %v458_v39 = vmul.f32 %v11697_v61, %v10293_v33  ;;  %v3653_v11 = vpop.f32.mrf.mxu1 }
 0x1d5   : > { %v2364_v49 = vpack.c.b16 %v2344_v34, %v2343_v29  ;;  %v1901_v40 = vsel %vm10520_vm4, %v1896_v41, %v1900_v32  ;;  %v2279_v36 = vunpack.c.l.b16 %v1891_v35  ;;  %v764_v60 = vshrl.u32 %v556_v58, 16  ;;  %v975_v34 = vld [vmem:[#allocation2 + $0x98] sm:$0x1]  ;;  %v3420_v35 = vpop.f32.mrf.mxu0 }
 0x1d6   : > { %v767_v46 = vshll.u32 %v556_v58, 16  ;;  %v2280_v3 = vunpack.c.l.b16 %v1901_v40  ;;  %v758_v53 = vrot.slane %v756_v57, 7  ;;  %v5372_v38 = vsel %vm10562_vm7, %v9545_v22, %v5371_v12  ;;  %v3831_v22 = vpop.f32.mrf.mxu3  ;;  %v4860_v40 = vld [vmem:[#allocation3 + $0x3c] sm:$0xf] }
 0x1d7   : > { %3865 = vmatmul.bf16.gmra.mxu3 %v2364_v49  ;;  %v766_v29 = vrot.slane %v764_v60, 7  ;;  %v5373_v54 = vrot.slane %v5371_v12, 4  ;;  %v5374_v45 = vrot.slane %v11822_v19, 5  ;;  %v493_v32 = vadd.f32 %v11736_v4, %v457_v13 }
 0x1d8   : > { %v2300_v21 = vpack.c.b16 %v2280_v3, %v2279_v36  ;;  %v761_v6 = vor.u32 %v759_v26, %v758_v53  ;;  %v762_v15 = vrot.slane %v758_v53, 4  ;;  %v5610_v31 = vunpack.c.l.b16 %v5372_v38  ;;  %v11837_v36 = vld [vmem:[#allocation3 + $0x40] sm:$0xf]  ;;  %v11846_v53 = vld [vmem:[%s10975_s18 + $0x68] sm:$0xff]  }
 0x1d9   : > { %v769_v41 = vor.u32 %v767_v46, %v766_v29  ;;  %v771_v58 = vrot.slane %v766_v29, 4  ;;  %v5375_v33 = vsel %vm10562_vm7, %v5373_v54, %v5374_v45  ;;  %v3304_v12 = vsel %vm3265_vm14, %v10123_v16, %v3178_v51 }
 0x1da   : > { %3776 = vmatmul.bf16.gmra.mxu2 %v2300_v21  ;;  %v972_v13 = vsel %vm11027_vm6, %v761_v6, %v971_v7  ;;  %v5611_v49 = vunpack.c.l.b16 %v5375_v33  ;;  %v3654_v57 = vadd.f32 %v3653_v11, %v3420_v35  ;;  %v3340_v26 = vsel %vm3314_vm1, %v3304_v12, %v3258_v62 }
 0x1db   : > { %v770_v60 = vsel %vm10692_vm11, %v762_v15, %v769_v41  ;;  %973 = vst [vmem:[#allocation2 + $0x90] sm:$0xf] %v972_v13  ;;  %v976_v46 = vsel %vm11033_vm9, %v771_v58, %v975_v34  ;;  %9314 = vmatmul.msk.bf16.gmra.mxu0 %vm3354_vm2, %v3340_v26  ;;  %v494_v16 = vadd.f32 %v11736_v4, %v458_v39  ;;  %v525_v3 = vmax.f32 %v493_v32, 0.0  ;;  %v11853_v39 = vld [vmem:[#allocation3 + $0x44] sm:$0x1] }
 0x1dc   : > { %974 = vst [vmem:[#allocation2 + $0x94] sm:$0xf] %v770_v60  ;;  %v5639_v38 = vpack.c.b16 %v5611_v49, %v5610_v31  ;;  %v3743_v51 = vadd.f32 %v3742_v18, %v3654_v57  ;;  %v4997_v29 = vshrl.u32 %v4860_v40, 16  ;;  %v5000_v7 = vshll.u32 %v4860_v40, 16  ;;  %v11861_v40 = vpop.f32.mrf.mxu1  ;;  %v11863_v60 = vpop.f32.mrf.mxu2 }
 0x1dd   : > { %977 = vst [vmem:[#allocation2 + $0x98] sm:$0x1] %v976_v46  ;;  %v526_v54 = vmax.f32 %v494_v16, 0.0  ;;  %v557_v45 = vpack.c.bf16 %v525_v3, %v525_v3  ;;  %v5006_v62 = vshll.u32 %v11837_v36, 16  ;;  %v5010_v21 = vshrl.u32 %v11837_v36, 16 }
 0x1de   : > { %5658 = vrot.lane.b32.xlu0 %v5639_v38, %s10446_s27  ;;  %v11851_v6 = vadd.f32 %v3831_v22, %v3743_v51  ;;  %v4999_v32 = vrot.slane %v4997_v29, 4  ;;  %v5002_v15 = vrot.slane %v5000_v7, 5  ;;  %v10296_v34 = vunpack.c.l.bf16 %v11846_v53  ;;  %v11859_v22 = vpop.f32.mrf.mxu0  ;;  %13741 = vst [vmem:[#allocation23_spill] sm:$0xff] %v11861_v40 }
 0x1df   : > { %v558_v11 = vpack.c.bf16 %v526_v54, %v526_v54  ;;  %v773_v18 = vshrl.u32 %v557_v45, 16  ;;  %v11856_v31 = vrot.slane %v5006_v62, 5  ;;  %v776_v41 = vshll.u32 %v557_v45, 16  ;;  %13740 = vst [vmem:[#allocation22_spill] sm:$0xff] %v11859_v22  ;;  %v11871_v62 = vpop.f32.mrf.mxu3 }
 0x1e0   : > { %v5003_v58 = vor.u32 %v5002_v15, %v4999_v32  ;;  %v5012_v33 = vrot.slane %v5010_v21, 4  ;;  %v5016_v12 = vshll.u32 %v11853_v39, 16  ;;  %13742 = vst [vmem:[#allocation24_spill] sm:$0xff] %v11863_v60  ;;  %v10297_v3 = vunpack.c.h.bf16 %v11846_v53 }
 0x1e1   : > { %v775_v35 = vrot.slane %v773_v18, 7  ;;  %v781_v13 = vshrl.u32 %v558_v11, 16  ;;  %v784_v49 = vshll.u32 %v558_v11, 16  ;;  %v11869_v38 = vmul.f32 %v11697_v61, %v10296_v34  ;;  %13743 = vst [vmem:[#allocation25_spill] sm:$0xff] %v11871_v62  ;;  %v978_v34 = vld [vmem:[#allocation2 + $0x9c] sm:$0xf] }
 0x1e2   : > { %v1587_v57 = vld [vmem:[#allocation2 + $0x90] sm:$0xf]  ;;  %v5004_v46 = vrot.slane %v5003_v58, 4  ;;  %v11865_v16 = vrot.slane %v5016_v12, 5  ;;  %v5013_v21 = vor.u32 %v5012_v33, %v11856_v31 }
 0x1e3   : > { %v2010_v26 = vld [vmem:[#allocation2 + $0x90] sm:$0xe]  ;;  %v1588_v51 = vld [vmem:[#allocation2 + $0x94] sm:$0xf]  ;;  %v1903_v29 = vshrl.u32 %v1587_v57, 16  ;;  %v1906_v7 = vshll.u32 %v1587_v57, 16  ;;  %v778_v58 = vor.u32 %v776_v41, %v775_v35 }
 0x1e4   : > { %v9150_v54 = vrot.slane %v2010_v26, 9  ;;  %v10083_v45 = vld [vmem:[#allocation2 + $0x90] sm:$0xff]  ;;  %v1607_v32 = vld [vmem:[#allocation2 + $0x98] sm:$0x1]  ;;  %v1912_v15 = vshll.u32 %v1588_v51, 16  ;;  %v1916_v11 = vshrl.u32 %v1588_v51, 16 }
 0x1e5   : > { %v2151_v18 = vrot.slane %v1588_v51, 5  ;;  %v1905_v12 = vrot.slane %v1903_v29, 4  ;;  %v1908_v60 = vrot.slane %v1906_v7, 5  ;;  %v1922_v53 = vshll.u32 %v1607_v32, 16  ;;  %3692 = vmatmul.bf16.gmra.mxu1 %v10083_v45  ;;  %v982_v29 = vld [vmem:[#allocation2 + $0xa4] sm:$0x1] }
 0x1e6   : > { %v2154_v40 = vrot.slane %v1607_v32, 5  ;;  %v1914_v22 = vrot.slane %v1912_v15, 5  ;;  %v1918_v1 = vrot.slane %v1916_v11, 4  ;;  %v779_v33 = vrot.slane %v775_v35, 4 }
 0x1e7   : > { %v2152_v57 = vsel %vm10562_vm7, %v9150_v54, %v2151_v18  ;;  %v2153_v26 = vrot.slane %v2151_v18, 4  ;;  %v1909_v62 = vor.u32 %v1908_v60, %v1905_v12  ;;  %v783_v25 = vrot.slane %v781_v13, 7  ;;  %v10124_v54 = vld [vmem:[#allocation3 + $0x9c] sm:$0xff]  ;;  %v3180_v13 = vpop.permute.xlu2 %3179  ;;  %v3425_v60 = vpop.f32.mrf.mxu0 }
 0x1e8   : > { %v2345_v48 = vunpack.c.l.b16 %v2152_v57  ;;  %v1919_v0 = vor.u32 %v1918_v1, %v1914_v22  ;;  %v1924_v56 = vrot.slane %v1922_v53, 5  ;;  %v979_v51 = vsel %vm11027_vm6, %v778_v58, %v978_v34  ;;  %v3747_v12 = vpop.f32.mrf.mxu2 }
 0x1e9   : > { %v2155_v41 = vsel %vm10562_vm7, %v2153_v26, %v2154_v40  ;;  %v1910_v7 = vrot.slane %v1909_v62, 4  ;;  %v786_v32 = vor.u32 %v784_v49, %v783_v25  ;;  %v788_v15 = vrot.slane %v783_v25, 4  ;;  %980 = vst [vmem:[#allocation2 + $0x9c] sm:$0xf] %v979_v51  ;;  %v4858_v62 = vld [vmem:[#allocation3 + $0x30] sm:$0xf] }
 0x1ea   : > { %v2346_v45 = vunpack.c.l.b16 %v2155_v41  ;;  %v1920_v11 = vrot.slane %v1919_v0, 4  ;;  %v5009_v35 = vsel %vm10520_vm4, %v5004_v46, %v11856_v31  ;;  %v5014_v1 = vrot.slane %v5013_v21, 4  ;;  %v3260_v0 = vpop.permute.xlu0 %3259  ;;  %v3658_v21 = vpop.f32.mrf.mxu1 }
 0x1eb   : > { %v460_v40 = vmul.f32 %v11697_v61, %v10297_v3  ;;  %v1915_v18 = vsel %vm10520_vm4, %v1910_v7, %v1914_v22  ;;  %v787_v49 = vsel %vm10692_vm11, %v779_v33, %v786_v32  ;;  %v983_v25 = vsel %vm11033_vm9, %v788_v15, %v982_v29  ;;  %v3836_v3 = vpop.f32.mrf.mxu3 }
 0x1ec   : > { %v2365_v58 = vpack.c.b16 %v2346_v45, %v2345_v48  ;;  %v1925_v31 = vsel %vm10520_vm4, %v1920_v11, %v1924_v56  ;;  %v2281_v46 = vunpack.c.l.b16 %v1915_v18  ;;  %981 = vst [vmem:[#allocation2 + $0xa0] sm:$0xf] %v787_v49  ;;  %v5019_v61 = vsel %vm10520_vm4, %v5014_v1, %v11865_v16 }
 0x1ed   : > { %v5532_v48 = vunpack.c.l.b16 %v5009_v35  ;;  %v2282_v22 = vunpack.c.l.b16 %v1925_v31  ;;  %984 = vst [vmem:[#allocation2 + $0xa4] sm:$0x1] %v983_v25  ;;  %v5533_v53 = vunpack.c.l.b16 %v5019_v61  ;;  %v3307_v34 = vsel %vm3265_vm14, %v10124_v54, %v3180_v13 }
 0x1ee   : > { %3870 = vmatmul.bf16.gmra.mxu3 %v2365_v58  ;;  %v3659_v57 = vadd.f32 %v3658_v21, %v3425_v60  ;;  %v3342_v26 = vsel %vm3314_vm1, %v3307_v34, %v3260_v0  ;;  %v4973_v56 = vshrl.u32 %v4858_v62, 16  ;;  %v4976_v33 = vshll.u32 %v4858_v62, 16 }
 0x1ef   : > { %v4982_v41 = vshll.u32 %v11802_v8, 16  ;;  %v2301_v51 = vpack.c.b16 %v2282_v22, %v2281_v46  ;;  %v5560_v29 = vpack.c.b16 %v5533_v53, %v5532_v48  ;;  %9315 = vmatmul.msk.bf16.gmra.mxu0 %vm3354_vm2, %v3342_v26  ;;  %v4986_v16 = vshrl.u32 %v11802_v8, 16 }
 0x1f0   : > { %v3748_v7 = vadd.f32 %v3747_v12, %v3659_v57  ;;  %v1589_v45 = vld [vmem:[#allocation2 + $0x9c] sm:$0xf]  ;;  %v4975_v15 = vrot.slane %v4973_v56, 4  ;;  %v4978_v11 = vrot.slane %v4976_v33, 5  ;;  %v495_v54 = vadd.f32 %v11736_v4, %v11869_v38 }
 0x1f1   : > { %v2011_v32 = vld [vmem:[#allocation2 + $0x9c] sm:$0xe]  ;;  %3781 = vmatmul.bf16.gmra.mxu2 %v2301_v51  ;;  %v1927_v35 = vshrl.u32 %v1589_v45, 16  ;;  %v1930_v1 = vshll.u32 %v1589_v45, 16  ;;  %5580 = vrot.lane.b32.xlu1 %v5560_v29, %s10445_s26  ;;  %v4984_v58 = vrot.slane %v4982_v41, 5  ;;  %v4988_v49 = vrot.slane %v4986_v16, 4 }
 0x1f2   : > { %v9151_v13 = vrot.slane %v2011_v32, 9  ;;  %v11903_v60 = vadd.f32 %v3836_v3, %v3748_v7  ;;  %v4979_v18 = vor.u32 %v4978_v11, %v4975_v15  ;;  %v4992_v8 = vshll.u32 %v11822_v19, 16  ;;  %v11909_v41 = vpop.f32.mrf.mxu1 }
 0x1f3   : > { %v1590_v25 = vld [vmem:[#allocation2 + $0xa0] sm:$0xf]  ;;  %v1929_v0 = vrot.slane %v1927_v35, 4  ;;  %v1932_v62 = vrot.slane %v1930_v1, 5  ;;  %v496_v46 = vadd.f32 %v11736_v4, %v460_v40  ;;  %v527_v38 = vmax.f32 %v495_v54, 0.0  ;;  %13744 = vst [vmem:[#allocation26_spill] sm:$0xff] %v11909_v41  ;;  %v11911_v40 = vpop.f32.mrf.mxu2  ;;  %v11913_v16 = vpop.f32.mrf.mxu3 }
 0x1f4   : > { %v10084_v31 = vld [vmem:[#allocation2 + $0x9c] sm:$0xff]  ;;  %v1608_v21 = vld [vmem:[#allocation2 + $0xa4] sm:$0x1]  ;;  %v1936_v12 = vshll.u32 %v1590_v25, 16  ;;  %v1940_v61 = vshrl.u32 %v1590_v25, 16  ;;  %v2158_v48 = vrot.slane %v1590_v25, 5  ;;  %v4989_v57 = vor.u32 %v4988_v49, %v4984_v58  ;;  %v11921_v49 = vpop.f32.mrf.mxu0 }
 0x1f5   : > { %v4980_v22 = vrot.slane %v4979_v18, 4  ;;  %v1933_v53 = vor.u32 %v1932_v62, %v1929_v0  ;;  %v1946_v3 = vshll.u32 %v1608_v21, 16  ;;  %v2161_v34 = vrot.slane %v1608_v21, 5  ;;  %3697 = vmatmul.bf16.gmra.mxu1 %v10084_v31  ;;  %13745 = vst [vmem:[#allocation27_spill] sm:$0xff] %v11911_v40  ;;  %v4862_v25 = vld [vmem:[#allocation3 + $0x48] sm:$0xf] }
 0x1f6   : > { %v1938_v26 = vrot.slane %v1936_v12, 5  ;;  %v1942_v56 = vrot.slane %v1940_v61, 4  ;;  %v2159_v19 = vsel %vm10562_vm7, %v9151_v13, %v2158_v48  ;;  %v2160_v33 = vrot.slane %v2158_v48, 4  ;;  %13746 = vst [vmem:[#allocation28_spill] sm:$0xff] %v11913_v16  ;;  %v10152_v0 = vld [vmem:[%s13704_s4 + $0x100] sm:$0xff] }
 0x1f7   : > { %v1934_v51 = vrot.slane %v1933_v53, 4  ;;  %v1948_v29 = vrot.slane %v1946_v3, 5  ;;  %v2347_v7 = vunpack.c.l.b16 %v2159_v19  ;;  %v4985_v45 = vsel %vm10520_vm4, %v4980_v22, %v4984_v58  ;;  %13747 = vst [vmem:[#allocation29_spill] sm:$0xff] %v11921_v49  ;;  %6136 = vmatpush.bf16.msrb.mxu2 %v10152_v0 }
 0x1f8   : > { %v1943_v32 = vor.u32 %v1942_v56, %v1938_v26  ;;  %v2162_v15 = vsel %vm10562_vm7, %v2160_v33, %v2161_v34  ;;  %v4990_v11 = vrot.slane %v4989_v57, 4  ;;  %v4994_v54 = vrot.slane %v4992_v8, 5  ;;  %v10160_v8 = vld [vmem:[%s13704_s4 + $0x140] sm:$0xff]  ;;  %v985_v33 = vld [vmem:[#allocation2 + $0xa8] sm:$0xf] }
 0x1f9   : > { %v1939_v35 = vsel %vm10520_vm4, %v1934_v51, %v1938_v26  ;;  %v2348_v1 = vunpack.c.l.b16 %v2162_v15  ;;  %v5530_v13 = vunpack.c.l.b16 %v4985_v45  ;;  %v528_v18 = vmax.f32 %v496_v46, 0.0  ;;  %v10144_v46 = vld [vmem:[%s13704_s4 + $0xc0] sm:$0xff]  ;;  %6225 = vmatpush.bf16.msrb.mxu3 %v10160_v8  ;;  %v11937_v51 = vld [vmem:[%s10975_s18 + $0x70] sm:$0xff]   ;;  %v4889_v45 = vld [vmem:[#allocation3 + $0x50] sm:$0x1] }
 0x1fa   : > { %v1944_v58 = vrot.slane %v1943_v32, 4  ;;  %v4995_v62 = vsel %vm10520_vm4, %v4990_v11, %v4994_v54  ;;  %v559_v31 = vpack.c.bf16 %v527_v38, %v527_v38  ;;  %v2283_v21 = vunpack.c.l.b16 %v1939_v35  ;;  %v4863_v38 = vld [vmem:[#allocation3 + $0x4c] sm:$0xf]  ;;  %6047 = vmatpush.bf16.msrb.mxu1 %v10144_v46 }
 0x1fb   : > { %v2366_v12 = vpack.c.b16 %v2348_v1, %v2347_v7  ;;  %v5531_v61 = vunpack.c.l.b16 %v4995_v62  ;;  %v560_v48 = vpack.c.bf16 %v528_v18, %v528_v18  ;;  %v5021_v34 = vshrl.u32 %v4862_v25, 16  ;;  %v5289_v1 = vld [vmem:[#allocation3 + $0x48] sm:$0xe]  ;;  %v3752_v62 = vpop.f32.mrf.mxu2 }
 0x1fc   : > { %v1949_v22 = vsel %vm10520_vm4, %v1944_v58, %v1948_v29  ;;  %v790_v53 = vshrl.u32 %v559_v31, 16  ;;  %v793_v3 = vshll.u32 %v559_v31, 16  ;;  %v5024_v15 = vshll.u32 %v4862_v25, 16  ;;  %v989_v58 = vld [vmem:[#allocation2 + $0xb0] sm:$0x1] }
 0x1fd   : > { %v2284_v57 = vunpack.c.l.b16 %v1949_v22  ;;  %v5559_v26 = vpack.c.b16 %v5531_v61, %v5530_v13  ;;  %v798_v56 = vshrl.u32 %v560_v48, 16  ;;  %v801_v19 = vshll.u32 %v560_v48, 16  ;;  %v3663_v13 = vpop.f32.mrf.mxu1  ;;  %v3841_v61 = vpop.f32.mrf.mxu3  ;;  %v10125_v22 = vld [vmem:[#allocation3 + $0xa8] sm:$0xff] }
 0x1fe   : > { %3875 = vmatmul.bf16.gmra.mxu3 %v2366_v12  ;;  %v792_v7 = vrot.slane %v790_v53, 7  ;;  %v5023_v32 = vrot.slane %v5021_v34, 4  ;;  %v5030_v54 = vshll.u32 %v4863_v38, 16  ;;  %v5034_v35 = vshrl.u32 %v4863_v38, 16  ;;  %v3430_v48 = vpop.f32.mrf.mxu0 }
 0x1ff   : > { %v2302_v11 = vpack.c.b16 %v2284_v57, %v2283_v21  ;;  %5578 = vrot.lane.b32.xlu2 %v5559_v26, %s10445_s26  ;;  %v800_v29 = vrot.slane %v798_v56, 7  ;;  %v5026_v31 = vrot.slane %v5024_v15, 5  ;;  %v10300_v8 = vunpack.c.l.bf16 %v11937_v51  ;;  %v3182_v26 = vpop.permute.xlu1 %3181 }
 0x200   : > { %v795_v18 = vor.u32 %v793_v3, %v792_v7  ;;  %v796_v0 = vrot.slane %v792_v7, 4  ;;  %v5032_v25 = vrot.slane %v5030_v54, 5  ;;  %v5036_v21 = vrot.slane %v5034_v35, 4 }
 0x201   : > { %3786 = vmatmul.bf16.gmra.mxu2 %v2302_v11  ;;  %v803_v46 = vor.u32 %v801_v19, %v800_v29  ;;  %v805_v12 = vrot.slane %v800_v29, 4  ;;  %v5027_v34 = vor.u32 %v5026_v31, %v5023_v32  ;;  %v5040_v3 = vshll.u32 %v4889_v45, 16  ;;  %v3262_v11 = vpop.permute.xlu2 %3261  ;;  %v5288_v29 = vld [vmem:[#allocation3 + $0x3c] sm:$0xe] }
 0x202   : > { %v986_v53 = vsel %vm11027_vm6, %v795_v18, %v985_v33  ;;  %v9547_v57 = vrot.slane %v5289_v1, 9  ;;  %v5037_v7 = vor.u32 %v5036_v21, %v5032_v25  ;;  %v5385_v15 = vrot.slane %v4863_v38, 5 }
 0x203   : > { %v804_v56 = vsel %vm10692_vm11, %v796_v0, %v803_v46  ;;  %987 = vst [vmem:[#allocation2 + $0xa8] sm:$0xf] %v986_v53  ;;  %v990_v19 = vsel %vm11033_vm9, %v805_v12, %v989_v58  ;;  %v5028_v54 = vrot.slane %v5027_v34, 4  ;;  %v5042_v35 = vrot.slane %v5040_v3, 5  ;;  %v10433_v3 = vld [vmem:[%s13702_s2] ss:$0 sm:$0xff] }
 0x204   : > { %988 = vst [vmem:[#allocation2 + $0xac] sm:$0xf] %v804_v56  ;;  %v5388_v16 = vrot.slane %v4889_v45, 5  ;;  %v3664_v33 = vadd.f32 %v3663_v13, %v3430_v48  ;;  %v5038_v32 = vrot.slane %v5037_v7, 4  ;;  %v5386_v1 = vsel %vm10562_vm7, %v9547_v57, %v5385_v15 }
 0x205   : > { %991 = vst [vmem:[#allocation2 + $0xb0] sm:$0x1] %v990_v19  ;;  %v5387_v18 = vrot.slane %v5385_v15, 4  ;;  %v3310_v0 = vsel %vm3265_vm14, %v10125_v22, %v3182_v26  ;;  %v5033_v58 = vsel %vm10520_vm4, %v5028_v54, %v5032_v25  ;;  %v5614_v31 = vunpack.c.l.b16 %v5386_v1  ;;  %v11966_v7 = vpop.f32.mrf.mxu1  ;;  %v11970_v54 = vpop.f32.mrf.mxu2 }
 0x206   : > { %v3753_v38 = vadd.f32 %v3752_v62, %v3664_v33  ;;  %v3344_v46 = vsel %vm3314_vm1, %v3310_v0, %v3262_v11  ;;  %v5043_v12 = vsel %vm10520_vm4, %v5038_v32, %v5042_v35  ;;  %v5534_v45 = vunpack.c.l.b16 %v5033_v58  ;;  %v11972_v35 = vpop.f32.mrf.mxu3 }
 0x207   : > { %v5389_v13 = vsel %vm10562_vm7, %v5387_v18, %v5388_v16  ;;  %9316 = vmatmul.msk.bf16.gmra.mxu0 %vm3354_vm2, %v3344_v46  ;;  %v9546_v21 = vrot.slane %v5288_v29, 9  ;;  %v5535_v48 = vunpack.c.l.b16 %v5043_v12  ;;  %v5378_v25 = vrot.slane %v11837_v36, 5 }
 0x208   : > { %v5615_v53 = vunpack.c.l.b16 %v5389_v13  ;;  %v11958_v22 = vadd.f32 %v3841_v61, %v3753_v38  ;;  %v5381_v62 = vrot.slane %v11853_v39, 5  ;;  %v10301_v34 = vunpack.c.h.bf16 %v11937_v51 }
 0x209   : > { %v461_v57 = vmul.f32 %v10433_v3, %v10300_v8  ;;  %v5561_v56 = vpack.c.b16 %v5535_v48, %v5534_v45  ;;  %v5379_v61 = vsel %vm10562_vm7, %v9546_v21, %v5378_v25  ;;  %v5380_v15 = vrot.slane %v5378_v25, 4 }
 0x20a   : > { %13748 = vst [vmem:[#allocation30_spill] sm:$0xff] %v11958_v22  ;;  %v1591_v26 = vld [vmem:[#allocation2 + $0xa8] sm:$0xf]  ;;  %v5641_v19 = vpack.c.b16 %v5615_v53, %v5614_v31  ;;  %v5612_v8 = vunpack.c.l.b16 %v5379_v61 }
 0x20b   : > { %v2012_v16 = vld [vmem:[#allocation2 + $0xa8] sm:$0xe]  ;;  %v1592_v36 = vld [vmem:[#allocation2 + $0xac] sm:$0xf]  ;;  %v1951_v11 = vshrl.u32 %v1591_v26, 16  ;;  %v1954_v39 = vshll.u32 %v1591_v26, 16  ;;  %5582 = vrot.lane.b32.xlu0 %v5561_v56, %s10445_s26  ;;  %v5382_v0 = vsel %vm10562_vm7, %v5380_v15, %v5381_v62  ;;  %v462_v62 = vmul.f32 %v10433_v3, %v10301_v34 }
 0x20c   : > { %v9152_v29 = vrot.slane %v2012_v16, 9  ;;  %v10085_v51 = vld [vmem:[#allocation2 + $0xa8] sm:$0xff]  ;;  %v1609_v33 = vld [vmem:[#allocation2 + $0xb0] sm:$0x1]  ;;  %v1960_v32 = vshll.u32 %v1592_v36, 16  ;;  %v1964_v1 = vshrl.u32 %v1592_v36, 16  ;;  %5662 = vrot.lane.b32.xlu1 %v5641_v19, %s10446_s27  ;;  %v5613_v26 = vunpack.c.l.b16 %v5382_v0 }
 0x20d   : > { %v2165_v18 = vrot.slane %v1592_v36, 5  ;;  %v1953_v58 = vrot.slane %v1951_v11, 4  ;;  %v1956_v31 = vrot.slane %v1954_v39, 5  ;;  %v1970_v38 = vshll.u32 %v1609_v33, 16  ;;  %3702 = vmatmul.bf16.gmra.mxu1 %v10085_v51  ;;  %v11994_v0 = vld [vmem:[#allocation3 + $0x5c] sm:$0x1] }
 0x20e   : > { %v2168_v46 = vrot.slane %v1609_v33, 5  ;;  %v1962_v12 = vrot.slane %v1960_v32, 5  ;;  %v1966_v45 = vrot.slane %v1964_v1, 4  ;;  %v497_v19 = vadd.f32 %v11736_v4, %v461_v57 }
 0x20f   : > { %v2166_v13 = vsel %vm10562_vm7, %v9152_v29, %v2165_v18  ;;  %v2167_v21 = vrot.slane %v2165_v18, 4  ;;  %v1957_v48 = vor.u32 %v1956_v31, %v1953_v58  ;;  %v1972_v53 = vrot.slane %v1970_v38, 5  ;;  %v11984_v29 = vld [vmem:[#allocation3 + $0x58] sm:$0xf]  ;;  %v11992_v18 = vpop.f32.mrf.mxu0  ;;  %v5290_v58 = vld [vmem:[#allocation3 + $0x54] sm:$0xe] }
 0x210   : > { %v2349_v25 = vunpack.c.l.b16 %v2166_v13  ;;  %v1967_v16 = vor.u32 %v1966_v45, %v1962_v12  ;;  %v5640_v36 = vpack.c.b16 %v5613_v26, %v5612_v8  ;;  %v498_v39 = vadd.f32 %v11736_v4, %v462_v62  ;;  %v3668_v4 = vpop.f32.mrf.mxu1  ;;  %v10126_v31 = vld [vmem:[#allocation3 + $0xb4] sm:$0xff]  ;;  %v3184_v26 = vpop.permute.xlu0 %3183 }
 0x211   : > { %v2169_v56 = vsel %vm10562_vm7, %v2167_v21, %v2168_v46  ;;  %v1958_v61 = vrot.slane %v1957_v48, 4  ;;  %v529_v51 = vmax.f32 %v497_v19, 0.0  ;;  %v5392_v1 = vrot.slane %v11984_v29, 5  ;;  %v3757_v46 = vpop.f32.mrf.mxu2 }
 0x212   : > { %v2350_v15 = vunpack.c.l.b16 %v2169_v56  ;;  %v1968_v11 = vrot.slane %v1967_v16, 4  ;;  %5660 = vrot.lane.b32.xlu2 %v5640_v36, %s10446_s27  ;;  %v530_v57 = vmax.f32 %v498_v39, 0.0  ;;  %v9548_v45 = vrot.slane %v5290_v58, 9  ;;  %v3264_v16 = vpop.permute.xlu1 %3263 }
 0x213   : > { %v1963_v33 = vsel %vm10520_vm4, %v1958_v61, %v1962_v12  ;;  %v561_v8 = vpack.c.bf16 %v529_v51, %v529_v51  ;;  %v3846_v12 = vpop.f32.mrf.mxu3  ;;  %v5394_v13 = vrot.slane %v5392_v1, 4  ;;  %v3313_v19 = vsel %vm3265_vm14, %v10126_v31, %v3184_v26  ;;  %v3987_v61 = vld [vmem:[#allocation2 + $0xc] sm:$0xf]  ;;  %v3988_v51 = vld [vmem:[#allocation2 + $0x10] sm:$0xf] }
 0x214   : > { %v2367_v32 = vpack.c.b16 %v2350_v15, %v2349_v25  ;;  %v1973_v34 = vsel %vm10520_vm4, %v1968_v11, %v1972_v53  ;;  %v2285_v3 = vunpack.c.l.b16 %v1963_v33  ;;  %v562_v21 = vpack.c.bf16 %v530_v57, %v530_v57  ;;  %v992_v33 = vld [vmem:[#allocation2 + $0xb4] sm:$0xf] }
 0x215   : > { %v2286_v38 = vunpack.c.l.b16 %v1973_v34  ;;  %v807_v48 = vshrl.u32 %v561_v8, 16  ;;  %v810_v25 = vshll.u32 %v561_v8, 16  ;;  %v5395_v53 = vrot.slane %v11994_v0, 5 }
 0x216   : > { %3880 = vmatmul.bf16.gmra.mxu3 %v2367_v32  ;;  %v5393_v62 = vsel %vm10562_vm7, %v9548_v45, %v5392_v1  ;;  %v815_v36 = vshrl.u32 %v562_v21, 16  ;;  %v818_v11 = vshll.u32 %v562_v21, 16  ;;  %v3346_v57 = vsel %vm3314_vm1, %v3313_v19, %v3264_v16  ;;  %v996_v1 = vld [vmem:[#allocation2 + $0xbc] sm:$0x1]  ;;  %v4019_v45 = vld [vmem:[#allocation2 + $0x14] sm:$0x1] }
 0x217   : > { %v2303_v56 = vpack.c.b16 %v2286_v38, %v2285_v3  ;;  %v809_v15 = vrot.slane %v807_v48, 7  ;;  %v5396_v39 = vsel %vm10562_vm7, %v5394_v13, %v5395_v53  ;;  %v5616_v32 = vunpack.c.l.b16 %v5393_v62  ;;  %9317 = vmatmul.msk.bf16.gmra.mxu0 %vm3354_vm2, %v3346_v57  ;;  %v3435_v62 = vpop.f32.mrf.mxu0  ;;  %v4419_v57 = vld [vmem:[#allocation2 + $0xc] sm:$0xe] }
 0x218   : > { %v5617_v34 = vunpack.c.l.b16 %v5396_v39  ;;  %v817_v58 = vrot.slane %v815_v36, 7  ;;  %v4036_v31 = vshrl.u32 %v3987_v61, 16  ;;  %v4039_v21 = vshll.u32 %v3987_v61, 16  ;;  %v12006_v39 = vpop.f32.mrf.mxu1 }
 0x219   : > { %3791 = vmatmul.bf16.gmra.mxu2 %v2303_v56  ;;  %v812_v3 = vor.u32 %v810_v25, %v809_v15  ;;  %v813_v8 = vrot.slane %v809_v15, 4  ;;  %v4045_v48 = vshll.u32 %v3988_v51, 16  ;;  %v4049_v26 = vshrl.u32 %v3988_v51, 16  ;;  %v12009_v19 = vpop.f32.mrf.mxu2 }
 0x21a   : > { %v5642_v38 = vpack.c.b16 %v5617_v34, %v5616_v32  ;;  %v820_v13 = vor.u32 %v818_v11, %v817_v58  ;;  %v822_v53 = vrot.slane %v817_v58, 4  ;;  %v4038_v25 = vrot.slane %v4036_v31, 4  ;;  %v4866_v58 = vld [vmem:[#allocation3 + $0x60] sm:$0xf] }
 0x21b   : > { %v993_v56 = vsel %vm11027_vm6, %v812_v3, %v992_v33  ;;  %v3669_v16 = vadd.f32 %v3668_v4, %v3435_v62  ;;  %v12011_v15 = vpop.f32.mrf.mxu3  ;;  %v4041_v61 = vrot.slane %v4039_v21, 5  ;;  %v12013_v36 = vrot.slane %v4045_v48, 5 }
 0x21c   : > { %994 = vst [vmem:[#allocation2 + $0xb4] sm:$0xf] %v993_v56  ;;  %5664 = vrot.lane.b32.xlu0 %v5642_v38, %s10446_s27  ;;  %v4051_v11 = vrot.slane %v4049_v26, 4  ;;  %v821_v32 = vsel %vm10692_vm11, %v813_v8, %v820_v13  ;;  %v997_v33 = vsel %vm11033_vm9, %v822_v53, %v996_v1  ;;  %v4055_v34 = vshll.u32 %v4019_v45, 16  ;;  %v12026_v53 = vld [vmem:[#allocation3 + $0x64] sm:$0xf] }
 0x21d   : > { %v4485_v3 = vrot.slane %v3988_v51, 5  ;;  %995 = vst [vmem:[#allocation2 + $0xb8] sm:$0xf] %v821_v32  ;;  %v3758_v4 = vadd.f32 %v3757_v46, %v3669_v16  ;;  %v4042_v31 = vor.u32 %v4041_v61, %v4038_v25  ;;  %v9414_v56 = vrot.slane %v4419_v57, 9 }
 0x21e   : > { %v4052_v38 = vor.u32 %v4051_v11, %v12013_v36  ;;  %998 = vst [vmem:[#allocation2 + $0xbc] sm:$0x1] %v997_v33  ;;  %v12020_v21 = vrot.slane %v4055_v34, 5  ;;  %v5069_v48 = vshrl.u32 %v4866_v58, 16  ;;  %v4488_v1 = vrot.slane %v4019_v45, 5 }
 0x21f   : > { %v12022_v26 = vadd.f32 %v3846_v12, %v3758_v4  ;;  %v12024_v8 = vrot.slane %v4042_v31, 4  ;;  %v4487_v13 = vrot.slane %v4485_v3, 4  ;;  %v12032_v46 = vsel %vm10562_vm7, %v9414_v56, %v4485_v3  ;;  %v12034_v11 = vpop.f32.mrf.mxu0  ;;  %v10216_v31 = vld [vmem:[%s13704_s4 + $0x1f8] sm:$0xff] }
 0x220   : > { %v12028_v51 = vrot.slane %v4052_v38, 4  ;;  %v5071_v62 = vrot.slane %v5069_v48, 4  ;;  %v5072_v25 = vshll.u32 %v4866_v58, 16  ;;  %v12036_v12 = vpop.f32.mrf.mxu1  ;;  %v5078_v33 = vshll.u32 %v12026_v53, 16  ;;  %v10224_v38 = vld [vmem:[%s13704_s4 + $0x238] sm:$0xff]  ;;  %8547 = vmatpush.bf16.msra.mxu2 %v10216_v31 }
 0x221   : > { %13749 = vst [vmem:[#allocation31_spill] sm:$0xff] %v12022_v26  ;;  %v12041_v57 = vsel %vm10562_vm7, %v4487_v13, %v4488_v1  ;;  %v12044_v4 = vpop.f32.mrf.mxu2  ;;  %8636 = vmatpush.bf16.msra.mxu3 %v10224_v38  ;;  %v10208_v13 = vld [vmem:[%s13704_s4 + $0x1b8] sm:$0xff] }
 0x222   : > { %v5074_v32 = vrot.slane %v5072_v25, 5  ;;  %v5080_v59 = vrot.slane %v5078_v33, 5  ;;  %8458 = vmatpush.bf16.msra.mxu1 %v10208_v13  ;;  %v10241_v13 = vld [vmem:[%s13705_s5 + $0x10] sm:$0x30] }
 0x223   : > { %v1593_v16 = vld [vmem:[#allocation2 + $0xb4] sm:$0xf]  ;;  %v12046_v58 = vpop.f32.mrf.mxu3 }
 0x224   : > { %v2013_v61 = vld [vmem:[#allocation2 + $0xb4] sm:$0xe]  ;;  %v1975_v45 = vshrl.u32 %v1593_v16, 16  ;;  %v1978_v34 = vshll.u32 %v1593_v16, 16  ;;  %v1594_v56 = vld [vmem:[#allocation2 + $0xb8] sm:$0xf]  ;;  %v5075_v16 = vor.u32 %v5074_v32, %v5071_v62 }
 0x225   : > { %v9153_v48 = vrot.slane %v2013_v61, 9  ;;  %v10086_v25 = vld [vmem:[#allocation2 + $0xb4] sm:$0xff]  ;;  %v1610_v3 = vld [vmem:[#allocation2 + $0xbc] sm:$0x1]  ;;  %v1984_v49 = vshll.u32 %v1594_v56, 16  ;;  %v1988_v24 = vshrl.u32 %v1594_v56, 16 }
 0x226   : > { %v1977_v40 = vrot.slane %v1975_v45, 4  ;;  %v1980_v41 = vrot.slane %v1978_v34, 5  ;;  %v1994_v61 = vshll.u32 %v1610_v3, 16  ;;  %v2172_v2 = vrot.slane %v1594_v56, 5  ;;  %3707 = vmatmul.bf16.gmra.mxu1 %v10086_v25  ;;  %v12065_v62 = vld [vmem:[#allocation3 + $0x68] sm:$0x1]  ;;  %v5573_v56 = vpop.permute.xlu2 %5572 }
 0x227   : > { %v2175_v30 = vrot.slane %v1610_v3, 5  ;;  %v1986_v20 = vrot.slane %v1984_v49, 5  ;;  %v1990_v1 = vrot.slane %v1988_v24, 4  ;;  %v5076_v32 = vrot.slane %v5075_v16, 4  ;;  %v10168_v45 = vld [vmem:[#allocation3 + $0xc] sm:$0xff]  ;;  %v5653_v24 = vpop.permute.xlu0 %5652 }
 0x228   : > { %v1981_v27 = vor.u32 %v1980_v41, %v1977_v40  ;;  %v1996_v34 = vrot.slane %v1994_v61, 5  ;;  %v2173_v31 = vsel %vm10562_vm7, %v9153_v48, %v2172_v2  ;;  %v2174_v38 = vrot.slane %v2172_v2, 4  ;;  %v3440_v2 = vpop.f32.mrf.mxu0  ;;  %v12078_v61 = vpop.f32.mrf.mxu1  ;;  %v4864_v3 = vld [vmem:[#allocation3 + $0x54] sm:$0xf] }
 0x229   : > { %v1991_v25 = vor.u32 %v1990_v1, %v1986_v20  ;;  %v2351_v9 = vunpack.c.l.b16 %v2173_v31  ;;  %v5081_v41 = vsel %vm10520_vm4, %v5076_v32, %v5080_v59  ;;  %v5082_v49 = vshrl.u32 %v12026_v53, 16 }
 0x22a   : > { %v1982_v33 = vrot.slane %v1981_v27, 4  ;;  %v2176_v40 = vsel %vm10562_vm7, %v2174_v38, %v2175_v30  ;;  %v5088_v16 = vshll.u32 %v12065_v62, 16  ;;  %v12076_v48 = vunpack.c.l.b16 %v5081_v41  ;;  %v9952_v27 = vld [vmem:[%s13705_s5 + $0x10] sm:$0xf]  ;;  %v12089_v38 = vpop.f32.mrf.mxu2 }
 0x22b   : > { %v1992_v1 = vrot.slane %v1991_v25, 4  ;;  %v2352_v32 = vunpack.c.l.b16 %v2176_v40  ;;  %v5686_v31 = vsel %vm3265_vm14, %v10168_v45, %v5573_v56  ;;  %v12091_v41 = vpop.f32.mrf.mxu3  ;;  %v5084_v5 = vrot.slane %v5082_v49, 4 }
 0x22c   : > { %v1987_v30 = vsel %vm10520_vm4, %v1982_v33, %v1986_v20  ;;  %v5090_v10 = vrot.slane %v5088_v16, 5  ;;  %v3674_v52 = vadd.f32 %v12036_v12, %v3440_v2  ;;  %v5733_v20 = vsel %vm3314_vm1, %v5686_v31, %v5653_v24 }
 0x22d   : > { %v2287_v17 = vunpack.c.l.b16 %v1987_v30  ;;  %v1997_v26 = vsel %vm10520_vm4, %v1992_v1, %v1996_v34  ;;  %v2368_v22 = vpack.c.b16 %v2352_v32, %v2351_v9  ;;  %v9953_v33 = vor.u32 %v10241_v13, %v9952_v27  ;;  %9628 = vmatmul.msk.bf16.vlgmr.msrb.gmra.mxu0 %vm3354_vm2, %v5733_v20  ;;  %v3990_v9 = vld [vmem:[#allocation2 + $0x1c] sm:$0xf]  ;;  %v10128_v27 = vld [vmem:[#allocation2 + $0xc] sm:$0xff] }
 0x22e   : > { %v2288_v25 = vunpack.c.l.b16 %v1997_v26  ;;  %v5085_v40 = vor.u32 %v5084_v5, %v5080_v59  ;;  %v3763_v45 = vadd.f32 %v12044_v4, %v3674_v52  ;;  %v5045_v56 = vshrl.u32 %v4864_v3, 16 }
 0x22f   : > { %3885 = vmatmul.bf16.gmra.mxu3 %v2368_v22  ;;  %v8223_v49 = vsel %vm3387_vm15, %v9953_v33, 0  ;;  %v5048_v16 = vshll.u32 %v4864_v3, 16  ;;  %v5054_v12 = vshll.u32 %v11984_v29, 16  ;;  %v5058_v34 = vshrl.u32 %v11984_v29, 16  ;;  %v4020_v33 = vld [vmem:[#allocation2 + $0x20] sm:$0x1] }
 0x230   : > { %v2304_v2 = vpack.c.b16 %v2288_v25, %v2287_v17  ;;  %v5086_v24 = vrot.slane %v5085_v40, 4  ;;  %v12103_v26 = vadd.f32 %v12046_v58, %v3763_v45  ;;  %8232 = vmatpush.bf16.msra.mxu0 %v8223_v49  ;;  %v5047_v5 = vrot.slane %v5045_v56, 4  ;;  %v12108_v17 = vpop.f32.mrf.mxu0  ;;  %v12110_v1 = vpop.f32.mrf.mxu1  ;;  %v4420_v25 = vld [vmem:[#allocation2 + $0x18] sm:$0xe] }
 0x231   : > { %v5050_v52 = vrot.slane %v5048_v16, 5  ;;  %v5056_v59 = vrot.slane %v5054_v12, 5  ;;  %v5060_v4 = vrot.slane %v5058_v34, 4  ;;  %v5064_v22 = vshll.u32 %v11994_v0, 16 }
 0x232   : > { %13750 = vst [vmem:[#allocation32_spill] sm:$0xff] %v12103_v26  ;;  %3796 = vmatmul.bf16.gmra.mxu2 %v2304_v2  ;;  %v5091_v3 = vsel %vm10520_vm4, %v5086_v24, %v5090_v10  ;;  %v4060_v13 = vshrl.u32 %v3989_v63, 16  ;;  %v4063_v29 = vshll.u32 %v3989_v63, 16  ;;  %v4069_v30 = vshll.u32 %v3990_v9, 16 }
 0x233   : > { %v5539_v58 = vunpack.c.l.b16 %v5091_v3  ;;  %v5051_v32 = vor.u32 %v5050_v52, %v5047_v5  ;;  %v5061_v31 = vor.u32 %v5060_v4, %v5056_v59  ;;  %v5066_v20 = vrot.slane %v5064_v22, 5  ;;  %v12112_v40 = vpop.f32.mrf.mxu3  ;;  %v12124_v2 = vpop.f32.mrf.mxu2 }
 0x234   : > { %v4062_v0 = vrot.slane %v4060_v13, 4  ;;  %v4065_v45 = vrot.slane %v4063_v29, 5  ;;  %v12114_v56 = vrot.slane %v4069_v30, 5  ;;  %v4073_v10 = vshrl.u32 %v3990_v9, 16 }
 0x235   : > { %v13751_v63 = vsel %vm10520_vm4, %v12024_v8, %v12013_v36  ;;  %v5563_v16 = vpack.c.b16 %v5539_v58, %v12076_v48  ;;  %v5052_v12 = vrot.slane %v5051_v32, 4  ;;  %v5062_v34 = vrot.slane %v5061_v31, 4  ;;  %v4868_v58 = vld [vmem:[#allocation3 + $0x6c] sm:$0xf] }
 0x236   : > { %v12121_v49 = vunpack.c.l.b16 %v13751_v63  ;;  %6048 = vmatmul.bf16.vlgmr.msrb.gmra.mxu1 %v10128_v27  ;;  %v4066_v24 = vor.u32 %v4065_v45, %v4062_v0  ;;  %v4075_v5 = vrot.slane %v4073_v10, 4  ;;  %v4079_v52 = vshll.u32 %v4020_v33, 16 }
 0x237   : > { %v9415_v4 = vrot.slane %v4420_v25, 9  ;;  %v13752_v22 = vsel %vm10520_vm4, %v12028_v51, %v12020_v21  ;;  %5586 = vrot.lane.b32.xlu1 %v5563_v16, %s10445_s26  ;;  %v5057_v36 = vsel %vm10520_vm4, %v5052_v12, %v5056_v59  ;;  %v5067_v8 = vsel %vm10520_vm4, %v5062_v34, %v5066_v20  ;;  %v4869_v21 = vld [vmem:[#allocation3 + $0x70] sm:$0xf]  ;;  %v5292_v34 = vld [vmem:[#allocation3 + $0x6c] sm:$0xe] }
 0x238   : > { %v4676_v3 = vunpack.c.l.b16 %v13752_v22  ;;  %v4492_v48 = vrot.slane %v3990_v9, 5  ;;  %v5536_v27 = vunpack.c.l.b16 %v5057_v36  ;;  %v5537_v13 = vunpack.c.l.b16 %v5067_v8  ;;  %v4892_v9 = vld [vmem:[#allocation3 + $0x74] sm:$0x1]  ;;  %v3445_v20 = vpop.f32.mrf.mxu0  ;;  %v12147_v45 = vpop.f32.mrf.mxu1 }
 0x239   : > { %v12136_v29 = vrot.slane %v4066_v24, 4  ;;  %v4076_v30 = vor.u32 %v4075_v5, %v12114_v56  ;;  %v4495_v31 = vrot.slane %v4020_v33, 5  ;;  %v12141_v0 = vrot.slane %v4079_v52, 5  ;;  %v5575_v36 = vpop.permute.xlu1 %5574 }
 0x23a   : > { %v4494_v32 = vrot.slane %v4492_v48, 4  ;;  %v5562_v51 = vpack.c.b16 %v5537_v13, %v5536_v27  ;;  %v12145_v59 = vsel %vm10562_vm7, %v9415_v4, %v4492_v48  ;;  %v4707_v10 = vpack.c.b16 %v4676_v3, %v12121_v49  ;;  %v10169_v4 = vld [vmem:[#allocation3 + $0x18] sm:$0xff] }
 0x23b   : > { %v12139_v25 = vrot.slane %v4076_v30, 4  ;;  %v13753_v63 = vunpack.c.l.b16 %v12032_v46  ;;  %v13754_v33 = vunpack.c.l.b16 %v12041_v57  ;;  %v5093_v12 = vshrl.u32 %v4868_v58, 16  ;;  %v12164_v8 = vpop.f32.mrf.mxu3 }
 0x23c   : > { %5584 = vrot.lane.b32.xlu2 %v5562_v51, %s10445_s26  ;;  %v12161_v5 = vsel %vm10562_vm7, %v4494_v32, %v4495_v31  ;;  %v5096_v52 = vshll.u32 %v4868_v58, 16  ;;  %v5102_v49 = vshll.u32 %v4869_v21, 16  ;;  %v5106_v22 = vshrl.u32 %v4869_v21, 16  ;;  %13755 = vst [vmem:[#allocation33_spill] sm:$0xff] %v12164_v8  ;;  %v5655_v32 = vpop.permute.xlu2 %5654 }
 0x23d   : > { %v4771_v16 = vpack.c.b16 %v13754_v33, %v13753_v63  ;;  %v5095_v57 = vrot.slane %v5093_v12, 4  ;;  %v5112_v3 = vshll.u32 %v4892_v9, 16  ;;  %v4082_v48 = vsel %vm10520_vm4, %v12139_v25, %v12141_v0  ;;  %v12171_v33 = vpop.f32.mrf.mxu2  ;;  %v5291_v12 = vld [vmem:[#allocation3 + $0x60] sm:$0xe] }
 0x23e   : > { %v5098_v27 = vrot.slane %v5096_v52, 5  ;;  %v5104_v13 = vrot.slane %v5102_v49, 5  ;;  %v9550_v30 = vrot.slane %v5292_v34, 9  ;;  %v4742_v58 = vunpack.c.l.b16 %v12161_v5  ;;  %v3991_v52 = vld [vmem:[#allocation2 + $0x24] sm:$0xf]  ;;  %v10129_v49 = vld [vmem:[#allocation2 + $0x18] sm:$0xff] }
 0x23f   : > { %6226 = vmatmul.bf16.vlgmr.msrb.gmra.mxu3 %v4771_v16  ;;  %v5108_v31 = vrot.slane %v5106_v22, 4  ;;  %v5114_v51 = vrot.slane %v5112_v3, 5  ;;  %v5406_v63 = vrot.slane %v4869_v21, 5  ;;  %v5409_v24 = vrot.slane %v4892_v9, 5 }
 0x240   : > { %v5099_v46 = vor.u32 %v5098_v27, %v5095_v57  ;;  %v3679_v8 = vadd.f32 %v12110_v1, %v3445_v20  ;;  %v5689_v26 = vsel %vm3265_vm14, %v10169_v4, %v5575_v36  ;;  %v9549_v9 = vrot.slane %v5291_v12, 9  ;;  %v12180_v1 = vpop.f32.mrf.mxu0  ;;  %v12182_v20 = vpop.f32.mrf.mxu1  ;;  %v10215_v4 = vld [vmem:[%s13704_s4 + $0x1f0] sm:$0xff]  ;;  %v12196_v27 = vld [vmem:[#allocation2 + $0x28] sm:$0xf] }
 0x241   : > { %v5109_v25 = vor.u32 %v5108_v31, %v5104_v13  ;;  %v5407_v0 = vsel %vm10562_vm7, %v9550_v30, %v5406_v63  ;;  %v5408_v34 = vrot.slane %v5406_v63, 4  ;;  %v5735_v16 = vsel %vm3314_vm1, %v5689_v26, %v5655_v32  ;;  %8548 = vmatpush.bf16.msra.mxu2 %v10215_v4  ;;  %v10223_v32 = vld [vmem:[%s13704_s4 + $0x230] sm:$0xff] }
 0x242   : > { %6137 = vmatmul.bf16.vlgmr.msrb.gmra.mxu2 %v4707_v10  ;;  %v5100_v21 = vrot.slane %v5099_v46, 4  ;;  %v5620_v22 = vunpack.c.l.b16 %v5407_v0  ;;  %v3768_v3 = vadd.f32 %v12124_v2, %v3679_v8  ;;  %9629 = vmatmul.msk.bf16.gmra.mxu0 %vm3354_vm2, %v5735_v16  ;;  %v5399_v10 = vrot.slane %v12026_v53, 5  ;;  %v10207_v53 = vld [vmem:[%s13704_s4 + $0x1b0] sm:$0xff] }
 0x243   : > { %v5110_v57 = vrot.slane %v5109_v25, 4  ;;  %v5410_v26 = vsel %vm10562_vm7, %v5408_v34, %v5409_v24  ;;  %v5402_v46 = vrot.slane %v12065_v62, 5  ;;  %v4084_v30 = vshrl.u32 %v3991_v52, 16  ;;  %v4021_v25 = vld [vmem:[#allocation2 + $0x2c] sm:$0x1]  ;;  %8637 = vmatpush.bf16.msra.mxu3 %v10223_v32  ;;  %8459 = vmatpush.bf16.msra.mxu1 %v10207_v53 }
 0x244   : > { %v5105_v2 = vsel %vm10520_vm4, %v5100_v21, %v5104_v13  ;;  %v5621_v36 = vunpack.c.l.b16 %v5410_v26  ;;  %v12194_v8 = vadd.f32 %v12112_v40, %v3768_v3  ;;  %v5400_v40 = vsel %vm10562_vm7, %v9549_v9, %v5399_v10  ;;  %v12212_v3 = vpop.f32.mrf.mxu3  ;;  %v4421_v26 = vld [vmem:[#allocation2 + $0x24] sm:$0xe]  ;;  %v12222_v32 = vld [vmem:[#allocation3 + $0x7c] sm:$0xf] }
 0x245   : > { %v5115_v62 = vsel %vm10520_vm4, %v5110_v57, %v5114_v51  ;;  %v5540_v24 = vunpack.c.l.b16 %v5105_v2  ;;  %v5401_v13 = vrot.slane %v5399_v10, 4  ;;  %v5618_v12 = vunpack.c.l.b16 %v5400_v40 }
 0x246   : > { %6053 = vmatmul.bf16.gmra.mxu1 %v10129_v49  ;;  %v5541_v31 = vunpack.c.l.b16 %v5115_v62  ;;  %v5644_v63 = vpack.c.b16 %v5621_v36, %v5620_v22  ;;  %v4086_v0 = vrot.slane %v4084_v30, 4  ;;  %v4087_v16 = vshll.u32 %v3991_v52, 16  ;;  %v5293_v52 = vld [vmem:[#allocation3 + $0x78] sm:$0xe]  ;;  %v3772_v30 = vpop.f32.mrf.mxu2 }
 0x247   : > { %v5403_v34 = vsel %vm10562_vm7, %v5401_v13, %v5402_v46  ;;  %v4093_v21 = vshll.u32 %v12196_v27, 16  ;;  %v4097_v51 = vshrl.u32 %v12196_v27, 16  ;;  %v13756_v49 = vsel %vm10520_vm4, %v12136_v29, %v12114_v56  ;;  %v12226_v29 = vld [vmem:[#allocation3 + $0x80] sm:$0x1] }
 0x248   : > { %v4677_v22 = vunpack.c.l.b16 %v13756_v49  ;;  %v4678_v9 = vunpack.c.l.b16 %v4082_v48  ;;  %v5564_v4 = vpack.c.b16 %v5541_v31, %v5540_v24  ;;  %5668 = vrot.lane.b32.xlu1 %v5644_v63, %s10446_s27  ;;  %v5619_v57 = vunpack.c.l.b16 %v5403_v34  ;;  %v10170_v48 = vld [vmem:[#allocation3 + $0x24] sm:$0xff]  ;;  %v3450_v62 = vpop.f32.mrf.mxu0  ;;  %v12228_v24 = vpop.f32.mrf.mxu1 }
 0x249   : > { %v4089_v10 = vrot.slane %v4087_v16, 5  ;;  %v12220_v46 = vrot.slane %v4093_v21, 5  ;;  %v4099_v2 = vrot.slane %v4097_v51, 4  ;;  %v4103_v36 = vshll.u32 %v4021_v25, 16  ;;  %13757 = vst [vmem:[#allocation34_spill] sm:$0xff] %v12228_v24  ;;  %v5577_v16 = vpop.permute.xlu0 %5576 }
 0x24a   : > { %5588 = vrot.lane.b32.xlu0 %v5564_v4, %s10445_s26  ;;  %v5643_v53 = vpack.c.b16 %v5619_v57, %v5618_v12  ;;  %v4499_v56 = vrot.slane %v12196_v27, 5  ;;  %v13758_v40 = vunpack.c.l.b16 %v12145_v59  ;;  %v9551_v34 = vrot.slane %v5293_v52, 9  ;;  %v5657_v52 = vpop.permute.xlu1 %5656 }
 0x24b   : > { %v4090_v31 = vor.u32 %v4089_v10, %v4086_v0  ;;  %v4100_v63 = vor.u32 %v4099_v2, %v12220_v46  ;;  %v9416_v12 = vrot.slane %v4421_v26, 9  ;;  %v4502_v21 = vrot.slane %v4021_v25, 5  ;;  %v3993_v10 = vld [vmem:[#allocation2 + $0x30] sm:$0xf]  ;;  %v3994_v2 = vld [vmem:[#allocation2 + $0x34] sm:$0xf] }
 0x24c   : > { %v4772_v13 = vpack.c.b16 %v4742_v58, %v13758_v40  ;;  %5666 = vrot.lane.b32.xlu2 %v5643_v53, %s10446_s27  ;;  %v4501_v27 = vrot.slane %v4499_v56, 4  ;;  %v5413_v51 = vrot.slane %v12222_v32, 5  ;;  %v4708_v49 = vpack.c.b16 %v4678_v9, %v4677_v22  ;;  %v12248_v53 = vld [vmem:[#allocation2 + $0x38] sm:$0x1] }
 0x24d   : > { %v4091_v4 = vrot.slane %v4090_v31, 4  ;;  %v4105_v57 = vrot.slane %v4103_v36, 5  ;;  %v5416_v59 = vrot.slane %v12226_v29, 5  ;;  %v4101_v24 = vrot.slane %v4100_v63, 4  ;;  %v12254_v31 = vpop.f32.mrf.mxu3 }
 0x24e   : > { %v5414_v5 = vsel %vm10562_vm7, %v9551_v34, %v5413_v51  ;;  %v5415_v58 = vrot.slane %v5413_v51, 4  ;;  %v5692_v0 = vsel %vm3265_vm14, %v10170_v48, %v5577_v16  ;;  %v4500_v25 = vsel %vm10562_vm7, %v9416_v12, %v4499_v56  ;;  %13759 = vst [vmem:[#allocation35_spill] sm:$0xff] %v12254_v31  ;;  %v10130_v34 = vld [vmem:[#allocation2 + $0x24] sm:$0xff] }
 0x24f   : > { %6231 = vmatmul.bf16.gmra.mxu3 %v4772_v13  ;;  %v5622_v26 = vunpack.c.l.b16 %v5414_v5  ;;  %v4503_v22 = vsel %vm10562_vm7, %v4501_v27, %v4502_v21  ;;  %v3684_v36 = vadd.f32 %v12182_v20, %v3450_v62  ;;  %v4096_v48 = vsel %vm10520_vm4, %v4091_v4, %v12220_v46  ;;  %v4422_v46 = vld [vmem:[#allocation2 + $0x30] sm:$0xe]  ;;  %v4872_v5 = vld [vmem:[#allocation3 + $0x84] sm:$0xf] }
 0x250   : > { %v5417_v9 = vsel %vm10562_vm7, %v5415_v58, %v5416_v59  ;;  %v5737_v13 = vsel %vm3314_vm1, %v5692_v0, %v5657_v52  ;;  %v4108_v56 = vshrl.u32 %v3993_v10, 16  ;;  %v4106_v63 = vsel %vm10520_vm4, %v4101_v24, %v4105_v57  ;;  %v12259_v12 = vpop.f32.mrf.mxu0  ;;  %v3688_v27 = vpop.f32.mrf.mxu1 }
 0x251   : > { %v5623_v40 = vunpack.c.l.b16 %v5417_v9  ;;  %v3773_v16 = vadd.f32 %v3772_v30, %v3684_v36  ;;  %v4111_v20 = vshll.u32 %v3993_v10, 16  ;;  %v4117_v62 = vshll.u32 %v3994_v2, 16  ;;  %13760 = vst [vmem:[#allocation36_spill] sm:$0xff] %v12259_v12  ;;  %v12265_v24 = vpop.f32.mrf.mxu2 }
 0x252   : > { %6142 = vmatmul.bf16.gmra.mxu2 %v4708_v49  ;;  %9630 = vmatmul.msk.bf16.gmra.mxu0 %vm3354_vm2, %v5737_v13  ;;  %v4110_v51 = vrot.slane %v4108_v56, 4  ;;  %v4121_v4 = vshrl.u32 %v3994_v2, 16  ;;  %v4127_v59 = vshll.u32 %v12248_v53, 16  ;;  %v4743_v49 = vunpack.c.l.b16 %v4500_v25  ;;  %13762 = vst [vmem:[#allocation38_spill] sm:$0xff] %v12265_v24  ;;  %v12270_v13 = vld [vmem:[#allocation3 + $0x88] sm:$0xf] }
 0x253   : > { %v5645_v21 = vpack.c.b16 %v5623_v40, %v5622_v26  ;;  %v12263_v58 = vadd.f32 %v12212_v3, %v3773_v16  ;;  %v4113_v30 = vrot.slane %v4111_v20, 5  ;;  %v12267_v57 = vrot.slane %v4117_v62, 5  ;;  %v12276_v20 = vld [vmem:[#allocation3 + $0x8c] sm:$0x1] }
 0x254   : > { %v4744_v0 = vunpack.c.l.b16 %v4503_v22  ;;  %v4123_v52 = vrot.slane %v4121_v4, 4  ;;  %v9417_v10 = vrot.slane %v4422_v46, 9  ;;  %v4506_v26 = vrot.slane %v3994_v2, 5 }
 0x255   : > { %13761 = vst [vmem:[#allocation37_spill] sm:$0xff] %v12263_v58  ;;  %5670 = vrot.lane.b32.xlu0 %v5645_v21, %s10446_s27  ;;  %v4679_v9 = vunpack.c.l.b16 %v4096_v48  ;;  %v4680_v36 = vunpack.c.l.b16 %v4106_v63  ;;  %v4114_v40 = vor.u32 %v4113_v30, %v4110_v51  ;;  %v5141_v25 = vshrl.u32 %v4872_v5, 16  ;;  %v10171_v51 = vld [vmem:[#allocation3 + $0x30] sm:$0xff]  ;;  %v3995_v58 = vld [vmem:[#allocation2 + $0x3c] sm:$0xf] }
 0x256   : > { %6058 = vmatmul.bf16.gmra.mxu1 %v10130_v34  ;;  %v4124_v3 = vor.u32 %v4123_v52, %v12267_v57  ;;  %v12273_v56 = vrot.slane %v4127_v59, 5  ;;  %v4509_v16 = vrot.slane %v12248_v53, 5  ;;  %v5144_v22 = vshll.u32 %v4872_v5, 16 }
 0x257   : > { %v12278_v62 = vrot.slane %v4114_v40, 4  ;;  %v12282_v2 = vsel %vm10562_vm7, %v9417_v10, %v4506_v26  ;;  %v4508_v48 = vrot.slane %v4506_v26, 4  ;;  %v5143_v63 = vrot.slane %v5141_v25, 4  ;;  %v4870_v40 = vld [vmem:[#allocation3 + $0x78] sm:$0xf] }
 0x258   : > { %v12284_v34 = vrot.slane %v4124_v3, 4  ;;  %v5146_v46 = vrot.slane %v5144_v22, 5  ;;  %v5150_v21 = vshll.u32 %v12270_v13, 16  ;;  %v4773_v59 = vpack.c.b16 %v4744_v0, %v4743_v49  ;;  %v3455_v30 = vpop.f32.mrf.mxu0  ;;  %v12289_v52 = vpop.f32.mrf.mxu1 }
 0x259   : > { %v5579_v4 = vpop.permute.xlu2 %5578  ;;  %v5154_v53 = vshrl.u32 %v12270_v13, 16  ;;  %v5160_v5 = vshll.u32 %v12276_v20, 16  ;;  %13763 = vst [vmem:[#allocation39_spill] sm:$0xff] %v12289_v52  ;;  %v4709_v10 = vpack.c.b16 %v4680_v36, %v4679_v9  ;;  %v5659_v22 = vpop.permute.xlu0 %5658  ;;  %v4120_v49 = vsel %vm10520_vm4, %v12278_v62, %v12267_v57 }
 0x25a   : > { %v3866_v25 = vpop.f32.mrf.mxu3  ;;  %v5147_v3 = vor.u32 %v5146_v46, %v5143_v63  ;;  %v5152_v31 = vrot.slane %v5150_v21, 5  ;;  %v4130_v0 = vsel %vm10520_vm4, %v12284_v34, %v12273_v56  ;;  %v12302_v52 = vsel %vm10562_vm7, %v4508_v48, %v4509_v16 }
 0x25b   : > { %v5156_v9 = vrot.slane %v5154_v53, 4  ;;  %v5695_v63 = vsel %vm3265_vm14, %v10171_v51, %v5579_v4  ;;  %v3689_v46 = vadd.f32 %v3688_v27, %v3455_v30  ;;  %v5117_v21 = vshrl.u32 %v4870_v40, 16  ;;  %v3996_v4 = vld [vmem:[#allocation2 + $0x40] sm:$0xf] }
 0x25c   : > { %v5148_v36 = vrot.slane %v5147_v3, 4  ;;  %v5162_v12 = vrot.slane %v5160_v5, 5  ;;  %v5739_v57 = vsel %vm3314_vm1, %v5695_v63, %v5659_v22  ;;  %v5120_v62 = vshll.u32 %v4870_v40, 16 }
 0x25d   : > { %v3777_v26 = vpop.f32.mrf.mxu2  ;;  %v5157_v24 = vor.u32 %v5156_v9, %v5152_v31  ;;  %v5119_v16 = vrot.slane %v5117_v21, 4  ;;  %v5126_v48 = vshll.u32 %v12222_v32, 16  ;;  %v5130_v27 = vshrl.u32 %v12222_v32, 16  ;;  %v4023_v9 = vld [vmem:[#allocation2 + $0x44] sm:$0x1]  ;;  %v10214_v32 = vld [vmem:[%s13704_s4 + $0x1e8] sm:$0xff] }
 0x25e   : > { %v5153_v56 = vsel %vm10520_vm4, %v5148_v36, %v5152_v31  ;;  %v3778_v34 = vadd.f32 %v3777_v26, %v3689_v46  ;;  %v5122_v51 = vrot.slane %v5120_v62, 5  ;;  %v5136_v40 = vshll.u32 %v12226_v29, 16  ;;  %8549 = vmatpush.bf16.msra.mxu2 %v10214_v32 }
 0x25f   : > { %6236 = vmatmul.bf16.gmra.mxu3 %v4773_v59  ;;  %v5158_v53 = vrot.slane %v5157_v24, 4  ;;  %v5544_v3 = vunpack.c.l.b16 %v5153_v56  ;;  %v5128_v5 = vrot.slane %v5126_v48, 5  ;;  %v4132_v22 = vshrl.u32 %v3995_v58, 16  ;;  %v10131_v59 = vld [vmem:[#allocation2 + $0x30] sm:$0xff] }
 0x260   : > { %v12310_v30 = vadd.f32 %v3866_v25, %v3778_v34  ;;  %v5123_v26 = vor.u32 %v5122_v51, %v5119_v16  ;;  %v5132_v24 = vrot.slane %v5130_v27, 4  ;;  %v4135_v36 = vshll.u32 %v3995_v58, 16  ;;  %v12316_v63 = vpop.f32.mrf.mxu0  ;;  %v10206_v58 = vld [vmem:[%s13704_s4 + $0x1a8] sm:$0xff]  ;;  %v4423_v16 = vld [vmem:[#allocation2 + $0x3c] sm:$0xe] }
 0x261   : > { %v5163_v31 = vsel %vm10520_vm4, %v5158_v53, %v5162_v12  ;;  %13764 = vst [vmem:[#allocation40_spill] sm:$0xff] %v12316_v63  ;;  %v5138_v29 = vrot.slane %v5136_v40, 5  ;;  %v4134_v46 = vrot.slane %v4132_v22, 4  ;;  %v10222_v12 = vld [vmem:[%s13704_s4 + $0x228] sm:$0xff]  ;;  %v4145_v34 = vshrl.u32 %v3996_v4, 16  ;;  %8460 = vmatpush.bf16.msra.mxu1 %v10206_v58 }
 0x262   : > { %6147 = vmatmul.bf16.gmra.mxu2 %v4709_v10  ;;  %9631 = vmatmul.msk.bf16.gmra.mxu0 %vm3354_vm2, %v5739_v57  ;;  %v5545_v25 = vunpack.c.l.b16 %v5163_v31  ;;  %v4141_v10 = vshll.u32 %v3996_v4, 16  ;;  %v12321_v21 = vpop.f32.mrf.mxu1  ;;  %v5124_v57 = vrot.slane %v5123_v26, 4  ;;  %v5133_v62 = vor.u32 %v5132_v24, %v5128_v5  ;;  %v12332_v27 = vpop.f32.mrf.mxu3 }
 0x263   : > { %v4137_v56 = vrot.slane %v4135_v36, 5  ;;  %v12329_v48 = vunpack.c.l.b16 %v4120_v49  ;;  %v4746_v53 = vunpack.c.l.b16 %v12302_v52  ;;  %13765 = vst [vmem:[#allocation41_spill] sm:$0xff] %v12332_v27  ;;  %8638 = vmatpush.bf16.msra.mxu3 %v10222_v12  ;;  %v4147_v24 = vrot.slane %v4145_v34, 4  ;;  %v4874_v36 = vld [vmem:[#allocation3 + $0x90] sm:$0xf] }
 0x264   : > { %v5566_v51 = vpack.c.b16 %v5545_v25, %v5544_v3  ;;  %v12334_v40 = vrot.slane %v4141_v10, 5  ;;  %v5129_v22 = vsel %vm10520_vm4, %v5124_v57, %v5128_v5  ;;  %v5134_v31 = vrot.slane %v5133_v62, 4  ;;  %v4875_v57 = vld [vmem:[#allocation3 + $0x94] sm:$0xf]  ;;  %v5294_v27 = vld [vmem:[#allocation3 + $0x84] sm:$0xe] }
 0x265   : > { %v4138_v26 = vor.u32 %v4137_v56, %v4134_v46  ;;  %v4682_v32 = vunpack.c.l.b16 %v4130_v0  ;;  %v5542_v49 = vunpack.c.l.b16 %v5129_v22  ;;  %v4151_v52 = vshll.u32 %v4023_v9, 16  ;;  %v12339_v25 = vpop.f32.mrf.mxu2 }
 0x266   : > { %6063 = vmatmul.bf16.gmra.mxu1 %v10131_v59  ;;  %5592 = vrot.lane.b32.xlu1 %v5566_v51, %s10445_s26  ;;  %v9418_v3 = vrot.slane %v4423_v16, 9  ;;  %13766 = vst [vmem:[#allocation42_spill] sm:$0xff] %v12339_v25  ;;  %v5139_v10 = vsel %vm10520_vm4, %v5134_v31, %v5138_v29  ;;  %v4148_v59 = vor.u32 %v4147_v24, %v12334_v40  ;;  %v4513_v12 = vrot.slane %v3996_v4, 5  ;;  %v4895_v51 = vld [vmem:[#allocation3 + $0x98] sm:$0x1] }
 0x267   : > { %v5543_v58 = vunpack.c.l.b16 %v5139_v10  ;;  %v12344_v5 = vrot.slane %v4138_v26, 4  ;;  %v4516_v46 = vrot.slane %v4023_v9, 5  ;;  %v5165_v62 = vshrl.u32 %v4874_v36, 16  ;;  %v5295_v9 = vld [vmem:[#allocation3 + $0x90] sm:$0xe] }
 0x268   : > { %v13767_v0 = vunpack.c.l.b16 %v12282_v2  ;;  %v12350_v34 = vsel %vm10562_vm7, %v9418_v3, %v4513_v12  ;;  %v4515_v16 = vrot.slane %v4513_v12, 4  ;;  %v3460_v22 = vpop.f32.mrf.mxu0  ;;  %v4710_v29 = vpack.c.b16 %v4682_v32, %v12329_v48  ;;  %v10172_v3 = vld [vmem:[#allocation3 + $0x3c] sm:$0xff] }
 0x269   : > { %v5565_v31 = vpack.c.b16 %v5543_v58, %v5542_v49  ;;  %v12353_v4 = vrot.slane %v4148_v59, 4  ;;  %v12355_v26 = vrot.slane %v4151_v52, 5  ;;  %v5167_v2 = vrot.slane %v5165_v62, 4 }
 0x26a   : > { %v4774_v56 = vpack.c.b16 %v4746_v53, %v13767_v0  ;;  %v12359_v24 = vsel %vm10562_vm7, %v4515_v16, %v4516_v46  ;;  %v5168_v53 = vshll.u32 %v4874_v36, 16  ;;  %v5174_v10 = vshll.u32 %v4875_v57, 16  ;;  %v12367_v59 = vpop.f32.mrf.mxu1  ;;  %v5581_v36 = vpop.permute.xlu1 %5580 }
 0x26b   : > { %5590 = vrot.lane.b32.xlu2 %v5565_v31, %s10445_s26  ;;  %v4144_v48 = vsel %vm10520_vm4, %v12344_v5, %v12334_v40  ;;  %v5178_v49 = vshrl.u32 %v4875_v57, 16  ;;  %v5184_v52 = vshll.u32 %v4895_v51, 16  ;;  %13768 = vst [vmem:[#allocation43_spill] sm:$0xff] %v12367_v59  ;;  %v9553_v46 = vrot.slane %v5295_v9, 9 }
 0x26c   : > { %v5170_v12 = vrot.slane %v5168_v53, 5  ;;  %v5176_v58 = vrot.slane %v5174_v10, 5  ;;  %v5427_v62 = vrot.slane %v4875_v57, 5  ;;  %v4154_v0 = vsel %vm10520_vm4, %v12353_v4, %v12355_v26  ;;  %v5661_v32 = vpop.permute.xlu2 %5660  ;;  %v3997_v4 = vld [vmem:[#allocation2 + $0x48] sm:$0xf] }
 0x26d   : > { %v4748_v40 = vunpack.c.l.b16 %v12359_v24  ;;  %v5180_v16 = vrot.slane %v5178_v49, 4  ;;  %v5186_v31 = vrot.slane %v5184_v52, 5  ;;  %v5430_v57 = vrot.slane %v4895_v51, 5  ;;  %v10132_v24 = vld [vmem:[#allocation2 + $0x3c] sm:$0xff] }
 0x26e   : > { %v5171_v25 = vor.u32 %v5170_v12, %v5167_v2  ;;  %v5428_v53 = vsel %vm10562_vm7, %v9553_v46, %v5427_v62  ;;  %v5429_v9 = vrot.slane %v5427_v62, 4  ;;  %v3694_v59 = vadd.f32 %v12321_v21, %v3460_v22 }
 0x26f   : > { %6241 = vmatmul.bf16.gmra.mxu3 %v4774_v56  ;;  %v5181_v10 = vor.u32 %v5180_v16, %v5176_v58  ;;  %v5626_v56 = vunpack.c.l.b16 %v5428_v53  ;;  %v5698_v63 = vsel %vm3265_vm14, %v10172_v3, %v5581_v36  ;;  %v9552_v12 = vrot.slane %v5294_v27, 9 }
 0x270   : > { %v5172_v49 = vrot.slane %v5171_v25, 4  ;;  %v5431_v52 = vsel %vm10562_vm7, %v5429_v9, %v5430_v57  ;;  %v5741_v2 = vsel %vm3314_vm1, %v5698_v63, %v5661_v32  ;;  %v12381_v46 = vpop.f32.mrf.mxu0  ;;  %v5420_v21 = vrot.slane %v12270_v13, 5 }
 0x271   : > { %v3871_v5 = vpop.f32.mrf.mxu3  ;;  %13769 = vst [vmem:[#allocation44_spill] sm:$0xff] %v12381_v46  ;;  %v5182_v51 = vrot.slane %v5181_v10, 4  ;;  %v5627_v62 = vunpack.c.l.b16 %v5431_v52  ;;  %v5423_v25 = vrot.slane %v12276_v20, 5  ;;  %v4156_v3 = vshrl.u32 %v3997_v4, 16 }
 0x272   : > { %6152 = vmatmul.bf16.gmra.mxu2 %v4710_v29  ;;  %9632 = vmatmul.msk.bf16.gmra.mxu0 %vm3354_vm2, %v5741_v2  ;;  %v5177_v22 = vsel %vm10520_vm4, %v5172_v49, %v5176_v58  ;;  %v3998_v29 = vld [vmem:[#allocation2 + $0x4c] sm:$0xf]  ;;  %v4159_v36 = vshll.u32 %v3997_v4, 16  ;;  %v5421_v13 = vsel %vm10562_vm7, %v9552_v12, %v5420_v21  ;;  %v5422_v57 = vrot.slane %v5420_v21, 4  ;;  %v3698_v49 = vpop.f32.mrf.mxu1  ;;  %v12399_v21 = vld [vmem:[#allocation3 + $0xa0] sm:$0xf] }
 0x273   : > { %v5187_v63 = vsel %vm10520_vm4, %v5182_v51, %v5186_v31  ;;  %v5546_v27 = vunpack.c.l.b16 %v5177_v22  ;;  %v5647_v32 = vpack.c.b16 %v5627_v62, %v5626_v56  ;;  %v4158_v58 = vrot.slane %v4156_v3, 4  ;;  %v4424_v31 = vld [vmem:[#allocation2 + $0x48] sm:$0xe]  ;;  %v5296_v22 = vld [vmem:[#allocation3 + $0x9c] sm:$0xe] }
 0x274   : > { %v3782_v26 = vpop.f32.mrf.mxu2  ;;  %v5547_v9 = vunpack.c.l.b16 %v5187_v63  ;;  %v5624_v20 = vunpack.c.l.b16 %v5421_v13  ;;  %v4161_v10 = vrot.slane %v4159_v36, 5  ;;  %v4165_v4 = vshll.u32 %v3998_v29, 16 }
 0x275   : > { %v3783_v16 = vadd.f32 %v3782_v26, %v3694_v59  ;;  %v4024_v59 = vld [vmem:[#allocation2 + $0x50] sm:$0x1]  ;;  %5674 = vrot.lane.b32.xlu1 %v5647_v32, %s10446_s27  ;;  %v4169_v26 = vshrl.u32 %v3998_v29, 16  ;;  %v4683_v52 = vunpack.c.l.b16 %v4144_v48  ;;  %v4684_v3 = vunpack.c.l.b16 %v4154_v0  ;;  %v12410_v0 = vld [vmem:[#allocation3 + $0xa4] sm:$0x1] }
 0x276   : > { %6068 = vmatmul.bf16.gmra.mxu1 %v10132_v24  ;;  %v5567_v56 = vpack.c.b16 %v5547_v9, %v5546_v27  ;;  %v4175_v24 = vshll.u32 %v4024_v59, 16  ;;  %v4162_v12 = vor.u32 %v4161_v10, %v4158_v58  ;;  %v4167_v62 = vrot.slane %v4165_v4, 5 }
 0x277   : > { %v12390_v53 = vadd.f32 %v3871_v5, %v3783_v16  ;;  %v5424_v5 = vsel %vm10562_vm7, %v5422_v57, %v5423_v25  ;;  %v4171_v16 = vrot.slane %v4169_v26, 4  ;;  %v13771_v36 = vunpack.c.l.b16 %v12350_v34  ;;  %v10173_v26 = vld [vmem:[#allocation3 + $0x48] sm:$0xff] }
 0x278   : > { %v5625_v51 = vunpack.c.l.b16 %v5424_v5  ;;  %5594 = vrot.lane.b32.xlu0 %v5567_v56, %s10445_s26  ;;  %v9419_v27 = vrot.slane %v4424_v31, 9  ;;  %v4520_v25 = vrot.slane %v3998_v29, 5  ;;  %v3465_v32 = vpop.f32.mrf.mxu0  ;;  %v4163_v13 = vrot.slane %v4162_v12, 4  ;;  %v3999_v5 = vld [vmem:[#allocation2 + $0x54] sm:$0xf] }
 0x279   : > { %v12397_v2 = vpop.f32.mrf.mxu3  ;;  %v4775_v63 = vpack.c.b16 %v4748_v40, %v13771_v36  ;;  %v4172_v57 = vor.u32 %v4171_v16, %v4167_v62  ;;  %v4523_v58 = vrot.slane %v4024_v59, 5  ;;  %v9554_v34 = vrot.slane %v5296_v22, 9 }
 0x27a   : > { %13770 = vst [vmem:[#allocation45_spill] sm:$0xff] %v12397_v2  ;;  %v5646_v9 = vpack.c.b16 %v5625_v51, %v5624_v20  ;;  %v12408_v10 = vsel %vm10562_vm7, %v9419_v27, %v4520_v25  ;;  %v4522_v4 = vrot.slane %v4520_v25, 4  ;;  %v5434_v40 = vrot.slane %v12399_v21, 5  ;;  %v4000_v27 = vld [vmem:[#allocation2 + $0x58] sm:$0xf] }
 0x27b   : > { %v12415_v31 = vadd.f32 %v11966_v7, %v11992_v18  ;;  %v4168_v29 = vsel %vm10520_vm4, %v4163_v13, %v4167_v62  ;;  %v4173_v59 = vrot.slane %v4172_v57, 4  ;;  %v4177_v20 = vrot.slane %v4175_v24, 5  ;;  %v12439_v13 = vpop.f32.mrf.mxu1 }
 0x27c   : > { %v12404_v48 = vpop.f32.mrf.mxu2  ;;  %5672 = vrot.lane.b32.xlu2 %v5646_v9, %s10446_s27  ;;  %v12422_v51 = vadd.f32 %v12006_v39, %v12034_v11  ;;  %v4711_v12 = vpack.c.b16 %v4684_v3, %v4683_v52  ;;  %v5435_v16 = vsel %vm10562_vm7, %v9554_v34, %v5434_v40  ;;  %v5436_v22 = vrot.slane %v5434_v40, 4  ;;  %v4025_v3 = vld [vmem:[#allocation2 + $0x5c] sm:$0x1]  ;;  %13773 = vst [vmem:[#allocation47_spill] sm:$0xff] %v12439_v13 }
 0x27d   : > { %13772 = vst [vmem:[#allocation46_spill] sm:$0xff] %v12404_v48  ;;  %v5583_v56 = vpop.permute.xlu0 %5582  ;;  %v12426_v18 = vunpack.c.l.b16 %v4168_v29  ;;  %v12430_v62 = vsel %vm10562_vm7, %v4522_v4, %v4523_v58  ;;  %v5437_v36 = vrot.slane %v12410_v0, 5  ;;  %v5628_v39 = vunpack.c.l.b16 %v5435_v16  ;;  %v4425_v4 = vld [vmem:[#allocation2 + $0x54] sm:$0xe] }
 0x27e   : > { %v5663_v7 = vpop.permute.xlu1 %5662  ;;  %v5701_v11 = vsel %vm3265_vm14, %v10173_v26, %v5583_v56  ;;  %v3699_v52 = vadd.f32 %v3698_v49, %v3465_v32  ;;  %v4180_v25 = vshrl.u32 %v3999_v5, 16  ;;  %v4183_v58 = vshll.u32 %v3999_v5, 16  ;;  %v10133_v26 = vld [vmem:[#allocation2 + $0x48] sm:$0xff] }
 0x27f   : > { %6246 = vmatmul.bf16.gmra.mxu3 %v4775_v63  ;;  %v4178_v63 = vsel %vm10520_vm4, %v4173_v59, %v4177_v20  ;;  %v5438_v9 = vsel %vm10562_vm7, %v5436_v22, %v5437_v36  ;;  %v5743_v57 = vsel %vm3314_vm1, %v5701_v11, %v5663_v7  ;;  %v4750_v34 = vunpack.c.l.b16 %v12430_v62  ;;  %v4878_v59 = vld [vmem:[#allocation3 + $0xa8] sm:$0xf] }
 0x280   : > { %v5629_v49 = vunpack.c.l.b16 %v5438_v9  ;;  %v4182_v32 = vrot.slane %v4180_v25, 4  ;;  %v4189_v29 = vshll.u32 %v4000_v27, 16  ;;  %v12443_v56 = vpop.f32.mrf.mxu0  ;;  %v10213_v20 = vld [vmem:[%s13704_s4 + $0x1e0] sm:$0xff]  ;;  %v4185_v5 = vrot.slane %v4183_v58, 5 }
 0x281   : > { %13774 = vst [vmem:[#allocation48_spill] sm:$0xff] %v12443_v56  ;;  %v4193_v22 = vshrl.u32 %v4000_v27, 16  ;;  %v10221_v7 = vld [vmem:[%s13704_s4 + $0x220] sm:$0xff]  ;;  %v12455_v36 = vunpack.c.l.b16 %v4178_v63  ;;  %v3876_v11 = vpop.f32.mrf.mxu3  ;;  %v9420_v24 = vrot.slane %v4425_v4, 9  ;;  %8550 = vmatpush.bf16.msra.mxu2 %v10213_v20  ;;  %v4527_v56 = vrot.slane %v4000_v27, 5 }
 0x282   : > { %6157 = vmatmul.bf16.gmra.mxu2 %v4711_v12  ;;  %9633 = vmatmul.msk.bf16.gmra.mxu0 %vm3354_vm2, %v5743_v57  ;;  %v4199_v12 = vshll.u32 %v4025_v3, 16  ;;  %v10205_v62 = vld [vmem:[%s13704_s4 + $0x1a0] sm:$0xff]  ;;  %v5648_v25 = vpack.c.b16 %v5629_v49, %v5628_v39  ;;  %v4191_v9 = vrot.slane %v4189_v29, 5  ;;  %v4186_v58 = vor.u32 %v4185_v5, %v4182_v32 }
 0x283   : > { %8639 = vmatpush.bf16.msra.mxu3 %v10221_v7  ;;  %8461 = vmatpush.bf16.msra.mxu1 %v10205_v62  ;;  %v4530_v63 = vrot.slane %v4025_v3, 5  ;;  %v5213_v2 = vshrl.u32 %v4878_v59, 16  ;;  %v5216_v48 = vshll.u32 %v4878_v59, 16  ;;  %v12466_v32 = vadd.f32 %v11970_v54, %v12415_v31 }
 0x284   : > { %v3787_v40 = vpop.f32.mrf.mxu2  ;;  %v4201_v13 = vrot.slane %v4199_v12, 5  ;;  %5676 = vrot.lane.b32.xlu0 %v5648_v25, %s10446_s27  ;;  %v4187_v39 = vrot.slane %v4186_v58, 4  ;;  %v4529_v20 = vrot.slane %v4527_v56, 4  ;;  %v12472_v27 = vadd.f32 %v12009_v19, %v12422_v51 }
 0x285   : > { %v3788_v16 = vadd.f32 %v3787_v40, %v3699_v52  ;;  %v12457_v52 = vld [vmem:[#allocation3 + $0xac] sm:$0xf]  ;;  %v4195_v40 = vrot.slane %v4193_v22, 4  ;;  %v5218_v5 = vrot.slane %v5216_v48, 5  ;;  %v4528_v59 = vsel %vm10562_vm7, %v9420_v24, %v4527_v56 }
 0x286   : > { %6073 = vmatmul.bf16.gmra.mxu1 %v10133_v26  ;;  %v5222_v4 = vshll.u32 %v12457_v52, 16  ;;  %v5226_v29 = vshrl.u32 %v12457_v52, 16  ;;  %v5215_v26 = vrot.slane %v5213_v2, 4  ;;  %v4192_v12 = vsel %vm10520_vm4, %v4187_v39, %v4191_v9  ;;  %v4876_v2 = vld [vmem:[#allocation3 + $0x9c] sm:$0xf] }
 0x287   : > { %v12459_v57 = vadd.f32 %v3876_v11, %v3788_v16  ;;  %v4196_v49 = vor.u32 %v4195_v40, %v4191_v9  ;;  %v12468_v16 = vld [vmem:[#allocation3 + $0xb0] sm:$0x1]  ;;  %v4531_v54 = vsel %vm10562_vm7, %v4529_v20, %v4530_v63  ;;  %v4712_v48 = vpack.c.b16 %v12455_v36, %v12426_v18  ;;  %v4001_v18 = vld [vmem:[#allocation2 + $0x60] sm:$0xf] }
 0x288   : > { %v5224_v22 = vrot.slane %v5222_v4, 5  ;;  %v5219_v31 = vor.u32 %v5218_v5, %v5215_v26  ;;  %v5228_v7 = vrot.slane %v5226_v29, 4  ;;  %v3470_v62 = vpop.f32.mrf.mxu0  ;;  %v13775_v19 = vunpack.c.l.b16 %v12408_v10 }
 0x289   : > { %v4197_v3 = vrot.slane %v4196_v49, 4  ;;  %v5232_v11 = vshll.u32 %v12468_v16, 16  ;;  %v4751_v25 = vunpack.c.l.b16 %v4528_v59  ;;  %v12489_v63 = vunpack.c.l.b16 %v4192_v12  ;;  %v12495_v29 = vpop.f32.mrf.mxu3  ;;  %v4002_v59 = vld [vmem:[#allocation2 + $0x64] sm:$0xf] }
 0x28a   : > { %v4776_v51 = vpack.c.b16 %v4750_v34, %v13775_v19  ;;  %v3703_v56 = vpop.f32.mrf.mxu1  ;;  %v5220_v9 = vrot.slane %v5219_v31, 4  ;;  %v5229_v58 = vor.u32 %v5228_v7, %v5224_v22  ;;  %v4752_v39 = vunpack.c.l.b16 %v4531_v54  ;;  %13776 = vst [vmem:[#allocation49_spill] sm:$0xff] %v12495_v29 }
 0x28b   : > { %v4202_v24 = vsel %vm10520_vm4, %v4197_v3, %v4201_v13  ;;  %v12487_v40 = vadd.f32 %v3703_v56, %v3470_v62  ;;  %v5234_v49 = vrot.slane %v5232_v11, 5  ;;  %v5189_v4 = vshrl.u32 %v4876_v2, 16  ;;  %v10134_v56 = vld [vmem:[#allocation2 + $0x54] sm:$0xff] }
 0x28c   : > { %v12491_v36 = vunpack.c.l.b16 %v4202_v24  ;;  %v5225_v10 = vsel %vm10520_vm4, %v5220_v9, %v5224_v22  ;;  %v5230_v13 = vrot.slane %v5229_v58, 4  ;;  %v5192_v34 = vshll.u32 %v4876_v2, 16  ;;  %v12499_v12 = vpop.f32.mrf.mxu2 }
 0x28d   : > { %v5550_v20 = vunpack.c.l.b16 %v5225_v10  ;;  %v5191_v26 = vrot.slane %v5189_v4, 4  ;;  %v5198_v5 = vshll.u32 %v12399_v21, 16  ;;  %v5202_v3 = vshrl.u32 %v12399_v21, 16  ;;  %13777 = vst [vmem:[#allocation50_spill] sm:$0xff] %v12499_v12  ;;  %v4426_v10 = vld [vmem:[#allocation2 + $0x60] sm:$0xe] }
 0x28e   : > { %v5235_v54 = vsel %vm10520_vm4, %v5230_v13, %v5234_v49  ;;  %v5194_v31 = vrot.slane %v5192_v34, 5  ;;  %v5208_v22 = vshll.u32 %v12410_v0, 16  ;;  %v4204_v7 = vshrl.u32 %v4001_v18, 16  ;;  %v10174_v12 = vld [vmem:[#allocation3 + $0x54] sm:$0xff] }
 0x28f   : > { %6251 = vmatmul.bf16.gmra.mxu3 %v4776_v51  ;;  %v5551_v62 = vunpack.c.l.b16 %v5235_v54  ;;  %v5200_v2 = vrot.slane %v5198_v5, 5  ;;  %v5204_v19 = vrot.slane %v5202_v3, 4  ;;  %v4026_v51 = vld [vmem:[#allocation2 + $0x68] sm:$0x1]  ;;  %v4207_v24 = vshll.u32 %v4001_v18, 16  ;;  %v5665_v18 = vpop.permute.xlu0 %5664 }
 0x290   : > { %v5195_v11 = vor.u32 %v5194_v31, %v5191_v26  ;;  %v5210_v9 = vrot.slane %v5208_v22, 5  ;;  %v4206_v21 = vrot.slane %v4204_v7, 4  ;;  %v4213_v58 = vshll.u32 %v4002_v59, 16  ;;  %v3472_v4 = vpop.f32.mrf.mxu0 }
 0x291   : > { %v5569_v29 = vpack.c.b16 %v5551_v62, %v5550_v20  ;;  %v5205_v49 = vor.u32 %v5204_v19, %v5200_v2  ;;  %v4209_v13 = vrot.slane %v4207_v24, 5  ;;  %v4217_v34 = vshrl.u32 %v4002_v59, 16 }
 0x292   : > { %6162 = vmatmul.bf16.gmra.mxu2 %v4712_v48  ;;  %v4777_v0 = vpack.c.b16 %v4752_v39, %v4751_v25  ;;  %v5196_v46 = vrot.slane %v5195_v11, 4  ;;  %v4215_v54 = vrot.slane %v4213_v58, 5  ;;  %v4223_v5 = vshll.u32 %v4026_v51, 16  ;;  %v4880_v39 = vld [vmem:[#allocation3 + $0xb4] sm:$0xf] }
 0x293   : > { %5598 = vrot.lane.b32.xlu1 %v5569_v29, %s10445_s26  ;;  %v5206_v48 = vrot.slane %v5205_v49, 4  ;;  %v4210_v3 = vor.u32 %v4209_v13, %v4206_v21  ;;  %v4219_v26 = vrot.slane %v4217_v34, 4  ;;  %v9421_v31 = vrot.slane %v4426_v10, 9  ;;  %v3705_v21 = vpop.f32.mrf.mxu1 }
 0x294   : > { %v4713_v22 = vpack.c.b16 %v12491_v36, %v12489_v63  ;;  %v5201_v7 = vsel %vm10520_vm4, %v5196_v46, %v5200_v2  ;;  %v4534_v62 = vrot.slane %v4002_v59, 5  ;;  %v4537_v25 = vrot.slane %v4026_v51, 5 }
 0x295   : > { %v5211_v29 = vsel %vm10520_vm4, %v5206_v48, %v5210_v9  ;;  %v5548_v24 = vunpack.c.l.b16 %v5201_v7  ;;  %v4211_v11 = vrot.slane %v4210_v3, 4  ;;  %v4220_v63 = vor.u32 %v4219_v26, %v4215_v54 }
 0x296   : > { %6078 = vmatmul.bf16.gmra.mxu1 %v10134_v56  ;;  %v5585_v20 = vpop.permute.xlu2 %5584  ;;  %v5549_v10 = vunpack.c.l.b16 %v5211_v29  ;;  %v4225_v36 = vrot.slane %v4223_v5, 5  ;;  %v4881_v56 = vld [vmem:[#allocation3 + $0xb8] sm:$0xf]  ;;  %v3706_v46 = vadd.f32 %v3705_v21, %v3472_v4  ;;  %v12516_v59 = vsel %vm10562_vm7, %v9421_v31, %v4534_v62 }
 0x297   : > { %v5704_v19 = vsel %vm3265_vm14, %v10174_v12, %v5585_v20  ;;  %v4536_v12 = vrot.slane %v4534_v62, 4  ;;  %v5237_v2 = vshrl.u32 %v4880_v39, 16  ;;  %v4216_v13 = vsel %vm10520_vm4, %v4211_v11, %v4215_v54  ;;  %v5298_v20 = vld [vmem:[#allocation3 + $0xb4] sm:$0xe] }
 0x298   : > { %v5745_v58 = vsel %vm3314_vm1, %v5704_v19, %v5665_v18  ;;  %v5568_v9 = vpack.c.b16 %v5549_v10, %v5548_v24  ;;  %v4221_v34 = vrot.slane %v4220_v63, 4  ;;  %v4898_v18 = vld [vmem:[#allocation3 + $0xbc] sm:$0x1]  ;;  %v5240_v48 = vshll.u32 %v4880_v39, 16  ;;  %v3475_v5 = vpop.f32.mrf.mxu0  ;;  %v4003_v63 = vld [vmem:[#allocation2 + $0x6c] sm:$0xf] }
 0x299   : > { %v3881_v49 = vpop.f32.mrf.mxu3  ;;  %9634 = vmatmul.msk.bf16.gmra.mxu0 %vm3354_vm2, %v5745_v58  ;;  %v12523_v4 = vsel %vm10562_vm7, %v4536_v12, %v4537_v25  ;;  %v5239_v26 = vrot.slane %v5237_v2, 4  ;;  %v5246_v31 = vshll.u32 %v4881_v56, 16  ;;  %v4753_v54 = vunpack.c.l.b16 %v12516_v59  ;;  %v5297_v25 = vld [vmem:[#allocation3 + $0xa8] sm:$0xe]  ;;  %v10220_v59 = vld [vmem:[%s13704_s4 + $0x218] sm:$0xff] }
 0x29a   : > { %5596 = vrot.lane.b32.xlu2 %v5568_v9, %s10445_s26  ;;  %v4226_v7 = vsel %vm10520_vm4, %v4221_v34, %v4225_v36  ;;  %v5242_v62 = vrot.slane %v5240_v48, 5  ;;  %v5250_v19 = vshrl.u32 %v4881_v56, 16  ;;  %v12531_v29 = vunpack.c.l.b16 %v4216_v13  ;;  %8640 = vmatpush.bf16.msra.mxu3 %v10220_v59  ;;  %v1528_v59 = vld [vmem:[#allocation3 + $0xc8] sm:$0x1] }
 0x29b   : > { %v5256_v24 = vshll.u32 %v4898_v18, 16  ;;  %v4754_v11 = vunpack.c.l.b16 %v12523_v4  ;;  %v9556_v10 = vrot.slane %v5298_v20, 9  ;;  %v12534_v12 = vunpack.c.l.b16 %v4226_v7 }
 0x29c   : > { %v3792_v51 = vpop.f32.mrf.mxu2  ;;  %v5243_v21 = vor.u32 %v5242_v62, %v5239_v26  ;;  %v5252_v58 = vrot.slane %v5250_v19, 4  ;;  %v5448_v2 = vrot.slane %v4881_v56, 5  ;;  %v9555_v34 = vrot.slane %v5297_v25, 9 }
 0x29d   : > { %v3793_v3 = vadd.f32 %v3792_v51, %v12487_v40  ;;  %v5248_v40 = vrot.slane %v5246_v31, 5  ;;  %v5258_v36 = vrot.slane %v5256_v24, 5  ;;  %v5451_v51 = vrot.slane %v4898_v18, 5 }
 0x29e   : > { %v5244_v9 = vrot.slane %v5243_v21, 4  ;;  %v5441_v13 = vrot.slane %v12457_v52, 5  ;;  %v5449_v48 = vsel %vm10562_vm7, %v9556_v10, %v5448_v2  ;;  %v5444_v4 = vrot.slane %v12468_v16, 5 }
 0x29f   : > { %v12529_v39 = vadd.f32 %v3881_v49, %v3793_v3  ;;  %6256 = vmatmul.bf16.gmra.mxu3 %v4777_v0  ;;  %v5253_v49 = vor.u32 %v5252_v58, %v5248_v40  ;;  %v5450_v3 = vrot.slane %v5448_v2, 4  ;;  %v4228_v26 = vshrl.u32 %v4003_v63, 16  ;;  %v10135_v0 = vld [vmem:[#allocation2 + $0x60] sm:$0xff] }
 0x2a0   : > { %v5249_v20 = vsel %vm10520_vm4, %v5244_v9, %v5248_v40  ;;  %v5632_v18 = vunpack.c.l.b16 %v5449_v48  ;;  %v5442_v7 = vsel %vm10562_vm7, %v9555_v34, %v5441_v13  ;;  %v12544_v62 = vpop.f32.mrf.mxu0  ;;  %v5443_v25 = vrot.slane %v5441_v13, 4  ;;  %v4027_v9 = vld [vmem:[#allocation2 + $0x74] sm:$0x1]  ;;  %v10212_v13 = vld [vmem:[%s13704_s4 + $0x1d8] sm:$0xff] }
 0x2a1   : > { %13778 = vst [vmem:[#allocation51_spill] sm:$0xff] %v12529_v39  ;;  %v5254_v56 = vrot.slane %v5253_v49, 4  ;;  %v5552_v24 = vunpack.c.l.b16 %v5249_v20  ;;  %v5452_v16 = vsel %vm10562_vm7, %v5450_v3, %v5451_v51  ;;  %v3883_v21 = vpop.f32.mrf.mxu3  ;;  %v5630_v2 = vunpack.c.l.b16 %v5442_v7  ;;  %v4427_v49 = vld [vmem:[#allocation2 + $0x6c] sm:$0xe]  ;;  %v10175_v3 = vld [vmem:[#allocation3 + $0x60] sm:$0xff]  ;;  %8551 = vmatpush.bf16.msra.mxu2 %v10212_v13 }
 0x2a2   : > { %6167 = vmatmul.bf16.gmra.mxu2 %v4713_v22  ;;  %v4004_v22 = vld [vmem:[#allocation2 + $0x70] sm:$0xf]  ;;  %v5633_v40 = vunpack.c.l.b16 %v5452_v16  ;;  %v5445_v48 = vsel %vm10562_vm7, %v5443_v25, %v5444_v4  ;;  %v4230_v51 = vrot.slane %v4228_v26, 4  ;;  %v9422_v16 = vrot.slane %v4427_v49, 9 }
 0x2a3   : > { %v3708_v19 = vpop.f32.mrf.mxu1  ;;  %v5259_v58 = vsel %vm10520_vm4, %v5254_v56, %v5258_v36  ;;  %v4237_v20 = vshll.u32 %v4004_v22, 16  ;;  %v1092_v56 = vld [vmem:[%s10659_s8 + $0x78] sm:$0xf] }
 0x2a4   : > { %v3794_v31 = vpop.f32.mrf.mxu2  ;;  %v12550_v10 = vadd.f32 %v3708_v19, %v3475_v5  ;;  %v5650_v36 = vpack.c.b16 %v5633_v40, %v5632_v18  ;;  %v4231_v5 = vshll.u32 %v4003_v63, 16  ;;  %v4241_v19 = vshrl.u32 %v4004_v22, 16 }
 0x2a5   : > { %v3795_v52 = vadd.f32 %v3794_v31, %v3706_v46  ;;  %v5553_v46 = vunpack.c.l.b16 %v5259_v58  ;;  %v5631_v31 = vunpack.c.l.b16 %v5445_v48  ;;  %v4541_v58 = vrot.slane %v4004_v22, 5  ;;  %v1093_v22 = vld [vmem:[%s10659_s8 + $0x7c] sm:$0xf] }
 0x2a6   : > { %6083 = vmatmul.bf16.gmra.mxu1 %v10135_v0  ;;  %5680 = vrot.lane.b32.xlu1 %v5650_v36, %s10446_s27  ;;  %v5667_v4 = vpop.permute.xlu2 %5666  ;;  %v4233_v25 = vrot.slane %v4231_v5, 5  ;;  %v4778_v0 = vpack.c.b16 %v4754_v11, %v4753_v54  ;;  %v4243_v18 = vrot.slane %v4241_v19, 4  ;;  %v1350_v40 = vshrl.u32 %v1092_v56, 16 }
 0x2a7   : > { %v12552_v34 = vadd.f32 %v3883_v21, %v3795_v52  ;;  %v5570_v7 = vpack.c.b16 %v5553_v46, %v5552_v24  ;;  %v4247_v52 = vshll.u32 %v4027_v9, 16  ;;  %v5649_v26 = vpack.c.b16 %v5631_v31, %v5630_v2  ;;  %v4005_v31 = vld [vmem:[#allocation2 + $0x78] sm:$0xf] }
 0x2a8   : > { %v4239_v21 = vrot.slane %v4237_v20, 5  ;;  %v4544_v24 = vrot.slane %v4027_v9, 5  ;;  %v4234_v46 = vor.u32 %v4233_v25, %v4230_v51  ;;  %v12568_v2 = vsel %vm10562_vm7, %v9422_v16, %v4541_v58 }
 0x2a9   : > { %13779 = vst [vmem:[#allocation52_spill] sm:$0xff] %v12552_v34  ;;  %5600 = vrot.lane.b32.xlu0 %v5570_v7, %s10445_s26  ;;  %v5587_v63 = vpop.permute.xlu1 %5586  ;;  %5678 = vrot.lane.b32.xlu2 %v5649_v26, %s10446_s27  ;;  %v4543_v48 = vrot.slane %v4541_v58, 4  ;;  %v4249_v13 = vrot.slane %v4247_v52, 5  ;;  %v1352_v36 = vrot.slane %v1350_v40, 7  ;;  %v4714_v51 = vpack.c.b16 %v12534_v12, %v12531_v29  ;;  %v1524_v26 = vld [vmem:[#allocation3 + $0xc0] sm:$0xf] }
 0x2aa   : > { %v5707_v49 = vsel %vm3265_vm14, %v10175_v3, %v5587_v63  ;;  %v4244_v9 = vor.u32 %v4243_v18, %v4239_v21  ;;  %v5816_v3 = vpop.f32.mrf.mxu0  ;;  %v4235_v5 = vrot.slane %v4234_v46, 4  ;;  %v1353_v7 = vshll.u32 %v1092_v56, 16  ;;  %v10204_v29 = vld [vmem:[%s13704_s4 + $0x198] sm:$0xff] }
 0x2ab   : > { %v3710_v54 = vpop.f32.mrf.mxu1  ;;  %v5747_v11 = vsel %vm3314_vm1, %v5707_v49, %v5667_v4  ;;  %v12580_v20 = vsel %vm10562_vm7, %v4543_v48, %v4544_v24  ;;  %v4755_v52 = vunpack.c.l.b16 %v12568_v2  ;;  %v1358_v4 = vshrl.u32 %v1093_v22, 16  ;;  %v4006_v63 = vld [vmem:[#allocation2 + $0x7c] sm:$0xf]  ;;  %8462 = vmatpush.bf16.msra.mxu1 %v10204_v29  ;;  %v4028_v49 = vld [vmem:[#allocation2 + $0x80] sm:$0x1] }
 0x2ac   : > { %9635 = vmatmul.msk.bf16.gmra.mxu0 %vm3354_vm2, %v5747_v11  ;;  %v4245_v19 = vrot.slane %v4244_v9, 4  ;;  %v12583_v16 = vadd.f32 %v3710_v54, %v12544_v62  ;;  %v4240_v12 = vsel %vm10520_vm4, %v4235_v5, %v4239_v21  ;;  %v1355_v25 = vor.u32 %v1353_v7, %v1352_v36  ;;  %v4428_v46 = vld [vmem:[#allocation2 + $0x78] sm:$0xe]  ;;  %v7270_v29 = vld [vmem:[#allocation3 + $0x18] sm:$0xf] }
 0x2ad   : > { %v1361_v58 = vshll.u32 %v1093_v22, 16  ;;  %v4252_v56 = vshrl.u32 %v4005_v31, 16  ;;  %v4756_v18 = vunpack.c.l.b16 %v12580_v20  ;;  %v1356_v24 = vrot.slane %v1352_v36, 4  ;;  %v10136_v20 = vld [vmem:[#allocation2 + $0x6c] sm:$0xff] }
 0x2ae   : > { %v4250_v62 = vsel %vm10520_vm4, %v4245_v19, %v4249_v13  ;;  %v1360_v40 = vrot.slane %v1358_v4, 7  ;;  %v12594_v48 = vunpack.c.l.b16 %v4240_v12  ;;  %v1525_v21 = vsel %vm10700_vm12, %v1355_v25, %v1524_v26 }
 0x2af   : > { %6261 = vmatmul.bf16.gmra.mxu3 %v4778_v0  ;;  %v4254_v22 = vrot.slane %v4252_v56, 4  ;;  %v4255_v54 = vshll.u32 %v4005_v31, 16  ;;  %1526 = vst [vmem:[#allocation3 + $0xc0] sm:$0xf] %v1525_v21  ;;  %v4261_v9 = vshll.u32 %v4006_v63, 16  ;;  %v4265_v13 = vshrl.u32 %v4006_v63, 16 }
 0x2b0   : > { %v1363_v11 = vor.u32 %v1361_v58, %v1360_v40  ;;  %v1365_v0 = vrot.slane %v1360_v40, 4  ;;  %v12598_v36 = vunpack.c.l.b16 %v4250_v62  ;;  %v4271_v19 = vshll.u32 %v4028_v49, 16  ;;  %v12607_v40 = vld [vmem:[#allocation3 + $0x1c] sm:$0xf] }
 0x2b1   : > { %v4257_v7 = vrot.slane %v4255_v54, 5  ;;  %v9423_v4 = vrot.slane %v4428_v46, 9  ;;  %v4263_v26 = vrot.slane %v4261_v9, 5  ;;  %v4267_v25 = vrot.slane %v4265_v13, 4  ;;  %v12614_v13 = vld [vmem:[#allocation3 + $0x20] sm:$0x1] }
 0x2b2   : > { %6172 = vmatmul.bf16.gmra.mxu2 %v4714_v51  ;;  %v3886_v5 = vpop.f32.mrf.mxu3  ;;  %v1364_v47 = vsel %vm10692_vm11, %v1356_v24, %v1363_v11  ;;  %v1529_v31 = vsel %vm10710_vm13, %v1365_v0, %v1528_v59  ;;  %v4273_v56 = vrot.slane %v4271_v19, 5  ;;  %v4548_v62 = vrot.slane %v4006_v63, 5  ;;  %v12609_v54 = vpop.f32.mrf.mxu0 }
 0x2b3   : > { %v6049_v12 = vpop.f32.mrf.mxu1  ;;  %1527 = vst.msk [vmem:[#allocation3 + $0xc4] sm:$0xf] %vm1006_vm0, %v1364_v47  ;;  %v4258_v58 = vor.u32 %v4257_v7, %v4254_v22  ;;  %v4268_v21 = vor.u32 %v4267_v25, %v4263_v26  ;;  %v4551_v24 = vrot.slane %v4028_v49, 5  ;;  %v7319_v11 = vshrl.u32 %v7270_v29, 16  ;;  %v10176_v25 = vld [vmem:[#allocation3 + $0x6c] sm:$0xff] }
 0x2b4   : > { %v12605_v51 = vadd.f32 %v6049_v12, %v5816_v3  ;;  %1530 = vst [vmem:[#allocation3 + $0xc8] sm:$0x1] %v1529_v31  ;;  %v7322_v50 = vshll.u32 %v7270_v29, 16  ;;  %v4549_v3 = vsel %vm10562_vm7, %v9423_v4, %v4548_v62  ;;  %v4550_v22 = vrot.slane %v4548_v62, 4 }
 0x2b5   : > { %v3797_v46 = vpop.f32.mrf.mxu2  ;;  %v4259_v0 = vrot.slane %v4258_v58, 4  ;;  %v4269_v9 = vrot.slane %v4268_v21, 4  ;;  %v4757_v63 = vunpack.c.l.b16 %v4549_v3  ;;  %v7321_v7 = vrot.slane %v7319_v11, 4 }
 0x2b6   : > { %v3798_v59 = vadd.f32 %v3797_v46, %v12550_v10  ;;  %6088 = vmatmul.bf16.gmra.mxu1 %v10136_v20  ;;  %v7324_v19 = vrot.slane %v7322_v50, 5  ;;  %v5299_v47 = vld [vmem:[#allocation3 + $0xc0] sm:$0xe]  ;;  %v4552_v10 = vsel %vm10562_vm7, %v4550_v22, %v4551_v24  ;;  %v7328_v20 = vshll.u32 %v12607_v40, 16 }
 0x2b7   : > { %v4264_v49 = vsel %vm10520_vm4, %v4259_v0, %v4263_v26  ;;  %v4882_v29 = vld [vmem:[#allocation3 + $0xc0] sm:$0xf]  ;;  %v4715_v4 = vpack.c.b16 %v12598_v36, %v12594_v48  ;;  %v4779_v31 = vpack.c.b16 %v4756_v18, %v4755_v52  ;;  %v4758_v58 = vunpack.c.l.b16 %v4552_v10 }
 0x2b8   : > { %v12616_v12 = vadd.f32 %v3886_v5, %v3798_v59  ;;  %v4274_v5 = vsel %vm10520_vm4, %v4269_v9, %v4273_v56  ;;  %v9557_v46 = vrot.slane %v5299_v47, 9  ;;  %v12629_v26 = vunpack.c.l.b16 %v4264_v49 }
 0x2b9   : > { %v7325_v21 = vor.u32 %v7324_v19, %v7321_v7  ;;  %v7332_v24 = vshrl.u32 %v12607_v40, 16  ;;  %v12634_v48 = vunpack.c.l.b16 %v4274_v5  ;;  %v7330_v2 = vrot.slane %v7328_v20, 5 }
 0x2ba   : > { %13780 = vst [vmem:[#allocation53_spill] sm:$0xff] %v12616_v12  ;;  %v3888_v62 = vpop.f32.mrf.mxu3  ;;  %v4883_v11 = vld [vmem:[#allocation3 + $0xc4] sm:$0xf]  ;;  %v5669_v59 = vpop.permute.xlu1 %5668  ;;  %v7338_v52 = vshll.u32 %v12614_v13, 16  ;;  %v5261_v18 = vshrl.u32 %v4882_v29, 16  ;;  %v12637_v3 = vpack.c.b16 %v4758_v58, %v4757_v63  ;;  %v5264_v9 = vshll.u32 %v4882_v29, 16 }
 0x2bb   : > { %v12632_v50 = vpop.f32.mrf.mxu1  ;;  %v4899_v36 = vld [vmem:[#allocation3 + $0xc8] sm:$0x1]  ;;  %v5455_v56 = vrot.slane %v4883_v11, 5  ;;  %v7326_v22 = vrot.slane %v7325_v21, 4  ;;  %v7334_v49 = vrot.slane %v7332_v24, 4  ;;  %vm9025_vm0 = vcmask 1041408  }
 0x2bc   : > { %v5589_v0 = vpop.permute.xlu0 %5588  ;;  %v5458_v19 = vrot.slane %v4899_v36, 5  ;;  %v7340_v10 = vrot.slane %v7338_v52, 5  ;;  %v4007_v21 = vld [vmem:[#allocation2 + $0x84] sm:$0xf]  ;;  %v5266_v52 = vrot.slane %v5264_v9, 5 }
 0x2bd   : > { %v3799_v7 = vpop.f32.mrf.mxu2  ;;  %v5710_v47 = vsel %vm3265_vm14, %v10176_v25, %v5589_v0  ;;  %v5456_v20 = vsel %vm10562_vm7, %v9557_v46, %v5455_v56  ;;  %v5457_v12 = vrot.slane %v5455_v56, 4  ;;  %v7331_v63 = vsel %vm10520_vm4, %v7326_v22, %v7330_v2 }
 0x2be   : > { %v3800_v5 = vadd.f32 %v3799_v7, %v12583_v16  ;;  %v5749_v34 = vsel %vm3314_vm1, %v5710_v47, %v5669_v59  ;;  %v5634_v39 = vunpack.c.l.b16 %v5456_v20  ;;  %v7335_v29 = vor.u32 %v7334_v49, %v7330_v2  ;;  %v10137_v7 = vld [vmem:[#allocation2 + $0x78] sm:$0xff]  ;;  %v12651_v2 = vld [vmem:[#allocation2 + $0x88] sm:$0xf] }
 0x2bf   : > { %6266 = vmatmul.bf16.gmra.mxu3 %v4779_v31  ;;  %9636 = vmatmul.msk.bf16.gmra.mxu0 %vm3354_vm2, %v5749_v34  ;;  %v5821_v58 = vpop.f32.mrf.mxu0  ;;  %v5263_v25 = vrot.slane %v5261_v18, 4  ;;  %v5459_v16 = vsel %vm10562_vm7, %v5457_v12, %v5458_v19  ;;  %v7942_v46 = vunpack.c.l.b16 %v7331_v63  ;;  %v5270_v31 = vshll.u32 %v4883_v11, 16  ;;  %v10177_v63 = vld [vmem:[#allocation3 + $0x78] sm:$0xff] }
 0x2c0   : > { %v12647_v24 = vadd.f32 %v3888_v62, %v3800_v5  ;;  %v5635_v56 = vunpack.c.l.b16 %v5459_v16  ;;  %v7336_v59 = vrot.slane %v7335_v29, 4  ;;  %v5274_v0 = vshrl.u32 %v4883_v11, 16 }
 0x2c1   : > { %v5267_v47 = vor.u32 %v5266_v52, %v5263_v25  ;;  %v5280_v22 = vshll.u32 %v4899_v36, 16  ;;  %v4276_v18 = vshrl.u32 %v4007_v21, 16  ;;  %v4279_v49 = vshll.u32 %v4007_v21, 16  ;;  %v12658_v25 = vld [vmem:[#allocation2 + $0x8c] sm:$0x1] }
 0x2c2   : > { %6177 = vmatmul.bf16.gmra.mxu2 %v4715_v4  ;;  %v6227_v34 = vpop.f32.mrf.mxu3  ;;  %v5651_v62 = vpack.c.b16 %v5635_v56, %v5634_v39  ;;  %v7341_v12 = vsel %vm10520_vm4, %v7336_v59, %v7340_v10  ;;  %v5272_v19 = vrot.slane %v5270_v31, 5  ;;  %v5276_v9 = vrot.slane %v5274_v0, 4  ;;  %v10211_v10 = vld [vmem:[%s13704_s4 + $0x1d0] sm:$0xff]  ;;  %v4429_v0 = vld [vmem:[#allocation2 + $0x84] sm:$0xe] }
 0x2c3   : > { %v6054_v5 = vpop.f32.mrf.mxu1  ;;  %v7943_v20 = vunpack.c.l.b16 %v7341_v12  ;;  %v5268_v4 = vrot.slane %v5267_v47, 4  ;;  %v5282_v11 = vrot.slane %v5280_v22, 5  ;;  %v4278_v21 = vrot.slane %v4276_v18, 4  ;;  %8552 = vmatpush.bf16.msra.mxu2 %v10211_v10 }
 0x2c4   : > { %v12655_v29 = vadd.f32 %v6054_v5, %v5821_v58  ;;  %5682 = vrot.lane.b32.xlu0 %v5651_v62, %s10446_s27  ;;  %v5277_v36 = vor.u32 %v5276_v9, %v5272_v19  ;;  %v4281_v39 = vrot.slane %v4279_v49, 5  ;;  %v4285_v52 = vshll.u32 %v12651_v2, 16 }
 0x2c5   : > { %v6138_v16 = vpop.f32.mrf.mxu2  ;;  %v7974_v58 = vpack.c.b16 %v7943_v20, %v7942_v46  ;;  %v5273_v59 = vsel %vm10520_vm4, %v5268_v4, %v5272_v19  ;;  %v4289_v31 = vshrl.u32 %v12651_v2, 16  ;;  %v6052_v47 = vadd.f32 %v12632_v50, %v12609_v54  ;;  %v5591_v22 = vpop.permute.xlu2 %5590  ;;  %v7272_v19 = vld [vmem:[#allocation3 + $0x24] sm:$0xf] }
 0x2c6   : > { %v6139_v56 = vadd.f32 %v6138_v16, %v12605_v51  ;;  %6093 = vmatmul.bf16.gmra.mxu1 %v10137_v7  ;;  %v5278_v18 = vrot.slane %v5277_v36, 4  ;;  %v4282_v49 = vor.u32 %v4281_v39, %v4278_v21  ;;  %v4287_v62 = vrot.slane %v4285_v52, 5  ;;  %v10219_v52 = vld [vmem:[%s13704_s4 + $0x210] sm:$0xff] }
 0x2c7   : > { %7990 = vrot.lane.b32.xlu1 %v7974_v58, %s10445_s26  ;;  %v5554_v51 = vunpack.c.l.b16 %v5273_v59  ;;  %v4291_v7 = vrot.slane %v4289_v31, 4  ;;  %v4295_v46 = vshll.u32 %v12658_v25, 16  ;;  %v5823_v12 = vpop.f32.mrf.mxu0  ;;  %v5713_v9 = vsel %vm3265_vm14, %v10177_v63, %v5591_v22  ;;  %v5671_v20 = vpop.permute.xlu0 %5670  ;;  %v7273_v58 = vld [vmem:[#allocation3 + $0x28] sm:$0xf]  ;;  %8641 = vmatpush.bf16.msra.mxu3 %v10219_v52  ;;  %v7702_v52 = vld [vmem:[#allocation3 + $0x18] sm:$0xe] }
 0x2c8   : > { %v6228_v5 = vadd.f32 %v6227_v34, %v6139_v56  ;;  %v5283_v54 = vsel %vm10520_vm4, %v5278_v18, %v5282_v11  ;;  %v4283_v50 = vrot.slane %v4282_v49, 4  ;;  %v9424_v4 = vrot.slane %v4429_v0, 9 }
 0x2c9   : > { %v5555_v36 = vunpack.c.l.b16 %v5283_v54  ;;  %v4292_v21 = vor.u32 %v4291_v7, %v4287_v62  ;;  %v4297_v39 = vrot.slane %v4295_v46, 5  ;;  %v4555_v56 = vrot.slane %v12651_v2, 5  ;;  %v7303_v7 = vld [vmem:[#allocation3 + $0x2c] sm:$0x1]  ;;  %v10203_v2 = vld [vmem:[%s13704_s4 + $0x190] sm:$0xff] }
 0x2ca   : > { %v12676_v16 = vadd.f32 %v6228_v5, %v11571_v44  ;;  %v6229_v34 = vpop.f32.mrf.mxu3  ;;  %v4288_v63 = vsel %vm10520_vm4, %v4283_v50, %v4287_v62  ;;  %v4558_v11 = vrot.slane %v12658_v25, 5  ;;  %v7343_v59 = vshrl.u32 %v7272_v19, 16  ;;  %8463 = vmatpush.bf16.msra.mxu1 %v10203_v2 }
 0x2cb   : > { %v6056_v10 = vpop.f32.mrf.mxu1  ;;  %v4716_v44 = vpack.c.b16 %v12634_v48, %v12629_v26  ;;  %v5751_v31 = vsel %vm3314_vm1, %v5713_v9, %v5671_v20  ;;  %v5571_v0 = vpack.c.b16 %v5555_v36, %v5554_v51  ;;  %v4293_v22 = vrot.slane %v4292_v21, 4  ;;  %v7703_v9 = vld [vmem:[#allocation3 + $0x24] sm:$0xe] }
 0x2cc   : > { %v12688_v49 = vunpack.c.l.b16 %v4288_v63  ;;  %v4557_v5 = vrot.slane %v4555_v56, 4  ;;  %v7345_v62 = vrot.slane %v7343_v59, 4  ;;  %v7346_v46 = vshll.u32 %v7272_v19, 16 }
 0x2cd   : > { %v6140_v18 = vpop.f32.mrf.mxu2  ;;  %5602 = vrot.lane.b32.xlu2 %v5571_v0, %s10445_s26  ;;  %v4298_v26 = vsel %vm10520_vm4, %v4293_v22, %v4297_v39  ;;  %v12698_v48 = vsel %vm10562_vm7, %v9424_v4, %v4555_v56  ;;  %v7352_v51 = vshll.u32 %v7273_v58, 16  ;;  %v7356_v54 = vshrl.u32 %v7273_v58, 16  ;;  %v10138_v0 = vld [vmem:[#allocation2 + $0x84] sm:$0xff] }
 0x2ce   : > { %v6141_v25 = vadd.f32 %v6140_v18, %v6052_v47  ;;  %v12702_v19 = vunpack.c.l.b16 %v4298_v26  ;;  %v12706_v47 = vsel %vm10562_vm7, %v4557_v5, %v4558_v11  ;;  %v7348_v20 = vrot.slane %v7346_v46, 5 }
 0x2cf   : > { %6271 = vmatmul.bf16.gmra.mxu3 %v12637_v3  ;;  %9637 = vmatmul.msk.bf16.gmra.mxu0 %vm3354_vm2, %v5751_v31  ;;  %v12710_v36 = vadd.f32 %v6056_v10, %v5823_v12  ;;  %v7354_v4 = vrot.slane %v7352_v51, 5  ;;  %v7362_v21 = vshll.u32 %v7303_v7, 16  ;;  %v5826_v39 = vpop.f32.mrf.mxu0  ;;  %v4759_v3 = vunpack.c.l.b16 %v12698_v48 }
 0x2d0   : > { %v12708_v50 = vadd.f32 %v6229_v34, %v6141_v25  ;;  %v7349_v63 = vor.u32 %v7348_v20, %v7345_v62  ;;  %v7358_v56 = vrot.slane %v7356_v54, 4  ;;  %v9869_v59 = vrot.slane %v7703_v9, 9  ;;  %v4009_v20 = vld [vmem:[#allocation2 + $0x90] sm:$0xf] }
 0x2d1   : > { %v4717_v11 = vpack.c.b16 %v12702_v19, %v12688_v49  ;;  %v4760_v34 = vunpack.c.l.b16 %v12706_v47  ;;  %v7364_v12 = vrot.slane %v7362_v21, 5  ;;  %v7775_v10 = vrot.slane %v7273_v58, 5 }
 0x2d2   : > { %6182 = vmatmul.bf16.gmra.mxu2 %v4716_v44  ;;  %v6232_v31 = vpop.f32.mrf.mxu3  ;;  %v7350_v18 = vrot.slane %v7349_v63, 4  ;;  %v7359_v5 = vor.u32 %v7358_v56, %v7354_v4  ;;  %v7778_v46 = vrot.slane %v7303_v7, 5  ;;  %v9868_v2 = vrot.slane %v7702_v52, 9  ;;  %v4010_v52 = vld [vmem:[#allocation2 + $0x94] sm:$0xf] }
 0x2d3   : > { %v6059_v22 = vpop.f32.mrf.mxu1  ;;  %v7776_v62 = vsel %vm10562_vm7, %v9869_v59, %v7775_v10  ;;  %v7777_v25 = vrot.slane %v7775_v10, 4  ;;  %v7768_v44 = vrot.slane %v12607_v40, 5  ;;  %v7771_v58 = vrot.slane %v12614_v13, 5 }
 0x2d4   : > { %v12718_v26 = vadd.f32 %v6059_v22, %v5826_v39  ;;  %v7355_v51 = vsel %vm10520_vm4, %v7350_v18, %v7354_v4  ;;  %v7360_v9 = vrot.slane %v7359_v5, 4  ;;  %v8024_v47 = vunpack.c.l.b16 %v7776_v62  ;;  %v10178_v39 = vld [vmem:[#allocation3 + $0x84] sm:$0xff] }
 0x2d5   : > { %v6143_v48 = vpop.f32.mrf.mxu2  ;;  %v7944_v54 = vunpack.c.l.b16 %v7355_v51  ;;  %v7779_v21 = vsel %vm10562_vm7, %v7777_v25, %v7778_v46  ;;  %v7769_v40 = vsel %vm10562_vm7, %v9868_v2, %v7768_v44  ;;  %v7770_v56 = vrot.slane %v7768_v44, 4  ;;  %v4030_v25 = vld [vmem:[#allocation2 + $0x98] sm:$0x1] }
 0x2d6   : > { %v6144_v7 = vadd.f32 %v6143_v48, %v12655_v29  ;;  %6098 = vmatmul.bf16.gmra.mxu1 %v10138_v0  ;;  %v7365_v4 = vsel %vm10520_vm4, %v7360_v9, %v7364_v12  ;;  %v8025_v63 = vunpack.c.l.b16 %v7779_v21  ;;  %v8022_v59 = vunpack.c.l.b16 %v7769_v40  ;;  %v5673_v62 = vpop.permute.xlu2 %5672 }
 0x2d7   : > { %v7945_v10 = vunpack.c.l.b16 %v7365_v4  ;;  %v4300_v22 = vshrl.u32 %v4009_v20, 16  ;;  %v4303_v29 = vshll.u32 %v4009_v20, 16  ;;  %v5828_v0 = vpop.f32.mrf.mxu0  ;;  %v7772_v46 = vsel %vm10562_vm7, %v7770_v56, %v7771_v58  ;;  %v7704_v58 = vld [vmem:[#allocation3 + $0x30] sm:$0xe] }
 0x2d8   : > { %v6233_v13 = vadd.f32 %v6232_v31, %v6144_v7  ;;  %v8055_v18 = vpack.c.b16 %v8025_v63, %v8024_v47  ;;  %v5593_v5 = vpop.permute.xlu1 %5592  ;;  %v4309_v2 = vshll.u32 %v4010_v52, 16  ;;  %v4313_v48 = vshrl.u32 %v4010_v52, 16  ;;  %v4430_v7 = vld [vmem:[#allocation2 + $0x90] sm:$0xe] }
 0x2d9   : > { %v7975_v44 = vpack.c.b16 %v7945_v10, %v7944_v54  ;;  %v5716_v31 = vsel %vm3265_vm14, %v10178_v39, %v5593_v5  ;;  %v8023_v9 = vunpack.c.l.b16 %v7772_v46  ;;  %v4781_v20 = vpack.c.b16 %v4760_v34, %v4759_v3  ;;  %v12740_v54 = vld [vmem:[#allocation3 + $0x34] sm:$0xf] }
 0x2da   : > { %v12734_v51 = vadd.f32 %v6233_v13, %v11657_v42  ;;  %v6234_v12 = vpop.f32.mrf.mxu3  ;;  %8072 = vrot.lane.b32.xlu1 %v8055_v18, %s10446_s27  ;;  %v4302_v21 = vrot.slane %v4300_v22, 4  ;;  %v4305_v40 = vrot.slane %v4303_v29, 5  ;;  %v4311_v4 = vrot.slane %v4309_v2, 5  ;;  %v12742_v18 = vld [vmem:[#allocation3 + $0x38] sm:$0x1] }
 0x2db   : > { %v6061_v47 = vpop.f32.mrf.mxu1  ;;  %7992 = vrot.lane.b32.xlu0 %v7975_v44, %s10445_s26  ;;  %v5753_v63 = vsel %vm3314_vm1, %v5716_v31, %v5673_v62  ;;  %v8054_v42 = vpack.c.b16 %v8023_v9, %v8022_v59  ;;  %v4315_v56 = vrot.slane %v4313_v48, 4  ;;  %v4319_v13 = vshll.u32 %v4030_v25, 16 }
 0x2dc   : > { %v4306_v10 = vor.u32 %v4305_v40, %v4302_v21  ;;  %v9425_v5 = vrot.slane %v4430_v7, 9  ;;  %v4562_v3 = vrot.slane %v4010_v52, 5  ;;  %v4565_v34 = vrot.slane %v4030_v25, 5  ;;  %v4011_v7 = vld [vmem:[#allocation2 + $0x9c] sm:$0xf] }
 0x2dd   : > { %v6145_v39 = vpop.f32.mrf.mxu2  ;;  %8070 = vrot.lane.b32.xlu2 %v8054_v42, %s10446_s27  ;;  %v4316_v29 = vor.u32 %v4315_v56, %v4311_v4  ;;  %v4321_v46 = vrot.slane %v4319_v13, 5  ;;  %v9870_v2 = vrot.slane %v7704_v58, 9  ;;  %v7782_v52 = vrot.slane %v12740_v54, 5  ;;  %v10139_v42 = vld [vmem:[#allocation2 + $0x90] sm:$0xff]  ;;  %v4012_v56 = vld [vmem:[#allocation2 + $0xa0] sm:$0xf] }
 0x2de   : > { %v6146_v22 = vadd.f32 %v6145_v39, %v12710_v36  ;;  %v4307_v59 = vrot.slane %v4306_v10, 4  ;;  %v4563_v62 = vsel %vm10562_vm7, %v9425_v5, %v4562_v3  ;;  %v4564_v48 = vrot.slane %v4562_v3, 4  ;;  %v4031_v10 = vld [vmem:[#allocation2 + $0xa4] sm:$0x1] }
 0x2df   : > { %6276 = vmatmul.bf16.gmra.mxu3 %v4781_v20  ;;  %9638 = vmatmul.msk.bf16.gmra.mxu0 %vm3354_vm2, %v5753_v63  ;;  %v12752_v25 = vadd.f32 %v11972_v35, %v12466_v32  ;;  %v4317_v44 = vrot.slane %v4316_v29, 4  ;;  %v7785_v31 = vrot.slane %v12742_v18, 5  ;;  %v5831_v9 = vpop.f32.mrf.mxu0  ;;  %v7783_v40 = vsel %vm10562_vm7, %v9870_v2, %v7782_v52  ;;  %v10210_v2 = vld [vmem:[%s13704_s4 + $0x1c8] sm:$0xff] }
 0x2e0   : > { %v12754_v36 = vadd.f32 %v6234_v12, %v6146_v22  ;;  %v4312_v20 = vsel %vm10520_vm4, %v4307_v59, %v4311_v4  ;;  %v4566_v21 = vsel %vm10562_vm7, %v4564_v48, %v4565_v34  ;;  %v7784_v58 = vrot.slane %v7782_v52, 4  ;;  %v4431_v34 = vld [vmem:[#allocation2 + $0x9c] sm:$0xe]  ;;  %8553 = vmatpush.bf16.msra.mxu2 %v10210_v2 }
 0x2e1   : > { %v12765_v35 = vadd.f32 %v12011_v15, %v12472_v27  ;;  %v4322_v12 = vsel %vm10520_vm4, %v4317_v44, %v4321_v46  ;;  %v12772_v4 = vadd.f32 %v6061_v47, %v5828_v0  ;;  %v4761_v63 = vunpack.c.l.b16 %v4563_v62  ;;  %v7276_v44 = vld [vmem:[#allocation3 + $0x3c] sm:$0xf] }
 0x2e2   : > { %6187 = vmatmul.bf16.gmra.mxu2 %v4717_v11  ;;  %v6237_v32 = vpop.f32.mrf.mxu3  ;;  %v12774_v13 = vunpack.c.l.b16 %v4312_v20  ;;  %v7786_v15 = vsel %vm10562_vm7, %v7784_v58, %v7785_v31  ;;  %v8026_v27 = vunpack.c.l.b16 %v7783_v40  ;;  %v4324_v5 = vshrl.u32 %v4011_v7, 16 }
 0x2e3   : > { %v6064_v39 = vpop.f32.mrf.mxu1  ;;  %v4762_v49 = vunpack.c.l.b16 %v4566_v21  ;;  %v8027_v19 = vunpack.c.l.b16 %v7786_v15  ;;  %v4327_v3 = vshll.u32 %v4011_v7, 16  ;;  %v12780_v47 = vunpack.c.l.b16 %v4322_v12  ;;  %v12787_v15 = vld [vmem:[#allocation3 + $0x40] sm:$0xf] }
 0x2e4   : > { %v12778_v11 = vadd.f32 %v6064_v39, %v5831_v9  ;;  %v4326_v22 = vrot.slane %v4324_v5, 4  ;;  %v4333_v29 = vshll.u32 %v4012_v56, 16  ;;  %v4337_v46 = vshrl.u32 %v4012_v56, 16 }
 0x2e5   : > { %v6148_v0 = vpop.f32.mrf.mxu2  ;;  %v8056_v62 = vpack.c.b16 %v8027_v19, %v8026_v27  ;;  %v4329_v48 = vrot.slane %v4327_v3, 5  ;;  %v4343_v52 = vshll.u32 %v4031_v10, 16  ;;  %v9426_v7 = vrot.slane %v4431_v34, 9 }
 0x2e6   : > { %v6149_v59 = vadd.f32 %v6148_v0, %v12718_v26  ;;  %6103 = vmatmul.bf16.gmra.mxu1 %v10139_v42  ;;  %v4335_v31 = vrot.slane %v4333_v29, 5  ;;  %v4339_v9 = vrot.slane %v4337_v46, 4  ;;  %v4569_v20 = vrot.slane %v4012_v56, 5  ;;  %v10179_v26 = vld [vmem:[#allocation3 + $0x90] sm:$0xff] }
 0x2e7   : > { %v4782_v40 = vpack.c.b16 %v4762_v49, %v4761_v63  ;;  %8074 = vrot.lane.b32.xlu0 %v8056_v62, %s10446_s27  ;;  %v4330_v58 = vor.u32 %v4329_v48, %v4326_v22  ;;  %v5833_v12 = vpop.f32.mrf.mxu0  ;;  %v4572_v39 = vrot.slane %v4031_v10, 5  ;;  %v7391_v19 = vshrl.u32 %v7276_v44, 16  ;;  %v10218_v10 = vld [vmem:[%s13704_s4 + $0x208] sm:$0xff]  ;;  %v5675_v0 = vpop.permute.xlu1 %5674 }
 0x2e8   : > { %v6238_v21 = vadd.f32 %v6237_v32, %v6149_v59  ;;  %v4340_v42 = vor.u32 %v4339_v9, %v4335_v31  ;;  %v12791_v27 = vsel %vm10562_vm7, %v9426_v7, %v4569_v20  ;;  %v4571_v5 = vrot.slane %v4569_v20, 4  ;;  %8642 = vmatpush.bf16.msra.mxu3 %v10218_v10  ;;  %v7274_v9 = vld [vmem:[#allocation3 + $0x30] sm:$0xf] }
 0x2e9   : > { %v4331_v63 = vrot.slane %v4330_v58, 4  ;;  %v4345_v49 = vrot.slane %v4343_v52, 5  ;;  %v7394_v3 = vshll.u32 %v7276_v44, 16  ;;  %v7393_v46 = vrot.slane %v7391_v19, 4  ;;  %v12811_v52 = vld [vmem:[#allocation3 + $0x44] sm:$0x1] }
 0x2ea   : > { %v12794_v56 = vadd.f32 %v6238_v21, %v11712_v23  ;;  %v6239_v32 = vpop.f32.mrf.mxu3  ;;  %v4341_v22 = vrot.slane %v4340_v42, 4  ;;  %v12801_v29 = vsel %vm10562_vm7, %v4571_v5, %v4572_v39  ;;  %v7400_v2 = vshll.u32 %v12787_v15, 16  ;;  %v5595_v62 = vpop.permute.xlu0 %5594 }
 0x2eb   : > { %v6066_v34 = vpop.f32.mrf.mxu1  ;;  %v12806_v23 = vadd.f32 %v12078_v61, %v12108_v17  ;;  %v4718_v59 = vpack.c.b16 %v12780_v47, %v12774_v13  ;;  %v4763_v48 = vunpack.c.l.b16 %v12791_v27  ;;  %v7396_v44 = vrot.slane %v7394_v3, 5  ;;  %v10202_v17 = vld [vmem:[%s13704_s4 + $0x188] sm:$0xff] }
 0x2ec   : > { %v5719_v20 = vsel %vm3265_vm14, %v10179_v26, %v5595_v62  ;;  %v4336_v21 = vsel %vm10520_vm4, %v4331_v63, %v4335_v31  ;;  %v12816_v58 = vadd.f32 %v6066_v34, %v5833_v12  ;;  %v4764_v61 = vunpack.c.l.b16 %v12801_v29  ;;  %8464 = vmatpush.bf16.msra.mxu1 %v10202_v17  ;;  %v10140_v29 = vld [vmem:[#allocation2 + $0x9c] sm:$0xff] }
 0x2ed   : > { %v6150_v7 = vpop.f32.mrf.mxu2  ;;  %v5755_v47 = vsel %vm3314_vm1, %v5719_v20, %v5675_v0  ;;  %v4346_v39 = vsel %vm10520_vm4, %v4341_v22, %v4345_v49  ;;  %v7402_v42 = vrot.slane %v7400_v2, 5  ;;  %v7397_v31 = vor.u32 %v7396_v44, %v7393_v46  ;;  %v4013_v49 = vld [vmem:[#allocation2 + $0xa8] sm:$0xf] }
 0x2ee   : > { %v6151_v13 = vadd.f32 %v6150_v7, %v12772_v4  ;;  %v7404_v12 = vshrl.u32 %v12787_v15, 16  ;;  %v7410_v26 = vshll.u32 %v12811_v52, 16  ;;  %v7367_v27 = vshrl.u32 %v7274_v9, 16 }
 0x2ef   : > { %6281 = vmatmul.bf16.gmra.mxu3 %v4782_v40  ;;  %9639 = vmatmul.msk.bf16.gmra.mxu0 %vm3354_vm2, %v5755_v47  ;;  %v12831_v19 = vunpack.c.l.b16 %v4336_v21  ;;  %v5836_v4 = vpop.f32.mrf.mxu0  ;;  %v7370_v63 = vshll.u32 %v7274_v9, 16  ;;  %v7376_v3 = vshll.u32 %v12740_v54, 16  ;;  %v12834_v10 = vunpack.c.l.b16 %v4346_v39  ;;  %v12840_v21 = vld [vmem:[#allocation2 + $0xac] sm:$0xf] }
 0x2f0   : > { %v12829_v5 = vadd.f32 %v6239_v32, %v6151_v13  ;;  %v7398_v40 = vrot.slane %v7397_v31, 4  ;;  %v7406_v34 = vrot.slane %v7404_v12, 4  ;;  %v7369_v0 = vrot.slane %v7367_v27, 4 }
 0x2f1   : > { %v7412_v46 = vrot.slane %v7410_v26, 5  ;;  %v7372_v2 = vrot.slane %v7370_v63, 5  ;;  %v7378_v32 = vrot.slane %v7376_v3, 5  ;;  %v7380_v62 = vshrl.u32 %v12740_v54, 16  ;;  %v10180_v26 = vld [vmem:[#allocation3 + $0x9c] sm:$0xff] }
 0x2f2   : > { %13781 = vst [vmem:[#allocation54_spill] sm:$0xff] %v12829_v5  ;;  %6192 = vmatmul.bf16.gmra.mxu2 %v4718_v59  ;;  %v6242_v22 = vpop.f32.mrf.mxu3  ;;  %v7403_v9 = vsel %vm10520_vm4, %v7398_v40, %v7402_v42  ;;  %v7407_v7 = vor.u32 %v7406_v34, %v7402_v42  ;;  %v7386_v20 = vshll.u32 %v12742_v18, 16  ;;  %v4348_v17 = vshrl.u32 %v4013_v49, 16 }
 0x2f3   : > { %v6069_v44 = vpop.f32.mrf.mxu1  ;;  %v7948_v13 = vunpack.c.l.b16 %v7403_v9  ;;  %v7373_v59 = vor.u32 %v7372_v2, %v7369_v0  ;;  %v7382_v39 = vrot.slane %v7380_v62, 4  ;;  %v4351_v63 = vshll.u32 %v4013_v49, 16 }
 0x2f4   : > { %v12842_v47 = vadd.f32 %v6069_v44, %v5836_v4  ;;  %v7408_v12 = vrot.slane %v7407_v7, 4  ;;  %v7388_v27 = vrot.slane %v7386_v20, 5  ;;  %v4350_v54 = vrot.slane %v4348_v17, 4  ;;  %v5597_v42 = vpop.permute.xlu2 %5596  ;;  %v4432_v7 = vld [vmem:[#allocation2 + $0xa8] sm:$0xe] }
 0x2f5   : > { %v6153_v31 = vpop.f32.mrf.mxu2  ;;  %v7374_v40 = vrot.slane %v7373_v59, 4  ;;  %v7383_v18 = vor.u32 %v7382_v39, %v7378_v32  ;;  %v4357_v34 = vshll.u32 %v12840_v21, 16  ;;  %v4783_v5 = vpack.c.b16 %v4764_v61, %v4763_v48 }
 0x2f6   : > { %v6154_v3 = vadd.f32 %v6153_v31, %v12778_v11  ;;  %6108 = vmatmul.bf16.gmra.mxu1 %v10140_v29  ;;  %v7413_v4 = vsel %vm10520_vm4, %v7408_v12, %v7412_v46  ;;  %v4353_v0 = vrot.slane %v4351_v63, 5  ;;  %v4361_v2 = vshrl.u32 %v12840_v21, 16  ;;  %v4032_v11 = vld [vmem:[#allocation2 + $0xb0] sm:$0x1]  ;;  %v5677_v17 = vpop.permute.xlu0 %5676 }
 0x2f7   : > { %v7949_v44 = vunpack.c.l.b16 %v7413_v4  ;;  %v7379_v49 = vsel %vm10520_vm4, %v7374_v40, %v7378_v32  ;;  %v7384_v9 = vrot.slane %v7383_v18, 4  ;;  %v5838_v29 = vpop.f32.mrf.mxu0  ;;  %v5722_v20 = vsel %vm3265_vm14, %v10180_v26, %v5597_v42  ;;  %v7278_v32 = vld [vmem:[#allocation3 + $0x48] sm:$0xf] }
 0x2f8   : > { %v6243_v62 = vadd.f32 %v6242_v22, %v6154_v3  ;;  %v7946_v59 = vunpack.c.l.b16 %v7379_v49  ;;  %v4354_v48 = vor.u32 %v4353_v0, %v4350_v54  ;;  %v4359_v61 = vrot.slane %v4357_v34, 5 }
 0x2f9   : > { %v7977_v31 = vpack.c.b16 %v7949_v44, %v7948_v13  ;;  %v7389_v22 = vsel %vm10520_vm4, %v7384_v9, %v7388_v27  ;;  %v4363_v12 = vrot.slane %v4361_v2, 4  ;;  %v4367_v18 = vshll.u32 %v4032_v11, 16  ;;  %v7279_v2 = vld [vmem:[#allocation3 + $0x4c] sm:$0xf] }
 0x2fa   : > { %v12853_v46 = vadd.f32 %v6243_v62, %v11780_v37  ;;  %v6244_v39 = vpop.f32.mrf.mxu3  ;;  %v7947_v3 = vunpack.c.l.b16 %v7389_v22  ;;  %v4355_v40 = vrot.slane %v4354_v48, 4  ;;  %v9427_v4 = vrot.slane %v4432_v7, 9 }
 0x2fb   : > { %v6071_v63 = vpop.f32.mrf.mxu1  ;;  %v4719_v26 = vpack.c.b16 %v12834_v10, %v12831_v19  ;;  %7996 = vrot.lane.b32.xlu1 %v7977_v31, %s10445_s26  ;;  %v5757_v37 = vsel %vm3314_vm1, %v5722_v20, %v5677_v17  ;;  %v4364_v54 = vor.u32 %v4363_v12, %v4359_v61  ;;  %v4576_v13 = vrot.slane %v12840_v21, 5  ;;  %v7306_v10 = vld [vmem:[#allocation3 + $0x50] sm:$0x1] }
 0x2fc   : > { %v7976_v34 = vpack.c.b16 %v7947_v3, %v7946_v59  ;;  %v4369_v27 = vrot.slane %v4367_v18, 5  ;;  %v4579_v0 = vrot.slane %v4032_v11, 5  ;;  %v7415_v62 = vshrl.u32 %v7278_v32, 16 }
 0x2fd   : > { %v6155_v42 = vpop.f32.mrf.mxu2  ;;  %v4360_v49 = vsel %vm10520_vm4, %v4355_v40, %v4359_v61  ;;  %v4365_v9 = vrot.slane %v4364_v54, 4  ;;  %v4577_v19 = vsel %vm10562_vm7, %v9427_v4, %v4576_v13  ;;  %v4578_v21 = vrot.slane %v4576_v13, 4  ;;  %v7706_v61 = vld [vmem:[#allocation3 + $0x48] sm:$0xe]  ;;  %v10141_v40 = vld [vmem:[#allocation2 + $0xa8] sm:$0xff] }
 0x2fe   : > { %v6156_v44 = vadd.f32 %v6155_v42, %v12816_v58  ;;  %v4765_v7 = vunpack.c.l.b16 %v4577_v19  ;;  %v7417_v20 = vrot.slane %v7415_v62, 4  ;;  %v7418_v17 = vshll.u32 %v7278_v32, 16  ;;  %7994 = vrot.lane.b32.xlu2 %v7976_v34, %s10445_s26  ;;  %v7705_v54 = vld [vmem:[#allocation3 + $0x3c] sm:$0xe]  ;;  %v10181_v19 = vld [vmem:[#allocation3 + $0xa8] sm:$0xff] }
 0x2ff   : > { %6286 = vmatmul.bf16.gmra.mxu3 %v4783_v5  ;;  %9640 = vmatmul.msk.bf16.gmra.mxu0 %vm3354_vm2, %v5757_v37  ;;  %v4370_v58 = vsel %vm10520_vm4, %v4365_v9, %v4369_v27  ;;  %v7424_v59 = vshll.u32 %v7279_v2, 16  ;;  %v7428_v48 = vshrl.u32 %v7279_v2, 16  ;;  %v12873_v31 = vadd.f32 %v6071_v63, %v5838_v29  ;;  %v5841_v37 = vpop.f32.mrf.mxu0 }
 0x300   : > { %v12868_v11 = vadd.f32 %v6244_v39, %v6156_v44  ;;  %v4580_v5 = vsel %vm10562_vm7, %v4578_v21, %v4579_v0  ;;  %v7420_v22 = vrot.slane %v7418_v17, 5  ;;  %v7434_v12 = vshll.u32 %v7306_v10, 16 }
 0x301   : > { %v12877_v32 = vunpack.c.l.b16 %v4360_v49  ;;  %v4766_v39 = vunpack.c.l.b16 %v4580_v5  ;;  %v7426_v18 = vrot.slane %v7424_v59, 5  ;;  %v7430_v4 = vrot.slane %v7428_v48, 4 }
 0x302   : > { %6197 = vmatmul.bf16.gmra.mxu2 %v4719_v26  ;;  %v6247_v3 = vpop.f32.mrf.mxu3  ;;  %v12879_v13 = vunpack.c.l.b16 %v4370_v58  ;;  %v7421_v29 = vor.u32 %v7420_v22, %v7417_v20  ;;  %v7436_v63 = vrot.slane %v7434_v12, 5  ;;  %v9872_v34 = vrot.slane %v7706_v61, 9  ;;  %v10209_v58 = vld [vmem:[%s13704_s4 + $0x1c0] sm:$0xff]  ;;  %v4015_v12 = vld [vmem:[#allocation2 + $0xb4] sm:$0xf] }
 0x303   : > { %v6074_v42 = vpop.f32.mrf.mxu1  ;;  %v12881_v27 = vpack.c.b16 %v4766_v39, %v4765_v7  ;;  %v7431_v0 = vor.u32 %v7430_v4, %v7426_v18  ;;  %v7796_v62 = vrot.slane %v7279_v2, 5  ;;  %v7799_v26 = vrot.slane %v7306_v10, 5  ;;  %v5679_v5 = vpop.permute.xlu2 %5678  ;;  %8554 = vmatpush.bf16.msra.mxu2 %v10209_v58 }
 0x304   : > { %v7422_v49 = vrot.slane %v7421_v29, 4  ;;  %v12883_v9 = vadd.f32 %v6074_v42, %v5841_v37  ;;  %v9871_v21 = vrot.slane %v7705_v54, 9  ;;  %v7789_v17 = vrot.slane %v12787_v15, 5  ;;  %v4016_v29 = vld [vmem:[#allocation2 + $0xb8] sm:$0xf] }
 0x305   : > { %v6158_v44 = vpop.f32.mrf.mxu2  ;;  %v7432_v7 = vrot.slane %v7431_v0, 4  ;;  %v7797_v2 = vsel %vm10562_vm7, %v9872_v34, %v7796_v62  ;;  %v7798_v10 = vrot.slane %v7796_v62, 4  ;;  %v5599_v61 = vpop.permute.xlu1 %5598  ;;  %v7792_v42 = vrot.slane %v12811_v52, 5 }
 0x306   : > { %v6159_v20 = vadd.f32 %v6158_v44, %v12842_v47  ;;  %6113 = vmatmul.bf16.gmra.mxu1 %v10141_v40  ;;  %v7427_v59 = vsel %vm10520_vm4, %v7422_v49, %v7426_v18  ;;  %v8030_v48 = vunpack.c.l.b16 %v7797_v2  ;;  %v7790_v15 = vsel %vm10562_vm7, %v9871_v21, %v7789_v17  ;;  %v4033_v44 = vld [vmem:[#allocation2 + $0xbc] sm:$0x1]  ;;  %v4433_v49 = vld [vmem:[#allocation2 + $0xb4] sm:$0xe] }
 0x307   : > { %v7791_v22 = vrot.slane %v7789_v17, 4  ;;  %v7437_v47 = vsel %vm10520_vm4, %v7432_v7, %v7436_v63  ;;  %v7950_v40 = vunpack.c.l.b16 %v7427_v59  ;;  %v7800_v4 = vsel %vm10562_vm7, %v7798_v10, %v7799_v26  ;;  %v10217_v26 = vld [vmem:[%s13704_s4 + $0x200] sm:$0xff]  ;;  %v5843_v10 = vpop.f32.mrf.mxu0  ;;  %v12911_v59 = vld [vmem:[#allocation3 + $0x58] sm:$0xf] }
 0x308   : > { %v6248_v39 = vadd.f32 %v6247_v3, %v6159_v20  ;;  %v7951_v37 = vunpack.c.l.b16 %v7437_v47  ;;  %v8031_v54 = vunpack.c.l.b16 %v7800_v4  ;;  %v5725_v18 = vsel %vm3265_vm14, %v10181_v19, %v5599_v61  ;;  %8643 = vmatpush.bf16.msra.mxu3 %v10217_v26 }
 0x309   : > { %v5759_v3 = vsel %vm3314_vm1, %v5725_v18, %v5679_v5  ;;  %v8028_v62 = vunpack.c.l.b16 %v7790_v15  ;;  %v4372_v63 = vshrl.u32 %v4015_v12, 16  ;;  %v7793_v52 = vsel %vm10562_vm7, %v7791_v22, %v7792_v42 }
 0x30a   : > { %v12903_v34 = vadd.f32 %v6248_v39, %v11851_v6  ;;  %v6249_v0 = vpop.f32.mrf.mxu3  ;;  %v7978_v21 = vpack.c.b16 %v7951_v37, %v7950_v40  ;;  %v8058_v17 = vpack.c.b16 %v8031_v54, %v8030_v48  ;;  %v4375_v58 = vshll.u32 %v4015_v12, 16  ;;  %v7707_v12 = vld [vmem:[#allocation3 + $0x54] sm:$0xe]  ;;  %v10201_v39 = vld [vmem:[%s13704_s4 + $0x180] sm:$0xff]  ;;  %v12921_v54 = vld [vmem:[#allocation3 + $0x5c] sm:$0x1] }
 0x30b   : > { %v6076_v19 = vpop.f32.mrf.mxu1  ;;  %v8029_v6 = vunpack.c.l.b16 %v7793_v52  ;;  %v4374_v20 = vrot.slane %v4372_v63, 4  ;;  %v4381_v7 = vshll.u32 %v4016_v29, 16  ;;  %v4385_v2 = vshrl.u32 %v4016_v29, 16  ;;  %8465 = vmatpush.bf16.msra.mxu1 %v10201_v39 }
 0x30c   : > { %v4720_v5 = vpack.c.b16 %v12879_v13, %v12877_v32  ;;  %7998 = vrot.lane.b32.xlu0 %v7978_v21, %s10445_s26  ;;  %8078 = vrot.lane.b32.xlu1 %v8058_v17, %s10446_s27  ;;  %v4377_v48 = vrot.slane %v4375_v58, 5  ;;  %v4391_v15 = vshll.u32 %v4033_v44, 16  ;;  %v9428_v22 = vrot.slane %v4433_v49, 9  ;;  %v10400_v17 = vld [vmem:[%s10975_s18 + $0x78] sm:$0xff]  }
 0x30d   : > { %v6160_v61 = vpop.f32.mrf.mxu2  ;;  %v8057_v40 = vpack.c.b16 %v8029_v6, %v8028_v62  ;;  %v4383_v4 = vrot.slane %v4381_v7, 5  ;;  %v4387_v37 = vrot.slane %v4385_v2, 4  ;;  %v4583_v18 = vrot.slane %v4016_v29, 5  ;;  %v10142_v58 = vld [vmem:[#allocation2 + $0xb4] sm:$0xff] }
 0x30e   : > { %v6161_v47 = vadd.f32 %v6160_v61, %v12873_v31  ;;  %v4378_v32 = vor.u32 %v4377_v48, %v4374_v20  ;;  %v4393_v13 = vrot.slane %v4391_v15, 5  ;;  %v4586_v42 = vrot.slane %v4033_v44, 5  ;;  %v7282_v48 = vld [vmem:[#allocation3 + $0x60] sm:$0xf] }
 0x30f   : > { %6291 = vmatmul.bf16.gmra.mxu3 %v12881_v27  ;;  %9641 = vmatmul.msk.bf16.gmra.mxu0 %vm3354_vm2, %v5759_v3  ;;  %v4388_v49 = vor.u32 %v4387_v37, %v4383_v4  ;;  %v9873_v31 = vrot.slane %v7707_v12, 9  ;;  %v7803_v62 = vrot.slane %v12911_v59, 5  ;;  %v4584_v27 = vsel %vm10562_vm7, %v9428_v22, %v4583_v18  ;;  %v10434_v37 = vld [vmem:[%s13702_s2] ss:$0 sm:$0xff] }
 0x310   : > { %v12925_v63 = vadd.f32 %v6249_v0, %v6161_v47  ;;  %8076 = vrot.lane.b32.xlu2 %v8057_v40, %s10446_s27  ;;  %v4379_v26 = vrot.slane %v4378_v32, 4  ;;  %v4585_v21 = vrot.slane %v4583_v18, 4  ;;  %v7806_v3 = vrot.slane %v12921_v54, 5 }
 0x311   : > { %v12935_v29 = vadd.f32 %v12089_v38, %v12806_v23  ;;  %v12939_v0 = vadd.f32 %v12147_v45, %v12180_v1  ;;  %v4389_v52 = vrot.slane %v4388_v49, 4  ;;  %v7804_v6 = vsel %vm10562_vm7, %v9873_v31, %v7803_v62 }
 0x312   : > { %6202 = vmatmul.bf16.gmra.mxu2 %v4720_v5  ;;  %v6252_v44 = vpop.f32.mrf.mxu3  ;;  %v4384_v20 = vsel %vm10520_vm4, %v4379_v26, %v4383_v4  ;;  %v6077_v7 = vadd.f32 %v6076_v19, %v5843_v10  ;;  %v4587_v38 = vsel %vm10562_vm7, %v4585_v21, %v4586_v42  ;;  %v7805_v23 = vrot.slane %v7803_v62, 4 }
 0x313   : > { %v6079_v2 = vpop.f32.mrf.mxu1  ;;  %v4394_v45 = vsel %vm10520_vm4, %v4389_v52, %v4393_v13  ;;  %v4767_v1 = vunpack.c.l.b16 %v4584_v27  ;;  %v8032_v61 = vunpack.c.l.b16 %v7804_v6  ;;  %v10304_v5 = vunpack.c.l.bf16 %v10400_v17  ;;  %v12957_v13 = vld [vmem:[#allocation3 + $0x64] sm:$0xf]  ;;  %v10182_v27 = vld [vmem:[#allocation3 + $0xb4] sm:$0xff] }
 0x314   : > { %v12949_v22 = vunpack.c.l.b16 %v4384_v20  ;;  %v7807_v12 = vsel %vm10562_vm7, %v7805_v23, %v7806_v3  ;;  %v10305_v39 = vunpack.c.h.bf16 %v10400_v17  ;;  %v7463_v19 = vshrl.u32 %v7282_v48, 16  ;;  %v12964_v3 = vld [vmem:[#allocation3 + $0x68] sm:$0x1] }
 0x315   : > { %v6163_v15 = vpop.f32.mrf.mxu2  ;;  %v4768_v47 = vunpack.c.l.b16 %v4587_v38  ;;  %v8033_v40 = vunpack.c.l.b16 %v7807_v12  ;;  %v463_v32 = vmul.f32 %v10434_v37, %v10304_v5  ;;  %v4704_v18 = vunpack.c.l.b16 %v4394_v45 }
 0x316   : > { %v6164_v10 = vadd.f32 %v6163_v15, %v12883_v9  ;;  %6118 = vmatmul.bf16.gmra.mxu1 %v10142_v58  ;;  %v5846_v4 = vpop.f32.mrf.mxu0  ;;  %v464_v49 = vmul.f32 %v10434_v37, %v10305_v39  ;;  %v7465_v31 = vrot.slane %v7463_v19, 4  ;;  %v10435_v9 = vld [vmem:[%s13703_s3] ss:$0 sm:$0xff]  ;;  %v7466_v17 = vshll.u32 %v7282_v48, 16  ;;  %v7280_v37 = vld [vmem:[#allocation3 + $0x54] sm:$0xf] }
 0x317   : > { %v12959_v42 = vadd.f32 %v6079_v2, %v5846_v4  ;;  %v8059_v26 = vpack.c.b16 %v8033_v40, %v8032_v61  ;;  %v499_v21 = vadd.f32 %v10435_v9, %v463_v32  ;;  %v7472_v58 = vshll.u32 %v12957_v13, 16 }
 0x318   : > { %v6253_v62 = vadd.f32 %v6252_v44, %v6164_v10  ;;  %v500_v52 = vadd.f32 %v10435_v9, %v464_v49  ;;  %v7476_v6 = vshrl.u32 %v12957_v13, 16  ;;  %v7482_v20 = vshll.u32 %v12964_v3, 16  ;;  %v5681_v23 = vpop.permute.xlu1 %5680 }
 0x319   : > { %v4785_v38 = vpack.c.b16 %v4768_v47, %v4767_v1  ;;  %8080 = vrot.lane.b32.xlu0 %v8059_v26, %s10446_s27  ;;  %v531_v45 = vmax.f32 %v499_v21, 0.0  ;;  %v7468_v61 = vrot.slane %v7466_v17, 5  ;;  %v4721_v5 = vpack.c.b16 %v4704_v18, %v12949_v22 }
 0x31a   : > { %v12970_v2 = vadd.f32 %v6253_v62, %v11903_v60  ;;  %v6254_v44 = vpop.f32.mrf.mxu3  ;;  %v532_v12 = vmax.f32 %v500_v52, 0.0  ;;  %v7474_v39 = vrot.slane %v7472_v58, 5  ;;  %v7478_v19 = vrot.slane %v7476_v6, 4 }
 0x31b   : > { %v5601_v48 = vpop.permute.xlu0 %5600  ;;  %v12974_v15 = vpop.f32.mrf.mxu1  ;;  %v563_v40 = vpack.c.bf16 %v531_v45, %v531_v45  ;;  %v7469_v60 = vor.u32 %v7468_v61, %v7465_v31  ;;  %v7484_v4 = vrot.slane %v7482_v20, 5  ;;  %v7439_v62 = vshrl.u32 %v7280_v37, 16  ;;  %v999_v45 = vld [vmem:[#allocation2 + $0xc0] sm:$0xf] }
 0x31c   : > { %v5728_v10 = vsel %vm3265_vm14, %v10182_v27, %v5601_v48  ;;  %v564_v32 = vpack.c.bf16 %v532_v12, %v532_v12  ;;  %v7479_v49 = vor.u32 %v7478_v19, %v7474_v39  ;;  %v12980_v21 = vadd.f32 %v12091_v41, %v12935_v29  ;;  %v1003_v19 = vld [vmem:[#allocation2 + $0xc8] sm:$0x1] }
 0x31d   : > { %v6165_v1 = vpop.f32.mrf.mxu2  ;;  %v5761_v47 = vsel %vm3314_vm1, %v5728_v10, %v5681_v23  ;;  %v824_v22 = vshrl.u32 %v563_v40, 16  ;;  %v827_v18 = vshll.u32 %v563_v40, 16  ;;  %v7470_v9 = vrot.slane %v7469_v60, 4 }
 0x31e   : > { %v6166_v26 = vadd.f32 %v6165_v1, %v6077_v7  ;;  %v832_v31 = vshrl.u32 %v564_v32, 16  ;;  %v835_v27 = vshll.u32 %v564_v32, 16  ;;  %v5848_v17 = vpop.f32.mrf.mxu0  ;;  %v7480_v52 = vrot.slane %v7479_v49, 4  ;;  %v6404_v32 = vld [vmem:[#allocation2 + $0x18] sm:$0xf] }
 0x31f   : > { %6296 = vmatmul.bf16.gmra.mxu3 %v4785_v38  ;;  %9642 = vmatmul.msk.bf16.gmra.mxu0 %vm3354_vm2, %v5761_v47  ;;  %v826_v6 = vrot.slane %v824_v22, 7  ;;  %v7475_v7 = vsel %vm10520_vm4, %v7470_v9, %v7474_v39  ;;  %v7441_v20 = vrot.slane %v7439_v62, 4  ;;  %v7442_v38 = vshll.u32 %v7280_v37, 16 }
 0x320   : > { %v12983_v58 = vadd.f32 %v6254_v44, %v6166_v26  ;;  %v834_v23 = vrot.slane %v832_v31, 7  ;;  %v7485_v41 = vsel %vm10520_vm4, %v7480_v52, %v7484_v4  ;;  %v7954_v29 = vunpack.c.l.b16 %v7475_v7 }
 0x321   : > { %v12991_v61 = vadd.f32 %v12171_v33, %v12939_v0  ;;  %v829_v44 = vor.u32 %v827_v18, %v826_v6  ;;  %v830_v12 = vrot.slane %v826_v6, 4  ;;  %v7955_v10 = vunpack.c.l.b16 %v7485_v41  ;;  %v10183_v18 = vld [vmem:[#allocation3 + $0xc0] sm:$0xff] }
 0x322   : > { %6207 = vmatmul.bf16.gmra.mxu2 %v4721_v5  ;;  %v6257_v48 = vpop.f32.mrf.mxu3  ;;  %v837_v40 = vor.u32 %v835_v27, %v834_v23  ;;  %v839_v39 = vrot.slane %v834_v23, 4  ;;  %v7444_v1 = vrot.slane %v7442_v38, 5  ;;  %v7448_v47 = vshll.u32 %v12911_v59, 16  ;;  %v12998_v5 = vld [vmem:[#allocation2 + $0x1c] sm:$0xf] }
 0x323   : > { %v6084_v60 = vpop.f32.mrf.mxu1  ;;  %v1000_v4 = vsel %vm11027_vm6, %v829_v44, %v999_v45  ;;  %v7980_v37 = vpack.c.b16 %v7955_v10, %v7954_v29  ;;  %v7452_v33 = vshrl.u32 %v12911_v59, 16  ;;  %v7458_v0 = vshll.u32 %v12921_v54, 16 }
 0x324   : > { %v838_v62 = vsel %vm10692_vm11, %v830_v12, %v837_v40  ;;  %1001 = vst [vmem:[#allocation2 + $0xc0] sm:$0xf] %v1000_v4  ;;  %v1004_v22 = vsel %vm11033_vm9, %v839_v39, %v1003_v19  ;;  %v7445_v9 = vor.u32 %v7444_v1, %v7441_v20  ;;  %v7450_v31 = vrot.slane %v7448_v47, 5  ;;  %v13783_v39 = vld [vmem:[#allocation30_spill] sm:$0xff] }
 0x325   : > { %v6168_v49 = vpop.f32.mrf.mxu2  ;;  %1002 = vst [vmem:[#allocation2 + $0xc4] sm:$0xf] %v838_v62  ;;  %8002 = vrot.lane.b32.xlu1 %v7980_v37, %s10445_s26  ;;  %v7454_v59 = vrot.slane %v7452_v33, 4  ;;  %v7460_v54 = vrot.slane %v7458_v0, 5  ;;  %v6453_v52 = vshrl.u32 %v6404_v32, 16  ;;  %v6456_v6 = vshll.u32 %v6404_v32, 16 }
 0x326   : > { %v6169_v27 = vadd.f32 %v6168_v49, %v12959_v42  ;;  %1005 = vst [vmem:[#allocation2 + $0xc8] sm:$0x1] %v1004_v22  ;;  %v7446_v43 = vrot.slane %v7445_v9, 4  ;;  %v6462_v7 = vshll.u32 %v12998_v5, 16  ;;  %v6466_v23 = vshrl.u32 %v12998_v5, 16 }
 0x327   : > { %v5603_v20 = vpop.permute.xlu2 %5602  ;;  %v7455_v41 = vor.u32 %v7454_v59, %v7450_v31  ;;  %v6455_v29 = vrot.slane %v6453_v52, 4  ;;  %v6472_v38 = vshll.u32 %v13004_v55, 16  ;;  %v13011_v42 = vld [vmem:[#allocation2 + $0x18] sm:$0xe]  ;;  %v6082_v44 = vadd.f32 %v12974_v15, %v5848_v17 }
 0x328   : > { %v6258_v45 = vadd.f32 %v6257_v48, %v6169_v27  ;;  %v13015_v12 = vsel %vm3265_vm14, %v10183_v18, %v5603_v20  ;;  %v7451_v10 = vsel %vm10520_vm4, %v7446_v43, %v7450_v31  ;;  %v6458_v40 = vrot.slane %v6456_v6, 5 }
 0x329   : > { %v5851_v19 = vpop.f32.mrf.mxu0  ;;  %v7456_v32 = vrot.slane %v7455_v41, 4  ;;  %v6464_v4 = vrot.slane %v6462_v7, 5  ;;  %v7952_v33 = vunpack.c.l.b16 %v7451_v10  ;;  %v6468_v0 = vrot.slane %v6466_v23, 4 }
 0x32a   : > { %v13020_v1 = vadd.f32 %v6258_v45, %v13783_v39  ;;  %v6259_v48 = vpop.f32.mrf.mxu3  ;;  %v13022_v47 = vadd.f32 %v6084_v60, %v5851_v19  ;;  %v13024_v15 = vrot.slane %v6472_v38, 5  ;;  %v9740_v17 = vrot.slane %v13011_v42, 9 }
 0x32b   : > { %v6086_v37 = vpop.f32.mrf.mxu1  ;;  %v4017_v49 = vld [vmem:[#allocation2 + $0xc0] sm:$0xf]  ;;  %v7461_v26 = vsel %vm10520_vm4, %v7456_v32, %v7460_v54  ;;  %v6459_v22 = vor.u32 %v6458_v40, %v6455_v29  ;;  %v6902_v18 = vrot.slane %v12998_v5, 5  ;;  %v6905_v60 = vrot.slane %v13004_v55, 5 }
 0x32c   : > { %v4434_v62 = vld [vmem:[#allocation2 + $0xc0] sm:$0xe]  ;;  %v4018_v31 = vld [vmem:[#allocation2 + $0xc4] sm:$0xf]  ;;  %v4396_v27 = vshrl.u32 %v4017_v49, 16  ;;  %v4399_v59 = vshll.u32 %v4017_v49, 16  ;;  %v7953_v6 = vunpack.c.l.b16 %v7461_v26 }
 0x32d   : > { %v6170_v9 = vpop.f32.mrf.mxu2  ;;  %v9429_v52 = vrot.slane %v4434_v62, 9  ;;  %v10143_v43 = vld [vmem:[#allocation2 + $0xc0] sm:$0xff]  ;;  %v4034_v7 = vld [vmem:[#allocation2 + $0xc8] sm:$0x1]  ;;  %v4405_v23 = vshll.u32 %v4018_v31, 16  ;;  %v4409_v45 = vshrl.u32 %v4018_v31, 16 }
 0x32e   : > { %v6171_v20 = vadd.f32 %v6170_v9, %v6082_v44  ;;  %v4590_v41 = vrot.slane %v4018_v31, 5  ;;  %v4398_v38 = vrot.slane %v4396_v27, 4  ;;  %v4401_v42 = vrot.slane %v4399_v59, 5  ;;  %6123 = vmatmul.bf16.gmra.mxu1 %v10143_v43 }
 0x32f   : > { %v4415_v54 = vshll.u32 %v4034_v7, 16  ;;  %v4593_v29 = vrot.slane %v4034_v7, 5  ;;  %v4407_v5 = vrot.slane %v4405_v23, 5  ;;  %v4411_v19 = vrot.slane %v4409_v45, 4 }
 0x330   : > { %v6260_v55 = vadd.f32 %v6259_v48, %v6171_v20  ;;  %v4591_v10 = vsel %vm10562_vm7, %v9429_v52, %v4590_v41  ;;  %v4402_v40 = vor.u32 %v4401_v42, %v4398_v38  ;;  %v4592_v32 = vrot.slane %v4590_v41, 4 }
 0x331   : > { %v4417_v39 = vrot.slane %v4415_v54, 5  ;;  %v4769_v49 = vunpack.c.l.b16 %v4591_v10  ;;  %v5853_v62 = vpop.f32.mrf.mxu0  ;;  %v4412_v26 = vor.u32 %v4411_v19, %v4407_v5  ;;  %v7979_v31 = vpack.c.b16 %v7953_v6, %v7952_v33 }
 0x332   : > { %v13034_v44 = vadd.f32 %v6260_v55, %v12752_v25  ;;  %v6262_v9 = vpop.f32.mrf.mxu3  ;;  %v6460_v27 = vrot.slane %v6459_v22, 4  ;;  %v4403_v59 = vrot.slane %v4402_v40, 4  ;;  %v4594_v43 = vsel %vm10562_vm7, %v4592_v32, %v4593_v29  ;;  %v7284_v29 = vld [vmem:[#allocation3 + $0x6c] sm:$0xf]  ;;  %v7309_v32 = vld [vmem:[#allocation3 + $0x74] sm:$0x1] }
 0x333   : > { %v6469_v48 = vor.u32 %v6468_v0, %v6464_v4  ;;  %v6087_v7 = vadd.f32 %v6086_v37, %v5853_v62  ;;  %v6089_v23 = vpop.f32.mrf.mxu1  ;;  %v4413_v52 = vrot.slane %v4412_v26, 4  ;;  %v4770_v45 = vunpack.c.l.b16 %v4594_v43  ;;  %8000 = vrot.lane.b32.xlu2 %v7979_v31, %s10445_s26 }
 0x334   : > { %v6465_v20 = vsel %vm10520_vm4, %v6460_v27, %v6464_v4  ;;  %v6903_v25 = vsel %vm10562_vm7, %v9740_v17, %v6902_v18  ;;  %v4408_v33 = vsel %vm10520_vm4, %v4403_v59, %v4407_v5  ;;  %v6904_v0 = vrot.slane %v6902_v18, 4  ;;  %v7285_v4 = vld [vmem:[#allocation3 + $0x70] sm:$0xf]  ;;  %v10225_v27 = vld [vmem:[#allocation3 + $0x18] sm:$0xff]  ;;  %v13784_v59 = vld [vmem:[#allocation31_spill] sm:$0xff] }
 0x335   : > { %v6173_v22 = vpop.f32.mrf.mxu2  ;;  %v6470_v6 = vrot.slane %v6469_v48, 4  ;;  %v13045_v41 = vunpack.c.l.b16 %v6465_v20  ;;  %v4418_v37 = vsel %vm10520_vm4, %v4413_v52, %v4417_v39  ;;  %v4705_v38 = vunpack.c.l.b16 %v4408_v33 }
 0x336   : > { %v4786_v42 = vpack.c.b16 %v4770_v45, %v4769_v49  ;;  %v6174_v54 = vadd.f32 %v6173_v22, %v13022_v47  ;;  %v4706_v19 = vunpack.c.l.b16 %v4418_v37  ;;  %v5683_v55 = vpop.permute.xlu0 %5682  ;;  %v6906_v5 = vsel %vm10562_vm7, %v6904_v0, %v6905_v60  ;;  %v10185_v45 = vld [vmem:[#allocation2 + $0x18] sm:$0xff] }
 0x337   : > { %v6475_v17 = vsel %vm10520_vm4, %v6470_v6, %v13024_v15  ;;  %v7156_v10 = vunpack.c.l.b16 %v6903_v25  ;;  %v5763_v40 = vsel %vm3314_vm1, %v13015_v12, %v5683_v55  ;;  %v7157_v47 = vunpack.c.l.b16 %v6906_v5  ;;  %v7709_v15 = vld [vmem:[#allocation3 + $0x6c] sm:$0xe] }
 0x338   : > { %6301 = vmatmul.bf16.gmra.mxu3 %v4786_v42  ;;  %v6263_v18 = vadd.f32 %v6262_v9, %v6174_v54  ;;  %v13057_v39 = vunpack.c.l.b16 %v6475_v17  ;;  %v4722_v49 = vpack.c.b16 %v4706_v19, %v4705_v38  ;;  %9643 = vmatmul.msk.bf16.gmra.mxu0 %vm3354_vm2, %v5763_v40  ;;  %v7487_v62 = vshrl.u32 %v7284_v29, 16  ;;  %v7708_v19 = vld [vmem:[#allocation3 + $0x60] sm:$0xe] }
 0x339   : > { %v7490_v26 = vshll.u32 %v7284_v29, 16  ;;  %v7496_v31 = vshll.u32 %v7285_v4, 16  ;;  %v13065_v12 = vpack.c.b16 %v7157_v47, %v7156_v10  ;;  %v7500_v48 = vshrl.u32 %v7285_v4, 16  ;;  %v7991_v52 = vpop.permute.xlu1 %7990  ;;  %v8071_v29 = vpop.permute.xlu2 %8070 }
 0x33a   : > { %v13061_v60 = vadd.f32 %v6263_v18, %v13784_v59  ;;  %v6264_v43 = vpop.f32.mrf.mxu3  ;;  %v7124_v9 = vpack.c.b16 %v13057_v39, %v13045_v41  ;;  %6212 = vmatmul.bf16.gmra.mxu2 %v4722_v49  ;;  %v7489_v20 = vrot.slane %v7487_v62, 4  ;;  %v7506_v22 = vshll.u32 %v7309_v32, 16  ;;  %v10226_v41 = vld [vmem:[#allocation3 + $0x24] sm:$0xff] }
 0x33b   : > { %v7492_v25 = vrot.slane %v7490_v26, 5  ;;  %v7498_v33 = vrot.slane %v7496_v31, 5  ;;  %v6091_v6 = vpop.f32.mrf.mxu1  ;;  %v7502_v0 = vrot.slane %v7500_v48, 4  ;;  %v9875_v37 = vrot.slane %v7709_v15, 9  ;;  %v6406_v26 = vld [vmem:[#allocation2 + $0x24] sm:$0xf] }
 0x33c   : > { %v7817_v38 = vrot.slane %v7285_v4, 5  ;;  %v7820_v42 = vrot.slane %v7309_v32, 5  ;;  %v5856_v54 = vpop.f32.mrf.mxu0  ;;  %v7508_v5 = vrot.slane %v7506_v22, 5  ;;  %v8104_v18 = vsel %vm3265_vm14, %v10225_v27, %v7991_v52 }
 0x33d   : > { %v6175_v55 = vpop.f32.mrf.mxu2  ;;  %v7493_v17 = vor.u32 %v7492_v25, %v7489_v20  ;;  %v6090_v10 = vadd.f32 %v6089_v23, %v5856_v54  ;;  %v7503_v47 = vor.u32 %v7502_v0, %v7498_v33  ;;  %v8151_v32 = vsel %vm3314_vm1, %v8104_v18, %v8071_v29  ;;  %v6407_v25 = vld [vmem:[#allocation2 + $0x28] sm:$0xf] }
 0x33e   : > { %v6176_v40 = vadd.f32 %v6175_v55, %v6087_v7  ;;  %v7818_v49 = vsel %vm10562_vm7, %v9875_v37, %v7817_v38  ;;  %v7819_v62 = vrot.slane %v7817_v38, 4  ;;  %8466 = vmatmul.bf16.vlgmr.msra.gmra.mxu1 %v10185_v45  ;;  %v9874_v15 = vrot.slane %v7708_v19, 9 }
 0x33f   : > { %v7494_v31 = vrot.slane %v7493_v17, 4  ;;  %v8036_v4 = vunpack.c.l.b16 %v7818_v49  ;;  %v7504_v48 = vrot.slane %v7503_v47, 4  ;;  %v7810_v27 = vrot.slane %v12957_v13, 5  ;;  %v6437_v13 = vld [vmem:[#allocation2 + $0x2c] sm:$0x1] }
 0x340   : > { %v6265_v59 = vadd.f32 %v6264_v43, %v6176_v40  ;;  %v7821_v23 = vsel %vm10562_vm7, %v7819_v62, %v7820_v42  ;;  %v7813_v20 = vrot.slane %v12964_v3, 5  ;;  %v6477_v45 = vshrl.u32 %v6406_v26, 16  ;;  %v6837_v40 = vld [vmem:[#allocation2 + $0x24] sm:$0xe] }
 0x341   : > { %v7499_v7 = vsel %vm10520_vm4, %v7494_v31, %v7498_v33  ;;  %v8037_v52 = vunpack.c.l.b16 %v7821_v23  ;;  %v7509_v43 = vsel %vm10520_vm4, %v7504_v48, %v7508_v5  ;;  %v7811_v38 = vsel %vm10562_vm7, %v9874_v15, %v7810_v27  ;;  %v7710_v23 = vld [vmem:[#allocation3 + $0x78] sm:$0xe] }
 0x342   : > { %v13078_v22 = vadd.f32 %v6265_v59, %v12765_v35  ;;  %v6267_v0 = vpop.f32.mrf.mxu3  ;;  %v7956_v37 = vunpack.c.l.b16 %v7499_v7  ;;  %v7957_v42 = vunpack.c.l.b16 %v7509_v43  ;;  %v7812_v33 = vrot.slane %v7810_v27, 4 }
 0x343   : > { %v8061_v54 = vpack.c.b16 %v8037_v52, %v8036_v4  ;;  %v8034_v29 = vunpack.c.l.b16 %v7811_v38  ;;  %v6094_v19 = vpop.f32.mrf.mxu1  ;;  %v6479_v3 = vrot.slane %v6477_v45, 4  ;;  %v6480_v55 = vshll.u32 %v6406_v26, 16  ;;  %v13088_v45 = vld [vmem:[#allocation3 + $0x7c] sm:$0xf] }
 0x344   : > { %v6486_v17 = vshll.u32 %v6407_v25, 16  ;;  %v6490_v18 = vshrl.u32 %v6407_v25, 16  ;;  %v5858_v35 = vpop.f32.mrf.mxu0  ;;  %v7981_v49 = vpack.c.b16 %v7957_v42, %v7956_v37  ;;  %v7814_v5 = vsel %vm10562_vm7, %v7812_v33, %v7813_v20 }
 0x345   : > { %v6178_v47 = vpop.f32.mrf.mxu2  ;;  %8084 = vrot.lane.b32.xlu1 %v8061_v54, %s10446_s27  ;;  %v6496_v62 = vshll.u32 %v6437_v13, 16  ;;  %v6092_v31 = vadd.f32 %v6091_v6, %v5858_v35  ;;  %v8035_v4 = vunpack.c.l.b16 %v7814_v5  ;;  %v6482_v59 = vrot.slane %v6480_v55, 5  ;;  %v13091_v6 = vld [vmem:[#allocation3 + $0x80] sm:$0x1] }
 0x346   : > { %v6179_v15 = vadd.f32 %v6178_v47, %v6090_v10  ;;  %v6488_v48 = vrot.slane %v6486_v17, 5  ;;  %8004 = vrot.lane.b32.xlu0 %v7981_v49, %s10445_s26  ;;  %v6492_v26 = vrot.slane %v6490_v18, 4  ;;  %v9741_v7 = vrot.slane %v6837_v40, 9  ;;  %v6408_v10 = vld [vmem:[#allocation2 + $0x30] sm:$0xf] }
 0x347   : > { %v6498_v27 = vrot.slane %v6496_v62, 5  ;;  %v6909_v52 = vrot.slane %v6407_v25, 5  ;;  %v8060_v37 = vpack.c.b16 %v8035_v4, %v8034_v29  ;;  %v6483_v20 = vor.u32 %v6482_v59, %v6479_v3  ;;  %v13785_v25 = vld [vmem:[#allocation32_spill] sm:$0xff] }
 0x348   : > { %8644 = vmatmul.bf16.vlgmr.msra.gmra.mxu3 %v13065_v12  ;;  %v6268_v43 = vadd.f32 %v6267_v0, %v6179_v15  ;;  %v6912_v38 = vrot.slane %v6437_v13, 5  ;;  %9954 = vmatmul.msk.bf16.vlgmr.msra.gmra.mxu0 %vm3354_vm2, %v8151_v32  ;;  %v6493_v42 = vor.u32 %v6492_v26, %v6488_v48  ;;  %v9876_v55 = vrot.slane %v7710_v23, 9  ;;  %v10186_v3 = vld [vmem:[#allocation2 + $0x24] sm:$0xff] }
 0x349   : > { %v6910_v54 = vsel %vm10562_vm7, %v9741_v7, %v6909_v52  ;;  %v6911_v33 = vrot.slane %v6909_v52, 4  ;;  %8082 = vrot.lane.b32.xlu2 %v8060_v37, %s10446_s27  ;;  %v6484_v12 = vrot.slane %v6483_v20, 4  ;;  %v7824_v13 = vrot.slane %v13088_v45, 5  ;;  %v6409_v7 = vld [vmem:[#allocation2 + $0x34] sm:$0xf] }
 0x34a   : > { %v13097_v17 = vadd.f32 %v6268_v43, %v13785_v25  ;;  %v6269_v18 = vpop.f32.mrf.mxu3  ;;  %v7158_v0 = vunpack.c.l.b16 %v6910_v54  ;;  %8555 = vmatmul.bf16.vlgmr.msra.gmra.mxu2 %v7124_v9  ;;  %v6494_v32 = vrot.slane %v6493_v42, 4  ;;  %v7827_v35 = vrot.slane %v13091_v6, 5  ;;  %v13786_v52 = vld [vmem:[#allocation33_spill] sm:$0xff]  ;;  %v6438_v42 = vld [vmem:[#allocation2 + $0x38] sm:$0x1] }
 0x34b   : > { %v6913_v29 = vsel %vm10562_vm7, %v6911_v33, %v6912_v38  ;;  %v13107_v40 = vpop.f32.mrf.mxu1  ;;  %v6501_v47 = vshrl.u32 %v6408_v10, 16  ;;  %v6489_v49 = vsel %vm10520_vm4, %v6484_v12, %v6488_v48  ;;  %v7825_v62 = vsel %vm10562_vm7, %v9876_v55, %v7824_v13  ;;  %v6838_v25 = vld [vmem:[#allocation2 + $0x30] sm:$0xe] }
 0x34c   : > { %v7159_v5 = vunpack.c.l.b16 %v6913_v29  ;;  %v7826_v15 = vrot.slane %v7824_v13, 4  ;;  %v5861_v39 = vpop.f32.mrf.mxu0  ;;  %v6499_v4 = vsel %vm10520_vm4, %v6494_v32, %v6498_v27  ;;  %v13115_v59 = vunpack.c.l.b16 %v6489_v49  ;;  %v8073_v13 = vpop.permute.xlu1 %8072 }
 0x34d   : > { %v6180_v9 = vpop.f32.mrf.mxu2  ;;  %v8038_v23 = vunpack.c.l.b16 %v7825_v62  ;;  %v6095_v26 = vadd.f32 %v6094_v19, %v5861_v39  ;;  %v13119_v43 = vadd.f32 %v13786_v52, %v12991_v61  ;;  %v13121_v48 = vunpack.c.l.b16 %v6499_v4  ;;  %v7993_v38 = vpop.permute.xlu0 %7992  ;;  %v7288_v62 = vld [vmem:[#allocation3 + $0x84] sm:$0xf]  ;;  %v13135_v52 = vld [vmem:[#allocation3 + $0x88] sm:$0xf] }
 0x34e   : > { %v6181_v37 = vadd.f32 %v6180_v9, %v6092_v31  ;;  %v7828_v20 = vsel %vm10562_vm7, %v7826_v15, %v7827_v35  ;;  %v7189_v54 = vpack.c.b16 %v7159_v5, %v7158_v0  ;;  %8471 = vmatmul.bf16.gmra.mxu1 %v10186_v3  ;;  %v6503_v33 = vrot.slane %v6501_v47, 4 }
 0x34f   : > { %v8039_v27 = vunpack.c.l.b16 %v7828_v20  ;;  %v6504_v55 = vshll.u32 %v6408_v10, 16  ;;  %v7125_v19 = vpack.c.b16 %v13121_v48, %v13115_v59  ;;  %v8107_v61 = vsel %vm3265_vm14, %v10226_v41, %v7993_v38 }
 0x350   : > { %v6270_v12 = vadd.f32 %v6269_v18, %v6181_v37  ;;  %v6510_v32 = vshll.u32 %v6409_v7, 16  ;;  %v6514_v49 = vshrl.u32 %v6409_v7, 16  ;;  %v6520_v35 = vshll.u32 %v6438_v42, 16 }
 0x351   : > { %v8062_v31 = vpack.c.b16 %v8039_v27, %v8038_v23  ;;  %v6506_v29 = vrot.slane %v6504_v55, 5  ;;  %v9742_v10 = vrot.slane %v6838_v25, 9  ;;  %v6916_v5 = vrot.slane %v6409_v7, 5  ;;  %v13139_v25 = vld [vmem:[#allocation3 + $0x8c] sm:$0x1] }
 0x352   : > { %v13129_v0 = vadd.f32 %v6270_v12, %v12980_v21  ;;  %v6272_v3 = vpop.f32.mrf.mxu3  ;;  %v6512_v47 = vrot.slane %v6510_v32, 5  ;;  %v8153_v18 = vsel %vm3314_vm1, %v8107_v61, %v8073_v13  ;;  %v6516_v41 = vrot.slane %v6514_v49, 4 }
 0x353   : > { %8086 = vrot.lane.b32.xlu0 %v8062_v31, %s10446_s27  ;;  %v6507_v15 = vor.u32 %v6506_v29, %v6503_v33  ;;  %v6099_v39 = vpop.f32.mrf.mxu1  ;;  %v6919_v9 = vrot.slane %v6438_v42, 5  ;;  %v6917_v59 = vsel %vm10562_vm7, %v9742_v10, %v6916_v5  ;;  %v6918_v23 = vrot.slane %v6916_v5, 4  ;;  %v7286_v10 = vld [vmem:[#allocation3 + $0x78] sm:$0xf] }
 0x354   : > { %v5863_v4 = vpop.f32.mrf.mxu0  ;;  %v7535_v21 = vshrl.u32 %v7288_v62, 16  ;;  %v7538_v48 = vshll.u32 %v7288_v62, 16  ;;  %v6517_v7 = vor.u32 %v6516_v41, %v6512_v47  ;;  %v6522_v38 = vrot.slane %v6520_v35, 5  ;;  %v10227_v62 = vld [vmem:[#allocation3 + $0x30] sm:$0xff] }
 0x355   : > { %v6183_v37 = vpop.f32.mrf.mxu2  ;;  %v6508_v20 = vrot.slane %v6507_v15, 4  ;;  %v7160_v27 = vunpack.c.l.b16 %v6917_v59  ;;  %v6920_v33 = vsel %vm10562_vm7, %v6918_v23, %v6919_v9  ;;  %v7544_v31 = vshll.u32 %v13135_v52, 16 }
 0x356   : > { %v6184_v55 = vadd.f32 %v6183_v37, %v6095_v26  ;;  %v7537_v42 = vrot.slane %v7535_v21, 4  ;;  %v7540_v12 = vrot.slane %v7538_v48, 5  ;;  %v6518_v13 = vrot.slane %v6517_v7, 4 }
 0x357   : > { %v6513_v61 = vsel %vm10520_vm4, %v6508_v20, %v6512_v47  ;;  %v7161_v32 = vunpack.c.l.b16 %v6920_v33  ;;  %v7548_v26 = vshrl.u32 %v13135_v52, 16  ;;  %v6097_v47 = vadd.f32 %v13107_v40, %v5863_v4 }
 0x358   : > { %8649 = vmatmul.bf16.gmra.mxu3 %v7189_v54  ;;  %v6273_v29 = vadd.f32 %v6272_v3, %v6184_v55  ;;  %v13144_v49 = vunpack.c.l.b16 %v6513_v61  ;;  %v7541_v35 = vor.u32 %v7540_v12, %v7537_v42  ;;  %9955 = vmatmul.msk.bf16.gmra.mxu0 %vm3354_vm2, %v8153_v18  ;;  %v6523_v5 = vsel %vm10520_vm4, %v6518_v13, %v6522_v38  ;;  %v7995_v21 = vpop.permute.xlu2 %7994  ;;  %v10187_v18 = vld [vmem:[#allocation2 + $0x30] sm:$0xff]  ;;  %v6410_v42 = vld [vmem:[#allocation2 + $0x3c] sm:$0xf] }
 0x359   : > { %v7546_v15 = vrot.slane %v7544_v31, 5  ;;  %v7554_v41 = vshll.u32 %v13139_v25, 16  ;;  %v13155_v9 = vunpack.c.l.b16 %v6523_v5  ;;  %v7550_v23 = vrot.slane %v7548_v26, 4  ;;  %v6411_v5 = vld [vmem:[#allocation2 + $0x40] sm:$0xf] }
 0x35a   : > { %v13153_v54 = vadd.f32 %v6273_v29, %v12194_v8  ;;  %v6274_v3 = vpop.f32.mrf.mxu3  ;;  %v7542_v59 = vrot.slane %v7541_v35, 4  ;;  %8560 = vmatmul.bf16.gmra.mxu2 %v7125_v19  ;;  %v13157_v48 = vpack.c.b16 %v7161_v32, %v7160_v27  ;;  %v7511_v40 = vshrl.u32 %v7286_v10, 16 }
 0x35b   : > { %v7556_v37 = vrot.slane %v7554_v41, 5  ;;  %v13159_v20 = vpop.f32.mrf.mxu1  ;;  %v7514_v4 = vshll.u32 %v7286_v10, 16  ;;  %v7551_v38 = vor.u32 %v7550_v23, %v7546_v15  ;;  %v8110_v55 = vsel %vm3265_vm14, %v10227_v62, %v7995_v21  ;;  %v6439_v21 = vld [vmem:[#allocation2 + $0x44] sm:$0x1] }
 0x35c   : > { %v7547_v8 = vsel %vm10520_vm4, %v7542_v59, %v7546_v15  ;;  %v5866_v33 = vpop.f32.mrf.mxu0  ;;  %v7513_v61 = vrot.slane %v7511_v40, 4  ;;  %v7520_v29 = vshll.u32 %v13088_v45, 16  ;;  %v7524_v35 = vshrl.u32 %v13088_v45, 16  ;;  %v8075_v40 = vpop.permute.xlu0 %8074 }
 0x35d   : > { %v6185_v19 = vpop.f32.mrf.mxu2  ;;  %v7960_v27 = vunpack.c.l.b16 %v7547_v8  ;;  %v6100_v12 = vadd.f32 %v6099_v39, %v5866_v33  ;;  %v7516_v13 = vrot.slane %v7514_v4, 5  ;;  %v7552_v31 = vrot.slane %v7551_v38, 4 }
 0x35e   : > { %v6186_v32 = vadd.f32 %v6185_v19, %v6097_v47  ;;  %8476 = vmatmul.bf16.gmra.mxu1 %v10187_v18  ;;  %v7530_v10 = vshll.u32 %v13091_v6, 16  ;;  %v6525_v15 = vshrl.u32 %v6410_v42, 16  ;;  %v6528_v62 = vshll.u32 %v6410_v42, 16  ;;  %v6839_v42 = vld [vmem:[#allocation2 + $0x3c] sm:$0xe] }
 0x35f   : > { %v7517_v26 = vor.u32 %v7516_v13, %v7513_v61  ;;  %v7557_v59 = vsel %vm10520_vm4, %v7552_v31, %v7556_v37  ;;  %v7522_v39 = vrot.slane %v7520_v29, 5  ;;  %v7526_v23 = vrot.slane %v7524_v35, 4 }
 0x360   : > { %v6275_v41 = vadd.f32 %v6274_v3, %v6186_v32  ;;  %v7961_v47 = vunpack.c.l.b16 %v7557_v59  ;;  %v7532_v8 = vrot.slane %v7530_v10, 5  ;;  %v6527_v38 = vrot.slane %v6525_v15, 4  ;;  %v7290_v10 = vld [vmem:[#allocation3 + $0x90] sm:$0xf] }
 0x361   : > { %v7518_v4 = vrot.slane %v7517_v26, 4  ;;  %v7527_v6 = vor.u32 %v7526_v23, %v7522_v39  ;;  %v6530_v33 = vrot.slane %v6528_v62, 5  ;;  %v6534_v19 = vshll.u32 %v6411_v5, 16 }
 0x362   : > { %v13172_v45 = vadd.f32 %v6275_v41, %v13119_v43  ;;  %v6277_v18 = vpop.f32.mrf.mxu3  ;;  %v7983_v3 = vpack.c.b16 %v7961_v47, %v7960_v27  ;;  %v6538_v61 = vshrl.u32 %v6411_v5, 16  ;;  %v6544_v13 = vshll.u32 %v6439_v21, 16 }
 0x363   : > { %v7523_v37 = vsel %vm10520_vm4, %v7518_v4, %v7522_v39  ;;  %v13176_v32 = vpop.f32.mrf.mxu1  ;;  %v8155_v31 = vsel %vm3314_vm1, %v8110_v55, %v8075_v40  ;;  %v7528_v29 = vrot.slane %v7527_v6, 4  ;;  %v6531_v35 = vor.u32 %v6530_v33, %v6527_v38 }
 0x364   : > { %v6536_v26 = vrot.slane %v6534_v19, 5  ;;  %v5868_v43 = vpop.f32.mrf.mxu0  ;;  %8008 = vrot.lane.b32.xlu1 %v7983_v3, %s10445_s26  ;;  %v7958_v62 = vunpack.c.l.b16 %v7523_v37  ;;  %v6540_v41 = vrot.slane %v6538_v61, 4  ;;  %v6546_v27 = vrot.slane %v6544_v13, 5  ;;  %v7712_v61 = vld [vmem:[#allocation3 + $0x90] sm:$0xe]  ;;  %v13787_v13 = vld [vmem:[#allocation37_spill] sm:$0xff] }
 0x365   : > { %v6188_v15 = vpop.f32.mrf.mxu2  ;;  %v9743_v59 = vrot.slane %v6839_v42, 9  ;;  %v7533_v39 = vsel %vm10520_vm4, %v7528_v29, %v7532_v8  ;;  %v6532_v47 = vrot.slane %v6531_v35, 4  ;;  %v6923_v4 = vrot.slane %v6411_v5, 5  ;;  %v7291_v42 = vld [vmem:[#allocation3 + $0x94] sm:$0xf] }
 0x366   : > { %v6189_v23 = vadd.f32 %v6188_v15, %v6100_v12  ;;  %v7959_v7 = vunpack.c.l.b16 %v7533_v39  ;;  %v6541_v55 = vor.u32 %v6540_v41, %v6536_v26  ;;  %v6926_v40 = vrot.slane %v6439_v21, 5  ;;  %v7312_v21 = vld [vmem:[#allocation3 + $0x98] sm:$0x1] }
 0x367   : > { %v7559_v38 = vshrl.u32 %v7290_v10, 16  ;;  %v6102_v33 = vadd.f32 %v13159_v20, %v5868_v43  ;;  %v6924_v19 = vsel %vm10562_vm7, %v9743_v59, %v6923_v4  ;;  %v6925_v3 = vrot.slane %v6923_v4, 4  ;;  %v10188_v43 = vld [vmem:[#allocation2 + $0x3c] sm:$0xff] }
 0x368   : > { %8654 = vmatmul.bf16.gmra.mxu3 %v13157_v48  ;;  %v6278_v6 = vadd.f32 %v6277_v18, %v6189_v23  ;;  %9956 = vmatmul.msk.bf16.gmra.mxu0 %vm3354_vm2, %v8155_v31  ;;  %v7982_v12 = vpack.c.b16 %v7959_v7, %v7958_v62  ;;  %v6537_v5 = vsel %vm10520_vm4, %v6532_v47, %v6536_v26  ;;  %v6542_v8 = vrot.slane %v6541_v55, 4 }
 0x369   : > { %v7162_v37 = vunpack.c.l.b16 %v6924_v19  ;;  %v6927_v20 = vsel %vm10562_vm7, %v6925_v3, %v6926_v40  ;;  %v7561_v29 = vrot.slane %v7559_v38, 4  ;;  %v7562_v35 = vshll.u32 %v7290_v10, 16  ;;  %v10228_v38 = vld [vmem:[#allocation3 + $0x3c] sm:$0xff] }
 0x36a   : > { %v13190_v48 = vadd.f32 %v6278_v6, %v13787_v13  ;;  %v6279_v18 = vpop.f32.mrf.mxu3  ;;  %v13788_v31 = vpack.c.b16 %v13155_v9, %v13144_v49  ;;  %8006 = vrot.lane.b32.xlu2 %v7982_v12, %s10445_s26  ;;  %v6547_v7 = vsel %vm10520_vm4, %v6542_v8, %v6546_v27  ;;  %v7163_v26 = vunpack.c.l.b16 %v6927_v20  ;;  %v7711_v8 = vld [vmem:[#allocation3 + $0x84] sm:$0xe] }
 0x36b   : > { %v7568_v15 = vshll.u32 %v7291_v42, 16  ;;  %v7572_v62 = vshrl.u32 %v7291_v42, 16  ;;  %v13200_v41 = vpop.f32.mrf.mxu1  ;;  %v13202_v59 = vunpack.c.l.b16 %v6537_v5  ;;  %v7564_v23 = vrot.slane %v7562_v35, 5  ;;  %v8077_v35 = vpop.permute.xlu2 %8076 }
 0x36c   : > { %8565 = vmatmul.bf16.gmra.mxu2 %v13788_v31  ;;  %v7578_v39 = vshll.u32 %v7312_v21, 16  ;;  %v9878_v10 = vrot.slane %v7712_v61, 9  ;;  %v5871_v47 = vpop.f32.mrf.mxu0  ;;  %v13204_v49 = vunpack.c.l.b16 %v6547_v7  ;;  %v7838_v40 = vrot.slane %v7291_v42, 5 }
 0x36d   : > { %v6190_v4 = vpop.f32.mrf.mxu2  ;;  %v7570_v9 = vrot.slane %v7568_v15, 5  ;;  %v7574_v55 = vrot.slane %v7572_v62, 4  ;;  %v7191_v6 = vpack.c.b16 %v7163_v26, %v7162_v37  ;;  %v7565_v19 = vor.u32 %v7564_v23, %v7561_v29  ;;  %v7997_v12 = vpop.permute.xlu1 %7996 }
 0x36e   : > { %v6191_v27 = vadd.f32 %v6190_v4, %v6102_v33  ;;  %v7580_v3 = vrot.slane %v7578_v39, 5  ;;  %8481 = vmatmul.bf16.gmra.mxu1 %v10188_v43  ;;  %v7839_v13 = vsel %vm10562_vm7, %v9878_v10, %v7838_v40  ;;  %v7840_v61 = vrot.slane %v7838_v40, 4  ;;  %v6412_v43 = vld [vmem:[#allocation2 + $0x48] sm:$0xf]  ;;  %v6413_v10 = vld [vmem:[#allocation2 + $0x4c] sm:$0xf] }
 0x36f   : > { %v7575_v5 = vor.u32 %v7574_v55, %v7570_v9  ;;  %v7841_v20 = vrot.slane %v7312_v21, 5  ;;  %v7566_v7 = vrot.slane %v7565_v19, 4  ;;  %v8042_v15 = vunpack.c.l.b16 %v7839_v13 }
 0x370   : > { %v13208_v31 = vadd.f32 %v6279_v18, %v6191_v27  ;;  %v6105_v42 = vadd.f32 %v13176_v32, %v5871_v47  ;;  %v8113_v29 = vsel %vm3265_vm14, %v10228_v38, %v7997_v12  ;;  %v9877_v26 = vrot.slane %v7711_v8, 9 }
 0x371   : > { %v7576_v33 = vrot.slane %v7575_v5, 4  ;;  %v7842_v37 = vsel %vm10562_vm7, %v7840_v61, %v7841_v20  ;;  %v7127_v62 = vpack.c.b16 %v13204_v49, %v13202_v59  ;;  %v7571_v21 = vsel %vm10520_vm4, %v7566_v7, %v7570_v9  ;;  %v6440_v5 = vld [vmem:[#allocation2 + $0x50] sm:$0x1] }
 0x372   : > { %v6282_v23 = vpop.f32.mrf.mxu3  ;;  %v8043_v18 = vunpack.c.l.b16 %v7842_v37  ;;  %v8157_v39 = vsel %vm3314_vm1, %v8113_v29, %v8077_v35  ;;  %v7962_v47 = vunpack.c.l.b16 %v7571_v21  ;;  %v7831_v4 = vrot.slane %v13135_v52, 5  ;;  %v6840_v35 = vld [vmem:[#allocation2 + $0x48] sm:$0xe] }
 0x373   : > { %v7581_v32 = vsel %vm10520_vm4, %v7576_v33, %v7580_v3  ;;  %v7834_v55 = vrot.slane %v13139_v25, 5  ;;  %v6109_v40 = vpop.f32.mrf.mxu1  ;;  %v6549_v59 = vshrl.u32 %v6412_v43, 16  ;;  %v6552_v49 = vshll.u32 %v6412_v43, 16 }
 0x374   : > { %v7963_v38 = vunpack.c.l.b16 %v7581_v32  ;;  %v8064_v27 = vpack.c.b16 %v8043_v18, %v8042_v15  ;;  %v5873_v19 = vpop.f32.mrf.mxu0  ;;  %v7832_v9 = vsel %vm10562_vm7, %v9877_v26, %v7831_v4  ;;  %v7833_v8 = vrot.slane %v7831_v4, 4  ;;  %v13230_v18 = vld [vmem:[#allocation3 + $0xa0] sm:$0xf] }
 0x375   : > { %v6193_v12 = vpop.f32.mrf.mxu2  ;;  %v6558_v13 = vshll.u32 %v6413_v10, 16  ;;  %v6562_v61 = vshrl.u32 %v6413_v10, 16  ;;  %v8040_v20 = vunpack.c.l.b16 %v7832_v9  ;;  %v6551_v25 = vrot.slane %v6549_v59, 4  ;;  %v10189_v9 = vld [vmem:[#allocation2 + $0x48] sm:$0xff] }
 0x376   : > { %v7984_v3 = vpack.c.b16 %v7963_v38, %v7962_v47  ;;  %8090 = vrot.lane.b32.xlu1 %v8064_v27, %s10446_s27  ;;  %v6194_v52 = vadd.f32 %v6193_v12, %v6105_v42  ;;  %v7835_v7 = vsel %vm10562_vm7, %v7833_v8, %v7834_v55  ;;  %v6554_v15 = vrot.slane %v6552_v49, 5  ;;  %v13233_v55 = vld [vmem:[#allocation3 + $0xa4] sm:$0x1]  ;;  %v7713_v38 = vld [vmem:[#allocation3 + $0x9c] sm:$0xe] }
 0x377   : > { %v6560_v33 = vrot.slane %v6558_v13, 5  ;;  %v6564_v37 = vrot.slane %v6562_v61, 4  ;;  %v8041_v26 = vunpack.c.l.b16 %v7835_v7  ;;  %v6568_v43 = vshll.u32 %v6440_v5, 16 }
 0x378   : > { %8659 = vmatmul.bf16.gmra.mxu3 %v7191_v6  ;;  %8010 = vrot.lane.b32.xlu0 %v7984_v3, %s10445_s26  ;;  %v6283_v29 = vadd.f32 %v6282_v23, %v6194_v52  ;;  %v6107_v21 = vadd.f32 %v13200_v41, %v5873_v19  ;;  %v6555_v42 = vor.u32 %v6554_v15, %v6551_v25  ;;  %v9744_v47 = vrot.slane %v6840_v35, 9 }
 0x379   : > { %9957 = vmatmul.msk.bf16.gmra.mxu0 %vm3354_vm2, %v8157_v39  ;;  %v6565_v32 = vor.u32 %v6564_v37, %v6560_v33  ;;  %v6930_v4 = vrot.slane %v6413_v10, 5  ;;  %v8063_v23 = vpack.c.b16 %v8041_v26, %v8040_v20  ;;  %v6570_v59 = vrot.slane %v6568_v43, 5  ;;  %v10229_v26 = vld [vmem:[#allocation3 + $0x48] sm:$0xff] }
 0x37a   : > { %v13236_v6 = vadd.f32 %v6283_v29, %v12310_v30  ;;  %v6284_v27 = vpop.f32.mrf.mxu3  ;;  %v6933_v49 = vrot.slane %v6440_v5, 5  ;;  %v6556_v41 = vrot.slane %v6555_v42, 4  ;;  %v9879_v13 = vrot.slane %v7713_v38, 9  ;;  %v6414_v5 = vld [vmem:[#allocation2 + $0x54] sm:$0xf] }
 0x37b   : > { %v6566_v19 = vrot.slane %v6565_v32, 4  ;;  %v6931_v39 = vsel %vm10562_vm7, %v9744_v47, %v6930_v4  ;;  %v6932_v12 = vrot.slane %v6930_v4, 4  ;;  %v13240_v8 = vpop.f32.mrf.mxu1  ;;  %8088 = vrot.lane.b32.xlu2 %v8063_v23, %s10446_s27  ;;  %v7845_v30 = vrot.slane %v13230_v18, 5  ;;  %v6415_v32 = vld [vmem:[#allocation2 + $0x58] sm:$0xf] }
 0x37c   : > { %8570 = vmatmul.bf16.gmra.mxu2 %v7127_v62  ;;  %v7164_v10 = vunpack.c.l.b16 %v6931_v39  ;;  %v7848_v61 = vrot.slane %v13233_v55, 5  ;;  %v5876_v3 = vpop.f32.mrf.mxu0  ;;  %v6561_v52 = vsel %vm10520_vm4, %v6556_v41, %v6560_v33  ;;  %v6573_v47 = vshrl.u32 %v6414_v5, 16 }
 0x37d   : > { %v6195_v62 = vpop.f32.mrf.mxu2  ;;  %v6571_v20 = vsel %vm10520_vm4, %v6566_v19, %v6570_v59  ;;  %v6934_v25 = vsel %vm10562_vm7, %v6932_v12, %v6933_v49  ;;  %v6110_v35 = vadd.f32 %v6109_v40, %v5876_v3  ;;  %v13251_v7 = vunpack.c.l.b16 %v6561_v52  ;;  %v6441_v40 = vld [vmem:[#allocation2 + $0x5c] sm:$0x1]  ;;  %v6841_v59 = vld [vmem:[#allocation2 + $0x54] sm:$0xe] }
 0x37e   : > { %v13253_v15 = vunpack.c.l.b16 %v6571_v20  ;;  %v6196_v37 = vadd.f32 %v6195_v62, %v6107_v21  ;;  %v7165_v29 = vunpack.c.l.b16 %v6934_v25  ;;  %8486 = vmatmul.bf16.gmra.mxu1 %v10189_v9  ;;  %v7846_v43 = vsel %vm10562_vm7, %v9879_v13, %v7845_v30  ;;  %v7999_v33 = vpop.permute.xlu0 %7998  ;;  %v7294_v20 = vld [vmem:[#allocation3 + $0xa8] sm:$0xf] }
 0x37f   : > { %v7847_v42 = vrot.slane %v7845_v30, 4  ;;  %v6576_v4 = vshll.u32 %v6414_v5, 16  ;;  %v8044_v23 = vunpack.c.l.b16 %v7846_v43  ;;  %v6575_v41 = vrot.slane %v6573_v47, 4  ;;  %v8079_v30 = vpop.permute.xlu1 %8078 }
 0x380   : > { %v13257_v38 = vadd.f32 %v6284_v27, %v6196_v37  ;;  %v7128_v49 = vpack.c.b16 %v13253_v15, %v13251_v7  ;;  %v7192_v39 = vpack.c.b16 %v7165_v29, %v7164_v10  ;;  %v8116_v13 = vsel %vm3265_vm14, %v10229_v26, %v7999_v33 }
 0x381   : > { %v7849_v21 = vsel %vm10562_vm7, %v7847_v42, %v7848_v61  ;;  %v6578_v19 = vrot.slane %v6576_v4, 5  ;;  %v6582_v3 = vshll.u32 %v6415_v32, 16  ;;  %v6586_v5 = vshrl.u32 %v6415_v32, 16 }
 0x382   : > { %13789 = vst [vmem:[#allocation5_spill] sm:$0xff] %v13257_v38  ;;  %v6287_v12 = vpop.f32.mrf.mxu3  ;;  %v8045_v9 = vunpack.c.l.b16 %v7849_v21  ;;  %v6592_v62 = vshll.u32 %v6441_v40, 16  ;;  %v9745_v52 = vrot.slane %v6841_v59, 9  ;;  %v6937_v43 = vrot.slane %v6415_v32, 5  ;;  %v13268_v21 = vld [vmem:[#allocation3 + $0xac] sm:$0xf] }
 0x383   : > { %v6579_v27 = vor.u32 %v6578_v19, %v6575_v41  ;;  %v6584_v37 = vrot.slane %v6582_v3, 5  ;;  %v6114_v15 = vpop.f32.mrf.mxu1  ;;  %v6940_v61 = vrot.slane %v6441_v40, 5  ;;  %v8159_v10 = vsel %vm3314_vm1, %v8116_v13, %v8079_v30  ;;  %v13273_v19 = vld [vmem:[#allocation3 + $0xb0] sm:$0x1]  ;;  %v7292_v13 = vld [vmem:[#allocation3 + $0x9c] sm:$0xf] }
 0x384   : > { %v8065_v25 = vpack.c.b16 %v8045_v9, %v8044_v23  ;;  %v5878_v7 = vpop.f32.mrf.mxu0  ;;  %v6588_v47 = vrot.slane %v6586_v5, 4  ;;  %v6594_v4 = vrot.slane %v6592_v62, 5  ;;  %v6938_v33 = vsel %vm10562_vm7, %v9745_v52, %v6937_v43 }
 0x385   : > { %v6198_v42 = vpop.f32.mrf.mxu2  ;;  %v6580_v29 = vrot.slane %v6579_v27, 4  ;;  %v6939_v59 = vrot.slane %v6937_v43, 4  ;;  %v7607_v23 = vshrl.u32 %v7294_v20, 16  ;;  %v6112_v41 = vadd.f32 %v13240_v8, %v5878_v7 }
 0x386   : > { %8092 = vrot.lane.b32.xlu0 %v8065_v25, %s10446_s27  ;;  %v6199_v26 = vadd.f32 %v6198_v42, %v6110_v35  ;;  %v6589_v40 = vor.u32 %v6588_v47, %v6584_v37  ;;  %v7610_v9 = vshll.u32 %v7294_v20, 16  ;;  %v7166_v3 = vunpack.c.l.b16 %v6938_v33 }
 0x387   : > { %v6585_v32 = vsel %vm10520_vm4, %v6580_v29, %v6584_v37  ;;  %v6941_v35 = vsel %vm10562_vm7, %v6939_v59, %v6940_v61  ;;  %v7609_v27 = vrot.slane %v7607_v23, 4  ;;  %v7616_v25 = vshll.u32 %v13268_v21, 16  ;;  %v10190_v61 = vld [vmem:[#allocation2 + $0x54] sm:$0xff]  ;;  %v10230_v29 = vld [vmem:[#allocation3 + $0x54] sm:$0xff] }
 0x388   : > { %8664 = vmatmul.bf16.gmra.mxu3 %v7192_v39  ;;  %v6288_v30 = vadd.f32 %v6287_v12, %v6199_v26  ;;  %v6590_v5 = vrot.slane %v6589_v40, 4  ;;  %v7167_v62 = vunpack.c.l.b16 %v6941_v35  ;;  %v7612_v52 = vrot.slane %v7610_v9, 5 }
 0x389   : > { %9958 = vmatmul.msk.bf16.gmra.mxu0 %vm3354_vm2, %v8159_v10  ;;  %v7620_v20 = vshrl.u32 %v13268_v21, 16  ;;  %v7626_v39 = vshll.u32 %v13273_v19, 16  ;;  %v7583_v12 = vshrl.u32 %v7292_v13, 16  ;;  %v13286_v43 = vunpack.c.l.b16 %v6585_v32 }
 0x38a   : > { %v13280_v8 = vadd.f32 %v6288_v30, %v12390_v53  ;;  %v6289_v37 = vpop.f32.mrf.mxu3  ;;  %v6595_v7 = vsel %vm10520_vm4, %v6590_v5, %v6594_v4  ;;  %v7613_v42 = vor.u32 %v7612_v52, %v7609_v27  ;;  %v7618_v10 = vrot.slane %v7616_v25, 5  ;;  %v6416_v52 = vld [vmem:[#allocation2 + $0x60] sm:$0xf] }
 0x38b   : > { %v13288_v47 = vunpack.c.l.b16 %v6595_v7  ;;  %v7193_v53 = vpack.c.b16 %v7167_v62, %v7166_v3  ;;  %v7622_v26 = vrot.slane %v7620_v20, 4  ;;  %v7585_v59 = vrot.slane %v7583_v12, 4  ;;  %v8081_v25 = vpop.permute.xlu0 %8080 }
 0x38c   : > { %13790 = vst [vmem:[#allocation30_spill] sm:$0xff] %v13280_v8  ;;  %8575 = vmatmul.bf16.gmra.mxu2 %v7128_v49  ;;  %v5881_v33 = vpop.f32.mrf.mxu0  ;;  %v7614_v40 = vrot.slane %v7613_v42, 4  ;;  %v7586_v30 = vshll.u32 %v7292_v13, 16  ;;  %v7592_v49 = vshll.u32 %v13230_v18, 16  ;;  %v7628_v32 = vrot.slane %v7626_v39, 5  ;;  %v6116_v8 = vpop.f32.mrf.mxu1 }
 0x38d   : > { %v6200_v23 = vpop.f32.mrf.mxu2  ;;  %v6115_v9 = vadd.f32 %v6114_v15, %v5881_v33  ;;  %v7623_v4 = vor.u32 %v7622_v26, %v7618_v10  ;;  %v8001_v5 = vpop.permute.xlu2 %8000  ;;  %v7596_v27 = vshrl.u32 %v13230_v18, 16  ;;  %v6417_v13 = vld [vmem:[#allocation2 + $0x64] sm:$0xf]  ;;  %v6597_v26 = vshrl.u32 %v6416_v52, 16 }
 0x38e   : > { %v6201_v35 = vadd.f32 %v6200_v23, %v6112_v41  ;;  %8491 = vmatmul.bf16.gmra.mxu1 %v10190_v61  ;;  %v7619_v3 = vsel %vm10520_vm4, %v7614_v40, %v7618_v10  ;;  %v8119_v62 = vsel %vm3265_vm14, %v10230_v29, %v8001_v5  ;;  %v7588_v20 = vrot.slane %v7586_v30, 5  ;;  %v6442_v23 = vld [vmem:[#allocation2 + $0x68] sm:$0x1] }
 0x38f   : > { %v7594_v15 = vrot.slane %v7592_v49, 5  ;;  %v7129_v41 = vpack.c.b16 %v13288_v47, %v13286_v43  ;;  %v7624_v39 = vrot.slane %v7623_v4, 4  ;;  %v7966_v7 = vunpack.c.l.b16 %v7619_v3 }
 0x390   : > { %v13297_v12 = vadd.f32 %v6289_v37, %v6201_v35  ;;  %v7589_v42 = vor.u32 %v7588_v20, %v7585_v59  ;;  %v7598_v18 = vrot.slane %v7596_v27, 4  ;;  %v7602_v61 = vshll.u32 %v13233_v55, 16  ;;  %v6842_v55 = vld [vmem:[#allocation2 + $0x60] sm:$0xe] }
 0x391   : > { %v7629_v10 = vsel %vm10520_vm4, %v7624_v39, %v7628_v32  ;;  %v8161_v29 = vsel %vm3314_vm1, %v8119_v62, %v8081_v25  ;;  %v6600_v40 = vshll.u32 %v6416_v52, 16  ;;  %v6606_v30 = vshll.u32 %v6417_v13, 16 }
 0x392   : > { %13791 = vst [vmem:[#allocation31_spill] sm:$0xff] %v13297_v12  ;;  %v6292_v33 = vpop.f32.mrf.mxu3  ;;  %v7967_v49 = vunpack.c.l.b16 %v7629_v10  ;;  %v7590_v43 = vrot.slane %v7589_v42, 4  ;;  %v7599_v37 = vor.u32 %v7598_v18, %v7594_v15  ;;  %v7604_v47 = vrot.slane %v7602_v61, 5  ;;  %v7296_v42 = vld [vmem:[#allocation3 + $0xb4] sm:$0xf] }
 0x393   : > { %v6599_v35 = vrot.slane %v6597_v26, 4  ;;  %v6602_v4 = vrot.slane %v6600_v40, 5  ;;  %v6608_v59 = vrot.slane %v6606_v30, 5  ;;  %v6610_v5 = vshrl.u32 %v6417_v13, 16 }
 0x394   : > { %v5883_v27 = vpop.f32.mrf.mxu0  ;;  %v7986_v20 = vpack.c.b16 %v7967_v49, %v7966_v7  ;;  %v7595_v32 = vsel %vm10520_vm4, %v7590_v43, %v7594_v15  ;;  %v7600_v39 = vrot.slane %v7599_v37, 4  ;;  %v6616_v62 = vshll.u32 %v6442_v23, 16  ;;  %v6119_v43 = vpop.f32.mrf.mxu1 }
 0x395   : > { %v6203_v3 = vpop.f32.mrf.mxu2  ;;  %v7964_v52 = vunpack.c.l.b16 %v7595_v32  ;;  %v6603_v12 = vor.u32 %v6602_v4, %v6599_v35  ;;  %v6612_v10 = vrot.slane %v6610_v5, 4  ;;  %v6117_v26 = vadd.f32 %v6116_v8, %v5883_v27  ;;  %v7297_v35 = vld [vmem:[#allocation3 + $0xb8] sm:$0xf] }
 0x396   : > { %v6204_v25 = vadd.f32 %v6203_v3, %v6115_v9  ;;  %8014 = vrot.lane.b32.xlu1 %v7986_v20, %s10445_s26  ;;  %v7605_v18 = vsel %vm10520_vm4, %v7600_v39, %v7604_v47  ;;  %v6618_v61 = vrot.slane %v6616_v62, 5  ;;  %v9746_v40 = vrot.slane %v6842_v55, 9  ;;  %v7715_v39 = vld [vmem:[#allocation3 + $0xb4] sm:$0xe] }
 0x397   : > { %v7965_v30 = vunpack.c.l.b16 %v7605_v18  ;;  %v6604_v49 = vrot.slane %v6603_v12, 4  ;;  %v6613_v15 = vor.u32 %v6612_v10, %v6608_v59  ;;  %v6944_v9 = vrot.slane %v6417_v13, 5 }
 0x398   : > { %8669 = vmatmul.bf16.gmra.mxu3 %v7193_v53  ;;  %v6293_v7 = vadd.f32 %v6292_v33, %v6204_v25  ;;  %v6947_v37 = vrot.slane %v6442_v23, 5  ;;  %v7631_v4 = vshrl.u32 %v7296_v42, 16  ;;  %v7634_v5 = vshll.u32 %v7296_v42, 16  ;;  %v7315_v33 = vld [vmem:[#allocation3 + $0xbc] sm:$0x1]  ;;  %v10191_v23 = vld [vmem:[#allocation2 + $0x60] sm:$0xff] }
 0x399   : > { %9959 = vmatmul.msk.bf16.gmra.mxu0 %vm3354_vm2, %v8161_v29  ;;  %v7985_v47 = vpack.c.b16 %v7965_v30, %v7964_v52  ;;  %v6609_v8 = vsel %vm10520_vm4, %v6604_v49, %v6608_v59  ;;  %v6614_v53 = vrot.slane %v6613_v15, 4  ;;  %v6945_v13 = vsel %vm10562_vm7, %v9746_v40, %v6944_v9  ;;  %v10231_v49 = vld [vmem:[#allocation3 + $0x60] sm:$0xff] }
 0x39a   : > { %v13310_v3 = vadd.f32 %v6293_v7, %v12459_v57  ;;  %v6294_v12 = vpop.f32.mrf.mxu3  ;;  %v13314_v27 = vunpack.c.l.b16 %v6609_v8  ;;  %v6946_v29 = vrot.slane %v6944_v9, 4  ;;  %v7633_v55 = vrot.slane %v7631_v4, 4  ;;  %v8003_v4 = vpop.permute.xlu1 %8002 }
 0x39b   : > { %8012 = vrot.lane.b32.xlu2 %v7985_v47, %s10445_s26  ;;  %v6619_v57 = vsel %vm10520_vm4, %v6614_v53, %v6618_v61  ;;  %v7168_v20 = vunpack.c.l.b16 %v6945_v13  ;;  %v7636_v32 = vrot.slane %v7634_v5, 5  ;;  %v7640_v59 = vshll.u32 %v7297_v35, 16  ;;  %v7714_v53 = vld [vmem:[#allocation3 + $0xa8] sm:$0xe] }
 0x39c   : > { %13792 = vst [vmem:[#allocation32_spill] sm:$0xff] %v13310_v3  ;;  %8580 = vmatmul.bf16.gmra.mxu2 %v7129_v41  ;;  %v13321_v41 = vunpack.c.l.b16 %v6619_v57  ;;  %v6948_v25 = vsel %vm10562_vm7, %v6946_v29, %v6947_v37  ;;  %v7644_v52 = vshrl.u32 %v7297_v35, 16  ;;  %v7650_v10 = vshll.u32 %v7315_v33, 16  ;;  %v5886_v42 = vpop.f32.mrf.mxu0 }
 0x39d   : > { %v6205_v62 = vpop.f32.mrf.mxu2  ;;  %v7169_v40 = vunpack.c.l.b16 %v6948_v25  ;;  %v7637_v7 = vor.u32 %v7636_v32, %v7633_v55  ;;  %v7642_v30 = vrot.slane %v7640_v59, 5  ;;  %v9881_v9 = vrot.slane %v7715_v39, 9  ;;  %v6418_v55 = vld [vmem:[#allocation2 + $0x6c] sm:$0xf] }
 0x39e   : > { %v6206_v18 = vadd.f32 %v6205_v62, %v6117_v26  ;;  %v7130_v61 = vpack.c.b16 %v13321_v41, %v13314_v27  ;;  %8496 = vmatmul.bf16.gmra.mxu1 %v10191_v23  ;;  %v7646_v15 = vrot.slane %v7644_v52, 4  ;;  %v7652_v8 = vrot.slane %v7650_v10, 5 }
 0x39f   : > { %v7638_v47 = vrot.slane %v7637_v7, 4  ;;  %v7859_v37 = vrot.slane %v7297_v35, 5  ;;  %v7194_v13 = vpack.c.b16 %v7169_v40, %v7168_v20  ;;  %v7862_v26 = vrot.slane %v7315_v33, 5 }
 0x3a0   : > { %v13327_v5 = vadd.f32 %v6294_v12, %v6206_v18  ;;  %v7647_v29 = vor.u32 %v7646_v15, %v7642_v30  ;;  %v6120_v57 = vadd.f32 %v6119_v43, %v5886_v42  ;;  %v8122_v39 = vsel %vm3265_vm14, %v10231_v49, %v8003_v4  ;;  %v6121_v12 = vpop.f32.mrf.mxu1  ;;  %v6419_v15 = vld [vmem:[#allocation2 + $0x70] sm:$0xf] }
 0x3a1   : > { %v7643_v32 = vsel %vm10520_vm4, %v7638_v47, %v7642_v30  ;;  %v7860_v23 = vsel %vm10562_vm7, %v9881_v9, %v7859_v37  ;;  %v7861_v59 = vrot.slane %v7859_v37, 4  ;;  %v9880_v35 = vrot.slane %v7714_v53, 9 }
 0x3a2   : > { %13793 = vst [vmem:[#allocation33_spill] sm:$0xff] %v13327_v5  ;;  %v7648_v62 = vrot.slane %v7647_v29, 4  ;;  %v7968_v25 = vunpack.c.l.b16 %v7643_v32  ;;  %v8048_v52 = vunpack.c.l.b16 %v7860_v23  ;;  %v7852_v43 = vrot.slane %v13268_v21, 5  ;;  %v6297_v40 = vpop.f32.mrf.mxu3  ;;  %v6443_v21 = vld [vmem:[#allocation2 + $0x74] sm:$0x1] }
 0x3a3   : > { %v7863_v20 = vsel %vm10562_vm7, %v7861_v59, %v7862_v26  ;;  %v8083_v33 = vpop.permute.xlu2 %8082  ;;  %v7855_v10 = vrot.slane %v13273_v19, 5  ;;  %v6621_v42 = vshrl.u32 %v6418_v55, 16  ;;  %v6624_v9 = vshll.u32 %v6418_v55, 16  ;;  %v6843_v59 = vld [vmem:[#allocation2 + $0x6c] sm:$0xe] }
 0x3a4   : > { %v7653_v7 = vsel %vm10520_vm4, %v7648_v62, %v7652_v8  ;;  %v8049_v30 = vunpack.c.l.b16 %v7863_v20  ;;  %v8163_v49 = vsel %vm3314_vm1, %v8122_v39, %v8083_v33  ;;  %v7853_v37 = vsel %vm10562_vm7, %v9880_v35, %v7852_v43  ;;  %v5888_v23 = vpop.f32.mrf.mxu0  ;;  %v13347_v33 = vld [vmem:[#allocation3 + $0xc4] sm:$0xf] }
 0x3a5   : > { %v6208_v18 = vpop.f32.mrf.mxu2  ;;  %v7969_v4 = vunpack.c.l.b16 %v7653_v7  ;;  %v7854_v53 = vrot.slane %v7852_v43, 4  ;;  %v8046_v19 = vunpack.c.l.b16 %v7853_v37  ;;  %v6623_v26 = vrot.slane %v6621_v42, 4  ;;  %v7716_v43 = vld [vmem:[#allocation3 + $0xc0] sm:$0xe] }
 0x3a6   : > { %v6209_v47 = vadd.f32 %v6208_v18, %v6120_v57  ;;  %v8067_v29 = vpack.c.b16 %v8049_v30, %v8048_v52  ;;  %v6626_v32 = vrot.slane %v6624_v9, 5  ;;  %v6630_v55 = vshll.u32 %v6419_v15, 16  ;;  %v6420_v7 = vld [vmem:[#allocation2 + $0x78] sm:$0xf] }
 0x3a7   : > { %v7987_v8 = vpack.c.b16 %v7969_v4, %v7968_v25  ;;  %v7856_v39 = vsel %vm10562_vm7, %v7854_v53, %v7855_v10  ;;  %v6634_v20 = vshrl.u32 %v6419_v15, 16  ;;  %v6640_v52 = vshll.u32 %v6443_v21, 16 }
 0x3a8   : > { %8674 = vmatmul.bf16.gmra.mxu3 %v7194_v13  ;;  %v6298_v62 = vadd.f32 %v6297_v40, %v6209_v47  ;;  %8096 = vrot.lane.b32.xlu1 %v8067_v29, %s10446_s27  ;;  %v8047_v57 = vunpack.c.l.b16 %v7856_v39  ;;  %v6627_v35 = vor.u32 %v6626_v32, %v6623_v26  ;;  %v13794_v13 = vld [vmem:[#allocation51_spill] sm:$0xff]  ;;  %v6632_v42 = vrot.slane %v6630_v55, 5  ;;  %v10192_v47 = vld [vmem:[#allocation2 + $0x6c] sm:$0xff] }
 0x3a9   : > { %9960 = vmatmul.msk.bf16.gmra.mxu0 %vm3354_vm2, %v8163_v49  ;;  %8016 = vrot.lane.b32.xlu0 %v7987_v8, %s10445_s26  ;;  %v6122_v18 = vadd.f32 %v6121_v12, %v5888_v23  ;;  %v9747_v10 = vrot.slane %v6843_v59, 9  ;;  %v13353_v40 = vld [vmem:[#allocation3 + $0xc8] sm:$0x1]  ;;  %v6636_v9 = vrot.slane %v6634_v20, 4  ;;  %v6642_v4 = vrot.slane %v6640_v52, 5 }
 0x3aa   : > { %v13351_v25 = vadd.f32 %v6298_v62, %v13794_v13  ;;  %v8066_v30 = vpack.c.b16 %v8047_v57, %v8046_v19  ;;  %v6628_v49 = vrot.slane %v6627_v35, 4  ;;  %v6951_v53 = vrot.slane %v6419_v15, 5  ;;  %v6299_v8 = vpop.f32.mrf.mxu3  ;;  %v6421_v35 = vld [vmem:[#allocation2 + $0x7c] sm:$0xf]  ;;  %v6444_v13 = vld [vmem:[#allocation2 + $0x80] sm:$0x1] }
 0x3ab   : > { %v6124_v37 = vpop.f32.mrf.mxu1  ;;  %v6954_v29 = vrot.slane %v6443_v21, 5  ;;  %v9882_v26 = vrot.slane %v7716_v43, 9  ;;  %v7866_v32 = vrot.slane %v13347_v33, 5  ;;  %v6637_v59 = vor.u32 %v6636_v9, %v6632_v42  ;;  %v6844_v9 = vld [vmem:[#allocation2 + $0x78] sm:$0xe] }
 0x3ac   : > { %13795 = vst [vmem:[#allocation37_spill] sm:$0xff] %v13351_v25  ;;  %8585 = vmatmul.bf16.gmra.mxu2 %v7130_v61  ;;  %8094 = vrot.lane.b32.xlu2 %v8066_v30, %s10446_s27  ;;  %v6633_v23 = vsel %vm10520_vm4, %v6628_v49, %v6632_v42  ;;  %v7869_v27 = vrot.slane %v13353_v40, 5  ;;  %v6645_v41 = vshrl.u32 %v6420_v7, 16  ;;  %v6952_v15 = vsel %vm10562_vm7, %v9747_v10, %v6951_v53  ;;  %v13409_v25 = vld [vmem:[#allocation2 + $0x88] sm:$0xf] }
 0x3ad   : > { %v6210_v12 = vpop.f32.mrf.mxu2  ;;  %v13363_v61 = vunpack.c.l.b16 %v6633_v23  ;;  %v6953_v21 = vrot.slane %v6951_v53, 4  ;;  %v6638_v62 = vrot.slane %v6637_v59, 4  ;;  %v7170_v39 = vunpack.c.l.b16 %v6952_v15  ;;  %v13796_v53 = vld [vmem:[#allocation52_spill] sm:$0xff]  ;;  %v7300_v23 = vld [vmem:[#allocation3 + $0xcc] sm:$0xf] }
 0x3ae   : > { %v6211_v19 = vadd.f32 %v6210_v12, %v6122_v18  ;;  %8501 = vmatmul.bf16.gmra.mxu1 %v10192_v47  ;;  %v7867_v55 = vsel %vm10562_vm7, %v9882_v26, %v7866_v32  ;;  %v7868_v57 = vrot.slane %v7866_v32, 4  ;;  %v6647_v42 = vrot.slane %v6645_v41, 4  ;;  %v13378_v15 = vld [vmem:[#allocation3 + $0xd0] sm:$0xf] }
 0x3af   : > { %v6955_v52 = vsel %vm10562_vm7, %v6953_v21, %v6954_v29  ;;  %v8050_v43 = vunpack.c.l.b16 %v7867_v55  ;;  %v6643_v18 = vsel %vm10520_vm4, %v6638_v62, %v6642_v4  ;;  %v6648_v49 = vshll.u32 %v6420_v7, 16 }
 0x3b0   : > { %v6300_v20 = vadd.f32 %v6299_v8, %v6211_v19  ;;  %v7171_v10 = vunpack.c.l.b16 %v6955_v52  ;;  %v7870_v30 = vsel %vm10562_vm7, %v7868_v57, %v7869_v27  ;;  %v7107_v47 = vunpack.c.l.b16 %v6643_v18  ;;  %v10232_v52 = vld [vmem:[#allocation3 + $0x6c] sm:$0xff] }
 0x3b1   : > { %v8051_v32 = vunpack.c.l.b16 %v7870_v30  ;;  %v6654_v12 = vshll.u32 %v6421_v35, 16  ;;  %v6650_v59 = vrot.slane %v6648_v49, 5  ;;  %v6658_v19 = vshrl.u32 %v6421_v35, 16 }
 0x3b2   : > { %v13376_v26 = vadd.f32 %v6300_v20, %v13796_v53  ;;  %v7195_v29 = vpack.c.b16 %v7171_v10, %v7170_v39  ;;  %v6664_v41 = vshll.u32 %v6444_v13, 16  ;;  %v7131_v4 = vpack.c.b16 %v7107_v47, %v13363_v61  ;;  %v13385_v47 = vld [vmem:[#allocation3 + $0xd4] sm:$0x1] }
 0x3b3   : > { %v8068_v21 = vpack.c.b16 %v8051_v32, %v8050_v43  ;;  %v6126_v8 = vpop.f32.mrf.mxu1  ;;  %v6656_v27 = vrot.slane %v6654_v12, 5  ;;  %v9748_v7 = vrot.slane %v6844_v9, 9  ;;  %v6651_v62 = vor.u32 %v6650_v59, %v6647_v42 }
 0x3b4   : > { %13797 = vst [vmem:[#allocation51_spill] sm:$0xff] %v13376_v26  ;;  %v6660_v55 = vrot.slane %v6658_v19, 4  ;;  %v6666_v57 = vrot.slane %v6664_v41, 5  ;;  %v6958_v20 = vrot.slane %v6421_v35, 5  ;;  %v6961_v39 = vrot.slane %v6444_v13, 5 }
 0x3b5   : > { %8098 = vrot.lane.b32.xlu0 %v8068_v21, %s10446_s27  ;;  %v5891_v18 = vpop.f32.mrf.mxu0  ;;  %v7679_v10 = vshrl.u32 %v7300_v23, 16  ;;  %v7682_v30 = vshll.u32 %v7300_v23, 16  ;;  %v7688_v49 = vshll.u32 %v13378_v15, 16  ;;  %v6652_v26 = vrot.slane %v6651_v62, 4  ;;  %v7298_v19 = vld [vmem:[#allocation3 + $0xc0] sm:$0xf] }
 0x3b6   : > { %v6125_v53 = vadd.f32 %v6124_v37, %v5891_v18  ;;  %v6661_v61 = vor.u32 %v6660_v55, %v6656_v27  ;;  %v6959_v43 = vsel %vm10562_vm7, %v9748_v7, %v6958_v20  ;;  %v6960_v9 = vrot.slane %v6958_v20, 4 }
 0x3b7   : > { %v8085_v42 = vpop.permute.xlu1 %8084  ;;  %v7681_v35 = vrot.slane %v7679_v10, 4  ;;  %v7684_v32 = vrot.slane %v7682_v30, 5  ;;  %v6657_v13 = vsel %vm10520_vm4, %v6652_v26, %v6656_v27  ;;  %v7690_v59 = vrot.slane %v7688_v49, 5  ;;  %v10193_v27 = vld [vmem:[#allocation2 + $0x78] sm:$0xff] }
 0x3b8   : > { %8679 = vmatmul.bf16.gmra.mxu3 %v7195_v29  ;;  %v8005_v12 = vpop.permute.xlu0 %8004  ;;  %v6662_v23 = vrot.slane %v6661_v61, 4  ;;  %v7692_v37 = vshrl.u32 %v13378_v15, 16  ;;  %v6962_v29 = vsel %vm10562_vm7, %v6960_v9, %v6961_v39  ;;  %v7172_v21 = vunpack.c.l.b16 %v6959_v43 }
 0x3b9   : > { %v8125_v41 = vsel %vm3265_vm14, %v10232_v52, %v8005_v12  ;;  %v7685_v7 = vor.u32 %v7684_v32, %v7681_v35  ;;  %v7173_v26 = vunpack.c.l.b16 %v6962_v29  ;;  %v13397_v10 = vunpack.c.l.b16 %v6657_v13 }
 0x3ba   : > { %v8165_v55 = vsel %vm3314_vm1, %v8125_v41, %v8085_v42  ;;  %v6667_v20 = vsel %vm10520_vm4, %v6662_v23, %v6666_v57  ;;  %v7694_v18 = vrot.slane %v7692_v37, 4  ;;  %v7698_v39 = vshll.u32 %v13385_v47, 16  ;;  %v6422_v23 = vld [vmem:[#allocation2 + $0x84] sm:$0xf] }
 0x3bb   : > { %v6302_v62 = vpop.f32.mrf.mxu3  ;;  %9961 = vmatmul.msk.bf16.gmra.mxu0 %vm3354_vm2, %v8165_v55  ;;  %v13399_v52 = vpop.f32.mrf.mxu1  ;;  %v7686_v30 = vrot.slane %v7685_v7, 4  ;;  %v7655_v49 = vshrl.u32 %v7298_v19, 16  ;;  %v7658_v43 = vshll.u32 %v7298_v19, 16  ;;  %v7664_v42 = vshll.u32 %v13347_v33, 16 }
 0x3bc   : > { %8590 = vmatmul.bf16.gmra.mxu2 %v7131_v4  ;;  %v13402_v4 = vunpack.c.l.b16 %v6667_v20  ;;  %v7695_v61 = vor.u32 %v7694_v18, %v7690_v59  ;;  %v7196_v35 = vpack.c.b16 %v7173_v26, %v7172_v21  ;;  %v7700_v12 = vrot.slane %v7698_v39, 5 }
 0x3bd   : > { %v6213_v57 = vpop.f32.mrf.mxu2  ;;  %v5893_v9 = vpop.f32.mrf.mxu0  ;;  %v7691_v32 = vsel %vm10520_vm4, %v7686_v30, %v7690_v59  ;;  %v7657_v13 = vrot.slane %v7655_v49, 4  ;;  %v7660_v55 = vrot.slane %v7658_v43, 5  ;;  %v7666_v20 = vrot.slane %v7664_v42, 5  ;;  %v13798_v43 = vld [vmem:[#allocation53_spill] sm:$0xff] }
 0x3be   : > { %v6214_v37 = vadd.f32 %v6213_v57, %v6125_v53  ;;  %v6127_v41 = vadd.f32 %v6126_v8, %v5893_v9  ;;  %8506 = vmatmul.bf16.gmra.mxu1 %v10193_v27  ;;  %v7696_v29 = vrot.slane %v7695_v61, 4  ;;  %v7972_v7 = vunpack.c.l.b16 %v7691_v32  ;;  %v10233_v53 = vld [vmem:[#allocation3 + $0x78] sm:$0xff]  ;;  %v13413_v61 = vld [vmem:[#allocation2 + $0x8c] sm:$0x1] }
 0x3bf   : > { %v7668_v19 = vshrl.u32 %v13347_v33, 16  ;;  %v7674_v18 = vshll.u32 %v13353_v40, 16  ;;  %v6669_v26 = vshrl.u32 %v6422_v23, 16  ;;  %v6672_v30 = vshll.u32 %v6422_v23, 16 }
 0x3c0   : > { %v6303_v21 = vadd.f32 %v6302_v62, %v6214_v37  ;;  %v7701_v59 = vsel %vm10520_vm4, %v7696_v29, %v7700_v12  ;;  %v7661_v8 = vor.u32 %v7660_v55, %v7657_v13  ;;  %v6678_v62 = vshll.u32 %v13409_v25, 16  ;;  %v6845_v13 = vld [vmem:[#allocation2 + $0x84] sm:$0xe]  ;;  %v13800_v29 = vld [vmem:[#allocation9_spill] sm:$0xff]  ;;  %v13801_v55 = vld [vmem:[#allocation6_spill] sm:$0xff] }
 0x3c1   : > { %v7973_v39 = vunpack.c.l.b16 %v7701_v59  ;;  %v7670_v27 = vrot.slane %v7668_v19, 4  ;;  %v7676_v49 = vrot.slane %v7674_v18, 5  ;;  %v6671_v40 = vrot.slane %v6669_v26, 4 }
 0x3c2   : > { %v13416_v42 = vadd.f32 %v6303_v21, %v13798_v43  ;;  %v6674_v57 = vrot.slane %v6672_v30, 5  ;;  %v7662_v12 = vrot.slane %v7661_v8, 4  ;;  %v6682_v37 = vshrl.u32 %v13409_v25, 16 }
 0x3c3   : > { %v6304_v33 = vpop.f32.mrf.mxu3  ;;  %v7989_v9 = vpack.c.b16 %v7973_v39, %v7972_v7  ;;  %v13419_v32 = vpop.f32.mrf.mxu1  ;;  %v7671_v23 = vor.u32 %v7670_v27, %v7666_v20  ;;  %v3636_v19 = vadd.f32 %v13801_v55, %v13800_v29  ;;  %v6680_v43 = vrot.slane %v6678_v62, 5 }
 0x3c4   : > { %13799 = vst [vmem:[#allocation52_spill] sm:$0xff] %v13416_v42  ;;  %v8007_v18 = vpop.permute.xlu2 %8006  ;;  %v6675_v21 = vor.u32 %v6674_v57, %v6671_v40  ;;  %v6688_v26 = vshll.u32 %v13413_v61, 16  ;;  %v7667_v8 = vsel %vm10520_vm4, %v7662_v12, %v7666_v20  ;;  %v6684_v42 = vrot.slane %v6682_v37, 4  ;;  %v7717_v57 = vld [vmem:[#allocation3 + $0xcc] sm:$0xe] }
 0x3c5   : > { %v8087_v59 = vpop.permute.xlu0 %8086  ;;  %v6215_v30 = vpop.f32.mrf.mxu2  ;;  %8020 = vrot.lane.b32.xlu1 %v7989_v9, %s10445_s26  ;;  %v8128_v7 = vsel %vm3265_vm14, %v10233_v53, %v8007_v18  ;;  %v7672_v27 = vrot.slane %v7671_v23, 4  ;;  %v7132_v29 = vpack.c.b16 %v13402_v4, %v13397_v10  ;;  %v7970_v5 = vunpack.c.l.b16 %v7667_v8 }
 0x3c6   : > { %v8234_v39 = vpop.f32.mrf.mxu0  ;;  %v6216_v55 = vadd.f32 %v6215_v30, %v6127_v41  ;;  %v9749_v40 = vrot.slane %v6845_v13, 9  ;;  %v8167_v62 = vsel %vm3314_vm1, %v8128_v7, %v8087_v59  ;;  %v6676_v53 = vrot.slane %v6675_v21, 4  ;;  %v6424_v59 = vld [vmem:[#allocation2 + $0x90] sm:$0xf] }
 0x3c7   : > { %v7677_v9 = vsel %vm10520_vm4, %v7672_v27, %v7676_v49  ;;  %v6685_v18 = vor.u32 %v6684_v42, %v6680_v43  ;;  %v6690_v20 = vrot.slane %v6688_v26, 5  ;;  %v6965_v12 = vrot.slane %v13409_v25, 5  ;;  %v10194_v49 = vld [vmem:[#allocation2 + $0x84] sm:$0xff] }
 0x3c8   : > { %8684 = vmatmul.bf16.gmra.mxu3 %v7196_v35  ;;  %v6305_v3 = vadd.f32 %v6304_v33, %v6216_v55  ;;  %v7971_v38 = vunpack.c.l.b16 %v7677_v9  ;;  %v6968_v10 = vrot.slane %v13413_v61, 5  ;;  %v9883_v4 = vrot.slane %v7717_v57, 9  ;;  %v13803_v9 = vld [vmem:[#allocation8_spill] sm:$0xff] }
 0x3c9   : > { %v6686_v23 = vrot.slane %v6685_v18, 4  ;;  %v7873_v41 = vrot.slane %v13378_v15, 5  ;;  %v8468_v42 = vadd.f32 %v13399_v52, %v8234_v39  ;;  %v6966_v25 = vsel %vm10562_vm7, %v9749_v40, %v6965_v12 }
 0x3ca   : > { %v13438_v35 = vadd.f32 %v6305_v3, %v12647_v24  ;;  %v7988_v13 = vpack.c.b16 %v7971_v38, %v7970_v5  ;;  %v6967_v61 = vrot.slane %v6965_v12, 4  ;;  %v7876_v38 = vrot.slane %v13385_v47, 5  ;;  %v13450_v3 = vld [vmem:[#allocation2 + $0x94] sm:$0xf]  ;;  %v13802_v5 = vld [vmem:[#allocation7_spill] sm:$0xff] }
 0x3cb   : > { %v8645_v37 = vpop.f32.mrf.mxu3  ;;  %9962 = vmatmul.msk.bf16.gmra.mxu0 %vm3354_vm2, %v8167_v62  ;;  %v13442_v33 = vpop.f32.mrf.mxu1  ;;  %v7874_v15 = vsel %vm10562_vm7, %v9883_v4, %v7873_v41  ;;  %v7875_v24 = vrot.slane %v7873_v41, 4  ;;  %v3725_v52 = vadd.f32 %v13802_v5, %v3636_v19  ;;  %v6681_v26 = vsel %vm10520_vm4, %v6676_v53, %v6680_v43 }
 0x3cc   : > { %8595 = vmatmul.bf16.gmra.mxu2 %v7132_v29  ;;  %8018 = vrot.lane.b32.xlu2 %v7988_v13, %s10445_s26  ;;  %v6691_v30 = vsel %vm10520_vm4, %v6686_v23, %v6690_v20  ;;  %v6969_v39 = vsel %vm10562_vm7, %v6967_v61, %v6968_v10  ;;  %v7174_v8 = vunpack.c.l.b16 %v6966_v25  ;;  %v8052_v27 = vunpack.c.l.b16 %v7874_v15  ;;  %v6446_v61 = vld [vmem:[#allocation2 + $0x98] sm:$0x1] }
 0x3cd   : > { %v8556_v21 = vpop.f32.mrf.mxu2  ;;  %v6693_v29 = vshrl.u32 %v6424_v59, 16  ;;  %v6696_v47 = vshll.u32 %v6424_v59, 16  ;;  %v7175_v40 = vunpack.c.l.b16 %v6969_v39  ;;  %v7877_v19 = vsel %vm10562_vm7, %v7875_v24, %v7876_v38  ;;  %v6846_v24 = vld [vmem:[#allocation2 + $0x90] sm:$0xe] }
 0x3ce   : > { %v8236_v7 = vpop.f32.mrf.mxu0  ;;  %8511 = vmatmul.bf16.gmra.mxu1 %v10194_v49  ;;  %v8557_v55 = vadd.f32 %v8556_v21, %v8468_v42  ;;  %v6702_v57 = vshll.u32 %v13450_v3, 16  ;;  %v8053_v43 = vunpack.c.l.b16 %v7877_v19  ;;  %v6706_v62 = vshrl.u32 %v13450_v3, 16  ;;  %v10234_v42 = vld [vmem:[#allocation3 + $0x84] sm:$0xff]  ;;  %v13804_v19 = vld [vmem:[#allocation12_spill] sm:$0xff] }
 0x3cf   : > { %v3814_v53 = vadd.f32 %v13803_v9, %v3725_v52  ;;  %v7110_v18 = vunpack.c.l.b16 %v6681_v26  ;;  %v7111_v20 = vunpack.c.l.b16 %v6691_v30  ;;  %v8470_v23 = vadd.f32 %v13419_v32, %v8236_v7 }
 0x3d0   : > { %v8069_v10 = vpack.c.b16 %v8053_v43, %v8052_v27  ;;  %v6695_v4 = vrot.slane %v6693_v29, 4  ;;  %v6698_v41 = vrot.slane %v6696_v47, 5  ;;  %v8646_v13 = vadd.f32 %v8645_v37, %v8557_v55 }
 0x3d1   : > { %v7197_v49 = vpack.c.b16 %v7175_v40, %v7174_v8  ;;  %v6704_v15 = vrot.slane %v6702_v57, 5  ;;  %v6708_v59 = vrot.slane %v6706_v62, 4  ;;  %v6972_v38 = vrot.slane %v13450_v3, 5  ;;  %v13805_v57 = vld [vmem:[#allocation10_spill] sm:$0xff] }
 0x3d2   : > { %v6340_v5 = vadd.f32 %v12708_v50, %v3814_v53  ;;  %v7133_v21 = vpack.c.b16 %v7111_v20, %v7110_v18  ;;  %v6699_v7 = vor.u32 %v6698_v41, %v6695_v4  ;;  %v6712_v39 = vshll.u32 %v6446_v61, 16  ;;  %v10195_v18 = vld [vmem:[#allocation2 + $0x90] sm:$0xff]  ;;  %v6426_v20 = vld [vmem:[#allocation2 + $0x9c] sm:$0xf] }
 0x3d3   : > { %v8647_v12 = vpop.f32.mrf.mxu3  ;;  %v13465_v25 = vpop.f32.mrf.mxu1  ;;  %v8757_v8 = vadd.f32 %v8646_v13, %v12676_v16  ;;  %v6709_v29 = vor.u32 %v6708_v59, %v6704_v15  ;;  %v9750_v47 = vrot.slane %v6846_v24, 9  ;;  %v6974_v50 = vrot.slane %v6972_v38, 4 }
 0x3d4   : > { %8100 = vrot.lane.b32.xlu2 %v8069_v10, %s10446_s27  ;;  %v6975_v40 = vrot.slane %v6446_v61, 5  ;;  %v3641_v43 = vadd.f32 %v13805_v57, %v13804_v19  ;;  %v6700_v16 = vrot.slane %v6699_v7, 4  ;;  %v6714_v4 = vrot.slane %v6712_v39, 5 }
 0x3d5   : > { %v8558_v52 = vpop.f32.mrf.mxu2  ;;  %v8089_v37 = vpop.permute.xlu2 %8088  ;;  %v8954_v10 = vmul.f32 %v8757_v8, %v8757_v8 }
 0x3d6   : > { %v8239_v32 = vpop.f32.mrf.mxu0  ;;  %v8559_v26 = vadd.f32 %v8558_v52, %v8470_v23  ;;  %v8009_v30 = vpop.permute.xlu1 %8008  ;;  %v13476_v23 = vld [vmem:[#allocation2 + $0xa0] sm:$0xf]  ;;  %v6976_v61 = vsel %vm10562_vm7, %v6974_v50, %v6975_v40  ;;  %v6720_v52 = vshll.u32 %v6426_v20, 16 }
 0x3d7   : > { %v8131_v27 = vsel %vm3265_vm14, %v10234_v42, %v8009_v30  ;;  %v8473_v53 = vadd.f32 %v13442_v33, %v8239_v32  ;;  %v6973_v33 = vsel %vm10562_vm7, %v9750_v47, %v6972_v38  ;;  %v6726_v32 = vshll.u32 %v13476_v23, 16 }
 0x3d8   : > { %8689 = vmatmul.bf16.gmra.mxu3 %v7197_v49  ;;  %v8648_v55 = vadd.f32 %v8647_v12, %v8559_v26  ;;  %v8169_v3 = vsel %vm3314_vm1, %v8131_v27, %v8089_v37  ;;  %v6710_v12 = vrot.slane %v6709_v29, 4  ;;  %v6705_v30 = vsel %vm10520_vm4, %v6700_v16, %v6704_v15 }
 0x3d9   : > { %v6730_v38 = vshrl.u32 %v13476_v23, 16  ;;  %v7176_v7 = vunpack.c.l.b16 %v6973_v33  ;;  %v7177_v39 = vunpack.c.l.b16 %v6976_v61  ;;  %v7112_v47 = vunpack.c.l.b16 %v6705_v30 }
 0x3da   : > { %v8758_v62 = vadd.f32 %v8648_v55, %v6340_v5  ;;  %v6717_v5 = vshrl.u32 %v6426_v20, 16  ;;  %v6715_v37 = vsel %vm10520_vm4, %v6710_v12, %v6714_v4  ;;  %v13499_v50 = vrot.slane %v6726_v32, 5  ;;  %v13807_v12 = vld [vmem:[#allocation13_spill] sm:$0xff] }
 0x3db   : > { %v8650_v9 = vpop.f32.mrf.mxu3  ;;  %9963 = vmatmul.msk.bf16.gmra.mxu0 %vm3354_vm2, %v8169_v3  ;;  %v13485_v41 = vpop.f32.mrf.mxu1  ;;  %v6722_v3 = vrot.slane %v6720_v52, 5  ;;  %v7113_v15 = vunpack.c.l.b16 %v6715_v37  ;;  %v7198_v16 = vpack.c.b16 %v7177_v39, %v7176_v7  ;;  %v6979_v20 = vrot.slane %v13476_v23, 5  ;;  %v6428_v39 = vld [vmem:[#allocation2 + $0xa8] sm:$0xf] }
 0x3dc   : > { %8600 = vmatmul.bf16.gmra.mxu2 %v7133_v21  ;;  %v10309_v13 = vpack.c.bf16 %v8758_v62, %v8757_v8  ;;  %v8917_v49 = vadd.f32 %v8758_v62, %v8757_v8  ;;  %v8955_v42 = vmul.f32 %v8758_v62, %v8758_v62  ;;  %v13806_v8 = vld [vmem:[#allocation11_spill] sm:$0xff]  ;;  %v6719_v55 = vrot.slane %v6717_v5, 4 }
 0x3dd   : > { %v8561_v59 = vpop.f32.mrf.mxu2  ;;  %v3730_v27 = vadd.f32 %v13806_v8, %v3641_v43  ;;  %v6447_v62 = vld [vmem:[#allocation2 + $0xa4] sm:$0x1]  ;;  %v6981_v32 = vrot.slane %v6979_v20, 4 }
 0x3de   : > { %v8241_v24 = vpop.f32.mrf.mxu0  ;;  %10310 = vst [vmem:[%s13482_s20] sm:$0xff] %v10309_v13   ;;  %v8986_v21 = vadd.f32 %v8955_v42, %v8954_v10  ;;  %v8562_v26 = vadd.f32 %v8561_v59, %v8473_v53  ;;  %8516 = vmatmul.bf16.gmra.mxu1 %v10195_v18  ;;  %v6732_v53 = vrot.slane %v6730_v38, 4  ;;  %v6847_v10 = vld [vmem:[#allocation2 + $0x9c] sm:$0xe]  ;;  %v6723_v42 = vor.u32 %v6722_v3, %v6719_v55  ;;  %v13511_v3 = vld [vmem:[#allocation2 + $0xac] sm:$0xf] }
 0x3df   : > { %v8475_v57 = vadd.f32 %v13465_v25, %v8241_v24  ;;  %v3819_v4 = vadd.f32 %v13807_v12, %v3730_v27  ;;  %v7134_v59 = vpack.c.b16 %v7113_v15, %v7112_v47  ;;  %v10235_v25 = vld [vmem:[#allocation3 + $0x90] sm:$0xff]  ;;  %v9751_v52 = vrot.slane %v6847_v10, 9  ;;  %v10196_v55 = vld [vmem:[#allocation2 + $0x9c] sm:$0xff] }
 0x3e0   : > { %v8651_v29 = vadd.f32 %v8650_v9, %v8562_v26  ;;  %v6733_v24 = vor.u32 %v6732_v53, %v13499_v50  ;;  %v6982_v26 = vrot.slane %v6447_v62, 5  ;;  %v6724_v37 = vrot.slane %v6723_v42, 4  ;;  %v13808_v15 = vld [vmem:[#allocation16_spill] sm:$0xff] }
 0x3e1   : > { %v6342_v23 = vadd.f32 %v12754_v36, %v3819_v4  ;;  %v6980_v53 = vsel %vm10562_vm7, %v9751_v52, %v6979_v20  ;;  %v6741_v12 = vshrl.u32 %v6428_v39, 16  ;;  %v6744_v42 = vshll.u32 %v6428_v39, 16 }
 0x3e2   : > { %v8759_v40 = vadd.f32 %v8651_v29, %v12734_v51  ;;  %v6736_v51 = vshll.u32 %v6447_v62, 16  ;;  %v6734_v47 = vrot.slane %v6733_v24, 4  ;;  %v6754_v20 = vshrl.u32 %v13511_v3, 16  ;;  %v13810_v24 = vld [vmem:[#allocation15_spill] sm:$0xff] }
 0x3e3   : > { %v8652_v19 = vpop.f32.mrf.mxu3  ;;  %v13503_v18 = vpop.f32.mrf.mxu1 }
 0x3e4   : > { %v8918_v43 = vadd.f32 %v8917_v49, %v8759_v40  ;;  %v8956_v9 = vmul.f32 %v8759_v40, %v8759_v40  ;;  %v6738_v7 = vrot.slane %v6736_v51, 5  ;;  %v6750_v51 = vshll.u32 %v13511_v3, 16 }
 0x3e5   : > { %v8563_v33 = vpop.f32.mrf.mxu2 }
 0x3e6   : > { %v8244_v13 = vpop.f32.mrf.mxu0  ;;  %v8987_v61 = vadd.f32 %v8986_v21, %v8956_v9  ;;  %v8564_v5 = vadd.f32 %v8563_v33, %v8475_v57  ;;  %v13809_v57 = vld [vmem:[#allocation14_spill] sm:$0xff]  ;;  %v6729_v33 = vsel %vm10520_vm4, %v6724_v37, %v13499_v50  ;;  %v6743_v50 = vrot.slane %v6741_v12, 4 }
 0x3e7   : > { %v8478_v29 = vadd.f32 %v13485_v41, %v8244_v13  ;;  %v3646_v36 = vadd.f32 %v13809_v57, %v13808_v15 }
 0x3e8   : > { %8694 = vmatmul.bf16.gmra.mxu3 %v7198_v16  ;;  %v8653_v49 = vadd.f32 %v8652_v19, %v8564_v5  ;;  %v8091_v30 = vpop.permute.xlu1 %8090  ;;  %v6983_v16 = vsel %vm10562_vm7, %v6981_v32, %v6982_v26  ;;  %v7114_v26 = vunpack.c.l.b16 %v6729_v33 }
 0x3e9   : > { %v3735_v52 = vadd.f32 %v13810_v24, %v3646_v36 }
 0x3ea   : > { %v8011_v38 = vpop.permute.xlu0 %8010  ;;  %v8760_v8 = vadd.f32 %v8653_v49, %v6342_v23  ;;  %v6746_v49 = vrot.slane %v6744_v42, 5 }
 0x3eb   : > { %v8655_v21 = vpop.f32.mrf.mxu3  ;;  %v8134_v27 = vsel %vm3265_vm14, %v10235_v25, %v8011_v38  ;;  %v13516_v62 = vpop.f32.mrf.mxu1  ;;  %v7179_v25 = vunpack.c.l.b16 %v6983_v16  ;;  %v6756_v38 = vrot.slane %v6754_v20, 4  ;;  %v13812_v20 = vld [vmem:[#allocation54_spill] sm:$0xff] }
 0x3ec   : > { %8605 = vmatmul.bf16.gmra.mxu2 %v7134_v59  ;;  %v8171_v19 = vsel %vm3314_vm1, %v8134_v27, %v8091_v30  ;;  %v10314_v9 = vpack.c.bf16 %v8760_v8, %v8759_v40  ;;  %v8919_v41 = vadd.f32 %v8918_v43, %v8760_v8  ;;  %v8957_v10 = vmul.f32 %v8760_v8, %v8760_v8  ;;  %v10236_v8 = vld [vmem:[#allocation3 + $0x9c] sm:$0xff] }
 0x3ed   : > { %9964 = vmatmul.msk.bf16.gmra.mxu0 %vm3354_vm2, %v8171_v19  ;;  %v6739_v40 = vsel %vm10520_vm4, %v6734_v47, %v6738_v7  ;;  %v7178_v43 = vunpack.c.l.b16 %v6980_v53  ;;  %v13532_v30 = vrot.slane %v6750_v51, 5  ;;  %v6448_v7 = vld [vmem:[#allocation2 + $0xb0] sm:$0x1]  ;;  %v6848_v47 = vld [vmem:[#allocation2 + $0xa8] sm:$0xe] }
 0x3ee   : > { %v8246_v13 = vpop.f32.mrf.mxu0  ;;  %10401 = vst [vmem:[%s13482_s20 + $0x8] sm:$0xff] %v10314_v9   ;;  %v8988_v59 = vadd.f32 %v8987_v61, %v8957_v10  ;;  %8521 = vmatmul.bf16.gmra.mxu1 %v10196_v55  ;;  %v7115_v23 = vunpack.c.l.b16 %v6739_v40  ;;  %v6986_v55 = vrot.slane %v13511_v3, 5  ;;  %v6747_v9 = vor.u32 %v6746_v49, %v6743_v50  ;;  %v10197_v50 = vld [vmem:[#allocation2 + $0xa8] sm:$0xff] }
 0x3ef   : > { %v8566_v4 = vpop.f32.mrf.mxu2  ;;  %v8480_v39 = vadd.f32 %v13503_v18, %v8246_v13  ;;  %v7199_v27 = vpack.c.b16 %v7179_v25, %v7178_v43  ;;  %v6760_v10 = vshll.u32 %v6448_v7, 16  ;;  %v9752_v13 = vrot.slane %v6848_v47, 9 }
 0x3f0   : > { %v8567_v5 = vadd.f32 %v8566_v4, %v8478_v29  ;;  %v7135_v53 = vpack.c.b16 %v7115_v23, %v7114_v26  ;;  %v6988_v3 = vrot.slane %v6986_v55, 4  ;;  %v6989_v51 = vrot.slane %v6448_v7, 5  ;;  %v13550_v7 = vld [vmem:[#allocation2 + $0xb8] sm:$0xf] }
 0x3f1   : > { %v6748_v43 = vrot.slane %v6747_v9, 4  ;;  %v6762_v25 = vrot.slane %v6760_v10, 5  ;;  %v6987_v26 = vsel %vm10562_vm7, %v9752_v13, %v6986_v55  ;;  %v6778_v10 = vshrl.u32 %v13550_v7, 16 }
 0x3f2   : > { %v8656_v32 = vadd.f32 %v8655_v21, %v8567_v5  ;;  %v13811_v21 = vld [vmem:[#allocation17_spill] sm:$0xff]  ;;  %v6990_v49 = vsel %vm10562_vm7, %v6988_v3, %v6989_v51 }
 0x3f3   : > { %v8657_v61 = vpop.f32.mrf.mxu3  ;;  %v8484_v29 = vpop.f32.mrf.mxu1  ;;  %v3824_v15 = vadd.f32 %v13811_v21, %v3735_v52  ;;  %v6753_v55 = vsel %vm10520_vm4, %v6748_v43, %v13532_v30  ;;  %v6780_v43 = vrot.slane %v6778_v10, 4 }
 0x3f4   : > { %v8761_v37 = vadd.f32 %v8656_v32, %v12794_v56  ;;  %v6757_v56 = vor.u32 %v6756_v38, %v13532_v30  ;;  %v7116_v30 = vunpack.c.l.b16 %v6753_v55 }
 0x3f5   : > { %v8013_v16 = vpop.permute.xlu2 %8012 }
 0x3f6   : > { %v8920_v57 = vadd.f32 %v8919_v41, %v8761_v37  ;;  %v8958_v36 = vmul.f32 %v8761_v37, %v8761_v37  ;;  %v8137_v4 = vsel %vm3265_vm14, %v10236_v8, %v8013_v16  ;;  %v8249_v33 = vpop.f32.mrf.mxu0  ;;  %v6344_v41 = vadd.f32 %v13812_v20, %v3824_v15  ;;  %v6430_v8 = vld [vmem:[#allocation2 + $0xb4] sm:$0xf] }
 0x3f7   : > { %v8568_v19 = vpop.f32.mrf.mxu2  ;;  %v6758_v32 = vrot.slane %v6757_v56, 4  ;;  %v7180_v15 = vunpack.c.l.b16 %v6987_v26  ;;  %v6765_v16 = vshrl.u32 %v6430_v8, 16  ;;  %v6768_v9 = vshll.u32 %v6430_v8, 16 }
 0x3f8   : > { %v8989_v12 = vadd.f32 %v8988_v59, %v8958_v36  ;;  %v8569_v18 = vadd.f32 %v8568_v19, %v8480_v39  ;;  %8699 = vmatmul.bf16.gmra.mxu3 %v7199_v27  ;;  %v8093_v42 = vpop.permute.xlu0 %8092  ;;  %v8483_v59 = vadd.f32 %v13516_v62, %v8249_v33  ;;  %v13813_v62 = vld [vmem:[#allocation21_spill] sm:$0xff]  ;;  %v13814_v27 = vld [vmem:[#allocation18_spill] sm:$0xff]  ;;  %v6774_v56 = vshll.u32 %v13550_v7, 16 }
 0x3f9   : > { %v8173_v40 = vsel %vm3314_vm1, %v8137_v4, %v8093_v42  ;;  %v3651_v47 = vadd.f32 %v13814_v27, %v13813_v62  ;;  %v13815_v4 = vld [vmem:[#allocation19_spill] sm:$0xff] }
 0x3fa   : > { %v8658_v5 = vadd.f32 %v8657_v61, %v8569_v18 }
 0x3fb   : > { %v8660_v52 = vpop.f32.mrf.mxu3  ;;  %v13545_v23 = vpop.f32.mrf.mxu1  ;;  %v3740_v33 = vadd.f32 %v13815_v4, %v3651_v47  ;;  %v10198_v4 = vld [vmem:[#allocation2 + $0xb4] sm:$0xff] }
 0x3fc   : > { %8610 = vmatmul.bf16.gmra.mxu2 %v7135_v53  ;;  %v8762_v24 = vadd.f32 %v8658_v5, %v6344_v41  ;;  %v7181_v53 = vunpack.c.l.b16 %v6990_v49  ;;  %v6767_v41 = vrot.slane %v6765_v16, 4  ;;  %v6770_v5 = vrot.slane %v6768_v9, 5 }
 0x3fd   : > { %9965 = vmatmul.msk.bf16.gmra.mxu0 %vm3354_vm2, %v8173_v40  ;;  %v13566_v40 = vrot.slane %v6774_v56, 5 }
 0x3fe   : > { %v10319_v38 = vpack.c.bf16 %v8762_v24, %v8761_v37  ;;  %v8921_v61 = vadd.f32 %v8920_v57, %v8762_v24  ;;  %v8959_v39 = vmul.f32 %v8762_v24, %v8762_v24  ;;  %v6763_v37 = vsel %vm10520_vm4, %v6758_v32, %v6762_v25  ;;  %v8251_v57 = vpop.f32.mrf.mxu0  ;;  %8526 = vmatmul.bf16.gmra.mxu1 %v10197_v50  ;;  %v10237_v50 = vld [vmem:[#allocation3 + $0xa8] sm:$0xff] }
 0x3ff   : > { %v8571_v21 = vpop.f32.mrf.mxu2  ;;  %v7117_v42 = vunpack.c.l.b16 %v6763_v37  ;;  %v8485_v3 = vadd.f32 %v8484_v29, %v8251_v57  ;;  %v7200_v51 = vpack.c.b16 %v7181_v53, %v7180_v15  ;;  %v6993_v32 = vrot.slane %v13550_v7, 5  ;;  %v13817_v53 = vld [vmem:[#allocation22_spill] sm:$0xff] }
 0x400   : > { %10402 = vst [vmem:[%s13482_s20 + $0x10] sm:$0xff] %v10319_v38   ;;  %v8990_v36 = vadd.f32 %v8989_v12, %v8959_v39  ;;  %v8572_v19 = vadd.f32 %v8571_v21, %v8483_v59  ;;  %v6449_v59 = vld [vmem:[#allocation2 + $0xbc] sm:$0x1]  ;;  %v6771_v27 = vor.u32 %v6770_v5, %v6767_v41  ;;  %v6781_v47 = vor.u32 %v6780_v43, %v13566_v40 }
 0x401   : > { %v7136_v29 = vpack.c.b16 %v7117_v42, %v7116_v30  ;;  %v6784_v21 = vshll.u32 %v6449_v59, 16  ;;  %v6995_v7 = vrot.slane %v6993_v32, 4  ;;  %v6996_v37 = vrot.slane %v6449_v59, 5  ;;  %v13577_v30 = vld [vmem:[#allocation2 + $0xc4] sm:$0xf] }
 0x402   : > { %v8661_v18 = vadd.f32 %v8660_v52, %v8572_v19  ;;  %v6849_v52 = vld [vmem:[#allocation2 + $0xb4] sm:$0xe] }
 0x403   : > { %v8662_v12 = vpop.f32.mrf.mxu3  ;;  %v13564_v20 = vpop.f32.mrf.mxu1  ;;  %v6786_v42 = vrot.slane %v6784_v21, 5 }
 0x404   : > { %v8763_v13 = vadd.f32 %v8661_v18, %v12853_v46  ;;  %v13816_v46 = vld [vmem:[#allocation20_spill] sm:$0xff] }
 0x405   : > { %v3829_v49 = vadd.f32 %v13816_v46, %v3740_v33  ;;  %v6432_v33 = vld [vmem:[#allocation2 + $0xc0] sm:$0xf] }
 0x406   : > { %v8922_v25 = vadd.f32 %v8921_v61, %v8763_v13  ;;  %v8960_v24 = vmul.f32 %v8763_v13, %v8763_v13  ;;  %v8254_v8 = vpop.f32.mrf.mxu0  ;;  %v8095_v62 = vpop.permute.xlu2 %8094  ;;  %v9753_v61 = vrot.slane %v6849_v52, 9  ;;  %v6789_v59 = vshrl.u32 %v6432_v33, 16 }
 0x407   : > { %v8573_v26 = vpop.f32.mrf.mxu2  ;;  %v6346_v55 = vadd.f32 %v12868_v11, %v3829_v49  ;;  %v8488_v10 = vadd.f32 %v13545_v23, %v8254_v8  ;;  %v6772_v11 = vrot.slane %v6771_v27, 4  ;;  %v6997_v23 = vsel %vm10562_vm7, %v6995_v7, %v6996_v37  ;;  %v13819_v8 = vld [vmem:[#allocation24_spill] sm:$0xff] }
 0x408   : > { %v8991_v38 = vadd.f32 %v8990_v36, %v8960_v24  ;;  %v8574_v39 = vadd.f32 %v8573_v26, %v8485_v3  ;;  %8704 = vmatmul.bf16.gmra.mxu3 %v7200_v51  ;;  %v8015_v19 = vpop.permute.xlu1 %8014  ;;  %v13818_v36 = vld [vmem:[#allocation23_spill] sm:$0xff]  ;;  %v6994_v51 = vsel %vm10562_vm7, %v9753_v61, %v6993_v32  ;;  %v6792_v52 = vshll.u32 %v6432_v33, 16  ;;  %v6450_v37 = vld [vmem:[#allocation2 + $0xc8] sm:$0x1] }
 0x409   : > { %v8140_v57 = vsel %vm3265_vm14, %v10237_v50, %v8015_v19  ;;  %v3656_v16 = vadd.f32 %v13818_v36, %v13817_v53  ;;  %v6798_v26 = vshll.u32 %v13577_v30, 16  ;;  %v6802_v50 = vshrl.u32 %v13577_v30, 16 }
 0x40a   : > { %v8663_v15 = vadd.f32 %v8662_v12, %v8574_v39  ;;  %v8175_v18 = vsel %vm3314_vm1, %v8140_v57, %v8095_v62  ;;  %v6782_v12 = vrot.slane %v6781_v47, 4  ;;  %v7182_v32 = vunpack.c.l.b16 %v6994_v51 }
 0x40b   : > { %v8665_v56 = vpop.f32.mrf.mxu3  ;;  %v8492_v3 = vpop.f32.mrf.mxu1  ;;  %v7183_v39 = vunpack.c.l.b16 %v6997_v23  ;;  %v3745_v62 = vadd.f32 %v13819_v8, %v3656_v16  ;;  %v6791_v47 = vrot.slane %v6789_v59, 4  ;;  %v6794_v21 = vrot.slane %v6792_v52, 5  ;;  %v6434_v8 = vld [vmem:[#allocation2 + $0xcc] sm:$0xf] }
 0x40c   : > { %8615 = vmatmul.bf16.gmra.mxu2 %v7136_v29  ;;  %v8764_v9 = vadd.f32 %v8663_v15, %v6346_v55  ;;  %v13593_v61 = vrot.slane %v6798_v26, 5  ;;  %v7000_v36 = vrot.slane %v13577_v30, 5  ;;  %v6808_v33 = vshll.u32 %v6450_v37, 16 }
 0x40d   : > { %9966 = vmatmul.msk.bf16.gmra.mxu0 %vm3354_vm2, %v8175_v18  ;;  %v7201_v57 = vpack.c.b16 %v7183_v39, %v7182_v32  ;;  %v6795_v18 = vor.u32 %v6794_v21, %v6791_v47  ;;  %v7003_v23 = vrot.slane %v6450_v37, 5 }
 0x40e   : > { %v10324_v41 = vpack.c.bf16 %v8764_v9, %v8763_v13  ;;  %v8923_v5 = vadd.f32 %v8922_v25, %v8764_v9  ;;  %v8961_v43 = vmul.f32 %v8764_v9, %v8764_v9  ;;  %v8256_v29 = vpop.f32.mrf.mxu0  ;;  %8531 = vmatmul.bf16.gmra.mxu1 %v10198_v4  ;;  %v6777_v13 = vsel %vm10520_vm4, %v6772_v11, %v13566_v40 }
 0x40f   : > { %v8576_v24 = vpop.f32.mrf.mxu2  ;;  %v6787_v25 = vsel %vm10520_vm4, %v6782_v12, %v6786_v42  ;;  %v7118_v19 = vunpack.c.l.b16 %v6777_v13  ;;  %v8490_v40 = vadd.f32 %v13564_v20, %v8256_v29  ;;  %v6796_v59 = vrot.slane %v6795_v18, 4 }
 0x410   : > { %10403 = vst [vmem:[%s13482_s20 + $0x18] sm:$0xff] %v10324_v41   ;;  %v8992_v46 = vadd.f32 %v8991_v38, %v8961_v43  ;;  %v8577_v49 = vadd.f32 %v8576_v24, %v8488_v10  ;;  %v6804_v38 = vrot.slane %v6802_v50, 4  ;;  %v7119_v7 = vunpack.c.l.b16 %v6787_v25  ;;  %v10238_v24 = vld [vmem:[#allocation3 + $0xb4] sm:$0xff] }
 0x411   : > { %v7002_v43 = vrot.slane %v7000_v36, 4  ;;  %v6810_v26 = vrot.slane %v6808_v33, 5  ;;  %v6801_v37 = vsel %vm10520_vm4, %v6796_v59, %v13593_v61 }
 0x412   : > { %v8666_v27 = vadd.f32 %v8665_v56, %v8577_v49  ;;  %v6850_v56 = vld [vmem:[#allocation2 + $0xc0] sm:$0xe]  ;;  %v6805_v4 = vor.u32 %v6804_v38, %v13593_v61  ;;  %v7137_v42 = vpack.c.b16 %v7119_v7, %v7118_v19  ;;  %v13610_v38 = vld [vmem:[#allocation2 + $0xd0] sm:$0xf] }
 0x413   : > { %v8667_v15 = vpop.f32.mrf.mxu3  ;;  %v13597_v53 = vpop.f32.mrf.mxu1  ;;  %v9754_v41 = vrot.slane %v6850_v56, 9  ;;  %v6816_v56 = vshll.u32 %v6434_v8, 16  ;;  %v6826_v33 = vshrl.u32 %v13610_v38, 16  ;;  %v13823_v61 = vld [vmem:[#allocation27_spill] sm:$0xff] }
 0x414   : > { %v8765_v55 = vadd.f32 %v8666_v27, %v12903_v34  ;;  %v13820_v34 = vld [vmem:[#allocation25_spill] sm:$0xff]  ;;  %v6806_v52 = vrot.slane %v6805_v4, 4  ;;  %v6822_v4 = vshll.u32 %v13610_v38, 16 }
 0x415   : > { %v3834_v11 = vadd.f32 %v13820_v34, %v3745_v62  ;;  %v7001_v39 = vsel %vm10562_vm7, %v9754_v41, %v7000_v36  ;;  %v6828_v59 = vrot.slane %v6826_v33, 4 }
 0x416   : > { %v8924_v16 = vadd.f32 %v8923_v5, %v8765_v55  ;;  %v8962_v9 = vmul.f32 %v8765_v55, %v8765_v55  ;;  %v8259_v20 = vpop.f32.mrf.mxu0 }
 0x417   : > { %v8578_v10 = vpop.f32.mrf.mxu2  ;;  %v6348_v30 = vadd.f32 %v12925_v63, %v3834_v11  ;;  %v8493_v29 = vadd.f32 %v8492_v3, %v8259_v20  ;;  %v7004_v63 = vsel %vm10562_vm7, %v7002_v43, %v7003_v23  ;;  %v13821_v3 = vld [vmem:[#allocation29_spill] sm:$0xff]  ;;  %v6818_v23 = vrot.slane %v6816_v56, 5 }
 0x418   : > { %v8993_v12 = vadd.f32 %v8992_v46, %v8962_v9  ;;  %v8579_v51 = vadd.f32 %v8578_v10, %v8490_v40  ;;  %8709 = vmatmul.bf16.gmra.mxu3 %v7201_v57  ;;  %v10199_v46 = vld [vmem:[#allocation2 + $0xc0] sm:$0xff]  ;;  %v6811_v57 = vsel %vm10520_vm4, %v6806_v52, %v6810_v26  ;;  %v6813_v9 = vshrl.u32 %v6434_v8, 16 }
 0x419   : > { %v7184_v10 = vunpack.c.l.b16 %v7001_v39  ;;  %v7185_v18 = vunpack.c.l.b16 %v7004_v63 }
 0x41a   : > { %v8668_v5 = vadd.f32 %v8667_v15, %v8579_v51  ;;  %v8097_v13 = vpop.permute.xlu1 %8096  ;;  %v13822_v15 = vld [vmem:[#allocation26_spill] sm:$0xff]  ;;  %v7121_v51 = vunpack.c.l.b16 %v6811_v57  ;;  %v6815_v43 = vrot.slane %v6813_v9, 4  ;;  %v10200_v9 = vld [vmem:[#allocation2 + $0xcc] sm:$0xff] }
 0x41b   : > { %v8670_v49 = vpop.f32.mrf.mxu3  ;;  %v8017_v25 = vpop.permute.xlu0 %8016  ;;  %v3661_v19 = vadd.f32 %v13822_v15, %v13821_v3 }
 0x41c   : > { %8620 = vmatmul.bf16.gmra.mxu2 %v7137_v42  ;;  %v8766_v50 = vadd.f32 %v8668_v5, %v6348_v30  ;;  %v13603_v32 = vpop.f32.mrf.mxu1  ;;  %v8143_v21 = vsel %vm3265_vm14, %v10238_v24, %v8017_v25  ;;  %v7120_v42 = vunpack.c.l.b16 %v6801_v37  ;;  %v7202_v30 = vpack.c.b16 %v7185_v18, %v7184_v10 }
 0x41d   : > { %v8177_v40 = vsel %vm3314_vm1, %v8143_v21, %v8097_v13  ;;  %v3750_v11 = vadd.f32 %v13823_v61, %v3661_v19  ;;  %v6824_v24 = vrot.slane %v6822_v4, 5  ;;  %v7007_v13 = vrot.slane %v13610_v38, 5 }
 0x41e   : > { %v10329_v62 = vpack.c.bf16 %v8766_v50, %v8765_v55  ;;  %v8925_v27 = vadd.f32 %v8924_v16, %v8766_v50  ;;  %v8963_v47 = vmul.f32 %v8766_v50, %v8766_v50  ;;  %9967 = vmatmul.msk.bf16.gmra.mxu0 %vm3354_vm2, %v8177_v40  ;;  %v8261_v16 = vpop.f32.mrf.mxu0  ;;  %8536 = vmatmul.bf16.gmra.mxu1 %v10199_v46  ;;  %v10239_v50 = vld [vmem:[#allocation3 + $0xc0] sm:$0xff]  ;;  %v13824_v46 = vld [vmem:[#allocation28_spill] sm:$0xff] }
 0x41f   : > { %v8581_v7 = vpop.f32.mrf.mxu2  ;;  %v8495_v41 = vadd.f32 %v13597_v53, %v8261_v16  ;;  %v3839_v25 = vadd.f32 %v13824_v46, %v3750_v11  ;;  %v7138_v63 = vpack.c.b16 %v7121_v51, %v7120_v42  ;;  %v6829_v3 = vor.u32 %v6828_v59, %v6824_v24 }
 0x420   : > { %10404 = vst [vmem:[%s13482_s20 + $0x20] sm:$0xff] %v10329_v62   ;;  %v8994_v55 = vadd.f32 %v8993_v12, %v8963_v47  ;;  %v8582_v36 = vadd.f32 %v8581_v7, %v8493_v29  ;;  %v6451_v29 = vld [vmem:[#allocation2 + $0xd4] sm:$0x1]  ;;  %v6819_v47 = vor.u32 %v6818_v23, %v6815_v43  ;;  %v7009_v38 = vrot.slane %v7007_v13, 4 }
 0x421   : > { %v6350_v21 = vadd.f32 %v12983_v58, %v3839_v25  ;;  %v7010_v37 = vrot.slane %v6451_v29, 5  ;;  %v6830_v56 = vrot.slane %v6829_v3, 4  ;;  %v10240_v25 = vld [vmem:[#allocation3 + $0xcc] sm:$0xff] }
 0x422   : > { %v8671_v34 = vadd.f32 %v8670_v49, %v8582_v36  ;;  %v6851_v49 = vld [vmem:[#allocation2 + $0xcc] sm:$0xe]  ;;  %v6820_v16 = vrot.slane %v6819_v47, 4 }
 0x423   : > { %v8672_v20 = vpop.f32.mrf.mxu3  ;;  %v9755_v15 = vrot.slane %v6851_v49, 9  ;;  %v7011_v11 = vsel %vm10562_vm7, %v7009_v38, %v7010_v37 }
 0x424   : > { %v8767_v12 = vadd.f32 %v8671_v34, %v12970_v2  ;;  %v8499_v5 = vpop.f32.mrf.mxu1  ;;  %v7187_v23 = vunpack.c.l.b16 %v7011_v11 }
 0x425   : > { %v7008_v4 = vsel %vm10562_vm7, %v9755_v15, %v7007_v13 }
 0x426   : > { %v8926_v52 = vadd.f32 %v8925_v27, %v8767_v12  ;;  %v8964_v26 = vmul.f32 %v8767_v12, %v8767_v12  ;;  %v8019_v53 = vpop.permute.xlu2 %8018  ;;  %v8264_v62 = vpop.f32.mrf.mxu0  ;;  %v6832_v27 = vshll.u32 %v6451_v29, 16 }
 0x427   : > { %v8583_v39 = vpop.f32.mrf.mxu2  ;;  %v8146_v7 = vsel %vm3265_vm14, %v10239_v50, %v8019_v53  ;;  %v8099_v40 = vpop.permute.xlu0 %8098  ;;  %v8498_v36 = vadd.f32 %v13603_v32, %v8264_v62 }
 0x428   : > { %v8995_v2 = vadd.f32 %v8994_v55, %v8964_v26  ;;  %v8584_v8 = vadd.f32 %v8583_v39, %v8495_v41  ;;  %8714 = vmatmul.bf16.gmra.mxu3 %v7202_v30  ;;  %v8179_v58 = vsel %vm3314_vm1, %v8146_v7, %v8099_v40  ;;  %v6834_v10 = vrot.slane %v6832_v27, 5 }
 0x429   : > { %v6825_v41 = vsel %vm10520_vm4, %v6820_v16, %v6824_v24 }
 0x42a   : > { %v8673_v19 = vadd.f32 %v8672_v20, %v8584_v8  ;;  %v6835_v43 = vsel %vm10520_vm4, %v6830_v56, %v6834_v10 }
 0x42b   : > { %v8675_v55 = vpop.f32.mrf.mxu3  ;;  %v7123_v26 = vunpack.c.l.b16 %v6835_v43 }
 0x42c   : > { %8625 = vmatmul.bf16.gmra.mxu2 %v7138_v63  ;;  %v8768_v57 = vadd.f32 %v8673_v19, %v6350_v21  ;;  %v8502_v18 = vpop.f32.mrf.mxu1 }
 0x42e   : > { %v10334_v33 = vpack.c.bf16 %v8768_v57, %v8767_v12  ;;  %v8927_v34 = vadd.f32 %v8926_v52, %v8768_v57  ;;  %v8965_v61 = vmul.f32 %v8768_v57, %v8768_v57  ;;  %9968 = vmatmul.msk.bf16.gmra.mxu0 %vm3354_vm2, %v8179_v58  ;;  %v8266_v20 = vpop.f32.mrf.mxu0  ;;  %8541 = vmatmul.bf16.gmra.mxu1 %v10200_v9  ;;  %v7186_v12 = vunpack.c.l.b16 %v7008_v4  ;;  %v8101_v62 = vpop.permute.xlu2 %8100 }
 0x42f   : > { %v8586_v42 = vpop.f32.mrf.mxu2  ;;  %v7122_v52 = vunpack.c.l.b16 %v6825_v41  ;;  %v8500_v50 = vadd.f32 %v8499_v5, %v8266_v20 }
 0x430   : > { %10405 = vst [vmem:[%s13482_s20 + $0x28] sm:$0xff] %v10334_v33   ;;  %v8996_v51 = vadd.f32 %v8995_v2, %v8965_v61  ;;  %v8587_v32 = vadd.f32 %v8586_v42, %v8498_v36  ;;  %v7203_v29 = vpack.c.b16 %v7187_v23, %v7186_v12 }
 0x431   : > { %v7139_v24 = vpack.c.b16 %v7123_v26, %v7122_v52 }
 0x432   : > { %v8676_v30 = vadd.f32 %v8675_v55, %v8587_v32 }
 0x433   : > { %v8677_v59 = vpop.f32.mrf.mxu3 }
 0x434   : > { %v8769_v28 = vadd.f32 %v8676_v30, %v13020_v1  ;;  %v8504_v49 = vpop.f32.mrf.mxu1 }
 0x436   : > { %v8928_v13 = vadd.f32 %v8927_v34, %v8769_v28  ;;  %v8966_v46 = vmul.f32 %v8769_v28, %v8769_v28 }
 0x437   : > { %v8588_v39 = vpop.f32.mrf.mxu2  ;;  %v8021_v14 = vpop.permute.xlu1 %8020 }
 0x438   : > { %v8997_v2 = vadd.f32 %v8996_v51, %v8966_v46  ;;  %v8589_v63 = vadd.f32 %v8588_v39, %v8500_v50  ;;  %8719 = vmatmul.bf16.gmra.mxu3 %v7203_v29  ;;  %v8269_v53 = vpop.f32.mrf.mxu0  ;;  %v8149_v1 = vsel %vm3265_vm14, %v10240_v25, %v8021_v14 }
 0x439   : > { %v8503_v21 = vadd.f32 %v8502_v18, %v8269_v53  ;;  %v8181_v3 = vsel %vm3314_vm1, %v8149_v1, %v8101_v62 }
 0x43a   : > { %v8678_v8 = vadd.f32 %v8677_v59, %v8589_v63 }
 0x43b   : > { %v8680_v47 = vpop.f32.mrf.mxu3 }
 0x43c   : > { %8630 = vmatmul.bf16.gmra.mxu2 %v7139_v24  ;;  %v8770_v5 = vadd.f32 %v8678_v8, %v13034_v44  ;;  %v8507_v27 = vpop.f32.mrf.mxu1 }
 0x43e   : > { %v10339_v15 = vpack.c.bf16 %v8770_v5, %v8769_v28  ;;  %v8929_v19 = vadd.f32 %v8928_v13, %v8770_v5  ;;  %v8967_v7 = vmul.f32 %v8770_v5, %v8770_v5  ;;  %9969 = vmatmul.msk.bf16.gmra.mxu0 %vm3354_vm2, %v8181_v3 }
 0x43f   : > { %v8591_v40 = vpop.f32.mrf.mxu2 }
 0x440   : > { %10406 = vst [vmem:[%s13482_s20 + $0x30] sm:$0xff] %v10339_v15   ;;  %v8998_v38 = vadd.f32 %v8997_v2, %v8967_v7  ;;  %v8592_v37 = vadd.f32 %v8591_v40, %v8503_v21  ;;  %v8271_v55 = vpop.f32.mrf.mxu0 }
 0x441   : > { %v8505_v44 = vadd.f32 %v8504_v49, %v8271_v55 }
 0x442   : > { %v8681_v57 = vadd.f32 %v8680_v47, %v8592_v37 }
 0x443   : > { %v8682_v16 = vpop.f32.mrf.mxu3 }
 0x444   : > { %v8771_v36 = vadd.f32 %v8681_v57, %v13061_v60  ;;  %v8509_v9 = vpop.f32.mrf.mxu1 }
 0x446   : > { %v8930_v58 = vadd.f32 %v8929_v19, %v8771_v36  ;;  %v8968_v56 = vmul.f32 %v8771_v36, %v8771_v36 }
 0x447   : > { %v8593_v10 = vpop.f32.mrf.mxu2 }
 0x448   : > { %v8999_v18 = vadd.f32 %v8998_v38, %v8968_v56  ;;  %v8594_v4 = vadd.f32 %v8593_v10, %v8505_v44  ;;  %v8274_v34 = vpop.f32.mrf.mxu0  ;;  %v13825_v10 = vld [vmem:[#allocation36_spill] sm:$0xff] }
 0x449   : > { %v8508_v42 = vadd.f32 %v8507_v27, %v8274_v34 }
 0x44a   : > { %v8683_v33 = vadd.f32 %v8682_v16, %v8594_v4 }
 0x44b   : > { %v8685_v11 = vpop.f32.mrf.mxu3 }
 0x44c   : > { %v8772_v61 = vadd.f32 %v8683_v33, %v13078_v22  ;;  %v8512_v51 = vpop.f32.mrf.mxu1 }
 0x44e   : > { %v10344_v32 = vpack.c.bf16 %v8772_v61, %v8771_v36  ;;  %v8931_v20 = vadd.f32 %v8930_v58, %v8772_v61  ;;  %v8969_v41 = vmul.f32 %v8772_v61, %v8772_v61 }
 0x44f   : > { %v8596_v60 = vpop.f32.mrf.mxu2 }
 0x450   : > { %10407 = vst [vmem:[%s13482_s20 + $0x38] sm:$0xff] %v10344_v32   ;;  %v9000_v43 = vadd.f32 %v8999_v18, %v8969_v41  ;;  %v8597_v12 = vadd.f32 %v8596_v60, %v8508_v42  ;;  %v8276_v30 = vpop.f32.mrf.mxu0  ;;  %v13826_v18 = vld [vmem:[#allocation34_spill] sm:$0xff] }
 0x451   : > { %v8510_v52 = vadd.f32 %v8509_v9, %v8276_v30  ;;  %v3686_v4 = vadd.f32 %v13826_v18, %v13825_v10  ;;  %v13827_v42 = vld [vmem:[#allocation38_spill] sm:$0xff]  ;;  %v13835_v10 = vld [vmem:[#allocation43_spill] sm:$0xff] }
 0x452   : > { %v8686_v23 = vadd.f32 %v8685_v11, %v8597_v12 }
 0x453   : > { %v8687_v59 = vpop.f32.mrf.mxu3 }
 0x454   : > { %v8773_v28 = vadd.f32 %v8686_v23, %v13097_v17  ;;  %v8514_v26 = vpop.f32.mrf.mxu1  ;;  %v13828_v23 = vld [vmem:[#allocation35_spill] sm:$0xff] }
 0x456   : > { %v8932_v50 = vadd.f32 %v8931_v20, %v8773_v28  ;;  %v8970_v22 = vmul.f32 %v8773_v28, %v8773_v28 }
 0x457   : > { %v8598_v29 = vpop.f32.mrf.mxu2 }
 0x458   : > { %v9001_v49 = vadd.f32 %v9000_v43, %v8970_v22  ;;  %v8599_v13 = vadd.f32 %v8598_v29, %v8510_v52  ;;  %v8279_v25 = vpop.f32.mrf.mxu0 }
 0x459   : > { %v8513_v24 = vadd.f32 %v8512_v51, %v8279_v25  ;;  %v3775_v51 = vadd.f32 %v13827_v42, %v3686_v4  ;;  %v13836_v42 = vld [vmem:[#allocation46_spill] sm:$0xff] }
 0x45a   : > { %v8688_v46 = vadd.f32 %v8687_v59, %v8599_v13 }
 0x45b   : > { %v8690_v2 = vpop.f32.mrf.mxu3  ;;  %v3864_v30 = vadd.f32 %v13828_v23, %v3775_v51  ;;  %v13838_v23 = vld [vmem:[#allocation45_spill] sm:$0xff] }
 0x45c   : > { %v8774_v39 = vadd.f32 %v8688_v46, %v13129_v0  ;;  %v8517_v63 = vpop.f32.mrf.mxu1 }
 0x45d   : > { %v6360_v52 = vadd.f32 %v13208_v31, %v3864_v30 }
 0x45e   : > { %v10349_v14 = vpack.c.bf16 %v8774_v39, %v8773_v28  ;;  %v8933_v8 = vadd.f32 %v8932_v50, %v8774_v39  ;;  %v8971_v53 = vmul.f32 %v8774_v39, %v8774_v39 }
 0x45f   : > { %v8601_v17 = vpop.f32.mrf.mxu2 }
 0x460   : > { %10408 = vst [vmem:[%s13482_s20 + $0x40] sm:$0xff] %v10349_v14   ;;  %v9002_v1 = vadd.f32 %v9001_v49, %v8971_v53  ;;  %v8602_v62 = vadd.f32 %v8601_v17, %v8513_v24  ;;  %v8281_v47 = vpop.f32.mrf.mxu0  ;;  %v13830_v24 = vld [vmem:[#allocation39_spill] sm:$0xff] }
 0x461   : > { %v8515_v27 = vadd.f32 %v8514_v26, %v8281_v47 }
 0x462   : > { %v8691_v5 = vadd.f32 %v8690_v2, %v8602_v62  ;;  %v13829_v2 = vld [vmem:[#allocation40_spill] sm:$0xff] }
 0x463   : > { %v8692_v3 = vpop.f32.mrf.mxu3 }
 0x464   : > { %v8775_v21 = vadd.f32 %v8691_v5, %v13153_v54  ;;  %v8519_v15 = vpop.f32.mrf.mxu1 }
 0x466   : > { %v8934_v19 = vadd.f32 %v8933_v8, %v8775_v21  ;;  %v8972_v0 = vmul.f32 %v8775_v21, %v8775_v21 }
 0x467   : > { %v8603_v7 = vpop.f32.mrf.mxu2 }
 0x468   : > { %v9003_v40 = vadd.f32 %v9002_v1, %v8972_v0  ;;  %v8604_v38 = vadd.f32 %v8603_v7, %v8515_v27  ;;  %v13831_v1 = vld [vmem:[#allocation42_spill] sm:$0xff] }
 0x46a   : > { %v8693_v37 = vadd.f32 %v8692_v3, %v8604_v38  ;;  %v8284_v57 = vpop.f32.mrf.mxu0  ;;  %v13833_v38 = vld [vmem:[#allocation5_spill] sm:$0xff] }
 0x46b   : > { %v8695_v36 = vpop.f32.mrf.mxu3  ;;  %v8518_v16 = vadd.f32 %v8517_v63, %v8284_v57  ;;  %v3691_v63 = vadd.f32 %v13830_v24, %v13829_v2  ;;  %v13840_v24 = vld [vmem:[#allocation48_spill] sm:$0xff] }
 0x46c   : > { %v8776_v55 = vadd.f32 %v8693_v37, %v13172_v45  ;;  %v8522_v44 = vpop.f32.mrf.mxu1 }
 0x46d   : > { %v3780_v31 = vadd.f32 %v13831_v1, %v3691_v63  ;;  %v13841_v63 = vld [vmem:[#allocation47_spill] sm:$0xff]  ;;  %v13842_v1 = vld [vmem:[#allocation50_spill] sm:$0xff] }
 0x46e   : > { %v10354_v9 = vpack.c.bf16 %v8776_v55, %v8775_v21  ;;  %v8935_v58 = vadd.f32 %v8934_v19, %v8776_v55  ;;  %v8973_v56 = vmul.f32 %v8776_v55, %v8776_v55 }
 0x46f   : > { %v8606_v54 = vpop.f32.mrf.mxu2 }
 0x470   : > { %10409 = vst [vmem:[%s13482_s20 + $0x48] sm:$0xff] %v10354_v9   ;;  %v9004_v33 = vadd.f32 %v9003_v40, %v8973_v56  ;;  %v8607_v34 = vadd.f32 %v8606_v54, %v8518_v16  ;;  %v13834_v54 = vld [vmem:[#allocation44_spill] sm:$0xff] }
 0x471   : > { %v3696_v18 = vadd.f32 %v13835_v10, %v13834_v54 }
 0x472   : > { %v8696_v61 = vadd.f32 %v8695_v36, %v8607_v34  ;;  %v8286_v11 = vpop.f32.mrf.mxu0 }
 0x473   : > { %v8697_v45 = vpop.f32.mrf.mxu3  ;;  %v8520_v20 = vadd.f32 %v8519_v15, %v8286_v11  ;;  %v13832_v15 = vld [vmem:[#allocation41_spill] sm:$0xff]  ;;  %v3785_v51 = vadd.f32 %v13836_v42, %v3696_v18 }
 0x474   : > { %v8777_v32 = vadd.f32 %v8696_v61, %v13190_v48  ;;  %v8524_v41 = vpop.f32.mrf.mxu1  ;;  %v3869_v19 = vadd.f32 %v13832_v15, %v3780_v31 }
 0x475   : > { %v3874_v30 = vadd.f32 %v13838_v23, %v3785_v51 }
 0x476   : > { %v8936_v60 = vadd.f32 %v8935_v58, %v8777_v32  ;;  %v8974_v43 = vmul.f32 %v8777_v32, %v8777_v32  ;;  %v6362_v37 = vadd.f32 %v13833_v38, %v3869_v19 }
 0x477   : > { %v8608_v12 = vpop.f32.mrf.mxu2 }
 0x478   : > { %v9005_v28 = vadd.f32 %v9004_v33, %v8974_v43  ;;  %v8609_v59 = vadd.f32 %v8608_v12, %v8520_v20 }
 0x47a   : > { %v8698_v26 = vadd.f32 %v8697_v45, %v8609_v59  ;;  %v8289_v50 = vpop.f32.mrf.mxu0 }
 0x47b   : > { %v8700_v29 = vpop.f32.mrf.mxu3  ;;  %v8523_v49 = vadd.f32 %v8522_v44, %v8289_v50 }
 0x47c   : > { %v8778_v22 = vadd.f32 %v8698_v26, %v6360_v52  ;;  %v8527_v39 = vpop.f32.mrf.mxu1  ;;  %v13839_v52 = vld [vmem:[#allocation31_spill] sm:$0xff] }
 0x47d   : > { %v6364_v26 = vadd.f32 %v13839_v52, %v3874_v30  ;;  %v13847_v30 = vld [vmem:[#allocation51_spill] sm:$0xff] }
 0x47e   : > { %v10359_v13 = vpack.c.bf16 %v8778_v22, %v8777_v32  ;;  %v8937_v48 = vadd.f32 %v8936_v60, %v8778_v22  ;;  %v8975_v46 = vmul.f32 %v8778_v22, %v8778_v22  ;;  %v13837_v32 = vld [vmem:[#allocation30_spill] sm:$0xff] }
 0x47f   : > { %v8611_v25 = vpop.f32.mrf.mxu2 }
 0x480   : > { %10410 = vst [vmem:[%s13482_s20 + $0x50] sm:$0xff] %v10359_v13   ;;  %v9006_v14 = vadd.f32 %v9005_v28, %v8975_v46  ;;  %v8612_v8 = vadd.f32 %v8611_v25, %v8523_v49 }
 0x482   : > { %v8701_v53 = vadd.f32 %v8700_v29, %v8612_v8  ;;  %v8291_v17 = vpop.f32.mrf.mxu0 }
 0x483   : > { %v8702_v5 = vpop.f32.mrf.mxu3  ;;  %v8525_v47 = vadd.f32 %v8524_v41, %v8291_v17 }
 0x484   : > { %v8779_v62 = vadd.f32 %v8701_v53, %v13236_v6  ;;  %v8529_v40 = vpop.f32.mrf.mxu1 }
 0x486   : > { %v8938_v21 = vadd.f32 %v8937_v48, %v8779_v62  ;;  %v8976_v3 = vmul.f32 %v8779_v62, %v8779_v62 }
 0x487   : > { %v8613_v27 = vpop.f32.mrf.mxu2 }
 0x488   : > { %v9007_v0 = vadd.f32 %v9006_v14, %v8976_v3  ;;  %v8614_v7 = vadd.f32 %v8613_v27, %v8525_v47  ;;  %v3701_v14 = vadd.f32 %v13841_v63, %v13840_v24 }
 0x48a   : > { %v8703_v57 = vadd.f32 %v8702_v5, %v8614_v7  ;;  %v8294_v55 = vpop.f32.mrf.mxu0  ;;  %v3790_v31 = vadd.f32 %v13842_v1, %v3701_v14  ;;  %v13844_v7 = vld [vmem:[#allocation49_spill] sm:$0xff] }
 0x48b   : > { %v8705_v16 = vpop.f32.mrf.mxu3  ;;  %v8528_v44 = vadd.f32 %v8527_v39, %v8294_v55 }
 0x48c   : > { %v8780_v36 = vadd.f32 %v8703_v57, %v6362_v37  ;;  %v8532_v11 = vpop.f32.mrf.mxu1  ;;  %v13845_v57 = vld [vmem:[#allocation33_spill] sm:$0xff] }
 0x48e   : > { %v10364_v9 = vpack.c.bf16 %v8780_v36, %v8779_v62  ;;  %v8939_v6 = vadd.f32 %v8938_v21, %v8780_v36  ;;  %v8977_v58 = vmul.f32 %v8780_v36, %v8780_v36  ;;  %v13843_v62 = vld [vmem:[#allocation32_spill] sm:$0xff] }
 0x48f   : > { %v8616_v56 = vpop.f32.mrf.mxu2 }
 0x490   : > { %10411 = vst [vmem:[%s13482_s20 + $0x58] sm:$0xff] %v10364_v9   ;;  %v9008_v4 = vadd.f32 %v9007_v0, %v8977_v58  ;;  %v8617_v33 = vadd.f32 %v8616_v56, %v8528_v44 }
 0x492   : > { %v8706_v34 = vadd.f32 %v8705_v16, %v8617_v33  ;;  %v8296_v61 = vpop.f32.mrf.mxu0 }
 0x493   : > { %v8707_v20 = vpop.f32.mrf.mxu3  ;;  %v8530_v41 = vadd.f32 %v8529_v40, %v8296_v61  ;;  %v3879_v40 = vadd.f32 %v13844_v7, %v3790_v31  ;;  %v13846_v61 = vld [vmem:[#allocation37_spill] sm:$0xff] }
 0x494   : > { %v8781_v45 = vadd.f32 %v8706_v34, %v13837_v32  ;;  %v8534_v13 = vpop.f32.mrf.mxu1 }
 0x495   : > { %v6366_v55 = vadd.f32 %v13845_v57, %v3879_v40 }
 0x496   : > { %v8940_v60 = vadd.f32 %v8939_v6, %v8781_v45  ;;  %v8978_v43 = vmul.f32 %v8781_v45, %v8781_v45 }
 0x497   : > { %v8618_v12 = vpop.f32.mrf.mxu2 }
 0x498   : > { %v9009_v28 = vadd.f32 %v9008_v4, %v8978_v43  ;;  %v8619_v59 = vadd.f32 %v8618_v12, %v8530_v41 }
 0x49a   : > { %v8708_v50 = vadd.f32 %v8707_v20, %v8619_v59 }
 0x49b   : > { %v8710_v29 = vpop.f32.mrf.mxu3  ;;  %v8299_v49 = vpop.f32.mrf.mxu0 }
 0x49c   : > { %v8782_v22 = vadd.f32 %v8708_v50, %v6364_v26  ;;  %v8533_v39 = vadd.f32 %v8532_v11, %v8299_v49  ;;  %v8537_v0 = vpop.f32.mrf.mxu1 }
 0x49e   : > { %v10369_v48 = vpack.c.bf16 %v8782_v22, %v8781_v45  ;;  %v8941_v46 = vadd.f32 %v8940_v60, %v8782_v22  ;;  %v8979_v25 = vmul.f32 %v8782_v22, %v8782_v22 }
 0x49f   : > { %v8621_v2 = vpop.f32.mrf.mxu2 }
 0x4a0   : > { %10412 = vst [vmem:[%s13482_s20 + $0x60] sm:$0xff] %v10369_v48   ;;  %v9010_v8 = vadd.f32 %v9009_v28, %v8979_v25  ;;  %v8622_v53 = vadd.f32 %v8621_v2, %v8533_v39  ;;  %v13848_v25 = vld [vmem:[#allocation52_spill] sm:$0xff] }
 0x4a2   : > { %v8711_v17 = vadd.f32 %v8710_v29, %v8622_v53 }
 0x4a3   : > { %v8712_v47 = vpop.f32.mrf.mxu3  ;;  %v8301_v21 = vpop.f32.mrf.mxu0 }
 0x4a4   : > { %v8783_v5 = vadd.f32 %v8711_v17, %v13843_v62  ;;  %v8535_v15 = vadd.f32 %v8534_v13, %v8301_v21  ;;  %v8539_v33 = vpop.f32.mrf.mxu1 }
 0x4a6   : > { %v8942_v3 = vadd.f32 %v8941_v46, %v8783_v5  ;;  %v8980_v27 = vmul.f32 %v8783_v5, %v8783_v5 }
 0x4a7   : > { %v8623_v19 = vpop.f32.mrf.mxu2 }
 0x4a8   : > { %v9011_v38 = vadd.f32 %v9010_v8, %v8980_v27  ;;  %v8624_v37 = vadd.f32 %v8623_v19, %v8535_v15 }
 0x4aa   : > { %v8713_v36 = vadd.f32 %v8712_v47, %v8624_v37 }
 0x4ab   : > { %v8715_v44 = vpop.f32.mrf.mxu3  ;;  %v8304_v9 = vpop.f32.mrf.mxu0 }
 0x4ac   : > { %v8784_v16 = vadd.f32 %v8713_v36, %v6366_v55  ;;  %v8538_v54 = vadd.f32 %v8537_v0, %v8304_v9  ;;  %v8542_v23 = vpop.f32.mrf.mxu1 }
 0x4ae   : > { %v10374_v6 = vpack.c.bf16 %v8784_v16, %v8783_v5  ;;  %v8943_v58 = vadd.f32 %v8942_v3, %v8784_v16  ;;  %v8981_v56 = vmul.f32 %v8784_v16, %v8784_v16 }
 0x4af   : > { %v8626_v10 = vpop.f32.mrf.mxu2 }
 0x4b0   : > { %10413 = vst [vmem:[%s13482_s20 + $0x68] sm:$0xff] %v10374_v6   ;;  %v9012_v18 = vadd.f32 %v9011_v38, %v8981_v56  ;;  %v8627_v4 = vadd.f32 %v8626_v10, %v8538_v54 }
 0x4b2   : > { %v8716_v34 = vadd.f32 %v8715_v44, %v8627_v4 }
 0x4b3   : > { %v8717_v42 = vpop.f32.mrf.mxu3  ;;  %v8306_v51 = vpop.f32.mrf.mxu0 }
 0x4b4   : > { %v8785_v11 = vadd.f32 %v8716_v34, %v13846_v61  ;;  %v8540_v20 = vadd.f32 %v8539_v33, %v8306_v51  ;;  %v8544_v2 = vpop.f32.mrf.mxu1 }
 0x4b6   : > { %v8944_v32 = vadd.f32 %v8943_v58, %v8785_v11  ;;  %v8982_v45 = vmul.f32 %v8785_v11, %v8785_v11 }
 0x4b7   : > { %v8628_v41 = vpop.f32.mrf.mxu2 }
 0x4b8   : > { %v9013_v60 = vadd.f32 %v9012_v18, %v8982_v45  ;;  %v8629_v43 = vadd.f32 %v8628_v41, %v8540_v20 }
 0x4ba   : > { %v8718_v12 = vadd.f32 %v8717_v42, %v8629_v43 }
 0x4bb   : > { %v8309_v59 = vpop.f32.mrf.mxu0  ;;  %v8720_v49 = vpop.f32.mrf.mxu3 }
 0x4bc   : > { %v8786_v28 = vadd.f32 %v8718_v12, %v13847_v30  ;;  %v8543_v22 = vadd.f32 %v8542_v23, %v8309_v59 }
 0x4be   : > { %v10379_v52 = vpack.c.bf16 %v8786_v28, %v8785_v11  ;;  %v8945_v26 = vadd.f32 %v8944_v32, %v8786_v28  ;;  %v8983_v50 = vmul.f32 %v8786_v28, %v8786_v28 }
 0x4bf   : > { %v8631_v29 = vpop.f32.mrf.mxu2 }
 0x4c0   : > { %10414 = vst [vmem:[%s13482_s20 + $0x70] sm:$0xff] %v10379_v52   ;;  %v9014_v13 = vadd.f32 %v9013_v60, %v8983_v50  ;;  %v8632_v48 = vadd.f32 %v8631_v29, %v8543_v22 }
 0x4c2   : > { %v8721_v46 = vadd.f32 %v8720_v49, %v8632_v48 }
 0x4c3   : > { %v8311_v24 = vpop.f32.mrf.mxu0  ;;  %v8722_v31 = vpop.f32.mrf.mxu3 }
 0x4c4   : > { %v8787_v39 = vadd.f32 %v8721_v46, %v13848_v25  ;;  %v8545_v8 = vadd.f32 %v8544_v2, %v8311_v24 }
 0x4c6   : > { %v8946_v63 = vadd.f32 %v8945_v26, %v8787_v39  ;;  %v8984_v14 = vmul.f32 %v8787_v39, %v8787_v39 }
 0x4c7   : > { %v8633_v53 = vpop.f32.mrf.mxu2 }
 0x4c8   : > { %v9015_v17 = vadd.f32 %v9014_v13, %v8984_v14  ;;  %v8634_v1 = vadd.f32 %v8633_v53, %v8545_v8 }
 0x4ca   : > { %v8723_v62 = vadd.f32 %v8722_v31, %v8634_v1 }
 0x4cc   : > { %v8788_v5 = vadd.f32 %v8723_v62, %v13438_v35 }
 0x4ce   : > { %v10384_v47 = vpack.c.bf16 %v8788_v5, %v8787_v39  ;;  %v8947_v21 = vadd.f32 %v8946_v63, %v8788_v5  ;;  %v8985_v3 = vmul.f32 %v8788_v5, %v8788_v5 }
 0x4d0   : > { %10415 = vst [vmem:[%s13482_s20 + $0x78] sm:$0xff] %v10384_v47   ;;  %v8948_v27 = vrot.slane %v8947_v21, 4  ;;  %v9016_v15 = vadd.f32 %v9015_v17, %v8985_v3 }
 0x4d2   : > { %v8949_v19 = vadd.f32 %v8948_v27, %v8947_v21  ;;  %v9017_v0 = vrot.slane %v9016_v15, 4 }
 0x4d4   : > { %v8950_v7 = vrot.slane %v8949_v19, 2  ;;  %v9018_v40 = vadd.f32 %v9017_v0, %v9016_v15 }
 0x4d6   : > { %v8951_v38 = vadd.f32 %v8950_v7, %v8949_v19  ;;  %v9019_v37 = vrot.slane %v9018_v40, 2 }
 0x4d8   : > { %v8952_v57 = vrot.slane %v8951_v38, 1  ;;  %v9020_v55 = vadd.f32 %v9019_v37, %v9018_v40 }
 0x4da   : > { %v9021_v36 = vrot.slane %v9020_v55, 1  ;;  %v8953_v16 = vadd.f32 %v8952_v57, %v8951_v38 }
 0x4dc   : > { %v9022_v44 = vadd.f32 %v9021_v36, %v9020_v55 }
 0x4de   : > { %v9024_v35 = vsel %vm896_vm5, %v8953_v16, %v9022_v44 }
 0x4df   : > { %v9026_v9 = vsel %vm9025_vm0, %v9024_v35, 0.0 }
 0x4e0   : > { %9027 = vst [vmem:[%s309_s23] sm:$0xff] %v9026_v9 }
 0x4e1 PF: > { %s18_s24 = sadd.s32 1, %s10442_s24  }
 0x4e2   : > { %p15_p4 = scmp.ge.s32.totalorder %s18_s24, 4  }
 0x4e4   :  { %17 = sbr.rel (!%p15_p4) target bundleno = 1 (0x1), region = 97 }

</bundles_post_ra>
